<compile_context>
chip_gen: v7x
topology: tpu7x:2x2x1
jax: 0.10.0
libtpu: 0.0.40
codegen_flags: <defaults>
</compile_context>

<pallas_src>
import math

import jax
import jax.numpy as jnp
from jax import lax
from jax.experimental import pallas as pl
from jax.experimental.pallas import tpu as pltpu

# keep f32 matmul passes on both the XLA reference and the Mosaic kernel
jax.config.update("jax_default_matmul_precision", "highest")

# ----------------------------- hyper parameters ------------------------------
B = 2            # batch
T = 16           # sequence length
F = 32           # model dim (ff_cfg.input_dim)
FF = 64          # feed-forward hidden dim
H = 4            # attention heads
DH = F // H      # per-head dim
W = 4            # GlowTTS relative-attention window
NR = 2 * W + 1   # number of relative positions
K = 7            # depthwise conv kernel size
PAD = (K - 1) // 2
LN_EPS = 1e-5
BN_EPS = 1e-5

# rows of the packed [NV, F] vector slab
(V_FF1_LN_G, V_FF1_LN_B, V_FF1_B2,
 V_MH_LN_G, V_MH_LN_B, V_BQ, V_BK, V_BV, V_BO,
 V_CV_LN_G, V_CV_LN_B, V_DW_B, V_BN_SCALE, V_BN_SHIFT, V_PW2_B,
 V_FF2_LN_G, V_FF2_LN_B, V_FF2_B2,
 V_FIN_LN_G, V_FIN_LN_B,
 V_DW0) = range(21)
NV = V_DW0 + K            # 27
WIDE = max(FF, 2 * F)     # width of the "wide" bias slab


# ------------------------- shared forward math (jnp only) ----------------------
def _forward_math(x3, vrow, vcol, vec, wvec, w_ffin, w_ffout, w_att, w_conv, erv):
    """One ConformerTTSMHSABlockV1 forward on a [nb, T, F] slab.

    Pure jnp/lax math, shared by the Pallas kernel body and the XLA reference check.
    """
    nb = x3.shape[0]
    x = x3.reshape(nb * T, F)

    def vf(i):                       # [1, F] row of the packed vector slab
        return vec[i:i + 1, :]

    def ln(y, gi, bi):
        m = jnp.mean(y, axis=-1, keepdims=True)
        c = y - m
        var = jnp.mean(c * c, axis=-1, keepdims=True)
        return c * lax.rsqrt(var + LN_EPS) * vf(gi) + vf(bi)

    def silu(y):
        return y * jax.nn.sigmoid(y)

    def ff(y, gi, bi, w1, b1, w2, b2):   # ConformerPositionwiseFeedForwardV1 (dropout = identity)
        y = ln(y, gi, bi)
        h = silu(jnp.dot(y, w1, preferred_element_type=jnp.float32) + b1)
        return jnp.dot(h, w2, preferred_element_type=jnp.float32) + b2

    # ---------------- ff1: x = 0.5 * FF1(x) + x ----------------
    x = 0.5 * ff(x, V_FF1_LN_G, V_FF1_LN_B,
                 w_ffin[:, 0:FF], wvec[0:1, 0:FF],
                 w_ffout[:, 0:F], vf(V_FF1_B2)) + x

    # -------- MHSA: GlowTTS windowed relative attention (pre-LN) --------
    # TODO(synk): GlowTTSMultiHeadAttentionV1 wrapper internals assumed
    # (pre-LayerNorm -> GlowTTS MultiHeadAttention, heads_share rel embeddings -> dropout).
    y = ln(x, V_MH_LN_G, V_MH_LN_B)
    qkv = jnp.dot(y, w_att[:, 0:3 * F], preferred_element_type=jnp.float32)
    q = qkv[:, 0:F] + vf(V_BQ)            # wq / bq already folded with 1/sqrt(DH)
    k = qkv[:, F:2 * F] + vf(V_BK)
    v = qkv[:, 2 * F:3 * F] + vf(V_BV)
    # relative logits for ALL heads with one matmul against the block-diagonal rel-key slab:
    # rel_all[:, h*NR + r] = sum_d q_scaled[:, h*DH + d] * emb_rel_k[r, d]
    rel_all = jnp.dot(q, w_att[:, 4 * F:4 * F + H * NR],
                      preferred_element_type=jnp.float32)

    q3 = q.reshape(nb, T, F)
    k3 = k.reshape(nb, T, F)
    v3 = v.reshape(nb, T, F)
    rel3 = rel_all.reshape(nb, T, H * NR)

    # band masks band[r][i, j] = 1 iff j - i == r - W; built once, reused for the
    # relative-score scatter and the relative-value diagonal extraction.
    rows = lax.broadcasted_iota(jnp.int32, (T, T), 0)
    cols = lax.broadcasted_iota(jnp.int32, (T, T), 1)
    diff = cols - rows
    bands = [(diff == (r - W)).astype(jnp.float32)[None, :, :] for r in range(NR)]
    erv_rows = [erv[r][None, None, :] for r in range(NR)]        # hoisted broadcasts

    # pair mask: attend iff both query and key positions are inside the sequence
    ok = (vrow * vcol) > 0.5                                     # [nb, T, T], hoisted

    heads = []
    for h in range(H):                                           # static unroll over heads
        qh = q3[:, :, h * DH:(h + 1) * DH]
        kh = k3[:, :, h * DH:(h + 1) * DH]
        vh = v3[:, :, h * DH:(h + 1) * DH]
        relh = rel3[:, :, h * NR:(h + 1) * NR]                   # [nb, T, NR]
        s = jnp.einsum('btd,bsd->bts', qh, kh, preferred_element_type=jnp.float32)
        for r in range(NR):                                      # scatter rel logits onto |j-i|<=W
            s = s + relh[:, :, r:r + 1] * bands[r]
        s = jnp.where(ok, s, -1e4)                               # masked_fill(mask == 0, -1e4)
        m = jnp.max(s, axis=-1, keepdims=True)
        e = jnp.exp(s - m)
        p = e / jnp.sum(e, axis=-1, keepdims=True)
        out_h = jnp.einsum('bts,bsd->btd', p, vh, preferred_element_type=jnp.float32)
        for r in range(NR):                                      # rel values: + p[i, i+r-W] * erv[r]
            wr = jnp.sum(p * bands[r], axis=-1, keepdims=True)   # diagonal extraction
            out_h = out_h + wr * erv_rows[r]
        heads.append(out_h)
    attn = jnp.concatenate(heads, axis=-1).reshape(nb * T, F)
    attn = jnp.dot(attn, w_att[:, 3 * F:4 * F],
                   preferred_element_type=jnp.float32) + vf(V_BO)
    x = attn + x

    # ---------------- conv module: x = Conv(x) + x ----------------
    y = ln(x, V_CV_LN_G, V_CV_LN_B)
    y = jnp.dot(y, w_conv[:, 0:2 * F], preferred_element_type=jnp.float32) \
        + wvec[2:3, 0:2 * F]
    y = y[:, 0:F] * jax.nn.sigmoid(y[:, F:2 * F])                # GLU
    # depthwise conv along T: zero-pad + static shifted slices (no band matmuls)
    y3 = y.reshape(nb, T, F)
    zpad = jnp.zeros((nb, PAD, F), jnp.float32)
    yp = jnp.concatenate([zpad, y3, zpad], axis=1)               # [nb, T + 2*PAD, F]
    dw_rows = [vec[V_DW0 + kk][None, None, :] for kk in range(K)]
    acc = jnp.zeros((nb, T, F), jnp.float32)
    for kk in range(K):
        acc = acc + yp[:, kk:kk + T, :] * dw_rows[kk]
    y = acc.reshape(nb * T, F) + vf(V_DW_B)
    y = y * vf(V_BN_SCALE) + vf(V_BN_SHIFT)      # BatchNorm1d eval (fresh running stats folded)
    y = silu(y)
    y = jnp.dot(y, w_conv[:, 2 * F:3 * F], preferred_element_type=jnp.float32) + vf(V_PW2_B)
    x = y + x

    # ---------------- ff2 + final layer norm ----------------
    x = 0.5 * ff(x, V_FF2_LN_G, V_FF2_LN_B,
                 w_ffin[:, FF:2 * FF], wvec[1:2, 0:FF],
                 w_ffout[:, F:2 * F], vf(V_FF2_B2)) + x
    return ln(x, V_FIN_LN_G, V_FIN_LN_B).reshape(nb, T, F)


# --------------------------------- kernel -------------------------------------
def conformer_block_kernel(x_ref, vrow_ref, vcol_ref, vecs_ref, wvec_ref,
                           w_ffin_ref, w_ffout_ref, w_att_ref, w_conv_ref,
                           erv_ref, o_ref):
    o_ref[...] = _forward_math(
        x_ref[...], vrow_ref[...], vcol_ref[...],
        vecs_ref[...], wvec_ref[...], w_ffin_ref[...], w_ffout_ref[...],
        w_att_ref[...], w_conv_ref[...], erv_ref[...])


# ------------------------------ parameter setup -------------------------------
def init_params(key):
    keys = iter(jax.random.split(key, 24))

    def nrm(shape, scale):
        return jax.random.normal(next(keys), shape, jnp.float32) * scale

    def linear(din, dout):
        return nrm((din, dout), 1.0 / math.sqrt(din)), jnp.zeros((dout,), jnp.float32)

    ones_f = jnp.ones((F,), jnp.float32)
    zeros_f = jnp.zeros((F,), jnp.float32)

    # feed-forward modules
    ff1_w1, ff1_b1 = linear(F, FF)
    ff1_w2, ff1_b2 = linear(FF, F)
    ff2_w1, ff2_b1 = linear(F, FF)
    ff2_w2, ff2_b2 = linear(FF, F)

    # MHSA projections (1x1 convs == linears); fold 1/sqrt(DH) query scale into wq/bq
    wq, bq = linear(F, F)
    wk, bk = linear(F, F)
    wv, bv = linear(F, F)
    wo, bo = linear(F, F)
    scale = 1.0 / math.sqrt(DH)
    wq_s, bq_s = wq * scale, bq * scale

    # GlowTTS relative embeddings (heads_share=True): [2W+1, DH]
    emb_rel_k = nrm((NR, DH), DH ** -0.5)
    emb_rel_v = nrm((NR, DH), DH ** -0.5)
    # block-diagonal rel-key slab so rel logits for all heads come from one matmul:
    # erk_blk[h*DH + d, h*NR + r] = emb_rel_k[r, d]
    erk_blk = jnp.zeros((F, H * NR), jnp.float32)
    for h in range(H):
        erk_blk = erk_blk.at[h * DH:(h + 1) * DH, h * NR:(h + 1) * NR].set(emb_rel_k.T)

    # conv module
    pw1_w, pw1_b = linear(F, 2 * F)
    dw_w = nrm((K, F), 1.0 / math.sqrt(K))       # dw_w[k, f] == torch depthwise weight[f, 0, k]
    dw_b = jnp.zeros((F,), jnp.float32)
    pw2_w, pw2_b = linear(F, F)
    bn_gamma = 1.0 + 0.1 * nrm((F,), 1.0)
    bn_beta = 0.1 * nrm((F,), 1.0)
    bn_scale = bn_gamma / jnp.sqrt(1.0 + BN_EPS)   # running_var = 1
    bn_shift = bn_beta                             # running_mean = 0

    # ---- packed slabs ----
    vec_rows = [
        ones_f, zeros_f, ff1_b2,
        ones_f, zeros_f, bq_s, bk, bv, bo,
        ones_f, zeros_f, dw_b, bn_scale, bn_shift, pw2_b,
        ones_f, zeros_f, ff2_b2,
        ones_f, zeros_f,
    ] + [dw_w[kk] for kk in range(K)]
    vecs = jnp.stack(vec_rows, axis=0)                              # [NV, F]
    assert vecs.shape == (NV, F)

    def widen(vr):
        return jnp.pad(vr, (0, WIDE - vr.shape[0]))
    wvec = jnp.stack([widen(ff1_b1), widen(ff2_b1), widen(pw1_b)], axis=0)   # [3, WIDE]

    w_ffin = jnp.concatenate([ff1_w1, ff2_w1], axis=1)              # [F, 2*FF]
    w_ffout = jnp.concatenate([ff1_w2, ff2_w2], axis=1)             # [FF, 2*F]
    w_att = jnp.concatenate([wq_s, wk, wv, wo, erk_blk], axis=1)    # [F, 4F + H*NR]
    w_conv = jnp.concatenate([pw1_w, pw2_w], axis=1)                # [F, 3F]

    return (vecs, wvec, w_ffin, w_ffout, w_att, w_conv, emb_rel_v)


# --------------------------------- wrapper -------------------------------------
def _batch_parallel_default() -> bool:
    # v7x has 2 TensorCores/chip: shard the batch across them with grid=(B,).
    # v5e / v6e are single-TC, where a batch grid is just a serial loop paying fixed
    # per-step overhead, so fuse the whole batch into one grid step instead.
    try:
        kind = jax.devices()[0].device_kind.lower().replace(" ", "")
    except Exception:
        return False
    return ("v7" in kind) or ("tpu7" in kind)


def conformer_tts_mhsa_block(x, sequence_mask, params, *, batch_parallel=None):
    """x: [B, T, F] float32; sequence_mask: [B, T], 0 inside the sequence, 1 outside."""
    if batch_parallel is None:
        batch_parallel = _batch_parallel_default()
    nb = 1 if batch_parallel else B

    valid = (sequence_mask == 0).astype(jnp.float32)   # [B, T], 1 = valid position
    vrow = valid[:, :, None]                           # [B, T, 1]
    vcol = valid[:, None, :]                           # [B, 1, T]

    def full_spec(a):
        nd = a.ndim
        return pl.BlockSpec(a.shape, lambda b, _nd=nd: (0,) * _nd)

    in_specs = [
        pl.BlockSpec((nb, T, F), lambda b: (b, 0, 0)),
        pl.BlockSpec((nb, T, 1), lambda b: (b, 0, 0)),
        pl.BlockSpec((nb, 1, T), lambda b: (b, 0, 0)),
    ] + [full_spec(p) for p in params]
    out_spec = pl.BlockSpec((nb, T, F), lambda b: (b, 0, 0))

    return pl.pallas_call(
        conformer_block_kernel,
        out_shape=jax.ShapeDtypeStruct((B, T, F), jnp.float32),
        grid_spec=pltpu.PrefetchScalarGridSpec(
            num_scalar_prefetch=0,
            grid=(B // nb,),
            in_specs=in_specs,
            out_specs=out_spec,
        ),
        compiler_params=pltpu.CompilerParams(
            dimension_semantics=(("parallel",) if batch_parallel else ("arbitrary",))),
    )(x, vrow, vcol, *params)


# ----------------------------------- main ---------------------------------------
if __name__ == "__main__":
    key = jax.random.PRNGKey(0)
    k_x, k_p = jax.random.split(key)

    x = jax.random.normal(k_x, (B, T, F), jnp.float32)
    lengths = jnp.array([T, T - 4], jnp.int32)
    # module docstring convention: 0 = within the sequence, 1 = outside
    sequence_mask = (jnp.arange(T)[None, :] >= lengths[:, None]).astype(jnp.float32)

    params = init_params(k_p)

    out = conformer_tts_mhsa_block(x, sequence_mask, params)
    out = jax.block_until_ready(out)

    # pure-JAX reference: identical math traced through XLA instead of Mosaic
    valid = (sequence_mask == 0).astype(jnp.float32)
    ref = _forward_math(x, valid[:, :, None], valid[:, None, :], *params)
    ref = jax.block_until_ready(ref)

    assert out.shape == (B, T, F)
    assert bool(jnp.all(jnp.isfinite(out)))
    assert float(jnp.max(jnp.abs(out - ref))) < 5e-2
    print("KERNEL_OK")
</pallas_src>

<mosaic_0001>
module attributes {stable_mosaic.version = 11 : i64} {
  func.func @conformer_block_kernel(%arg0: i32, %arg1: memref<2x16x32xf32, #tpu.memory_space<vmem>>, %arg2: memref<2x16x1xf32, #tpu.memory_space<vmem>>, %arg3: memref<2x1x16xf32, #tpu.memory_space<vmem>>, %arg4: memref<27x32xf32, #tpu.memory_space<vmem>>, %arg5: memref<3x64xf32, #tpu.memory_space<vmem>>, %arg6: memref<32x128xf32, #tpu.memory_space<vmem>>, %arg7: memref<64x64xf32, #tpu.memory_space<vmem>>, %arg8: memref<32x164xf32, #tpu.memory_space<vmem>>, %arg9: memref<32x96xf32, #tpu.memory_space<vmem>>, %arg10: memref<9x8xf32, #tpu.memory_space<vmem>>, %arg11: memref<2x16x32xf32, #tpu.memory_space<vmem>>) attributes {dimension_semantics = [#tpu.dimension_semantics<arbitrary>], iteration_bounds = array<i64: 1>, scalar_prefetch = 0 : i64, scratch_operands = 0 : i64, tpu.core_type = #tpu.core_type<tc>, window_params = [{transform_indices = @transform_0, window_bounds = array<i64: 2, 16, 32>}, {transform_indices = @transform_1, window_bounds = array<i64: 2, 16, 1>}, {transform_indices = @transform_2, window_bounds = array<i64: 2, 1, 16>}, {pipeline_mode = #tpu.pipeline_mode<synchronous>, transform_indices = @transform_3, window_bounds = array<i64: 27, 32>}, {pipeline_mode = #tpu.pipeline_mode<synchronous>, transform_indices = @transform_4, window_bounds = array<i64: 3, 64>}, {pipeline_mode = #tpu.pipeline_mode<synchronous>, transform_indices = @transform_5, window_bounds = array<i64: 32, 128>}, {pipeline_mode = #tpu.pipeline_mode<synchronous>, transform_indices = @transform_6, window_bounds = array<i64: 64, 64>}, {pipeline_mode = #tpu.pipeline_mode<synchronous>, transform_indices = @transform_7, window_bounds = array<i64: 32, 164>}, {pipeline_mode = #tpu.pipeline_mode<synchronous>, transform_indices = @transform_8, window_bounds = array<i64: 32, 96>}, {pipeline_mode = #tpu.pipeline_mode<synchronous>, transform_indices = @transform_9, window_bounds = array<i64: 9, 8>}, {transform_indices = @transform_10, window_bounds = array<i64: 2, 16, 32>}]} {
    %c0 = arith.constant 0 : index
    %c0_0 = arith.constant 0 : index
    %c0_1 = arith.constant 0 : index
    %0 = vector.load %arg1[%c0, %c0_0, %c0_1] : memref<2x16x32xf32, #tpu.memory_space<vmem>>, vector<2x16x32xf32>
    %c0_2 = arith.constant 0 : index
    %c0_3 = arith.constant 0 : index
    %c0_4 = arith.constant 0 : index
    %1 = vector.load %arg2[%c0_2, %c0_3, %c0_4] : memref<2x16x1xf32, #tpu.memory_space<vmem>>, vector<2x16x1xf32>
    %c0_5 = arith.constant 0 : index
    %c0_6 = arith.constant 0 : index
    %c0_7 = arith.constant 0 : index
    %2 = vector.load %arg3[%c0_5, %c0_6, %c0_7] : memref<2x1x16xf32, #tpu.memory_space<vmem>>, vector<2x1x16xf32>
    %c0_8 = arith.constant 0 : index
    %c0_9 = arith.constant 0 : index
    %3 = vector.load %arg4[%c0_8, %c0_9] : memref<27x32xf32, #tpu.memory_space<vmem>>, vector<27x32xf32>
    %c0_10 = arith.constant 0 : index
    %c0_11 = arith.constant 0 : index
    %4 = vector.load %arg5[%c0_10, %c0_11] : memref<3x64xf32, #tpu.memory_space<vmem>>, vector<3x64xf32>
    %c0_12 = arith.constant 0 : index
    %c0_13 = arith.constant 0 : index
    %5 = vector.load %arg6[%c0_12, %c0_13] : memref<32x128xf32, #tpu.memory_space<vmem>>, vector<32x128xf32>
    %c0_14 = arith.constant 0 : index
    %c0_15 = arith.constant 0 : index
    %6 = vector.load %arg7[%c0_14, %c0_15] : memref<64x64xf32, #tpu.memory_space<vmem>>, vector<64x64xf32>
    %c0_16 = arith.constant 0 : index
    %c0_17 = arith.constant 0 : index
    %7 = vector.load %arg8[%c0_16, %c0_17] : memref<32x164xf32, #tpu.memory_space<vmem>>, vector<32x164xf32>
    %c0_18 = arith.constant 0 : index
    %c0_19 = arith.constant 0 : index
    %8 = vector.load %arg9[%c0_18, %c0_19] : memref<32x96xf32, #tpu.memory_space<vmem>>, vector<32x96xf32>
    %c0_20 = arith.constant 0 : index
    %c0_21 = arith.constant 0 : index
    %9 = vector.load %arg10[%c0_20, %c0_21] : memref<9x8xf32, #tpu.memory_space<vmem>>, vector<9x8xf32>
    %10 = vector.shape_cast %0 : vector<2x16x32xf32> to vector<32x32xf32>
    %11 = vector.extract_strided_slice %5 {offsets = [0, 0], sizes = [32, 64], strides = [1, 1]} : vector<32x128xf32> to vector<32x64xf32>
    %12 = vector.extract_strided_slice %4 {offsets = [0, 0], sizes = [1, 64], strides = [1, 1]} : vector<3x64xf32> to vector<1x64xf32>
    %13 = vector.extract_strided_slice %6 {offsets = [0, 0], sizes = [64, 32], strides = [1, 1]} : vector<64x64xf32> to vector<64x32xf32>
    %14 = vector.extract_strided_slice %3 {offsets = [2, 0], sizes = [1, 32], strides = [1, 1]} : vector<27x32xf32> to vector<1x32xf32>
    %cst = arith.constant dense<0.000000e+00> : vector<32xf32>
    %15 = vector.multi_reduction <add>, %10, %cst [1] : vector<32x32xf32> to vector<32xf32>
    %16 = vector.shape_cast %15 : vector<32xf32> to vector<32x1xf32>
    %cst_22 = arith.constant 3.200000e+01 : f32
    %17 = vector.broadcast %cst_22 : f32 to vector<32x1xf32>
    %18 = arith.divf %16, %17 : vector<32x1xf32>
    %19 = vector.broadcast %18 : vector<32x1xf32> to vector<32x32xf32>
    %20 = arith.subf %10, %19 : vector<32x32xf32>
    %21 = arith.mulf %20, %20 : vector<32x32xf32>
    %cst_23 = arith.constant dense<0.000000e+00> : vector<32xf32>
    %22 = vector.multi_reduction <add>, %21, %cst_23 [1] : vector<32x32xf32> to vector<32xf32>
    %23 = vector.shape_cast %22 : vector<32xf32> to vector<32x1xf32>
    %cst_24 = arith.constant 3.200000e+01 : f32
    %24 = vector.broadcast %cst_24 : f32 to vector<32x1xf32>
    %25 = arith.divf %23, %24 : vector<32x1xf32>
    %cst_25 = arith.constant 9.99999974E-6 : f32
    %26 = vector.broadcast %cst_25 : f32 to vector<32x1xf32>
    %27 = arith.addf %25, %26 : vector<32x1xf32>
    %28 = math.rsqrt %27 : vector<32x1xf32>
    %29 = vector.broadcast %28 : vector<32x1xf32> to vector<32x32xf32>
    %30 = arith.mulf %20, %29 : vector<32x32xf32>
    %31 = vector.extract_strided_slice %3 {offsets = [0, 0], sizes = [1, 32], strides = [1, 1]} : vector<27x32xf32> to vector<1x32xf32>
    %32 = vector.broadcast %31 : vector<1x32xf32> to vector<32x32xf32>
    %33 = arith.mulf %30, %32 : vector<32x32xf32>
    %34 = vector.extract_strided_slice %3 {offsets = [1, 0], sizes = [1, 32], strides = [1, 1]} : vector<27x32xf32> to vector<1x32xf32>
    %35 = vector.broadcast %34 : vector<1x32xf32> to vector<32x32xf32>
    %36 = arith.addf %33, %35 : vector<32x32xf32>
    %cst_26 = arith.constant dense<0.000000e+00> : vector<32x64xf32>
    %37 = tpu.matmul %36, %11, %cst_26 {dimension_numbers = #tpu.dot_dimension_numbers<[1], [0], [0], [1], [0, 0, 1, 1], [], []>, precision = #tpu.contract_precision<fp32>} : vector<32x32xf32>, vector<32x64xf32>, vector<32x64xf32> -> vector<32x64xf32>
    %38 = vector.broadcast %12 : vector<1x64xf32> to vector<32x64xf32>
    %39 = arith.addf %37, %38 : vector<32x64xf32>
    %40 = arith.negf %39 : vector<32x64xf32>
    %41 = math.exp %40 : vector<32x64xf32>
    %cst_27 = arith.constant 1.000000e+00 : f32
    %42 = vector.broadcast %cst_27 : f32 to vector<32x64xf32>
    %43 = arith.addf %42, %41 : vector<32x64xf32>
    %44 = arith.divf %42, %43 : vector<32x64xf32>
    %45 = arith.mulf %39, %44 : vector<32x64xf32>
    %cst_28 = arith.constant dense<0.000000e+00> : vector<32x32xf32>
    %46 = tpu.matmul %45, %13, %cst_28 {dimension_numbers = #tpu.dot_dimension_numbers<[1], [0], [0], [1], [0, 0, 1, 1], [], []>, precision = #tpu.contract_precision<fp32>} : vector<32x64xf32>, vector<64x32xf32>, vector<32x32xf32> -> vector<32x32xf32>
    %47 = vector.broadcast %14 : vector<1x32xf32> to vector<32x32xf32>
    %48 = arith.addf %46, %47 : vector<32x32xf32>
    %cst_29 = arith.constant 5.000000e-01 : f32
    %49 = vector.broadcast %cst_29 : f32 to vector<32x32xf32>
    %50 = arith.mulf %49, %48 : vector<32x32xf32>
    %51 = arith.addf %50, %10 : vector<32x32xf32>
    %cst_30 = arith.constant dense<0.000000e+00> : vector<32xf32>
    %52 = vector.multi_reduction <add>, %51, %cst_30 [1] : vector<32x32xf32> to vector<32xf32>
    %53 = vector.shape_cast %52 : vector<32xf32> to vector<32x1xf32>
    %cst_31 = arith.constant 3.200000e+01 : f32
    %54 = vector.broadcast %cst_31 : f32 to vector<32x1xf32>
    %55 = arith.divf %53, %54 : vector<32x1xf32>
    %56 = vector.broadcast %55 : vector<32x1xf32> to vector<32x32xf32>
    %57 = arith.subf %51, %56 : vector<32x32xf32>
    %58 = arith.mulf %57, %57 : vector<32x32xf32>
    %cst_32 = arith.constant dense<0.000000e+00> : vector<32xf32>
    %59 = vector.multi_reduction <add>, %58, %cst_32 [1] : vector<32x32xf32> to vector<32xf32>
    %60 = vector.shape_cast %59 : vector<32xf32> to vector<32x1xf32>
    %cst_33 = arith.constant 3.200000e+01 : f32
    %61 = vector.broadcast %cst_33 : f32 to vector<32x1xf32>
    %62 = arith.divf %60, %61 : vector<32x1xf32>
    %cst_34 = arith.constant 9.99999974E-6 : f32
    %63 = vector.broadcast %cst_34 : f32 to vector<32x1xf32>
    %64 = arith.addf %62, %63 : vector<32x1xf32>
    %65 = math.rsqrt %64 : vector<32x1xf32>
    %66 = vector.broadcast %65 : vector<32x1xf32> to vector<32x32xf32>
    %67 = arith.mulf %57, %66 : vector<32x32xf32>
    %68 = vector.extract_strided_slice %3 {offsets = [3, 0], sizes = [1, 32], strides = [1, 1]} : vector<27x32xf32> to vector<1x32xf32>
    %69 = vector.broadcast %68 : vector<1x32xf32> to vector<32x32xf32>
    %70 = arith.mulf %67, %69 : vector<32x32xf32>
    %71 = vector.extract_strided_slice %3 {offsets = [4, 0], sizes = [1, 32], strides = [1, 1]} : vector<27x32xf32> to vector<1x32xf32>
    %72 = vector.broadcast %71 : vector<1x32xf32> to vector<32x32xf32>
    %73 = arith.addf %70, %72 : vector<32x32xf32>
    %74 = vector.extract_strided_slice %7 {offsets = [0, 0], sizes = [32, 96], strides = [1, 1]} : vector<32x164xf32> to vector<32x96xf32>
    %cst_35 = arith.constant dense<0.000000e+00> : vector<32x96xf32>
    %75 = tpu.matmul %73, %74, %cst_35 {dimension_numbers = #tpu.dot_dimension_numbers<[1], [0], [0], [1], [0, 0, 1, 1], [], []>, precision = #tpu.contract_precision<fp32>} : vector<32x32xf32>, vector<32x96xf32>, vector<32x96xf32> -> vector<32x96xf32>
    %76 = vector.extract_strided_slice %75 {offsets = [0, 0], sizes = [32, 32], strides = [1, 1]} : vector<32x96xf32> to vector<32x32xf32>
    %77 = vector.extract_strided_slice %3 {offsets = [5, 0], sizes = [1, 32], strides = [1, 1]} : vector<27x32xf32> to vector<1x32xf32>
    %78 = vector.broadcast %77 : vector<1x32xf32> to vector<32x32xf32>
    %79 = arith.addf %76, %78 : vector<32x32xf32>
    %80 = vector.extract_strided_slice %75 {offsets = [0, 32], sizes = [32, 32], strides = [1, 1]} : vector<32x96xf32> to vector<32x32xf32>
    %81 = vector.extract_strided_slice %3 {offsets = [6, 0], sizes = [1, 32], strides = [1, 1]} : vector<27x32xf32> to vector<1x32xf32>
    %82 = vector.broadcast %81 : vector<1x32xf32> to vector<32x32xf32>
    %83 = arith.addf %80, %82 : vector<32x32xf32>
    %84 = vector.extract_strided_slice %75 {offsets = [0, 64], sizes = [32, 32], strides = [1, 1]} : vector<32x96xf32> to vector<32x32xf32>
    %85 = vector.extract_strided_slice %3 {offsets = [7, 0], sizes = [1, 32], strides = [1, 1]} : vector<27x32xf32> to vector<1x32xf32>
    %86 = vector.broadcast %85 : vector<1x32xf32> to vector<32x32xf32>
    %87 = arith.addf %84, %86 : vector<32x32xf32>
    %88 = vector.extract_strided_slice %7 {offsets = [0, 128], sizes = [32, 36], strides = [1, 1]} : vector<32x164xf32> to vector<32x36xf32>
    %cst_36 = arith.constant dense<0.000000e+00> : vector<32x36xf32>
    %89 = tpu.matmul %79, %88, %cst_36 {dimension_numbers = #tpu.dot_dimension_numbers<[1], [0], [0], [1], [0, 0, 1, 1], [], []>, precision = #tpu.contract_precision<fp32>} : vector<32x32xf32>, vector<32x36xf32>, vector<32x36xf32> -> vector<32x36xf32>
    %90 = vector.shape_cast %79 : vector<32x32xf32> to vector<2x16x32xf32>
    %91 = vector.shape_cast %83 : vector<32x32xf32> to vector<2x16x32xf32>
    %92 = vector.shape_cast %87 : vector<32x32xf32> to vector<2x16x32xf32>
    %93 = vector.shape_cast %89 : vector<32x36xf32> to vector<2x16x36xf32>
    %94 = tpu.iota {dimensions = array<i32: 0>} : vector<16x16xi32>
    %95 = tpu.iota {dimensions = array<i32: 1>} : vector<16x16xi32>
    %96 = arith.subi %95, %94 : vector<16x16xi32>
    %c-4_i32 = arith.constant -4 : i32
    %97 = vector.broadcast %c-4_i32 : i32 to vector<16x16xi32>
    %98 = arith.cmpi eq, %96, %97 : vector<16x16xi32>
    %99 = arith.extui %98 : vector<16x16xi1> to vector<16x16xi32>
    %100 = arith.sitofp %99 : vector<16x16xi32> to vector<16x16xf32>
    %101 = vector.shape_cast %100 : vector<16x16xf32> to vector<1x16x16xf32>
    %c-3_i32 = arith.constant -3 : i32
    %102 = vector.broadcast %c-3_i32 : i32 to vector<16x16xi32>
    %103 = arith.cmpi eq, %96, %102 : vector<16x16xi32>
    %104 = arith.extui %103 : vector<16x16xi1> to vector<16x16xi32>
    %105 = arith.sitofp %104 : vector<16x16xi32> to vector<16x16xf32>
    %106 = vector.shape_cast %105 : vector<16x16xf32> to vector<1x16x16xf32>
    %c-2_i32 = arith.constant -2 : i32
    %107 = vector.broadcast %c-2_i32 : i32 to vector<16x16xi32>
    %108 = arith.cmpi eq, %96, %107 : vector<16x16xi32>
    %109 = arith.extui %108 : vector<16x16xi1> to vector<16x16xi32>
    %110 = arith.sitofp %109 : vector<16x16xi32> to vector<16x16xf32>
    %111 = vector.shape_cast %110 : vector<16x16xf32> to vector<1x16x16xf32>
    %c-1_i32 = arith.constant -1 : i32
    %112 = vector.broadcast %c-1_i32 : i32 to vector<16x16xi32>
    %113 = arith.cmpi eq, %96, %112 : vector<16x16xi32>
    %114 = arith.extui %113 : vector<16x16xi1> to vector<16x16xi32>
    %115 = arith.sitofp %114 : vector<16x16xi32> to vector<16x16xf32>
    %116 = vector.shape_cast %115 : vector<16x16xf32> to vector<1x16x16xf32>
    %c0_i32 = arith.constant 0 : i32
    %117 = vector.broadcast %c0_i32 : i32 to vector<16x16xi32>
    %118 = arith.cmpi eq, %96, %117 : vector<16x16xi32>
    %119 = arith.extui %118 : vector<16x16xi1> to vector<16x16xi32>
    %120 = arith.sitofp %119 : vector<16x16xi32> to vector<16x16xf32>
    %121 = vector.shape_cast %120 : vector<16x16xf32> to vector<1x16x16xf32>
    %c1_i32 = arith.constant 1 : i32
    %122 = vector.broadcast %c1_i32 : i32 to vector<16x16xi32>
    %123 = arith.cmpi eq, %96, %122 : vector<16x16xi32>
    %124 = arith.extui %123 : vector<16x16xi1> to vector<16x16xi32>
    %125 = arith.sitofp %124 : vector<16x16xi32> to vector<16x16xf32>
    %126 = vector.shape_cast %125 : vector<16x16xf32> to vector<1x16x16xf32>
    %c2_i32 = arith.constant 2 : i32
    %127 = vector.broadcast %c2_i32 : i32 to vector<16x16xi32>
    %128 = arith.cmpi eq, %96, %127 : vector<16x16xi32>
    %129 = arith.extui %128 : vector<16x16xi1> to vector<16x16xi32>
    %130 = arith.sitofp %129 : vector<16x16xi32> to vector<16x16xf32>
    %131 = vector.shape_cast %130 : vector<16x16xf32> to vector<1x16x16xf32>
    %c3_i32 = arith.constant 3 : i32
    %132 = vector.broadcast %c3_i32 : i32 to vector<16x16xi32>
    %133 = arith.cmpi eq, %96, %132 : vector<16x16xi32>
    %134 = arith.extui %133 : vector<16x16xi1> to vector<16x16xi32>
    %135 = arith.sitofp %134 : vector<16x16xi32> to vector<16x16xf32>
    %136 = vector.shape_cast %135 : vector<16x16xf32> to vector<1x16x16xf32>
    %c4_i32 = arith.constant 4 : i32
    %137 = vector.broadcast %c4_i32 : i32 to vector<16x16xi32>
    %138 = arith.cmpi eq, %96, %137 : vector<16x16xi32>
    %139 = arith.extui %138 : vector<16x16xi1> to vector<16x16xi32>
    %140 = arith.sitofp %139 : vector<16x16xi32> to vector<16x16xf32>
    %141 = vector.shape_cast %140 : vector<16x16xf32> to vector<1x16x16xf32>
    %142 = vector.extract_strided_slice %9 {offsets = [0, 0], sizes = [1, 8], strides = [1, 1]} : vector<9x8xf32> to vector<1x8xf32>
    %143 = vector.shape_cast %142 : vector<1x8xf32> to vector<8xf32>
    %144 = vector.shape_cast %143 : vector<8xf32> to vector<1x1x8xf32>
    %145 = vector.extract_strided_slice %9 {offsets = [1, 0], sizes = [1, 8], strides = [1, 1]} : vector<9x8xf32> to vector<1x8xf32>
    %146 = vector.shape_cast %145 : vector<1x8xf32> to vector<8xf32>
    %147 = vector.shape_cast %146 : vector<8xf32> to vector<1x1x8xf32>
    %148 = vector.extract_strided_slice %9 {offsets = [2, 0], sizes = [1, 8], strides = [1, 1]} : vector<9x8xf32> to vector<1x8xf32>
    %149 = vector.shape_cast %148 : vector<1x8xf32> to vector<8xf32>
    %150 = vector.shape_cast %149 : vector<8xf32> to vector<1x1x8xf32>
    %151 = vector.extract_strided_slice %9 {offsets = [3, 0], sizes = [1, 8], strides = [1, 1]} : vector<9x8xf32> to vector<1x8xf32>
    %152 = vector.shape_cast %151 : vector<1x8xf32> to vector<8xf32>
    %153 = vector.shape_cast %152 : vector<8xf32> to vector<1x1x8xf32>
    %154 = vector.extract_strided_slice %9 {offsets = [4, 0], sizes = [1, 8], strides = [1, 1]} : vector<9x8xf32> to vector<1x8xf32>
    %155 = vector.shape_cast %154 : vector<1x8xf32> to vector<8xf32>
    %156 = vector.shape_cast %155 : vector<8xf32> to vector<1x1x8xf32>
    %157 = vector.extract_strided_slice %9 {offsets = [5, 0], sizes = [1, 8], strides = [1, 1]} : vector<9x8xf32> to vector<1x8xf32>
    %158 = vector.shape_cast %157 : vector<1x8xf32> to vector<8xf32>
    %159 = vector.shape_cast %158 : vector<8xf32> to vector<1x1x8xf32>
    %160 = vector.extract_strided_slice %9 {offsets = [6, 0], sizes = [1, 8], strides = [1, 1]} : vector<9x8xf32> to vector<1x8xf32>
    %161 = vector.shape_cast %160 : vector<1x8xf32> to vector<8xf32>
    %162 = vector.shape_cast %161 : vector<8xf32> to vector<1x1x8xf32>
    %163 = vector.extract_strided_slice %9 {offsets = [7, 0], sizes = [1, 8], strides = [1, 1]} : vector<9x8xf32> to vector<1x8xf32>
    %164 = vector.shape_cast %163 : vector<1x8xf32> to vector<8xf32>
    %165 = vector.shape_cast %164 : vector<8xf32> to vector<1x1x8xf32>
    %166 = vector.extract_strided_slice %9 {offsets = [8, 0], sizes = [1, 8], strides = [1, 1]} : vector<9x8xf32> to vector<1x8xf32>
    %167 = vector.shape_cast %166 : vector<1x8xf32> to vector<8xf32>
    %168 = vector.shape_cast %167 : vector<8xf32> to vector<1x1x8xf32>
    %169 = vector.broadcast %1 : vector<2x16x1xf32> to vector<2x16x16xf32>
    %170 = vector.broadcast %2 : vector<2x1x16xf32> to vector<2x16x16xf32>
    %171 = arith.mulf %169, %170 : vector<2x16x16xf32>
    %cst_37 = arith.constant 5.000000e-01 : f32
    %172 = vector.broadcast %cst_37 : f32 to vector<2x16x16xf32>
    %173 = arith.cmpf ogt, %171, %172 : vector<2x16x16xf32>
    %174 = vector.extract_strided_slice %90 {offsets = [0, 0, 0], sizes = [2, 16, 8], strides = [1, 1, 1]} : vector<2x16x32xf32> to vector<2x16x8xf32>
    %175 = vector.extract_strided_slice %91 {offsets = [0, 0, 0], sizes = [2, 16, 8], strides = [1, 1, 1]} : vector<2x16x32xf32> to vector<2x16x8xf32>
    %176 = vector.extract_strided_slice %92 {offsets = [0, 0, 0], sizes = [2, 16, 8], strides = [1, 1, 1]} : vector<2x16x32xf32> to vector<2x16x8xf32>
    %177 = vector.extract_strided_slice %93 {offsets = [0, 0, 0], sizes = [2, 16, 9], strides = [1, 1, 1]} : vector<2x16x36xf32> to vector<2x16x9xf32>
    "tpu.trace_start"() <{level = 10 : i32, message = "btd,bsd->bts"}> : () -> ()
    %cst_38 = arith.constant dense<0.000000e+00> : vector<2x16x16xf32>
    %178 = tpu.matmul %174, %175, %cst_38 {dimension_numbers = #tpu.dot_dimension_numbers<[2], [2], [1], [1], [0, 0, 0, 1, 1, 1], [0], [0]>, precision = #tpu.contract_precision<fp32>} : vector<2x16x8xf32>, vector<2x16x8xf32>, vector<2x16x16xf32> -> vector<2x16x16xf32>
    "tpu.trace_stop"() : () -> ()
    %179 = vector.extract_strided_slice %177 {offsets = [0, 0, 0], sizes = [2, 16, 1], strides = [1, 1, 1]} : vector<2x16x9xf32> to vector<2x16x1xf32>
    %180 = vector.broadcast %179 : vector<2x16x1xf32> to vector<2x16x16xf32>
    %181 = vector.broadcast %101 : vector<1x16x16xf32> to vector<2x16x16xf32>
    %182 = arith.mulf %180, %181 : vector<2x16x16xf32>
    %183 = arith.addf %178, %182 : vector<2x16x16xf32>
    %184 = vector.extract_strided_slice %177 {offsets = [0, 0, 1], sizes = [2, 16, 1], strides = [1, 1, 1]} : vector<2x16x9xf32> to vector<2x16x1xf32>
    %185 = vector.broadcast %184 : vector<2x16x1xf32> to vector<2x16x16xf32>
    %186 = vector.broadcast %106 : vector<1x16x16xf32> to vector<2x16x16xf32>
    %187 = arith.mulf %185, %186 : vector<2x16x16xf32>
    %188 = arith.addf %183, %187 : vector<2x16x16xf32>
    %189 = vector.extract_strided_slice %177 {offsets = [0, 0, 2], sizes = [2, 16, 1], strides = [1, 1, 1]} : vector<2x16x9xf32> to vector<2x16x1xf32>
    %190 = vector.broadcast %189 : vector<2x16x1xf32> to vector<2x16x16xf32>
    %191 = vector.broadcast %111 : vector<1x16x16xf32> to vector<2x16x16xf32>
    %192 = arith.mulf %190, %191 : vector<2x16x16xf32>
    %193 = arith.addf %188, %192 : vector<2x16x16xf32>
    %194 = vector.extract_strided_slice %177 {offsets = [0, 0, 3], sizes = [2, 16, 1], strides = [1, 1, 1]} : vector<2x16x9xf32> to vector<2x16x1xf32>
    %195 = vector.broadcast %194 : vector<2x16x1xf32> to vector<2x16x16xf32>
    %196 = vector.broadcast %116 : vector<1x16x16xf32> to vector<2x16x16xf32>
    %197 = arith.mulf %195, %196 : vector<2x16x16xf32>
    %198 = arith.addf %193, %197 : vector<2x16x16xf32>
    %199 = vector.extract_strided_slice %177 {offsets = [0, 0, 4], sizes = [2, 16, 1], strides = [1, 1, 1]} : vector<2x16x9xf32> to vector<2x16x1xf32>
    %200 = vector.broadcast %199 : vector<2x16x1xf32> to vector<2x16x16xf32>
    %201 = vector.broadcast %121 : vector<1x16x16xf32> to vector<2x16x16xf32>
    %202 = arith.mulf %200, %201 : vector<2x16x16xf32>
    %203 = arith.addf %198, %202 : vector<2x16x16xf32>
    %204 = vector.extract_strided_slice %177 {offsets = [0, 0, 5], sizes = [2, 16, 1], strides = [1, 1, 1]} : vector<2x16x9xf32> to vector<2x16x1xf32>
    %205 = vector.broadcast %204 : vector<2x16x1xf32> to vector<2x16x16xf32>
    %206 = vector.broadcast %126 : vector<1x16x16xf32> to vector<2x16x16xf32>
    %207 = arith.mulf %205, %206 : vector<2x16x16xf32>
    %208 = arith.addf %203, %207 : vector<2x16x16xf32>
    %209 = vector.extract_strided_slice %177 {offsets = [0, 0, 6], sizes = [2, 16, 1], strides = [1, 1, 1]} : vector<2x16x9xf32> to vector<2x16x1xf32>
    %210 = vector.broadcast %209 : vector<2x16x1xf32> to vector<2x16x16xf32>
    %211 = vector.broadcast %131 : vector<1x16x16xf32> to vector<2x16x16xf32>
    %212 = arith.mulf %210, %211 : vector<2x16x16xf32>
    %213 = arith.addf %208, %212 : vector<2x16x16xf32>
    %214 = vector.extract_strided_slice %177 {offsets = [0, 0, 7], sizes = [2, 16, 1], strides = [1, 1, 1]} : vector<2x16x9xf32> to vector<2x16x1xf32>
    %215 = vector.broadcast %214 : vector<2x16x1xf32> to vector<2x16x16xf32>
    %216 = vector.broadcast %136 : vector<1x16x16xf32> to vector<2x16x16xf32>
    %217 = arith.mulf %215, %216 : vector<2x16x16xf32>
    %218 = arith.addf %213, %217 : vector<2x16x16xf32>
    %219 = vector.extract_strided_slice %177 {offsets = [0, 0, 8], sizes = [2, 16, 1], strides = [1, 1, 1]} : vector<2x16x9xf32> to vector<2x16x1xf32>
    %220 = vector.broadcast %219 : vector<2x16x1xf32> to vector<2x16x16xf32>
    %221 = vector.broadcast %141 : vector<1x16x16xf32> to vector<2x16x16xf32>
    %222 = arith.mulf %220, %221 : vector<2x16x16xf32>
    %223 = arith.addf %218, %222 : vector<2x16x16xf32>
    %cst_39 = arith.constant -1.000000e+04 : f32
    %224 = vector.broadcast %cst_39 : f32 to vector<2x16x16xf32>
    %225 = arith.select %173, %223, %224 : vector<2x16x16xi1>, vector<2x16x16xf32>
    %cst_40 = arith.constant dense<0xFF800000> : vector<2x16xf32>
    %226 = vector.multi_reduction <maximumf>, %225, %cst_40 [2] : vector<2x16x16xf32> to vector<2x16xf32>
    %227 = vector.shape_cast %226 : vector<2x16xf32> to vector<2x16x1xf32>
    %228 = vector.broadcast %227 : vector<2x16x1xf32> to vector<2x16x16xf32>
    %229 = arith.subf %225, %228 : vector<2x16x16xf32>
    %230 = math.exp %229 : vector<2x16x16xf32>
    %cst_41 = arith.constant dense<0.000000e+00> : vector<2x16xf32>
    %231 = vector.multi_reduction <add>, %230, %cst_41 [2] : vector<2x16x16xf32> to vector<2x16xf32>
    %232 = vector.shape_cast %231 : vector<2x16xf32> to vector<2x16x1xf32>
    %233 = vector.broadcast %232 : vector<2x16x1xf32> to vector<2x16x16xf32>
    %234 = arith.divf %230, %233 : vector<2x16x16xf32>
    "tpu.trace_start"() <{level = 10 : i32, message = "bts,bsd->btd"}> : () -> ()
    %cst_42 = arith.constant dense<0.000000e+00> : vector<2x16x8xf32>
    %235 = tpu.matmul %234, %176, %cst_42 {dimension_numbers = #tpu.dot_dimension_numbers<[2], [1], [1], [2], [0, 0, 0, 1, 1, 2], [0], [0]>, precision = #tpu.contract_precision<fp32>} : vector<2x16x16xf32>, vector<2x16x8xf32>, vector<2x16x8xf32> -> vector<2x16x8xf32>
    "tpu.trace_stop"() : () -> ()
    %236 = vector.broadcast %101 : vector<1x16x16xf32> to vector<2x16x16xf32>
    %237 = arith.mulf %234, %236 : vector<2x16x16xf32>
    %cst_43 = arith.constant dense<0.000000e+00> : vector<2x16xf32>
    %238 = vector.multi_reduction <add>, %237, %cst_43 [2] : vector<2x16x16xf32> to vector<2x16xf32>
    %239 = vector.shape_cast %238 : vector<2x16xf32> to vector<2x16x1xf32>
    %240 = vector.broadcast %239 : vector<2x16x1xf32> to vector<2x16x8xf32>
    %241 = vector.broadcast %144 : vector<1x1x8xf32> to vector<2x16x8xf32>
    %242 = arith.mulf %240, %241 : vector<2x16x8xf32>
    %243 = arith.addf %235, %242 : vector<2x16x8xf32>
    %244 = vector.broadcast %106 : vector<1x16x16xf32> to vector<2x16x16xf32>
    %245 = arith.mulf %234, %244 : vector<2x16x16xf32>
    %cst_44 = arith.constant dense<0.000000e+00> : vector<2x16xf32>
    %246 = vector.multi_reduction <add>, %245, %cst_44 [2] : vector<2x16x16xf32> to vector<2x16xf32>
    %247 = vector.shape_cast %246 : vector<2x16xf32> to vector<2x16x1xf32>
    %248 = vector.broadcast %247 : vector<2x16x1xf32> to vector<2x16x8xf32>
    %249 = vector.broadcast %147 : vector<1x1x8xf32> to vector<2x16x8xf32>
    %250 = arith.mulf %248, %249 : vector<2x16x8xf32>
    %251 = arith.addf %243, %250 : vector<2x16x8xf32>
    %252 = vector.broadcast %111 : vector<1x16x16xf32> to vector<2x16x16xf32>
    %253 = arith.mulf %234, %252 : vector<2x16x16xf32>
    %cst_45 = arith.constant dense<0.000000e+00> : vector<2x16xf32>
    %254 = vector.multi_reduction <add>, %253, %cst_45 [2] : vector<2x16x16xf32> to vector<2x16xf32>
    %255 = vector.shape_cast %254 : vector<2x16xf32> to vector<2x16x1xf32>
    %256 = vector.broadcast %255 : vector<2x16x1xf32> to vector<2x16x8xf32>
    %257 = vector.broadcast %150 : vector<1x1x8xf32> to vector<2x16x8xf32>
    %258 = arith.mulf %256, %257 : vector<2x16x8xf32>
    %259 = arith.addf %251, %258 : vector<2x16x8xf32>
    %260 = vector.broadcast %116 : vector<1x16x16xf32> to vector<2x16x16xf32>
    %261 = arith.mulf %234, %260 : vector<2x16x16xf32>
    %cst_46 = arith.constant dense<0.000000e+00> : vector<2x16xf32>
    %262 = vector.multi_reduction <add>, %261, %cst_46 [2] : vector<2x16x16xf32> to vector<2x16xf32>
    %263 = vector.shape_cast %262 : vector<2x16xf32> to vector<2x16x1xf32>
    %264 = vector.broadcast %263 : vector<2x16x1xf32> to vector<2x16x8xf32>
    %265 = vector.broadcast %153 : vector<1x1x8xf32> to vector<2x16x8xf32>
    %266 = arith.mulf %264, %265 : vector<2x16x8xf32>
    %267 = arith.addf %259, %266 : vector<2x16x8xf32>
    %268 = vector.broadcast %121 : vector<1x16x16xf32> to vector<2x16x16xf32>
    %269 = arith.mulf %234, %268 : vector<2x16x16xf32>
    %cst_47 = arith.constant dense<0.000000e+00> : vector<2x16xf32>
    %270 = vector.multi_reduction <add>, %269, %cst_47 [2] : vector<2x16x16xf32> to vector<2x16xf32>
    %271 = vector.shape_cast %270 : vector<2x16xf32> to vector<2x16x1xf32>
    %272 = vector.broadcast %271 : vector<2x16x1xf32> to vector<2x16x8xf32>
    %273 = vector.broadcast %156 : vector<1x1x8xf32> to vector<2x16x8xf32>
    %274 = arith.mulf %272, %273 : vector<2x16x8xf32>
    %275 = arith.addf %267, %274 : vector<2x16x8xf32>
    %276 = vector.broadcast %126 : vector<1x16x16xf32> to vector<2x16x16xf32>
    %277 = arith.mulf %234, %276 : vector<2x16x16xf32>
    %cst_48 = arith.constant dense<0.000000e+00> : vector<2x16xf32>
    %278 = vector.multi_reduction <add>, %277, %cst_48 [2] : vector<2x16x16xf32> to vector<2x16xf32>
    %279 = vector.shape_cast %278 : vector<2x16xf32> to vector<2x16x1xf32>
    %280 = vector.broadcast %279 : vector<2x16x1xf32> to vector<2x16x8xf32>
    %281 = vector.broadcast %159 : vector<1x1x8xf32> to vector<2x16x8xf32>
    %282 = arith.mulf %280, %281 : vector<2x16x8xf32>
    %283 = arith.addf %275, %282 : vector<2x16x8xf32>
    %284 = vector.broadcast %131 : vector<1x16x16xf32> to vector<2x16x16xf32>
    %285 = arith.mulf %234, %284 : vector<2x16x16xf32>
    %cst_49 = arith.constant dense<0.000000e+00> : vector<2x16xf32>
    %286 = vector.multi_reduction <add>, %285, %cst_49 [2] : vector<2x16x16xf32> to vector<2x16xf32>
    %287 = vector.shape_cast %286 : vector<2x16xf32> to vector<2x16x1xf32>
    %288 = vector.broadcast %287 : vector<2x16x1xf32> to vector<2x16x8xf32>
    %289 = vector.broadcast %162 : vector<1x1x8xf32> to vector<2x16x8xf32>
    %290 = arith.mulf %288, %289 : vector<2x16x8xf32>
    %291 = arith.addf %283, %290 : vector<2x16x8xf32>
    %292 = vector.broadcast %136 : vector<1x16x16xf32> to vector<2x16x16xf32>
    %293 = arith.mulf %234, %292 : vector<2x16x16xf32>
    %cst_50 = arith.constant dense<0.000000e+00> : vector<2x16xf32>
    %294 = vector.multi_reduction <add>, %293, %cst_50 [2] : vector<2x16x16xf32> to vector<2x16xf32>
    %295 = vector.shape_cast %294 : vector<2x16xf32> to vector<2x16x1xf32>
    %296 = vector.broadcast %295 : vector<2x16x1xf32> to vector<2x16x8xf32>
    %297 = vector.broadcast %165 : vector<1x1x8xf32> to vector<2x16x8xf32>
    %298 = arith.mulf %296, %297 : vector<2x16x8xf32>
    %299 = arith.addf %291, %298 : vector<2x16x8xf32>
    %300 = vector.broadcast %141 : vector<1x16x16xf32> to vector<2x16x16xf32>
    %301 = arith.mulf %234, %300 : vector<2x16x16xf32>
    %cst_51 = arith.constant dense<0.000000e+00> : vector<2x16xf32>
    %302 = vector.multi_reduction <add>, %301, %cst_51 [2] : vector<2x16x16xf32> to vector<2x16xf32>
    %303 = vector.shape_cast %302 : vector<2x16xf32> to vector<2x16x1xf32>
    %304 = vector.broadcast %303 : vector<2x16x1xf32> to vector<2x16x8xf32>
    %305 = vector.broadcast %168 : vector<1x1x8xf32> to vector<2x16x8xf32>
    %306 = arith.mulf %304, %305 : vector<2x16x8xf32>
    %307 = arith.addf %299, %306 : vector<2x16x8xf32>
    %308 = vector.extract_strided_slice %90 {offsets = [0, 0, 8], sizes = [2, 16, 8], strides = [1, 1, 1]} : vector<2x16x32xf32> to vector<2x16x8xf32>
    %309 = vector.extract_strided_slice %91 {offsets = [0, 0, 8], sizes = [2, 16, 8], strides = [1, 1, 1]} : vector<2x16x32xf32> to vector<2x16x8xf32>
    %310 = vector.extract_strided_slice %92 {offsets = [0, 0, 8], sizes = [2, 16, 8], strides = [1, 1, 1]} : vector<2x16x32xf32> to vector<2x16x8xf32>
    %311 = vector.extract_strided_slice %93 {offsets = [0, 0, 9], sizes = [2, 16, 9], strides = [1, 1, 1]} : vector<2x16x36xf32> to vector<2x16x9xf32>
    "tpu.trace_start"() <{level = 10 : i32, message = "btd,bsd->bts"}> : () -> ()
    %cst_52 = arith.constant dense<0.000000e+00> : vector<2x16x16xf32>
    %312 = tpu.matmul %308, %309, %cst_52 {dimension_numbers = #tpu.dot_dimension_numbers<[2], [2], [1], [1], [0, 0, 0, 1, 1, 1], [0], [0]>, precision = #tpu.contract_precision<fp32>} : vector<2x16x8xf32>, vector<2x16x8xf32>, vector<2x16x16xf32> -> vector<2x16x16xf32>
    "tpu.trace_stop"() : () -> ()
    %313 = vector.extract_strided_slice %311 {offsets = [0, 0, 0], sizes = [2, 16, 1], strides = [1, 1, 1]} : vector<2x16x9xf32> to vector<2x16x1xf32>
    %314 = vector.broadcast %313 : vector<2x16x1xf32> to vector<2x16x16xf32>
    %315 = vector.broadcast %101 : vector<1x16x16xf32> to vector<2x16x16xf32>
    %316 = arith.mulf %314, %315 : vector<2x16x16xf32>
    %317 = arith.addf %312, %316 : vector<2x16x16xf32>
    %318 = vector.extract_strided_slice %311 {offsets = [0, 0, 1], sizes = [2, 16, 1], strides = [1, 1, 1]} : vector<2x16x9xf32> to vector<2x16x1xf32>
    %319 = vector.broadcast %318 : vector<2x16x1xf32> to vector<2x16x16xf32>
    %320 = vector.broadcast %106 : vector<1x16x16xf32> to vector<2x16x16xf32>
    %321 = arith.mulf %319, %320 : vector<2x16x16xf32>
    %322 = arith.addf %317, %321 : vector<2x16x16xf32>
    %323 = vector.extract_strided_slice %311 {offsets = [0, 0, 2], sizes = [2, 16, 1], strides = [1, 1, 1]} : vector<2x16x9xf32> to vector<2x16x1xf32>
    %324 = vector.broadcast %323 : vector<2x16x1xf32> to vector<2x16x16xf32>
    %325 = vector.broadcast %111 : vector<1x16x16xf32> to vector<2x16x16xf32>
    %326 = arith.mulf %324, %325 : vector<2x16x16xf32>
    %327 = arith.addf %322, %326 : vector<2x16x16xf32>
    %328 = vector.extract_strided_slice %311 {offsets = [0, 0, 3], sizes = [2, 16, 1], strides = [1, 1, 1]} : vector<2x16x9xf32> to vector<2x16x1xf32>
    %329 = vector.broadcast %328 : vector<2x16x1xf32> to vector<2x16x16xf32>
    %330 = vector.broadcast %116 : vector<1x16x16xf32> to vector<2x16x16xf32>
    %331 = arith.mulf %329, %330 : vector<2x16x16xf32>
    %332 = arith.addf %327, %331 : vector<2x16x16xf32>
    %333 = vector.extract_strided_slice %311 {offsets = [0, 0, 4], sizes = [2, 16, 1], strides = [1, 1, 1]} : vector<2x16x9xf32> to vector<2x16x1xf32>
    %334 = vector.broadcast %333 : vector<2x16x1xf32> to vector<2x16x16xf32>
    %335 = vector.broadcast %121 : vector<1x16x16xf32> to vector<2x16x16xf32>
    %336 = arith.mulf %334, %335 : vector<2x16x16xf32>
    %337 = arith.addf %332, %336 : vector<2x16x16xf32>
    %338 = vector.extract_strided_slice %311 {offsets = [0, 0, 5], sizes = [2, 16, 1], strides = [1, 1, 1]} : vector<2x16x9xf32> to vector<2x16x1xf32>
    %339 = vector.broadcast %338 : vector<2x16x1xf32> to vector<2x16x16xf32>
    %340 = vector.broadcast %126 : vector<1x16x16xf32> to vector<2x16x16xf32>
    %341 = arith.mulf %339, %340 : vector<2x16x16xf32>
    %342 = arith.addf %337, %341 : vector<2x16x16xf32>
    %343 = vector.extract_strided_slice %311 {offsets = [0, 0, 6], sizes = [2, 16, 1], strides = [1, 1, 1]} : vector<2x16x9xf32> to vector<2x16x1xf32>
    %344 = vector.broadcast %343 : vector<2x16x1xf32> to vector<2x16x16xf32>
    %345 = vector.broadcast %131 : vector<1x16x16xf32> to vector<2x16x16xf32>
    %346 = arith.mulf %344, %345 : vector<2x16x16xf32>
    %347 = arith.addf %342, %346 : vector<2x16x16xf32>
    %348 = vector.extract_strided_slice %311 {offsets = [0, 0, 7], sizes = [2, 16, 1], strides = [1, 1, 1]} : vector<2x16x9xf32> to vector<2x16x1xf32>
    %349 = vector.broadcast %348 : vector<2x16x1xf32> to vector<2x16x16xf32>
    %350 = vector.broadcast %136 : vector<1x16x16xf32> to vector<2x16x16xf32>
    %351 = arith.mulf %349, %350 : vector<2x16x16xf32>
    %352 = arith.addf %347, %351 : vector<2x16x16xf32>
    %353 = vector.extract_strided_slice %311 {offsets = [0, 0, 8], sizes = [2, 16, 1], strides = [1, 1, 1]} : vector<2x16x9xf32> to vector<2x16x1xf32>
    %354 = vector.broadcast %353 : vector<2x16x1xf32> to vector<2x16x16xf32>
    %355 = vector.broadcast %141 : vector<1x16x16xf32> to vector<2x16x16xf32>
    %356 = arith.mulf %354, %355 : vector<2x16x16xf32>
    %357 = arith.addf %352, %356 : vector<2x16x16xf32>
    %cst_53 = arith.constant -1.000000e+04 : f32
    %358 = vector.broadcast %cst_53 : f32 to vector<2x16x16xf32>
    %359 = arith.select %173, %357, %358 : vector<2x16x16xi1>, vector<2x16x16xf32>
    %cst_54 = arith.constant dense<0xFF800000> : vector<2x16xf32>
    %360 = vector.multi_reduction <maximumf>, %359, %cst_54 [2] : vector<2x16x16xf32> to vector<2x16xf32>
    %361 = vector.shape_cast %360 : vector<2x16xf32> to vector<2x16x1xf32>
    %362 = vector.broadcast %361 : vector<2x16x1xf32> to vector<2x16x16xf32>
    %363 = arith.subf %359, %362 : vector<2x16x16xf32>
    %364 = math.exp %363 : vector<2x16x16xf32>
    %cst_55 = arith.constant dense<0.000000e+00> : vector<2x16xf32>
    %365 = vector.multi_reduction <add>, %364, %cst_55 [2] : vector<2x16x16xf32> to vector<2x16xf32>
    %366 = vector.shape_cast %365 : vector<2x16xf32> to vector<2x16x1xf32>
    %367 = vector.broadcast %366 : vector<2x16x1xf32> to vector<2x16x16xf32>
    %368 = arith.divf %364, %367 : vector<2x16x16xf32>
    "tpu.trace_start"() <{level = 10 : i32, message = "bts,bsd->btd"}> : () -> ()
    %cst_56 = arith.constant dense<0.000000e+00> : vector<2x16x8xf32>
    %369 = tpu.matmul %368, %310, %cst_56 {dimension_numbers = #tpu.dot_dimension_numbers<[2], [1], [1], [2], [0, 0, 0, 1, 1, 2], [0], [0]>, precision = #tpu.contract_precision<fp32>} : vector<2x16x16xf32>, vector<2x16x8xf32>, vector<2x16x8xf32> -> vector<2x16x8xf32>
    "tpu.trace_stop"() : () -> ()
    %370 = vector.broadcast %101 : vector<1x16x16xf32> to vector<2x16x16xf32>
    %371 = arith.mulf %368, %370 : vector<2x16x16xf32>
    %cst_57 = arith.constant dense<0.000000e+00> : vector<2x16xf32>
    %372 = vector.multi_reduction <add>, %371, %cst_57 [2] : vector<2x16x16xf32> to vector<2x16xf32>
    %373 = vector.shape_cast %372 : vector<2x16xf32> to vector<2x16x1xf32>
    %374 = vector.broadcast %373 : vector<2x16x1xf32> to vector<2x16x8xf32>
    %375 = vector.broadcast %144 : vector<1x1x8xf32> to vector<2x16x8xf32>
    %376 = arith.mulf %374, %375 : vector<2x16x8xf32>
    %377 = arith.addf %369, %376 : vector<2x16x8xf32>
    %378 = vector.broadcast %106 : vector<1x16x16xf32> to vector<2x16x16xf32>
    %379 = arith.mulf %368, %378 : vector<2x16x16xf32>
    %cst_58 = arith.constant dense<0.000000e+00> : vector<2x16xf32>
    %380 = vector.multi_reduction <add>, %379, %cst_58 [2] : vector<2x16x16xf32> to vector<2x16xf32>
    %381 = vector.shape_cast %380 : vector<2x16xf32> to vector<2x16x1xf32>
    %382 = vector.broadcast %381 : vector<2x16x1xf32> to vector<2x16x8xf32>
    %383 = vector.broadcast %147 : vector<1x1x8xf32> to vector<2x16x8xf32>
    %384 = arith.mulf %382, %383 : vector<2x16x8xf32>
    %385 = arith.addf %377, %384 : vector<2x16x8xf32>
    %386 = vector.broadcast %111 : vector<1x16x16xf32> to vector<2x16x16xf32>
    %387 = arith.mulf %368, %386 : vector<2x16x16xf32>
    %cst_59 = arith.constant dense<0.000000e+00> : vector<2x16xf32>
    %388 = vector.multi_reduction <add>, %387, %cst_59 [2] : vector<2x16x16xf32> to vector<2x16xf32>
    %389 = vector.shape_cast %388 : vector<2x16xf32> to vector<2x16x1xf32>
    %390 = vector.broadcast %389 : vector<2x16x1xf32> to vector<2x16x8xf32>
    %391 = vector.broadcast %150 : vector<1x1x8xf32> to vector<2x16x8xf32>
    %392 = arith.mulf %390, %391 : vector<2x16x8xf32>
    %393 = arith.addf %385, %392 : vector<2x16x8xf32>
    %394 = vector.broadcast %116 : vector<1x16x16xf32> to vector<2x16x16xf32>
    %395 = arith.mulf %368, %394 : vector<2x16x16xf32>
    %cst_60 = arith.constant dense<0.000000e+00> : vector<2x16xf32>
    %396 = vector.multi_reduction <add>, %395, %cst_60 [2] : vector<2x16x16xf32> to vector<2x16xf32>
    %397 = vector.shape_cast %396 : vector<2x16xf32> to vector<2x16x1xf32>
    %398 = vector.broadcast %397 : vector<2x16x1xf32> to vector<2x16x8xf32>
    %399 = vector.broadcast %153 : vector<1x1x8xf32> to vector<2x16x8xf32>
    %400 = arith.mulf %398, %399 : vector<2x16x8xf32>
    %401 = arith.addf %393, %400 : vector<2x16x8xf32>
    %402 = vector.broadcast %121 : vector<1x16x16xf32> to vector<2x16x16xf32>
    %403 = arith.mulf %368, %402 : vector<2x16x16xf32>
    %cst_61 = arith.constant dense<0.000000e+00> : vector<2x16xf32>
    %404 = vector.multi_reduction <add>, %403, %cst_61 [2] : vector<2x16x16xf32> to vector<2x16xf32>
    %405 = vector.shape_cast %404 : vector<2x16xf32> to vector<2x16x1xf32>
    %406 = vector.broadcast %405 : vector<2x16x1xf32> to vector<2x16x8xf32>
    %407 = vector.broadcast %156 : vector<1x1x8xf32> to vector<2x16x8xf32>
    %408 = arith.mulf %406, %407 : vector<2x16x8xf32>
    %409 = arith.addf %401, %408 : vector<2x16x8xf32>
    %410 = vector.broadcast %126 : vector<1x16x16xf32> to vector<2x16x16xf32>
    %411 = arith.mulf %368, %410 : vector<2x16x16xf32>
    %cst_62 = arith.constant dense<0.000000e+00> : vector<2x16xf32>
    %412 = vector.multi_reduction <add>, %411, %cst_62 [2] : vector<2x16x16xf32> to vector<2x16xf32>
    %413 = vector.shape_cast %412 : vector<2x16xf32> to vector<2x16x1xf32>
    %414 = vector.broadcast %413 : vector<2x16x1xf32> to vector<2x16x8xf32>
    %415 = vector.broadcast %159 : vector<1x1x8xf32> to vector<2x16x8xf32>
    %416 = arith.mulf %414, %415 : vector<2x16x8xf32>
    %417 = arith.addf %409, %416 : vector<2x16x8xf32>
    %418 = vector.broadcast %131 : vector<1x16x16xf32> to vector<2x16x16xf32>
    %419 = arith.mulf %368, %418 : vector<2x16x16xf32>
    %cst_63 = arith.constant dense<0.000000e+00> : vector<2x16xf32>
    %420 = vector.multi_reduction <add>, %419, %cst_63 [2] : vector<2x16x16xf32> to vector<2x16xf32>
    %421 = vector.shape_cast %420 : vector<2x16xf32> to vector<2x16x1xf32>
    %422 = vector.broadcast %421 : vector<2x16x1xf32> to vector<2x16x8xf32>
    %423 = vector.broadcast %162 : vector<1x1x8xf32> to vector<2x16x8xf32>
    %424 = arith.mulf %422, %423 : vector<2x16x8xf32>
    %425 = arith.addf %417, %424 : vector<2x16x8xf32>
    %426 = vector.broadcast %136 : vector<1x16x16xf32> to vector<2x16x16xf32>
    %427 = arith.mulf %368, %426 : vector<2x16x16xf32>
    %cst_64 = arith.constant dense<0.000000e+00> : vector<2x16xf32>
    %428 = vector.multi_reduction <add>, %427, %cst_64 [2] : vector<2x16x16xf32> to vector<2x16xf32>
    %429 = vector.shape_cast %428 : vector<2x16xf32> to vector<2x16x1xf32>
    %430 = vector.broadcast %429 : vector<2x16x1xf32> to vector<2x16x8xf32>
    %431 = vector.broadcast %165 : vector<1x1x8xf32> to vector<2x16x8xf32>
    %432 = arith.mulf %430, %431 : vector<2x16x8xf32>
    %433 = arith.addf %425, %432 : vector<2x16x8xf32>
    %434 = vector.broadcast %141 : vector<1x16x16xf32> to vector<2x16x16xf32>
    %435 = arith.mulf %368, %434 : vector<2x16x16xf32>
    %cst_65 = arith.constant dense<0.000000e+00> : vector<2x16xf32>
    %436 = vector.multi_reduction <add>, %435, %cst_65 [2] : vector<2x16x16xf32> to vector<2x16xf32>
    %437 = vector.shape_cast %436 : vector<2x16xf32> to vector<2x16x1xf32>
    %438 = vector.broadcast %437 : vector<2x16x1xf32> to vector<2x16x8xf32>
    %439 = vector.broadcast %168 : vector<1x1x8xf32> to vector<2x16x8xf32>
    %440 = arith.mulf %438, %439 : vector<2x16x8xf32>
    %441 = arith.addf %433, %440 : vector<2x16x8xf32>
    %442 = vector.extract_strided_slice %90 {offsets = [0, 0, 16], sizes = [2, 16, 8], strides = [1, 1, 1]} : vector<2x16x32xf32> to vector<2x16x8xf32>
    %443 = vector.extract_strided_slice %91 {offsets = [0, 0, 16], sizes = [2, 16, 8], strides = [1, 1, 1]} : vector<2x16x32xf32> to vector<2x16x8xf32>
    %444 = vector.extract_strided_slice %92 {offsets = [0, 0, 16], sizes = [2, 16, 8], strides = [1, 1, 1]} : vector<2x16x32xf32> to vector<2x16x8xf32>
    %445 = vector.extract_strided_slice %93 {offsets = [0, 0, 18], sizes = [2, 16, 9], strides = [1, 1, 1]} : vector<2x16x36xf32> to vector<2x16x9xf32>
    "tpu.trace_start"() <{level = 10 : i32, message = "btd,bsd->bts"}> : () -> ()
    %cst_66 = arith.constant dense<0.000000e+00> : vector<2x16x16xf32>
    %446 = tpu.matmul %442, %443, %cst_66 {dimension_numbers = #tpu.dot_dimension_numbers<[2], [2], [1], [1], [0, 0, 0, 1, 1, 1], [0], [0]>, precision = #tpu.contract_precision<fp32>} : vector<2x16x8xf32>, vector<2x16x8xf32>, vector<2x16x16xf32> -> vector<2x16x16xf32>
    "tpu.trace_stop"() : () -> ()
    %447 = vector.extract_strided_slice %445 {offsets = [0, 0, 0], sizes = [2, 16, 1], strides = [1, 1, 1]} : vector<2x16x9xf32> to vector<2x16x1xf32>
    %448 = vector.broadcast %447 : vector<2x16x1xf32> to vector<2x16x16xf32>
    %449 = vector.broadcast %101 : vector<1x16x16xf32> to vector<2x16x16xf32>
    %450 = arith.mulf %448, %449 : vector<2x16x16xf32>
    %451 = arith.addf %446, %450 : vector<2x16x16xf32>
    %452 = vector.extract_strided_slice %445 {offsets = [0, 0, 1], sizes = [2, 16, 1], strides = [1, 1, 1]} : vector<2x16x9xf32> to vector<2x16x1xf32>
    %453 = vector.broadcast %452 : vector<2x16x1xf32> to vector<2x16x16xf32>
    %454 = vector.broadcast %106 : vector<1x16x16xf32> to vector<2x16x16xf32>
    %455 = arith.mulf %453, %454 : vector<2x16x16xf32>
    %456 = arith.addf %451, %455 : vector<2x16x16xf32>
    %457 = vector.extract_strided_slice %445 {offsets = [0, 0, 2], sizes = [2, 16, 1], strides = [1, 1, 1]} : vector<2x16x9xf32> to vector<2x16x1xf32>
    %458 = vector.broadcast %457 : vector<2x16x1xf32> to vector<2x16x16xf32>
    %459 = vector.broadcast %111 : vector<1x16x16xf32> to vector<2x16x16xf32>
    %460 = arith.mulf %458, %459 : vector<2x16x16xf32>
    %461 = arith.addf %456, %460 : vector<2x16x16xf32>
    %462 = vector.extract_strided_slice %445 {offsets = [0, 0, 3], sizes = [2, 16, 1], strides = [1, 1, 1]} : vector<2x16x9xf32> to vector<2x16x1xf32>
    %463 = vector.broadcast %462 : vector<2x16x1xf32> to vector<2x16x16xf32>
    %464 = vector.broadcast %116 : vector<1x16x16xf32> to vector<2x16x16xf32>
    %465 = arith.mulf %463, %464 : vector<2x16x16xf32>
    %466 = arith.addf %461, %465 : vector<2x16x16xf32>
    %467 = vector.extract_strided_slice %445 {offsets = [0, 0, 4], sizes = [2, 16, 1], strides = [1, 1, 1]} : vector<2x16x9xf32> to vector<2x16x1xf32>
    %468 = vector.broadcast %467 : vector<2x16x1xf32> to vector<2x16x16xf32>
    %469 = vector.broadcast %121 : vector<1x16x16xf32> to vector<2x16x16xf32>
    %470 = arith.mulf %468, %469 : vector<2x16x16xf32>
    %471 = arith.addf %466, %470 : vector<2x16x16xf32>
    %472 = vector.extract_strided_slice %445 {offsets = [0, 0, 5], sizes = [2, 16, 1], strides = [1, 1, 1]} : vector<2x16x9xf32> to vector<2x16x1xf32>
    %473 = vector.broadcast %472 : vector<2x16x1xf32> to vector<2x16x16xf32>
    %474 = vector.broadcast %126 : vector<1x16x16xf32> to vector<2x16x16xf32>
    %475 = arith.mulf %473, %474 : vector<2x16x16xf32>
    %476 = arith.addf %471, %475 : vector<2x16x16xf32>
    %477 = vector.extract_strided_slice %445 {offsets = [0, 0, 6], sizes = [2, 16, 1], strides = [1, 1, 1]} : vector<2x16x9xf32> to vector<2x16x1xf32>
    %478 = vector.broadcast %477 : vector<2x16x1xf32> to vector<2x16x16xf32>
    %479 = vector.broadcast %131 : vector<1x16x16xf32> to vector<2x16x16xf32>
    %480 = arith.mulf %478, %479 : vector<2x16x16xf32>
    %481 = arith.addf %476, %480 : vector<2x16x16xf32>
    %482 = vector.extract_strided_slice %445 {offsets = [0, 0, 7], sizes = [2, 16, 1], strides = [1, 1, 1]} : vector<2x16x9xf32> to vector<2x16x1xf32>
    %483 = vector.broadcast %482 : vector<2x16x1xf32> to vector<2x16x16xf32>
    %484 = vector.broadcast %136 : vector<1x16x16xf32> to vector<2x16x16xf32>
    %485 = arith.mulf %483, %484 : vector<2x16x16xf32>
    %486 = arith.addf %481, %485 : vector<2x16x16xf32>
    %487 = vector.extract_strided_slice %445 {offsets = [0, 0, 8], sizes = [2, 16, 1], strides = [1, 1, 1]} : vector<2x16x9xf32> to vector<2x16x1xf32>
    %488 = vector.broadcast %487 : vector<2x16x1xf32> to vector<2x16x16xf32>
    %489 = vector.broadcast %141 : vector<1x16x16xf32> to vector<2x16x16xf32>
    %490 = arith.mulf %488, %489 : vector<2x16x16xf32>
    %491 = arith.addf %486, %490 : vector<2x16x16xf32>
    %cst_67 = arith.constant -1.000000e+04 : f32
    %492 = vector.broadcast %cst_67 : f32 to vector<2x16x16xf32>
    %493 = arith.select %173, %491, %492 : vector<2x16x16xi1>, vector<2x16x16xf32>
    %cst_68 = arith.constant dense<0xFF800000> : vector<2x16xf32>
    %494 = vector.multi_reduction <maximumf>, %493, %cst_68 [2] : vector<2x16x16xf32> to vector<2x16xf32>
    %495 = vector.shape_cast %494 : vector<2x16xf32> to vector<2x16x1xf32>
    %496 = vector.broadcast %495 : vector<2x16x1xf32> to vector<2x16x16xf32>
    %497 = arith.subf %493, %496 : vector<2x16x16xf32>
    %498 = math.exp %497 : vector<2x16x16xf32>
    %cst_69 = arith.constant dense<0.000000e+00> : vector<2x16xf32>
    %499 = vector.multi_reduction <add>, %498, %cst_69 [2] : vector<2x16x16xf32> to vector<2x16xf32>
    %500 = vector.shape_cast %499 : vector<2x16xf32> to vector<2x16x1xf32>
    %501 = vector.broadcast %500 : vector<2x16x1xf32> to vector<2x16x16xf32>
    %502 = arith.divf %498, %501 : vector<2x16x16xf32>
    "tpu.trace_start"() <{level = 10 : i32, message = "bts,bsd->btd"}> : () -> ()
    %cst_70 = arith.constant dense<0.000000e+00> : vector<2x16x8xf32>
    %503 = tpu.matmul %502, %444, %cst_70 {dimension_numbers = #tpu.dot_dimension_numbers<[2], [1], [1], [2], [0, 0, 0, 1, 1, 2], [0], [0]>, precision = #tpu.contract_precision<fp32>} : vector<2x16x16xf32>, vector<2x16x8xf32>, vector<2x16x8xf32> -> vector<2x16x8xf32>
    "tpu.trace_stop"() : () -> ()
    %504 = vector.broadcast %101 : vector<1x16x16xf32> to vector<2x16x16xf32>
    %505 = arith.mulf %502, %504 : vector<2x16x16xf32>
    %cst_71 = arith.constant dense<0.000000e+00> : vector<2x16xf32>
    %506 = vector.multi_reduction <add>, %505, %cst_71 [2] : vector<2x16x16xf32> to vector<2x16xf32>
    %507 = vector.shape_cast %506 : vector<2x16xf32> to vector<2x16x1xf32>
    %508 = vector.broadcast %507 : vector<2x16x1xf32> to vector<2x16x8xf32>
    %509 = vector.broadcast %144 : vector<1x1x8xf32> to vector<2x16x8xf32>
    %510 = arith.mulf %508, %509 : vector<2x16x8xf32>
    %511 = arith.addf %503, %510 : vector<2x16x8xf32>
    %512 = vector.broadcast %106 : vector<1x16x16xf32> to vector<2x16x16xf32>
    %513 = arith.mulf %502, %512 : vector<2x16x16xf32>
    %cst_72 = arith.constant dense<0.000000e+00> : vector<2x16xf32>
    %514 = vector.multi_reduction <add>, %513, %cst_72 [2] : vector<2x16x16xf32> to vector<2x16xf32>
    %515 = vector.shape_cast %514 : vector<2x16xf32> to vector<2x16x1xf32>
    %516 = vector.broadcast %515 : vector<2x16x1xf32> to vector<2x16x8xf32>
    %517 = vector.broadcast %147 : vector<1x1x8xf32> to vector<2x16x8xf32>
    %518 = arith.mulf %516, %517 : vector<2x16x8xf32>
    %519 = arith.addf %511, %518 : vector<2x16x8xf32>
    %520 = vector.broadcast %111 : vector<1x16x16xf32> to vector<2x16x16xf32>
    %521 = arith.mulf %502, %520 : vector<2x16x16xf32>
    %cst_73 = arith.constant dense<0.000000e+00> : vector<2x16xf32>
    %522 = vector.multi_reduction <add>, %521, %cst_73 [2] : vector<2x16x16xf32> to vector<2x16xf32>
    %523 = vector.shape_cast %522 : vector<2x16xf32> to vector<2x16x1xf32>
    %524 = vector.broadcast %523 : vector<2x16x1xf32> to vector<2x16x8xf32>
    %525 = vector.broadcast %150 : vector<1x1x8xf32> to vector<2x16x8xf32>
    %526 = arith.mulf %524, %525 : vector<2x16x8xf32>
    %527 = arith.addf %519, %526 : vector<2x16x8xf32>
    %528 = vector.broadcast %116 : vector<1x16x16xf32> to vector<2x16x16xf32>
    %529 = arith.mulf %502, %528 : vector<2x16x16xf32>
    %cst_74 = arith.constant dense<0.000000e+00> : vector<2x16xf32>
    %530 = vector.multi_reduction <add>, %529, %cst_74 [2] : vector<2x16x16xf32> to vector<2x16xf32>
    %531 = vector.shape_cast %530 : vector<2x16xf32> to vector<2x16x1xf32>
    %532 = vector.broadcast %531 : vector<2x16x1xf32> to vector<2x16x8xf32>
    %533 = vector.broadcast %153 : vector<1x1x8xf32> to vector<2x16x8xf32>
    %534 = arith.mulf %532, %533 : vector<2x16x8xf32>
    %535 = arith.addf %527, %534 : vector<2x16x8xf32>
    %536 = vector.broadcast %121 : vector<1x16x16xf32> to vector<2x16x16xf32>
    %537 = arith.mulf %502, %536 : vector<2x16x16xf32>
    %cst_75 = arith.constant dense<0.000000e+00> : vector<2x16xf32>
    %538 = vector.multi_reduction <add>, %537, %cst_75 [2] : vector<2x16x16xf32> to vector<2x16xf32>
    %539 = vector.shape_cast %538 : vector<2x16xf32> to vector<2x16x1xf32>
    %540 = vector.broadcast %539 : vector<2x16x1xf32> to vector<2x16x8xf32>
    %541 = vector.broadcast %156 : vector<1x1x8xf32> to vector<2x16x8xf32>
    %542 = arith.mulf %540, %541 : vector<2x16x8xf32>
    %543 = arith.addf %535, %542 : vector<2x16x8xf32>
    %544 = vector.broadcast %126 : vector<1x16x16xf32> to vector<2x16x16xf32>
    %545 = arith.mulf %502, %544 : vector<2x16x16xf32>
    %cst_76 = arith.constant dense<0.000000e+00> : vector<2x16xf32>
    %546 = vector.multi_reduction <add>, %545, %cst_76 [2] : vector<2x16x16xf32> to vector<2x16xf32>
    %547 = vector.shape_cast %546 : vector<2x16xf32> to vector<2x16x1xf32>
    %548 = vector.broadcast %547 : vector<2x16x1xf32> to vector<2x16x8xf32>
    %549 = vector.broadcast %159 : vector<1x1x8xf32> to vector<2x16x8xf32>
    %550 = arith.mulf %548, %549 : vector<2x16x8xf32>
    %551 = arith.addf %543, %550 : vector<2x16x8xf32>
    %552 = vector.broadcast %131 : vector<1x16x16xf32> to vector<2x16x16xf32>
    %553 = arith.mulf %502, %552 : vector<2x16x16xf32>
    %cst_77 = arith.constant dense<0.000000e+00> : vector<2x16xf32>
    %554 = vector.multi_reduction <add>, %553, %cst_77 [2] : vector<2x16x16xf32> to vector<2x16xf32>
    %555 = vector.shape_cast %554 : vector<2x16xf32> to vector<2x16x1xf32>
    %556 = vector.broadcast %555 : vector<2x16x1xf32> to vector<2x16x8xf32>
    %557 = vector.broadcast %162 : vector<1x1x8xf32> to vector<2x16x8xf32>
    %558 = arith.mulf %556, %557 : vector<2x16x8xf32>
    %559 = arith.addf %551, %558 : vector<2x16x8xf32>
    %560 = vector.broadcast %136 : vector<1x16x16xf32> to vector<2x16x16xf32>
    %561 = arith.mulf %502, %560 : vector<2x16x16xf32>
    %cst_78 = arith.constant dense<0.000000e+00> : vector<2x16xf32>
    %562 = vector.multi_reduction <add>, %561, %cst_78 [2] : vector<2x16x16xf32> to vector<2x16xf32>
    %563 = vector.shape_cast %562 : vector<2x16xf32> to vector<2x16x1xf32>
    %564 = vector.broadcast %563 : vector<2x16x1xf32> to vector<2x16x8xf32>
    %565 = vector.broadcast %165 : vector<1x1x8xf32> to vector<2x16x8xf32>
    %566 = arith.mulf %564, %565 : vector<2x16x8xf32>
    %567 = arith.addf %559, %566 : vector<2x16x8xf32>
    %568 = vector.broadcast %141 : vector<1x16x16xf32> to vector<2x16x16xf32>
    %569 = arith.mulf %502, %568 : vector<2x16x16xf32>
    %cst_79 = arith.constant dense<0.000000e+00> : vector<2x16xf32>
    %570 = vector.multi_reduction <add>, %569, %cst_79 [2] : vector<2x16x16xf32> to vector<2x16xf32>
    %571 = vector.shape_cast %570 : vector<2x16xf32> to vector<2x16x1xf32>
    %572 = vector.broadcast %571 : vector<2x16x1xf32> to vector<2x16x8xf32>
    %573 = vector.broadcast %168 : vector<1x1x8xf32> to vector<2x16x8xf32>
    %574 = arith.mulf %572, %573 : vector<2x16x8xf32>
    %575 = arith.addf %567, %574 : vector<2x16x8xf32>
    %576 = vector.extract_strided_slice %90 {offsets = [0, 0, 24], sizes = [2, 16, 8], strides = [1, 1, 1]} : vector<2x16x32xf32> to vector<2x16x8xf32>
    %577 = vector.extract_strided_slice %91 {offsets = [0, 0, 24], sizes = [2, 16, 8], strides = [1, 1, 1]} : vector<2x16x32xf32> to vector<2x16x8xf32>
    %578 = vector.extract_strided_slice %92 {offsets = [0, 0, 24], sizes = [2, 16, 8], strides = [1, 1, 1]} : vector<2x16x32xf32> to vector<2x16x8xf32>
    %579 = vector.extract_strided_slice %93 {offsets = [0, 0, 27], sizes = [2, 16, 9], strides = [1, 1, 1]} : vector<2x16x36xf32> to vector<2x16x9xf32>
    "tpu.trace_start"() <{level = 10 : i32, message = "btd,bsd->bts"}> : () -> ()
    %cst_80 = arith.constant dense<0.000000e+00> : vector<2x16x16xf32>
    %580 = tpu.matmul %576, %577, %cst_80 {dimension_numbers = #tpu.dot_dimension_numbers<[2], [2], [1], [1], [0, 0, 0, 1, 1, 1], [0], [0]>, precision = #tpu.contract_precision<fp32>} : vector<2x16x8xf32>, vector<2x16x8xf32>, vector<2x16x16xf32> -> vector<2x16x16xf32>
    "tpu.trace_stop"() : () -> ()
    %581 = vector.extract_strided_slice %579 {offsets = [0, 0, 0], sizes = [2, 16, 1], strides = [1, 1, 1]} : vector<2x16x9xf32> to vector<2x16x1xf32>
    %582 = vector.broadcast %581 : vector<2x16x1xf32> to vector<2x16x16xf32>
    %583 = vector.broadcast %101 : vector<1x16x16xf32> to vector<2x16x16xf32>
    %584 = arith.mulf %582, %583 : vector<2x16x16xf32>
    %585 = arith.addf %580, %584 : vector<2x16x16xf32>
    %586 = vector.extract_strided_slice %579 {offsets = [0, 0, 1], sizes = [2, 16, 1], strides = [1, 1, 1]} : vector<2x16x9xf32> to vector<2x16x1xf32>
    %587 = vector.broadcast %586 : vector<2x16x1xf32> to vector<2x16x16xf32>
    %588 = vector.broadcast %106 : vector<1x16x16xf32> to vector<2x16x16xf32>
    %589 = arith.mulf %587, %588 : vector<2x16x16xf32>
    %590 = arith.addf %585, %589 : vector<2x16x16xf32>
    %591 = vector.extract_strided_slice %579 {offsets = [0, 0, 2], sizes = [2, 16, 1], strides = [1, 1, 1]} : vector<2x16x9xf32> to vector<2x16x1xf32>
    %592 = vector.broadcast %591 : vector<2x16x1xf32> to vector<2x16x16xf32>
    %593 = vector.broadcast %111 : vector<1x16x16xf32> to vector<2x16x16xf32>
    %594 = arith.mulf %592, %593 : vector<2x16x16xf32>
    %595 = arith.addf %590, %594 : vector<2x16x16xf32>
    %596 = vector.extract_strided_slice %579 {offsets = [0, 0, 3], sizes = [2, 16, 1], strides = [1, 1, 1]} : vector<2x16x9xf32> to vector<2x16x1xf32>
    %597 = vector.broadcast %596 : vector<2x16x1xf32> to vector<2x16x16xf32>
    %598 = vector.broadcast %116 : vector<1x16x16xf32> to vector<2x16x16xf32>
    %599 = arith.mulf %597, %598 : vector<2x16x16xf32>
    %600 = arith.addf %595, %599 : vector<2x16x16xf32>
    %601 = vector.extract_strided_slice %579 {offsets = [0, 0, 4], sizes = [2, 16, 1], strides = [1, 1, 1]} : vector<2x16x9xf32> to vector<2x16x1xf32>
    %602 = vector.broadcast %601 : vector<2x16x1xf32> to vector<2x16x16xf32>
    %603 = vector.broadcast %121 : vector<1x16x16xf32> to vector<2x16x16xf32>
    %604 = arith.mulf %602, %603 : vector<2x16x16xf32>
    %605 = arith.addf %600, %604 : vector<2x16x16xf32>
    %606 = vector.extract_strided_slice %579 {offsets = [0, 0, 5], sizes = [2, 16, 1], strides = [1, 1, 1]} : vector<2x16x9xf32> to vector<2x16x1xf32>
    %607 = vector.broadcast %606 : vector<2x16x1xf32> to vector<2x16x16xf32>
    %608 = vector.broadcast %126 : vector<1x16x16xf32> to vector<2x16x16xf32>
    %609 = arith.mulf %607, %608 : vector<2x16x16xf32>
    %610 = arith.addf %605, %609 : vector<2x16x16xf32>
    %611 = vector.extract_strided_slice %579 {offsets = [0, 0, 6], sizes = [2, 16, 1], strides = [1, 1, 1]} : vector<2x16x9xf32> to vector<2x16x1xf32>
    %612 = vector.broadcast %611 : vector<2x16x1xf32> to vector<2x16x16xf32>
    %613 = vector.broadcast %131 : vector<1x16x16xf32> to vector<2x16x16xf32>
    %614 = arith.mulf %612, %613 : vector<2x16x16xf32>
    %615 = arith.addf %610, %614 : vector<2x16x16xf32>
    %616 = vector.extract_strided_slice %579 {offsets = [0, 0, 7], sizes = [2, 16, 1], strides = [1, 1, 1]} : vector<2x16x9xf32> to vector<2x16x1xf32>
    %617 = vector.broadcast %616 : vector<2x16x1xf32> to vector<2x16x16xf32>
    %618 = vector.broadcast %136 : vector<1x16x16xf32> to vector<2x16x16xf32>
    %619 = arith.mulf %617, %618 : vector<2x16x16xf32>
    %620 = arith.addf %615, %619 : vector<2x16x16xf32>
    %621 = vector.extract_strided_slice %579 {offsets = [0, 0, 8], sizes = [2, 16, 1], strides = [1, 1, 1]} : vector<2x16x9xf32> to vector<2x16x1xf32>
    %622 = vector.broadcast %621 : vector<2x16x1xf32> to vector<2x16x16xf32>
    %623 = vector.broadcast %141 : vector<1x16x16xf32> to vector<2x16x16xf32>
    %624 = arith.mulf %622, %623 : vector<2x16x16xf32>
    %625 = arith.addf %620, %624 : vector<2x16x16xf32>
    %cst_81 = arith.constant -1.000000e+04 : f32
    %626 = vector.broadcast %cst_81 : f32 to vector<2x16x16xf32>
    %627 = arith.select %173, %625, %626 : vector<2x16x16xi1>, vector<2x16x16xf32>
    %cst_82 = arith.constant dense<0xFF800000> : vector<2x16xf32>
    %628 = vector.multi_reduction <maximumf>, %627, %cst_82 [2] : vector<2x16x16xf32> to vector<2x16xf32>
    %629 = vector.shape_cast %628 : vector<2x16xf32> to vector<2x16x1xf32>
    %630 = vector.broadcast %629 : vector<2x16x1xf32> to vector<2x16x16xf32>
    %631 = arith.subf %627, %630 : vector<2x16x16xf32>
    %632 = math.exp %631 : vector<2x16x16xf32>
    %cst_83 = arith.constant dense<0.000000e+00> : vector<2x16xf32>
    %633 = vector.multi_reduction <add>, %632, %cst_83 [2] : vector<2x16x16xf32> to vector<2x16xf32>
    %634 = vector.shape_cast %633 : vector<2x16xf32> to vector<2x16x1xf32>
    %635 = vector.broadcast %634 : vector<2x16x1xf32> to vector<2x16x16xf32>
    %636 = arith.divf %632, %635 : vector<2x16x16xf32>
    "tpu.trace_start"() <{level = 10 : i32, message = "bts,bsd->btd"}> : () -> ()
    %cst_84 = arith.constant dense<0.000000e+00> : vector<2x16x8xf32>
    %637 = tpu.matmul %636, %578, %cst_84 {dimension_numbers = #tpu.dot_dimension_numbers<[2], [1], [1], [2], [0, 0, 0, 1, 1, 2], [0], [0]>, precision = #tpu.contract_precision<fp32>} : vector<2x16x16xf32>, vector<2x16x8xf32>, vector<2x16x8xf32> -> vector<2x16x8xf32>
    "tpu.trace_stop"() : () -> ()
    %638 = vector.broadcast %101 : vector<1x16x16xf32> to vector<2x16x16xf32>
    %639 = arith.mulf %636, %638 : vector<2x16x16xf32>
    %cst_85 = arith.constant dense<0.000000e+00> : vector<2x16xf32>
    %640 = vector.multi_reduction <add>, %639, %cst_85 [2] : vector<2x16x16xf32> to vector<2x16xf32>
    %641 = vector.shape_cast %640 : vector<2x16xf32> to vector<2x16x1xf32>
    %642 = vector.broadcast %641 : vector<2x16x1xf32> to vector<2x16x8xf32>
    %643 = vector.broadcast %144 : vector<1x1x8xf32> to vector<2x16x8xf32>
    %644 = arith.mulf %642, %643 : vector<2x16x8xf32>
    %645 = arith.addf %637, %644 : vector<2x16x8xf32>
    %646 = vector.broadcast %106 : vector<1x16x16xf32> to vector<2x16x16xf32>
    %647 = arith.mulf %636, %646 : vector<2x16x16xf32>
    %cst_86 = arith.constant dense<0.000000e+00> : vector<2x16xf32>
    %648 = vector.multi_reduction <add>, %647, %cst_86 [2] : vector<2x16x16xf32> to vector<2x16xf32>
    %649 = vector.shape_cast %648 : vector<2x16xf32> to vector<2x16x1xf32>
    %650 = vector.broadcast %649 : vector<2x16x1xf32> to vector<2x16x8xf32>
    %651 = vector.broadcast %147 : vector<1x1x8xf32> to vector<2x16x8xf32>
    %652 = arith.mulf %650, %651 : vector<2x16x8xf32>
    %653 = arith.addf %645, %652 : vector<2x16x8xf32>
    %654 = vector.broadcast %111 : vector<1x16x16xf32> to vector<2x16x16xf32>
    %655 = arith.mulf %636, %654 : vector<2x16x16xf32>
    %cst_87 = arith.constant dense<0.000000e+00> : vector<2x16xf32>
    %656 = vector.multi_reduction <add>, %655, %cst_87 [2] : vector<2x16x16xf32> to vector<2x16xf32>
    %657 = vector.shape_cast %656 : vector<2x16xf32> to vector<2x16x1xf32>
    %658 = vector.broadcast %657 : vector<2x16x1xf32> to vector<2x16x8xf32>
    %659 = vector.broadcast %150 : vector<1x1x8xf32> to vector<2x16x8xf32>
    %660 = arith.mulf %658, %659 : vector<2x16x8xf32>
    %661 = arith.addf %653, %660 : vector<2x16x8xf32>
    %662 = vector.broadcast %116 : vector<1x16x16xf32> to vector<2x16x16xf32>
    %663 = arith.mulf %636, %662 : vector<2x16x16xf32>
    %cst_88 = arith.constant dense<0.000000e+00> : vector<2x16xf32>
    %664 = vector.multi_reduction <add>, %663, %cst_88 [2] : vector<2x16x16xf32> to vector<2x16xf32>
    %665 = vector.shape_cast %664 : vector<2x16xf32> to vector<2x16x1xf32>
    %666 = vector.broadcast %665 : vector<2x16x1xf32> to vector<2x16x8xf32>
    %667 = vector.broadcast %153 : vector<1x1x8xf32> to vector<2x16x8xf32>
    %668 = arith.mulf %666, %667 : vector<2x16x8xf32>
    %669 = arith.addf %661, %668 : vector<2x16x8xf32>
    %670 = vector.broadcast %121 : vector<1x16x16xf32> to vector<2x16x16xf32>
    %671 = arith.mulf %636, %670 : vector<2x16x16xf32>
    %cst_89 = arith.constant dense<0.000000e+00> : vector<2x16xf32>
    %672 = vector.multi_reduction <add>, %671, %cst_89 [2] : vector<2x16x16xf32> to vector<2x16xf32>
    %673 = vector.shape_cast %672 : vector<2x16xf32> to vector<2x16x1xf32>
    %674 = vector.broadcast %673 : vector<2x16x1xf32> to vector<2x16x8xf32>
    %675 = vector.broadcast %156 : vector<1x1x8xf32> to vector<2x16x8xf32>
    %676 = arith.mulf %674, %675 : vector<2x16x8xf32>
    %677 = arith.addf %669, %676 : vector<2x16x8xf32>
    %678 = vector.broadcast %126 : vector<1x16x16xf32> to vector<2x16x16xf32>
    %679 = arith.mulf %636, %678 : vector<2x16x16xf32>
    %cst_90 = arith.constant dense<0.000000e+00> : vector<2x16xf32>
    %680 = vector.multi_reduction <add>, %679, %cst_90 [2] : vector<2x16x16xf32> to vector<2x16xf32>
    %681 = vector.shape_cast %680 : vector<2x16xf32> to vector<2x16x1xf32>
    %682 = vector.broadcast %681 : vector<2x16x1xf32> to vector<2x16x8xf32>
    %683 = vector.broadcast %159 : vector<1x1x8xf32> to vector<2x16x8xf32>
    %684 = arith.mulf %682, %683 : vector<2x16x8xf32>
    %685 = arith.addf %677, %684 : vector<2x16x8xf32>
    %686 = vector.broadcast %131 : vector<1x16x16xf32> to vector<2x16x16xf32>
    %687 = arith.mulf %636, %686 : vector<2x16x16xf32>
    %cst_91 = arith.constant dense<0.000000e+00> : vector<2x16xf32>
    %688 = vector.multi_reduction <add>, %687, %cst_91 [2] : vector<2x16x16xf32> to vector<2x16xf32>
    %689 = vector.shape_cast %688 : vector<2x16xf32> to vector<2x16x1xf32>
    %690 = vector.broadcast %689 : vector<2x16x1xf32> to vector<2x16x8xf32>
    %691 = vector.broadcast %162 : vector<1x1x8xf32> to vector<2x16x8xf32>
    %692 = arith.mulf %690, %691 : vector<2x16x8xf32>
    %693 = arith.addf %685, %692 : vector<2x16x8xf32>
    %694 = vector.broadcast %136 : vector<1x16x16xf32> to vector<2x16x16xf32>
    %695 = arith.mulf %636, %694 : vector<2x16x16xf32>
    %cst_92 = arith.constant dense<0.000000e+00> : vector<2x16xf32>
    %696 = vector.multi_reduction <add>, %695, %cst_92 [2] : vector<2x16x16xf32> to vector<2x16xf32>
    %697 = vector.shape_cast %696 : vector<2x16xf32> to vector<2x16x1xf32>
    %698 = vector.broadcast %697 : vector<2x16x1xf32> to vector<2x16x8xf32>
    %699 = vector.broadcast %165 : vector<1x1x8xf32> to vector<2x16x8xf32>
    %700 = arith.mulf %698, %699 : vector<2x16x8xf32>
    %701 = arith.addf %693, %700 : vector<2x16x8xf32>
    %702 = vector.broadcast %141 : vector<1x16x16xf32> to vector<2x16x16xf32>
    %703 = arith.mulf %636, %702 : vector<2x16x16xf32>
    %cst_93 = arith.constant dense<0.000000e+00> : vector<2x16xf32>
    %704 = vector.multi_reduction <add>, %703, %cst_93 [2] : vector<2x16x16xf32> to vector<2x16xf32>
    %705 = vector.shape_cast %704 : vector<2x16xf32> to vector<2x16x1xf32>
    %706 = vector.broadcast %705 : vector<2x16x1xf32> to vector<2x16x8xf32>
    %707 = vector.broadcast %168 : vector<1x1x8xf32> to vector<2x16x8xf32>
    %708 = arith.mulf %706, %707 : vector<2x16x8xf32>
    %709 = arith.addf %701, %708 : vector<2x16x8xf32>
    %710 = tpu.concatenate %307, %441, %575, %709 in 2 : vector<2x16x8xf32>, vector<2x16x8xf32>, vector<2x16x8xf32>, vector<2x16x8xf32> -> vector<2x16x32xf32>
    %711 = vector.shape_cast %710 : vector<2x16x32xf32> to vector<32x32xf32>
    %712 = vector.extract_strided_slice %7 {offsets = [0, 96], sizes = [32, 32], strides = [1, 1]} : vector<32x164xf32> to vector<32x32xf32>
    %cst_94 = arith.constant dense<0.000000e+00> : vector<32x32xf32>
    %713 = tpu.matmul %711, %712, %cst_94 {dimension_numbers = #tpu.dot_dimension_numbers<[1], [0], [0], [1], [0, 0, 1, 1], [], []>, precision = #tpu.contract_precision<fp32>} : vector<32x32xf32>, vector<32x32xf32>, vector<32x32xf32> -> vector<32x32xf32>
    %714 = vector.extract_strided_slice %3 {offsets = [8, 0], sizes = [1, 32], strides = [1, 1]} : vector<27x32xf32> to vector<1x32xf32>
    %715 = vector.broadcast %714 : vector<1x32xf32> to vector<32x32xf32>
    %716 = arith.addf %713, %715 : vector<32x32xf32>
    %717 = arith.addf %716, %51 : vector<32x32xf32>
    %cst_95 = arith.constant dense<0.000000e+00> : vector<32xf32>
    %718 = vector.multi_reduction <add>, %717, %cst_95 [1] : vector<32x32xf32> to vector<32xf32>
    %719 = vector.shape_cast %718 : vector<32xf32> to vector<32x1xf32>
    %cst_96 = arith.constant 3.200000e+01 : f32
    %720 = vector.broadcast %cst_96 : f32 to vector<32x1xf32>
    %721 = arith.divf %719, %720 : vector<32x1xf32>
    %722 = vector.broadcast %721 : vector<32x1xf32> to vector<32x32xf32>
    %723 = arith.subf %717, %722 : vector<32x32xf32>
    %724 = arith.mulf %723, %723 : vector<32x32xf32>
    %cst_97 = arith.constant dense<0.000000e+00> : vector<32xf32>
    %725 = vector.multi_reduction <add>, %724, %cst_97 [1] : vector<32x32xf32> to vector<32xf32>
    %726 = vector.shape_cast %725 : vector<32xf32> to vector<32x1xf32>
    %cst_98 = arith.constant 3.200000e+01 : f32
    %727 = vector.broadcast %cst_98 : f32 to vector<32x1xf32>
    %728 = arith.divf %726, %727 : vector<32x1xf32>
    %cst_99 = arith.constant 9.99999974E-6 : f32
    %729 = vector.broadcast %cst_99 : f32 to vector<32x1xf32>
    %730 = arith.addf %728, %729 : vector<32x1xf32>
    %731 = math.rsqrt %730 : vector<32x1xf32>
    %732 = vector.broadcast %731 : vector<32x1xf32> to vector<32x32xf32>
    %733 = arith.mulf %723, %732 : vector<32x32xf32>
    %734 = vector.extract_strided_slice %3 {offsets = [9, 0], sizes = [1, 32], strides = [1, 1]} : vector<27x32xf32> to vector<1x32xf32>
    %735 = vector.broadcast %734 : vector<1x32xf32> to vector<32x32xf32>
    %736 = arith.mulf %733, %735 : vector<32x32xf32>
    %737 = vector.extract_strided_slice %3 {offsets = [10, 0], sizes = [1, 32], strides = [1, 1]} : vector<27x32xf32> to vector<1x32xf32>
    %738 = vector.broadcast %737 : vector<1x32xf32> to vector<32x32xf32>
    %739 = arith.addf %736, %738 : vector<32x32xf32>
    %740 = vector.extract_strided_slice %8 {offsets = [0, 0], sizes = [32, 64], strides = [1, 1]} : vector<32x96xf32> to vector<32x64xf32>
    %cst_100 = arith.constant dense<0.000000e+00> : vector<32x64xf32>
    %741 = tpu.matmul %739, %740, %cst_100 {dimension_numbers = #tpu.dot_dimension_numbers<[1], [0], [0], [1], [0, 0, 1, 1], [], []>, precision = #tpu.contract_precision<fp32>} : vector<32x32xf32>, vector<32x64xf32>, vector<32x64xf32> -> vector<32x64xf32>
    %742 = vector.extract_strided_slice %4 {offsets = [2, 0], sizes = [1, 64], strides = [1, 1]} : vector<3x64xf32> to vector<1x64xf32>
    %743 = vector.broadcast %742 : vector<1x64xf32> to vector<32x64xf32>
    %744 = arith.addf %741, %743 : vector<32x64xf32>
    %745 = vector.extract_strided_slice %744 {offsets = [0, 0], sizes = [32, 32], strides = [1, 1]} : vector<32x64xf32> to vector<32x32xf32>
    %746 = vector.extract_strided_slice %744 {offsets = [0, 32], sizes = [32, 32], strides = [1, 1]} : vector<32x64xf32> to vector<32x32xf32>
    %747 = arith.negf %746 : vector<32x32xf32>
    %748 = math.exp %747 : vector<32x32xf32>
    %cst_101 = arith.constant 1.000000e+00 : f32
    %749 = vector.broadcast %cst_101 : f32 to vector<32x32xf32>
    %750 = arith.addf %749, %748 : vector<32x32xf32>
    %751 = arith.divf %749, %750 : vector<32x32xf32>
    %752 = arith.mulf %745, %751 : vector<32x32xf32>
    %753 = vector.shape_cast %752 : vector<32x32xf32> to vector<2x16x32xf32>
    %cst_102 = arith.constant 0.000000e+00 : f32
    %754 = vector.broadcast %cst_102 : f32 to vector<2x3x32xf32>
    %755 = tpu.concatenate %754, %753, %754 in 1 : vector<2x3x32xf32>, vector<2x16x32xf32>, vector<2x3x32xf32> -> vector<2x22x32xf32>
    %756 = vector.extract_strided_slice %3 {offsets = [20, 0], sizes = [1, 32], strides = [1, 1]} : vector<27x32xf32> to vector<1x32xf32>
    %757 = vector.shape_cast %756 : vector<1x32xf32> to vector<32xf32>
    %758 = vector.shape_cast %757 : vector<32xf32> to vector<1x1x32xf32>
    %759 = vector.extract_strided_slice %3 {offsets = [21, 0], sizes = [1, 32], strides = [1, 1]} : vector<27x32xf32> to vector<1x32xf32>
    %760 = vector.shape_cast %759 : vector<1x32xf32> to vector<32xf32>
    %761 = vector.shape_cast %760 : vector<32xf32> to vector<1x1x32xf32>
    %762 = vector.extract_strided_slice %3 {offsets = [22, 0], sizes = [1, 32], strides = [1, 1]} : vector<27x32xf32> to vector<1x32xf32>
    %763 = vector.shape_cast %762 : vector<1x32xf32> to vector<32xf32>
    %764 = vector.shape_cast %763 : vector<32xf32> to vector<1x1x32xf32>
    %765 = vector.extract_strided_slice %3 {offsets = [23, 0], sizes = [1, 32], strides = [1, 1]} : vector<27x32xf32> to vector<1x32xf32>
    %766 = vector.shape_cast %765 : vector<1x32xf32> to vector<32xf32>
    %767 = vector.shape_cast %766 : vector<32xf32> to vector<1x1x32xf32>
    %768 = vector.extract_strided_slice %3 {offsets = [24, 0], sizes = [1, 32], strides = [1, 1]} : vector<27x32xf32> to vector<1x32xf32>
    %769 = vector.shape_cast %768 : vector<1x32xf32> to vector<32xf32>
    %770 = vector.shape_cast %769 : vector<32xf32> to vector<1x1x32xf32>
    %771 = vector.extract_strided_slice %3 {offsets = [25, 0], sizes = [1, 32], strides = [1, 1]} : vector<27x32xf32> to vector<1x32xf32>
    %772 = vector.shape_cast %771 : vector<1x32xf32> to vector<32xf32>
    %773 = vector.shape_cast %772 : vector<32xf32> to vector<1x1x32xf32>
    %774 = vector.extract_strided_slice %3 {offsets = [26, 0], sizes = [1, 32], strides = [1, 1]} : vector<27x32xf32> to vector<1x32xf32>
    %775 = vector.shape_cast %774 : vector<1x32xf32> to vector<32xf32>
    %776 = vector.shape_cast %775 : vector<32xf32> to vector<1x1x32xf32>
    %cst_103 = arith.constant 0.000000e+00 : f32
    %777 = vector.broadcast %cst_103 : f32 to vector<2x16x32xf32>
    %778 = vector.extract_strided_slice %755 {offsets = [0, 0, 0], sizes = [2, 16, 32], strides = [1, 1, 1]} : vector<2x22x32xf32> to vector<2x16x32xf32>
    %779 = vector.broadcast %758 : vector<1x1x32xf32> to vector<2x16x32xf32>
    %780 = arith.mulf %778, %779 : vector<2x16x32xf32>
    %781 = arith.addf %777, %780 : vector<2x16x32xf32>
    %782 = vector.extract_strided_slice %755 {offsets = [0, 1, 0], sizes = [2, 16, 32], strides = [1, 1, 1]} : vector<2x22x32xf32> to vector<2x16x32xf32>
    %783 = vector.broadcast %761 : vector<1x1x32xf32> to vector<2x16x32xf32>
    %784 = arith.mulf %782, %783 : vector<2x16x32xf32>
    %785 = arith.addf %781, %784 : vector<2x16x32xf32>
    %786 = vector.extract_strided_slice %755 {offsets = [0, 2, 0], sizes = [2, 16, 32], strides = [1, 1, 1]} : vector<2x22x32xf32> to vector<2x16x32xf32>
    %787 = vector.broadcast %764 : vector<1x1x32xf32> to vector<2x16x32xf32>
    %788 = arith.mulf %786, %787 : vector<2x16x32xf32>
    %789 = arith.addf %785, %788 : vector<2x16x32xf32>
    %790 = vector.extract_strided_slice %755 {offsets = [0, 3, 0], sizes = [2, 16, 32], strides = [1, 1, 1]} : vector<2x22x32xf32> to vector<2x16x32xf32>
    %791 = vector.broadcast %767 : vector<1x1x32xf32> to vector<2x16x32xf32>
    %792 = arith.mulf %790, %791 : vector<2x16x32xf32>
    %793 = arith.addf %789, %792 : vector<2x16x32xf32>
    %794 = vector.extract_strided_slice %755 {offsets = [0, 4, 0], sizes = [2, 16, 32], strides = [1, 1, 1]} : vector<2x22x32xf32> to vector<2x16x32xf32>
    %795 = vector.broadcast %770 : vector<1x1x32xf32> to vector<2x16x32xf32>
    %796 = arith.mulf %794, %795 : vector<2x16x32xf32>
    %797 = arith.addf %793, %796 : vector<2x16x32xf32>
    %798 = vector.extract_strided_slice %755 {offsets = [0, 5, 0], sizes = [2, 16, 32], strides = [1, 1, 1]} : vector<2x22x32xf32> to vector<2x16x32xf32>
    %799 = vector.broadcast %773 : vector<1x1x32xf32> to vector<2x16x32xf32>
    %800 = arith.mulf %798, %799 : vector<2x16x32xf32>
    %801 = arith.addf %797, %800 : vector<2x16x32xf32>
    %802 = vector.extract_strided_slice %755 {offsets = [0, 6, 0], sizes = [2, 16, 32], strides = [1, 1, 1]} : vector<2x22x32xf32> to vector<2x16x32xf32>
    %803 = vector.broadcast %776 : vector<1x1x32xf32> to vector<2x16x32xf32>
    %804 = arith.mulf %802, %803 : vector<2x16x32xf32>
    %805 = arith.addf %801, %804 : vector<2x16x32xf32>
    %806 = vector.shape_cast %805 : vector<2x16x32xf32> to vector<32x32xf32>
    %807 = vector.extract_strided_slice %3 {offsets = [11, 0], sizes = [1, 32], strides = [1, 1]} : vector<27x32xf32> to vector<1x32xf32>
    %808 = vector.broadcast %807 : vector<1x32xf32> to vector<32x32xf32>
    %809 = arith.addf %806, %808 : vector<32x32xf32>
    %810 = vector.extract_strided_slice %3 {offsets = [12, 0], sizes = [1, 32], strides = [1, 1]} : vector<27x32xf32> to vector<1x32xf32>
    %811 = vector.broadcast %810 : vector<1x32xf32> to vector<32x32xf32>
    %812 = arith.mulf %809, %811 : vector<32x32xf32>
    %813 = vector.extract_strided_slice %3 {offsets = [13, 0], sizes = [1, 32], strides = [1, 1]} : vector<27x32xf32> to vector<1x32xf32>
    %814 = vector.broadcast %813 : vector<1x32xf32> to vector<32x32xf32>
    %815 = arith.addf %812, %814 : vector<32x32xf32>
    %816 = arith.negf %815 : vector<32x32xf32>
    %817 = math.exp %816 : vector<32x32xf32>
    %cst_104 = arith.constant 1.000000e+00 : f32
    %818 = vector.broadcast %cst_104 : f32 to vector<32x32xf32>
    %819 = arith.addf %818, %817 : vector<32x32xf32>
    %820 = arith.divf %818, %819 : vector<32x32xf32>
    %821 = arith.mulf %815, %820 : vector<32x32xf32>
    %822 = vector.extract_strided_slice %8 {offsets = [0, 64], sizes = [32, 32], strides = [1, 1]} : vector<32x96xf32> to vector<32x32xf32>
    %cst_105 = arith.constant dense<0.000000e+00> : vector<32x32xf32>
    %823 = tpu.matmul %821, %822, %cst_105 {dimension_numbers = #tpu.dot_dimension_numbers<[1], [0], [0], [1], [0, 0, 1, 1], [], []>, precision = #tpu.contract_precision<fp32>} : vector<32x32xf32>, vector<32x32xf32>, vector<32x32xf32> -> vector<32x32xf32>
    %824 = vector.extract_strided_slice %3 {offsets = [14, 0], sizes = [1, 32], strides = [1, 1]} : vector<27x32xf32> to vector<1x32xf32>
    %825 = vector.broadcast %824 : vector<1x32xf32> to vector<32x32xf32>
    %826 = arith.addf %823, %825 : vector<32x32xf32>
    %827 = arith.addf %826, %717 : vector<32x32xf32>
    %828 = vector.extract_strided_slice %5 {offsets = [0, 64], sizes = [32, 64], strides = [1, 1]} : vector<32x128xf32> to vector<32x64xf32>
    %829 = vector.extract_strided_slice %4 {offsets = [1, 0], sizes = [1, 64], strides = [1, 1]} : vector<3x64xf32> to vector<1x64xf32>
    %830 = vector.extract_strided_slice %6 {offsets = [0, 32], sizes = [64, 32], strides = [1, 1]} : vector<64x64xf32> to vector<64x32xf32>
    %831 = vector.extract_strided_slice %3 {offsets = [17, 0], sizes = [1, 32], strides = [1, 1]} : vector<27x32xf32> to vector<1x32xf32>
    %cst_106 = arith.constant dense<0.000000e+00> : vector<32xf32>
    %832 = vector.multi_reduction <add>, %827, %cst_106 [1] : vector<32x32xf32> to vector<32xf32>
    %833 = vector.shape_cast %832 : vector<32xf32> to vector<32x1xf32>
    %cst_107 = arith.constant 3.200000e+01 : f32
    %834 = vector.broadcast %cst_107 : f32 to vector<32x1xf32>
    %835 = arith.divf %833, %834 : vector<32x1xf32>
    %836 = vector.broadcast %835 : vector<32x1xf32> to vector<32x32xf32>
    %837 = arith.subf %827, %836 : vector<32x32xf32>
    %838 = arith.mulf %837, %837 : vector<32x32xf32>
    %cst_108 = arith.constant dense<0.000000e+00> : vector<32xf32>
    %839 = vector.multi_reduction <add>, %838, %cst_108 [1] : vector<32x32xf32> to vector<32xf32>
    %840 = vector.shape_cast %839 : vector<32xf32> to vector<32x1xf32>
    %cst_109 = arith.constant 3.200000e+01 : f32
    %841 = vector.broadcast %cst_109 : f32 to vector<32x1xf32>
    %842 = arith.divf %840, %841 : vector<32x1xf32>
    %cst_110 = arith.constant 9.99999974E-6 : f32
    %843 = vector.broadcast %cst_110 : f32 to vector<32x1xf32>
    %844 = arith.addf %842, %843 : vector<32x1xf32>
    %845 = math.rsqrt %844 : vector<32x1xf32>
    %846 = vector.broadcast %845 : vector<32x1xf32> to vector<32x32xf32>
    %847 = arith.mulf %837, %846 : vector<32x32xf32>
    %848 = vector.extract_strided_slice %3 {offsets = [15, 0], sizes = [1, 32], strides = [1, 1]} : vector<27x32xf32> to vector<1x32xf32>
    %849 = vector.broadcast %848 : vector<1x32xf32> to vector<32x32xf32>
    %850 = arith.mulf %847, %849 : vector<32x32xf32>
    %851 = vector.extract_strided_slice %3 {offsets = [16, 0], sizes = [1, 32], strides = [1, 1]} : vector<27x32xf32> to vector<1x32xf32>
    %852 = vector.broadcast %851 : vector<1x32xf32> to vector<32x32xf32>
    %853 = arith.addf %850, %852 : vector<32x32xf32>
    %cst_111 = arith.constant dense<0.000000e+00> : vector<32x64xf32>
    %854 = tpu.matmul %853, %828, %cst_111 {dimension_numbers = #tpu.dot_dimension_numbers<[1], [0], [0], [1], [0, 0, 1, 1], [], []>, precision = #tpu.contract_precision<fp32>} : vector<32x32xf32>, vector<32x64xf32>, vector<32x64xf32> -> vector<32x64xf32>
    %855 = vector.broadcast %829 : vector<1x64xf32> to vector<32x64xf32>
    %856 = arith.addf %854, %855 : vector<32x64xf32>
    %857 = arith.negf %856 : vector<32x64xf32>
    %858 = math.exp %857 : vector<32x64xf32>
    %cst_112 = arith.constant 1.000000e+00 : f32
    %859 = vector.broadcast %cst_112 : f32 to vector<32x64xf32>
    %860 = arith.addf %859, %858 : vector<32x64xf32>
    %861 = arith.divf %859, %860 : vector<32x64xf32>
    %862 = arith.mulf %856, %861 : vector<32x64xf32>
    %cst_113 = arith.constant dense<0.000000e+00> : vector<32x32xf32>
    %863 = tpu.matmul %862, %830, %cst_113 {dimension_numbers = #tpu.dot_dimension_numbers<[1], [0], [0], [1], [0, 0, 1, 1], [], []>, precision = #tpu.contract_precision<fp32>} : vector<32x64xf32>, vector<64x32xf32>, vector<32x32xf32> -> vector<32x32xf32>
    %864 = vector.broadcast %831 : vector<1x32xf32> to vector<32x32xf32>
    %865 = arith.addf %863, %864 : vector<32x32xf32>
    %cst_114 = arith.constant 5.000000e-01 : f32
    %866 = vector.broadcast %cst_114 : f32 to vector<32x32xf32>
    %867 = arith.mulf %866, %865 : vector<32x32xf32>
    %868 = arith.addf %867, %827 : vector<32x32xf32>
    %cst_115 = arith.constant dense<0.000000e+00> : vector<32xf32>
    %869 = vector.multi_reduction <add>, %868, %cst_115 [1] : vector<32x32xf32> to vector<32xf32>
    %870 = vector.shape_cast %869 : vector<32xf32> to vector<32x1xf32>
    %cst_116 = arith.constant 3.200000e+01 : f32
    %871 = vector.broadcast %cst_116 : f32 to vector<32x1xf32>
    %872 = arith.divf %870, %871 : vector<32x1xf32>
    %873 = vector.broadcast %872 : vector<32x1xf32> to vector<32x32xf32>
    %874 = arith.subf %868, %873 : vector<32x32xf32>
    %875 = arith.mulf %874, %874 : vector<32x32xf32>
    %cst_117 = arith.constant dense<0.000000e+00> : vector<32xf32>
    %876 = vector.multi_reduction <add>, %875, %cst_117 [1] : vector<32x32xf32> to vector<32xf32>
    %877 = vector.shape_cast %876 : vector<32xf32> to vector<32x1xf32>
    %cst_118 = arith.constant 3.200000e+01 : f32
    %878 = vector.broadcast %cst_118 : f32 to vector<32x1xf32>
    %879 = arith.divf %877, %878 : vector<32x1xf32>
    %cst_119 = arith.constant 9.99999974E-6 : f32
    %880 = vector.broadcast %cst_119 : f32 to vector<32x1xf32>
    %881 = arith.addf %879, %880 : vector<32x1xf32>
    %882 = math.rsqrt %881 : vector<32x1xf32>
    %883 = vector.broadcast %882 : vector<32x1xf32> to vector<32x32xf32>
    %884 = arith.mulf %874, %883 : vector<32x32xf32>
    %885 = vector.extract_strided_slice %3 {offsets = [18, 0], sizes = [1, 32], strides = [1, 1]} : vector<27x32xf32> to vector<1x32xf32>
    %886 = vector.broadcast %885 : vector<1x32xf32> to vector<32x32xf32>
    %887 = arith.mulf %884, %886 : vector<32x32xf32>
    %888 = vector.extract_strided_slice %3 {offsets = [19, 0], sizes = [1, 32], strides = [1, 1]} : vector<27x32xf32> to vector<1x32xf32>
    %889 = vector.broadcast %888 : vector<1x32xf32> to vector<32x32xf32>
    %890 = arith.addf %887, %889 : vector<32x32xf32>
    %891 = vector.shape_cast %890 : vector<32x32xf32> to vector<2x16x32xf32>
    %c0_120 = arith.constant 0 : index
    %c0_121 = arith.constant 0 : index
    %c0_122 = arith.constant 0 : index
    %892 = vector.load %arg11[%c0_120, %c0_121, %c0_122] : memref<2x16x32xf32, #tpu.memory_space<vmem>>, vector<2x16x32xf32>
    tpu.vector_store %arg11[%c0_120, %c0_121, %c0_122], %891 {strides = array<i32>} : memref<2x16x32xf32, #tpu.memory_space<vmem>>, vector<2x16x32xf32>,
    return
  }
  func.func @transform_0(%arg0: i32) -> (i32, i32, i32) {
    %c0_i32 = arith.constant 0 : i32
    %c0_i32_0 = arith.constant 0 : i32
    %c0_i32_1 = arith.constant 0 : i32
    return %arg0, %c0_i32, %c0_i32_0 : i32, i32, i32
  }
  func.func @transform_1(%arg0: i32) -> (i32, i32, i32) {
    %c0_i32 = arith.constant 0 : i32
    %c0_i32_0 = arith.constant 0 : i32
    %c0_i32_1 = arith.constant 0 : i32
    return %arg0, %c0_i32, %c0_i32_0 : i32, i32, i32
  }
  func.func @transform_2(%arg0: i32) -> (i32, i32, i32) {
    %c0_i32 = arith.constant 0 : i32
    %c0_i32_0 = arith.constant 0 : i32
    %c0_i32_1 = arith.constant 0 : i32
    return %arg0, %c0_i32, %c0_i32_0 : i32, i32, i32
  }
  func.func @transform_3(%arg0: i32) -> (i32, i32) {
    %c0_i32 = arith.constant 0 : i32
    %c0_i32_0 = arith.constant 0 : i32
    %c0_i32_1 = arith.constant 0 : i32
    return %c0_i32, %c0_i32_0 : i32, i32
  }
  func.func @transform_4(%arg0: i32) -> (i32, i32) {
    %c0_i32 = arith.constant 0 : i32
    %c0_i32_0 = arith.constant 0 : i32
    %c0_i32_1 = arith.constant 0 : i32
    return %c0_i32, %c0_i32_0 : i32, i32
  }
  func.func @transform_5(%arg0: i32) -> (i32, i32) {
    %c0_i32 = arith.constant 0 : i32
    %c0_i32_0 = arith.constant 0 : i32
    %c0_i32_1 = arith.constant 0 : i32
    return %c0_i32, %c0_i32_0 : i32, i32
  }
  func.func @transform_6(%arg0: i32) -> (i32, i32) {
    %c0_i32 = arith.constant 0 : i32
    %c0_i32_0 = arith.constant 0 : i32
    %c0_i32_1 = arith.constant 0 : i32
    return %c0_i32, %c0_i32_0 : i32, i32
  }
  func.func @transform_7(%arg0: i32) -> (i32, i32) {
    %c0_i32 = arith.constant 0 : i32
    %c0_i32_0 = arith.constant 0 : i32
    %c0_i32_1 = arith.constant 0 : i32
    return %c0_i32, %c0_i32_0 : i32, i32
  }
  func.func @transform_8(%arg0: i32) -> (i32, i32) {
    %c0_i32 = arith.constant 0 : i32
    %c0_i32_0 = arith.constant 0 : i32
    %c0_i32_1 = arith.constant 0 : i32
    return %c0_i32, %c0_i32_0 : i32, i32
  }
  func.func @transform_9(%arg0: i32) -> (i32, i32) {
    %c0_i32 = arith.constant 0 : i32
    %c0_i32_0 = arith.constant 0 : i32
    %c0_i32_1 = arith.constant 0 : i32
    return %c0_i32, %c0_i32_0 : i32, i32
  }
  func.func @transform_10(%arg0: i32) -> (i32, i32, i32) {
    %c0_i32 = arith.constant 0 : i32
    %c0_i32_0 = arith.constant 0 : i32
    %c0_i32_1 = arith.constant 0 : i32
    return %arg0, %c0_i32, %c0_i32_0 : i32, i32, i32
  }
}

</mosaic_0001>

<bundles_post_ra>
// kernel: tpu_custom_call.1
= control target key start
LH: loop header
LB: loop body
LE: loop exit
PB: predicated region body
PF: predicated region fallthrough
CT: control target
= control target key end

     0   :  { %15 = vsyncpa [#allocation3], 0  ;;  %s25173_s0 = inlined_call_operand.hbm [shape: f32[2,16,32], index: 0, kind: input, shape index: {}]   ;;  %s25174_s1 = inlined_call_operand.vmem [shape: f32[2,16,1], index: 1, kind: input, shape index: {}]   ;;  %s25175_s2 = inlined_call_operand.vmem [shape: f32[2,1,16], index: 2, kind: input, shape index: {}]   ;;  %s25176_s3 = inlined_call_operand.hbm [shape: f32[27,32], index: 3, kind: input, shape index: {}]   ;;  %s25177_s4 = inlined_call_operand.vmem [shape: f32[3,64], index: 4, kind: input, shape index: {}]   ;;  %s25178_s5 = inlined_call_operand.hbm [shape: f32[32,128], index: 5, kind: input, shape index: {}]   ;;  %s25179_s6 = inlined_call_operand.vmem [shape: f32[64,64], index: 6, kind: input, shape index: {}]   ;;  %s25180_s7 = inlined_call_operand.hbm [shape: f32[32,164], index: 7, kind: input, shape index: {}]   ;;  %s25181_s8 = inlined_call_operand.hbm [shape: f32[32,96], index: 8, kind: input, shape index: {}]   ;;  %s25182_s9 = inlined_call_operand.vmem [shape: f32[9,8], index: 9, kind: input, shape index: {}]   ;;  %s25183_s10 = inlined_call_operand.hbm [shape: f32[2,16,32], index: 10, kind: output, shape index: {}]  }
   0x1   :  { %16 = vsyncpa [#allocation6], 0 }
   0x2   :  { %17 = vsyncpa [#allocation9], 0 }
   0x3   :  { %18 = vsyncpa [#allocation4], 0  ;;  %s21399_s13 = smov [#allocation5]   ;;  %s21400_s15 = smov [#allocation8]  }
   0x4   :  { %s40_s14 = sshll.u32 %s21399_s13, 4  ;;  %s68_s16 = sshll.u32 %s21400_s15, 4  ;;  %s41_s14 = int_to_ptr.vmem [resolvable:$true] %s40_s14  ;;  %s21514_s16 = int_to_ptr.vmem [resolvable:$true] %s68_s16 }
   0x5   :  { %s21259_s19 = scalar_lea.hbm %s25176_s3, 512 }
   0x6   :  { %p21260_p0 = scmp.ne.s32.totalorder %s25176_s3, %s21259_s19  ;;  %p21263_p1 = scmp.lt.u32.totalorder %s21259_s19, %s25176_s3 }
   0x8   :  { %p21265_p2 = pnand %p21263_p1, %p21260_p0 }
   0xa   :  { %21268 = shalt.err (!%p21265_p2)
}
   0xb   :  { %s21269_s24 = scalar_lea.vmem %s41_s14, 512  ;;  %p21274_p4 = scmp.lt.s32.totalorder %s41_s14, %s41_s14 }
   0xc   :  { %p21270_p3 = scmp.ne.s32.totalorder %s41_s14, %s21269_s24  ;;  %p21275_p5 = scmp.lt.s32.totalorder %s21269_s24, %s21269_s24 }
   0xe   :  { %p21276_p6 = por %p21275_p5, %p21274_p4 }
  0x10   :  { %p21277_p7 = pnand %p21276_p6, %p21270_p3 }
  0x12   :  { %21280 = shalt.err (!%p21277_p7)
}
  0x13   :  { %s21401_s25 = smov 128   ;;  %s21402_s26 = smov 8  }
  0x14   :  { %46 = dma.hbm_to_vmem [thread:$0]  %s25176_s3, 512, %s41_s14, [#allocation6], %s21401_s25, %s21401_s25, %s21402_s26  }
  0x15   :  { %s21281_s11 = scalar_lea.hbm %s25180_s7, 1024 }
  0x16   :  { %p21282_p8 = scmp.ne.s32.totalorder %s25180_s7, %s21281_s11  ;;  %p21285_p9 = scmp.lt.u32.totalorder %s21281_s11, %s25180_s7 }
  0x18   :  { %p21287_p10 = pnand %p21285_p9, %p21282_p8 }
  0x1a   :  { %21290 = shalt.err (!%p21287_p10)
}
  0x1b   :  { %s21291_s18 = scalar_lea.vmem %s21514_s16, 1024  ;;  %p21296_p12 = scmp.lt.s32.totalorder %s21514_s16, %s21514_s16 }
  0x1c   :  { %p21292_p11 = scmp.ne.s32.totalorder %s21514_s16, %s21291_s18  ;;  %p21297_p13 = scmp.lt.s32.totalorder %s21291_s18, %s21291_s18 }
  0x1e   :  { %p21298_p0 = por %p21297_p13, %p21296_p12 }
  0x20   :  { %p21299_p1 = pnand %p21298_p0, %p21292_p11 }
  0x22   :  { %21302 = shalt.err (!%p21299_p1)
}
  0x23   :  { %s21403_s3 = smov 256   ;;  %s21404_s14 = smov 16  }
  0x24   :  { %74 = dma.hbm_to_vmem [thread:$0]  %s25180_s7, 1024, %s21514_s16, [#allocation9], %s21403_s3, %s21403_s3, %s21404_s14  }
  0x25   :  { %s21405_s21 = smov [#allocation2]   ;;  %s21406_s23 = smov [#allocation7]  }
  0x26   :  { %s24_s22 = sshll.u32 %s21405_s21, 4  ;;  %s54_s24 = sshll.u32 %s21406_s23, 4  ;;  %s25_s22 = int_to_ptr.vmem [resolvable:$true] %s24_s22  ;;  %s21549_s24 = int_to_ptr.vmem [resolvable:$true] %s54_s24 }
  0x27   :  { %s21303_s29 = scalar_lea.hbm %s25173_s0, 512 }
  0x28   :  { %p21304_p2 = scmp.ne.s32.totalorder %s25173_s0, %s21303_s29  ;;  %p21307_p3 = scmp.lt.u32.totalorder %s21303_s29, %s25173_s0 }
  0x2a   :  { %p21309_p4 = pnand %p21307_p3, %p21304_p2 }
  0x2c   :  { %21312 = shalt.err (!%p21309_p4)
}
  0x2d   :  { %s21313_s7 = scalar_lea.vmem %s25_s22, 512  ;;  %p21318_p6 = scmp.lt.s32.totalorder %s25_s22, %s25_s22 }
  0x2e   :  { %p21314_p5 = scmp.ne.s32.totalorder %s25_s22, %s21313_s7  ;;  %p21319_p7 = scmp.lt.s32.totalorder %s21313_s7, %s21313_s7 }
  0x30   :  { %p21320_p8 = por %p21319_p7, %p21318_p6 }
  0x32   :  { %p21321_p9 = pnand %p21320_p8, %p21314_p5 }
  0x34   :  { %21324 = shalt.err (!%p21321_p9)
}
  0x35   :  { %30 = dma.hbm_to_vmem [thread:$0]  %s25173_s0, 512, %s25_s22, [#allocation3], %s21401_s25, %s21401_s25, %s21402_s26  }
  0x36   :  { %s21325_s3 = scalar_lea.hbm %s25178_s5, 512 }
  0x37   :  { %p21326_p10 = scmp.ne.s32.totalorder %s25178_s5, %s21325_s3  ;;  %p21329_p11 = scmp.lt.u32.totalorder %s21325_s3, %s25178_s5 }
  0x39   :  { %p21331_p12 = pnand %p21329_p11, %p21326_p10 }
  0x3b   :  { %21334 = shalt.err (!%p21331_p12)
}
  0x3c   :  { %s21335_s27 = scalar_lea.vmem %s21549_s24, 512  ;;  %p21340_p0 = scmp.lt.s32.totalorder %s21549_s24, %s21549_s24 }
  0x3d   :  { %p21336_p13 = scmp.ne.s32.totalorder %s21549_s24, %s21335_s27  ;;  %p21341_p1 = scmp.lt.s32.totalorder %s21335_s27, %s21335_s27 }
  0x3f   :  { %p21342_p2 = por %p21341_p1, %p21340_p0 }
  0x41   :  { %p21343_p3 = pnand %p21342_p2, %p21336_p13 }
  0x43   :  { %21346 = shalt.err (!%p21343_p3)
}
  0x44   :  { %60 = dma.hbm_to_vmem [thread:$0]  %s25178_s5, 512, %s21549_s24, [#allocation6], %s21401_s25, %s21401_s25, %s21402_s26  }
  0x45   :  { %s21407_s28 = smov [#allocation10]   ;;  %s21347_s12 = scalar_lea.hbm %s25181_s8, 512 }
  0x46   :  { %s80_s29 = sshll.u32 %s21407_s28, 4  ;;  %p21348_p4 = scmp.ne.s32.totalorder %s25181_s8, %s21347_s12  ;;  %s81_s29 = int_to_ptr.vmem [resolvable:$true] %s80_s29 }
  0x47   :  { %p21351_p5 = scmp.lt.u32.totalorder %s21347_s12, %s25181_s8 }
  0x49   :  { %p21353_p6 = pnand %p21351_p5, %p21348_p4 }
  0x4b   :  { %21356 = shalt.err (!%p21353_p6)
}
  0x4c   :  { %s21357_s17 = scalar_lea.vmem %s81_s29, 512  ;;  %p21362_p8 = scmp.lt.s32.totalorder %s81_s29, %s81_s29 }
  0x4d   :  { %p21358_p7 = scmp.ne.s32.totalorder %s81_s29, %s21357_s17  ;;  %p21363_p9 = scmp.lt.s32.totalorder %s21357_s17, %s21357_s17 }
  0x4f   :  { %p21364_p10 = por %p21363_p9, %p21362_p8 }
  0x51   :  { %p21365_p11 = pnand %p21364_p10, %p21358_p7 }
  0x53   :  { %21368 = shalt.err (!%p21365_p11)
}
  0x54   :  { %86 = dma.hbm_to_vmem [thread:$0]  %s25181_s8, 512, %s81_s29, [#allocation9], %s21401_s25, %s21401_s25, %s21402_s26  }
  0x55   :  { %21391 = dma.done.wait [#allocation3], 512  }
  0x56   :  { %21392 = vsyncadd [#allocation3], 4294966784 }
  0x57   :  { %21393 = dma.done.wait [#allocation6], 1024  }
  0x58   :  { %21394 = vsyncadd [#allocation6], 4294966272 }
  0x59   :  { %21395 = dma.done.wait [#allocation9], 1536  }
  0x5a   :  { %21396 = vsyncadd [#allocation9], 4294965760  ;;  %vm145_vm0 = vcmask 261120   ;;  %v21601_v0 = vld [vmem:[#allocation2] sm:$0xff]  ;;  %v21603_v1 = vld [vmem:[#allocation2 + $0x10] sm:$0xff]  ;;  %v199_v62 = vlaneseq  ;;  %vm877_vm1 = vcmask 523264  }
  0x5b   :  { %v21605_v2 = vld [vmem:[#allocation2 + $0x8] sm:$0xff]  ;;  %v146_v3 = vsel %vm145_vm0, %v21601_v0, 0.0  ;;  %v152_v4 = vsel %vm145_vm0, %v21603_v1, 0.0  ;;  %v21611_v5 = vld [vmem:[#allocation2 + $0x18] sm:$0xff]  ;;  %v119_v28 = vld [vmem:[#allocation7] sm:$0xff]  ;;  %s21408_s15 = smov 32  }
  0x5c   :  { %147 = vadd.xlane.f32.xlu0 %v146_v3  ;;  %153 = vadd.xlane.f32.xlu1 %v152_v4  ;;  %v149_v6 = vsel %vm145_vm0, %v21605_v2, 0.0  ;;  %v155_v7 = vsel %vm145_vm0, %v21611_v5, 0.0  ;;  %v120_v29 = vld [vmem:[#allocation7 + $0x8] sm:$0xff]  ;;  %v121_v30 = vld [vmem:[#allocation7 + $0x10] sm:$0xff]  ;;  %v232_v31 = vand.u32 4294901760, %v119_v28  ;;  %v122_v33 = vld [vmem:[#allocation7 + $0x18] sm:$0xff] }
  0x5d   :  { %v235_v32 = vand.u32 4294901760, %v120_v29  ;;  %v238_v34 = vand.u32 4294901760, %v121_v30  ;;  %v241_v35 = vand.u32 4294901760, %v122_v33  ;;  %vm3047_vm2 = vcmask 64512   ;;  %s21409_s17 = smov 96   ;;  %s21422_s22 = smov 88  }
  0x5e   :  { %v342_v38 = vsub.f32 %v119_v28, %v232_v31  ;;  %vm4270_vm14 = vcmask 130048   ;;  %s21423_s28 = smov 120   ;;  %s21434_s29 = smov 56  }
  0x5f   :  { %v21641_v36 = vpack.c.bf16 %v235_v32, %v232_v31  ;;  %v21643_v37 = vpack.c.bf16 %v241_v35, %v238_v34  ;;  %v349_v39 = vsub.f32 %v120_v29, %v235_v32  ;;  %v356_v44 = vsub.f32 %v121_v30, %v238_v34  ;;  %s21435_s30 = smov 80   ;;  %s21436_s11 = smov 112  }
  0x60   :  { %150 = vadd.xlane.f32.xlu0 %v149_v6  ;;  %156 = vadd.xlane.f32.xlu1 %v155_v7  ;;  %v343_v40 = vand.u32 4294901760, %v342_v38  ;;  %v363_v45 = vsub.f32 %v122_v33, %v241_v35  ;;  %s21446_s12 = smov 48   ;;  %s21447_s13 = smov 72  }
  0x61   :  { %19581 = vmatprep.subr.bf16.mxu0 %v21641_v36  ;;  %v350_v41 = vand.u32 4294901760, %v349_v39  ;;  %v357_v48 = vand.u32 4294901760, %v356_v44  ;;  %v21654_v56 = vpack.c.bf16 %v349_v39, %v342_v38  ;;  %s21448_s7 = smov 104   ;;  %s21456_s16 = smov 40  }
  0x62   :  { %19583 = vmatpush3.bf16.msra.mxu0 %v21641_v36  ;;  %v344_v42 = vsub.f32 %v342_v38, %v343_v40  ;;  %v364_v49 = vand.u32 4294901760, %v363_v45  ;;  %v21656_v57 = vpack.c.bf16 %v363_v45, %v356_v44 }
  0x63   :  { %19585 = vmatprep.subr.bf16.mxu0 %v21643_v37  ;;  %v351_v43 = vsub.f32 %v349_v39, %v350_v41  ;;  %v358_v51 = vsub.f32 %v356_v44, %v357_v48  ;;  %v21658_v58 = vpack.c.bf16 %v350_v41, %v343_v40 }
  0x64   :  { %v345_v46 = vand.u32 4294901760, %v344_v42  ;;  %v365_v52 = vsub.f32 %v363_v45, %v364_v49  ;;  %v21660_v59 = vpack.c.bf16 %v364_v49, %v357_v48 }
  0x65   :  { %v352_v47 = vand.u32 4294901760, %v351_v43  ;;  %v359_v53 = vand.u32 4294901760, %v358_v51 }
  0x66   :  { %19587 = vmatpush3.bf16.msra.mxu0 %v21643_v37  ;;  %v366_v54 = vand.u32 4294901760, %v365_v52 }
  0x67   :  { %v21649_v50 = vpack.c.bf16 %v352_v47, %v345_v46 }
  0x68   :  { %v21652_v55 = vpack.c.bf16 %v366_v54, %v359_v53 }
  0x69   :  { %19589 = vmatprep.subr.bf16.mxu0 %v21649_v50 }
  0xe9   :  { %v148_v8 = vpop.xlane.xlu0 %147  ;;  %v154_v9 = vpop.xlane.xlu1 %153 }
  0xea   :  { %v159_v10 = vmul.f32 0.03125, %v148_v8  ;;  %v161_v11 = vmul.f32 0.03125, %v154_v9  ;;  %v21663_v8 = vshrl.u32 %v199_v62, 7 }
  0xec   :  { %v21618_v12 = vsub.f32 %v21601_v0, %v159_v10  ;;  %v21621_v13 = vsub.f32 %v21603_v1, %v161_v11 }
  0xed   :  { %v151_v14 = vpop.xlane.xlu0 %150  ;;  %v157_v15 = vpop.xlane.xlu1 %156 }
  0xee   :  { %v160_v16 = vmul.f32 0.03125, %v151_v14  ;;  %v162_v17 = vmul.f32 0.03125, %v157_v15  ;;  %v167_v18 = vmul.f32 %v21618_v12, %v21618_v12  ;;  %v169_v19 = vmul.f32 %v21621_v13, %v21621_v13 }
  0xef   :  { %v21666_v15 = vsub.s32 0, %v21663_v8 }
  0xf0   :  { %v21628_v20 = vsub.f32 %v21605_v2, %v160_v16  ;;  %v21631_v21 = vsub.f32 %v21611_v5, %v162_v17  ;;  %v171_v22 = vsel %vm145_vm0, %v167_v18, 0.0  ;;  %v177_v23 = vsel %vm145_vm0, %v169_v19, 0.0  ;;  %v21668_v17 = vld [vmem:[#allocation5] sm:$0xff] }
  0xf1   :  { %172 = vadd.xlane.f32.xlu0 %v171_v22  ;;  %25287 = vst [vmem:[#allocation16_spill] sm:$0xff] %v21666_v15  ;;  %v21671_v18 = vsub.s32 1, %v21663_v8  ;;  %v202_v19 = vrot.slane %v21668_v17, %v21666_v15 }
  0xf2   :  { %v168_v24 = vmul.f32 %v21628_v20, %v21628_v20  ;;  %v170_v25 = vmul.f32 %v21631_v21, %v21631_v21 }
  0xf3   :  { %25288 = vst [vmem:[#allocation17_spill] sm:$0xff] %v21671_v18 }
  0xf4   :  { %v174_v26 = vsel %vm145_vm0, %v168_v24, 0.0  ;;  %v180_v27 = vsel %vm145_vm0, %v170_v25, 0.0  ;;  %v210_v24 = vrot.slane %v21668_v17, %v21671_v18 }
  0xf5   :  { %178 = vadd.xlane.f32.xlu0 %v177_v23  ;;  %175 = vadd.xlane.f32.xlu1 %v174_v26 }
  0xf9   :  { %181 = vadd.xlane.f32.xlu1 %v180_v27 }
 0x17e   :  { %v173_v60 = vpop.xlane.xlu0 %172 }
 0x17f   :  { %v183_v61 = vmul.f32 0.03125, %v173_v60 }
 0x181   :  { %v187_v63 = vadd.f32 1e-05, %v183_v61 }
 0x182   :  { %v176_v3 = vpop.xlane.xlu1 %175  ;;  %v179_v4 = vpop.xlane.xlu0 %178 }
 0x183   :  { %21070 = vrsqrt.f32 %v187_v63  ;;  %v184_v6 = vmul.f32 0.03125, %v176_v3  ;;  %v185_v7 = vmul.f32 0.03125, %v179_v4 }
 0x185   :  { %v188_v9 = vadd.f32 1e-05, %v184_v6  ;;  %v189_v10 = vadd.f32 1e-05, %v185_v7 }
 0x186   :  { %v182_v11 = vpop.xlane.xlu1 %181 }
 0x187   :  { %21072 = vrsqrt.f32 %v188_v9  ;;  %v186_v14 = vmul.f32 0.03125, %v182_v11  ;;  %v127_v11 = vld [vmem:[%s25179_s6 + $0x20] sm:$0xff] }
 0x188   :  { %21074 = vrsqrt.f32 %v189_v10 }
 0x189   :  { %v190_v16 = vadd.f32 1e-05, %v186_v14  ;;  %v128_v14 = vld [vmem:[%s25179_s6 + $0x28] sm:$0xff] }
 0x18b   :  { %21076 = vrsqrt.f32 %v190_v16  ;;  %v903_v16 = vand.u32 4294901760, %v127_v11 }
 0x18d   :  { %v21071_v22 = vpop.eup %21070 }
 0x18e   :  { %v195_v23 = vmul.f32 %v21071_v22, %v21618_v12 }
 0x190   :  { %v203_v25 = vmul.f32 %v202_v19, %v195_v23 }
 0x191   :  { %v21073_v26 = vpop.eup %21072 }
 0x192   :  { %v21075_v27 = vpop.eup %21074  ;;  %v196_v28 = vmul.f32 %v21073_v26, %v21628_v20  ;;  %v211_v29 = vadd.f32 %v210_v24, %v203_v25  ;;  %v129_v25 = vld [vmem:[%s25179_s6 + $0x30] sm:$0xff]  ;;  %v130_v26 = vld [vmem:[%s25179_s6 + $0x38] sm:$0xff] }
 0x193   :  { %v197_v30 = vmul.f32 %v21075_v27, %v21621_v13  ;;  %v909_v27 = vand.u32 4294901760, %v129_v25 }
 0x194   :  { %v220_v31 = vsel %vm145_vm0, %v211_v29, 0  ;;  %v204_v32 = vmul.f32 %v202_v19, %v196_v28  ;;  %v912_v28 = vand.u32 4294901760, %v130_v26 }
 0x195   :  { %v21077_v33 = vpop.eup %21076  ;;  %v21681_v34 = vand.u32 4294901760, %v220_v31  ;;  %v205_v35 = vmul.f32 %v202_v19, %v197_v30 }
 0x196   :  { %v198_v12 = vmul.f32 %v21077_v33, %v21631_v21  ;;  %v212_v38 = vadd.f32 %v210_v24, %v204_v32 }
 0x197   :  { %v301_v39 = vsub.f32 %v220_v31, %v21681_v34  ;;  %v213_v40 = vadd.f32 %v210_v24, %v205_v35  ;;  %v21746_v31 = vpack.c.bf16 %v912_v28, %v909_v27 }
 0x198   :  { %v223_v41 = vsel %vm145_vm0, %v212_v38, 0  ;;  %v206_v42 = vmul.f32 %v202_v19, %v198_v12  ;;  %v906_v19 = vand.u32 4294901760, %v128_v14 }
 0x199   :  { %v302_v20 = vand.u32 4294901760, %v301_v39  ;;  %v310_v43 = vand.u32 4294901760, %v223_v41  ;;  %v226_v13 = vsel %vm145_vm0, %v213_v40, 0 }
 0x19a   :  { %v320_v44 = vand.u32 4294901760, %v226_v13  ;;  %v214_v45 = vadd.f32 %v210_v24, %v206_v42  ;;  %v21736_v22 = vpack.c.bf16 %v906_v19, %v903_v16 }
 0x19b   :  { %v303_v46 = vsub.f32 %v301_v39, %v302_v20  ;;  %v311_v47 = vsub.f32 %v223_v41, %v310_v43 }
 0x19c   :  { %v321_v48 = vsub.f32 %v226_v13, %v320_v44  ;;  %v229_v49 = vsel %vm145_vm0, %v214_v45, 0 }
 0x19d   :  { %v304_v51 = vand.u32 4294901760, %v303_v46  ;;  %v312_v21 = vand.u32 4294901760, %v311_v47  ;;  %v330_v52 = vand.u32 4294901760, %v229_v49 }
 0x19e   :  { %v322_v53 = vand.u32 4294901760, %v321_v48 }
 0x19f   :  { %18064 = vmatprep.mubr.f32.mxu0 %v304_v51  ;;  %v313_v54 = vsub.f32 %v311_v47, %v312_v21  ;;  %v331_v60 = vsub.f32 %v229_v49, %v330_v52  ;;  %v1047_v51 = vsub.f32 %v129_v25, %v909_v27 }
 0x1a0   :  { %v323_v61 = vsub.f32 %v321_v48, %v322_v53 }
 0x1a1   :  { %v314_v63 = vand.u32 4294901760, %v313_v54  ;;  %v332_v3 = vand.u32 4294901760, %v331_v60 }
 0x1a2   :  { %v324_v4 = vand.u32 4294901760, %v323_v61 }
 0x1a3   :  { %18065 = vmatmul.mubr.f32.vlgmr.msra.gmra.mrb[0].mxu0 %v314_v63  ;;  %v333_v6 = vsub.f32 %v331_v60, %v332_v3 }
 0x1a4   :  { %18067 = vmatprep.mubr.f32.mxu0 %v324_v4  ;;  %19591 = vmatpush3.bf16.msra.mxu0 %v21649_v50  ;;  %v123_v50 = vld [vmem:[%s25179_s6] sm:$0xff] }
 0x1a5   :  { %v334_v7 = vand.u32 4294901760, %v333_v6  ;;  %19593 = vmatprep.subr.bf16.mxu0 %v21652_v55 }
 0x1a7   :  { %18068 = vmatmul.mubr.f32.gmra.mrb[2].mxu0 %v334_v7 }
 0x1a8   :  { %19595 = vmatpush3.bf16.msra.mxu0 %v21652_v55  ;;  %18078 = vmatprep.mubr.f32.mxu0 %v21681_v34  ;;  %v124_v55 = vld [vmem:[%s25179_s6 + $0x8] sm:$0xff] }
 0x1a9   :  { %19597 = vmatprep.subr.bf16.mxu0 %v21654_v56 }
 0x1ab   :  { %18079 = vmatmul.mubr.f32.vlgmr.msra.gmra.mrb[0].mxu0 %v310_v43 }
 0x1ac   :  { %18081 = vmatprep.mubr.f32.mxu0 %v320_v44  ;;  %19599 = vmatpush3.bf16.msra.mxu0 %v21654_v56  ;;  %v891_v56 = vand.u32 4294901760, %v123_v50 }
 0x1ad   :  { %19601 = vmatprep.subr.bf16.mxu0 %v21656_v57 }
 0x1ae   :  { %v1005_v23 = vsub.f32 %v123_v50, %v891_v56 }
 0x1af   :  { %18082 = vmatmul.mubr.f32.gmra.mrb[2].mxu0 %v330_v52 }
 0x1b0   :  { %19603 = vmatpush3.bf16.msra.mxu0 %v21656_v57  ;;  %18092 = vmatprep.mubr.f32.mxu0 %v301_v39  ;;  %v1006_v29 = vand.u32 4294901760, %v1005_v23 }
 0x1b1   :  { %19605 = vmatprep.subr.bf16.mxu0 %v21641_v36 }
 0x1b2   :  { %v1007_v32 = vsub.f32 %v1005_v23, %v1006_v29 }
 0x1b3   :  { %18093 = vmatmul.mubr.f32.vlgmr.msra.gmra.mrb[0].mxu0 %v311_v47 }
 0x1b4   :  { %18095 = vmatprep.mubr.f32.mxu0 %v321_v48  ;;  %19607 = vmatpush3.bf16.msra.mxu0 %v21641_v36  ;;  %v1008_v12 = vand.u32 4294901760, %v1007_v32 }
 0x1b5   :  { %19609 = vmatprep.subr.bf16.mxu0 %v21643_v37 }
 0x1b7   :  { %18096 = vmatmul.mubr.f32.gmra.mrb[2].mxu0 %v331_v60  ;;  %v1048_v60 = vand.u32 4294901760, %v1047_v51 }
 0x1b8   :  { %19611 = vmatpush3.bf16.msra.mxu0 %v21643_v37  ;;  %18106 = vmatprep.mubr.f32.mxu0 %v302_v20  ;;  %v1033_v20 = vsub.f32 %v127_v11, %v903_v16 }
 0x1b9   :  { %19613 = vmatprep.subr.bf16.mxu0 %v21658_v58 }
 0x1ba   :  { %v1034_v45 = vand.u32 4294901760, %v1033_v20 }
 0x1bb   :  { %18107 = vmatmul.mubr.f32.vlgmr.msra.gmra.mrb[0].mxu0 %v312_v21  ;;  %v1054_v21 = vsub.f32 %v130_v26, %v912_v28 }
 0x1bc   :  { %18109 = vmatprep.mubr.f32.mxu0 %v322_v53  ;;  %19615 = vmatpush3.bf16.msra.mxu0 %v21658_v58  ;;  %v126_v58 = vld [vmem:[%s25179_s6 + $0x18] sm:$0xff]  ;;  %v1035_v48 = vsub.f32 %v1033_v20, %v1034_v45 }
 0x1bd   :  { %19617 = vmatprep.subr.bf16.mxu0 %v21660_v59  ;;  %v900_v9 = vand.u32 4294901760, %v126_v58  ;;  %v1055_v61 = vand.u32 4294901760, %v1054_v21 }
 0x1be   :  { %v1036_v53 = vand.u32 4294901760, %v1035_v48 }
 0x1bf   :  { %18110 = vmatmul.mubr.f32.gmra.mrb[2].mxu0 %v332_v3  ;;  %v1026_v35 = vsub.f32 %v126_v58, %v900_v9  ;;  %v1049_v3 = vsub.f32 %v1047_v51, %v1048_v60  ;;  %v1056_v4 = vsub.f32 %v1054_v21, %v1055_v61  ;;  %v21773_v11 = vpack.c.bf16 %v1055_v61, %v1048_v60 }
 0x1c0   :  { %19619 = vmatpush3.bf16.msra.mxu0 %v21660_v59  ;;  %18120 = vmatprep.mubr.f32.mxu0 %v21681_v34 }
 0x1c1   :  { %19621 = vmatprep.subr.bf16.mxu0 %v21641_v36  ;;  %v1027_v40 = vand.u32 4294901760, %v1026_v35  ;;  %v1050_v6 = vand.u32 4294901760, %v1049_v3  ;;  %v1057_v7 = vand.u32 4294901760, %v1056_v4 }
 0x1c3   :  { %18121 = vmatmul.mubr.f32.vlgmr.msra.gmra.mrb[0].mxu0 %v310_v43  ;;  %v1028_v13 = vsub.f32 %v1026_v35, %v1027_v40  ;;  %v21757_v50 = vpack.c.bf16 %v1057_v7, %v1050_v6 }
 0x1c4   :  { %18123 = vmatprep.mubr.f32.mxu0 %v320_v44  ;;  %19623 = vmatpush3.bf16.msra.mxu0 %v21641_v36  ;;  %v894_v36 = vand.u32 4294901760, %v124_v55 }
 0x1c5   :  { %19625 = vmatprep.subr.bf16.mxu0 %v21643_v37  ;;  %v1029_v47 = vand.u32 4294901760, %v1028_v13 }
 0x1c6   :  { %v21716_v57 = vpack.c.bf16 %v894_v36, %v891_v56  ;;  %v1012_v24 = vsub.f32 %v124_v55, %v894_v36 }
 0x1c7   :  { %18124 = vmatmul.mubr.f32.gmra.mrb[2].mxu0 %v330_v52 }
 0x1c8   :  { %19627 = vmatpush3.bf16.msra.mxu0 %v21643_v37  ;;  %18134 = vmatprep.mubr.f32.mxu0 %v21681_v34  ;;  %v125_v37 = vld [vmem:[%s25179_s6 + $0x10] sm:$0xff]  ;;  %v1013_v30 = vand.u32 4294901760, %v1012_v24  ;;  %v21759_v55 = vpack.c.bf16 %v1012_v24, %v1005_v23 }
 0x1c9   :  { %19629 = vmatprep.subr.bf16.mxu1 %v21716_v57  ;;  %v897_v59 = vand.u32 4294901760, %v125_v37 }
 0x1ca   :  { %19631 = vmatpush3.bf16.msra.mxu1 %v21716_v57  ;;  %v1014_v33 = vsub.f32 %v1012_v24, %v1013_v30  ;;  %v21767_v58 = vpack.c.bf16 %v1013_v30, %v1006_v29 }
 0x1cb   :  { %18135 = vmatmul.mubr.f32.vlgmr.msra.gmra.mrb[0].mxu0 %v310_v43  ;;  %v21726_v10 = vpack.c.bf16 %v900_v9, %v897_v59  ;;  %v1019_v34 = vsub.f32 %v125_v37, %v897_v59  ;;  %v1040_v43 = vsub.f32 %v128_v14, %v906_v19  ;;  %v21765_v37 = vpack.c.bf16 %v1054_v21, %v1047_v51  ;;  %v118_v14 = vld [vmem:[%s25177_s4] sm:$0x7] }
 0x1cc   :  { %18137 = vmatprep.mubr.f32.mxu0 %v320_v44  ;;  %v1015_v38 = vand.u32 4294901760, %v1014_v33  ;;  %v218_v16 = vrot.slane %v118_v14, %v21666_v15 }
 0x1cd   :  { %19633 = vmatprep.subr.bf16.mxu1 %v21726_v10  ;;  %v1020_v39 = vand.u32 4294901760, %v1019_v34  ;;  %v1041_v46 = vand.u32 4294901760, %v1040_v43  ;;  %v21761_v56 = vpack.c.bf16 %v1026_v35, %v1019_v34  ;;  %v21763_v36 = vpack.c.bf16 %v1040_v43, %v1033_v20 }
 0x1ce   :  { %19635 = vmatpush3.bf16.msra.mxu1 %v21726_v10  ;;  %v21750_v41 = vpack.c.bf16 %v1015_v38, %v1008_v12 }
 0x1cf   :  { %18138 = vmatmul.mubr.f32.gmra.mrb[2].mxu0 %v330_v52  ;;  %19637 = vmatprep.subr.bf16.mxu1 %v21736_v22  ;;  %v1021_v42 = vsub.f32 %v1019_v34, %v1020_v39  ;;  %v1042_v49 = vsub.f32 %v1040_v43, %v1041_v46  ;;  %v21769_v59 = vpack.c.bf16 %v1027_v40, %v1020_v39 }
 0x1d0   :  { %v21771_v9 = vpack.c.bf16 %v1041_v46, %v1034_v45 }
 0x1d1   :  { %v1022_v44 = vand.u32 4294901760, %v1021_v42  ;;  %v1043_v54 = vand.u32 4294901760, %v1042_v49 }
 0x1d2   :  { %19639 = vmatpush3.bf16.msra.mxu1 %v21736_v22 }
 0x1d3   :  { %19641 = vmatprep.subr.bf16.mxu1 %v21746_v31  ;;  %v21753_v52 = vpack.c.bf16 %v1029_v47, %v1022_v44  ;;  %v21755_v63 = vpack.c.bf16 %v1043_v54, %v1036_v53 }
 0x1d6   :  { %19643 = vmatpush3.bf16.msra.mxu1 %v21746_v31 }
 0x1d7   :  { %19645 = vmatprep.subr.bf16.mxu1 %v21750_v41 }
 0x29e   :  { %v18136_v19 = vpop.f32.mrb[0].mxu0 }
 0x29f   :  { %v20492_v23 = vadd.f32 %v18136_v19, %v218_v16  ;;  %v823_v24 = vpop.f32.mrb[1].mxu0 }
 0x2a0   :  { %v20493_v25 = vadd.f32 %v823_v24, %v218_v16 }
 0x2a1   :  { %v17156_v26 = vmul.f32 -1.442695, %v20492_v23 }
 0x2a2   :  { %v17155_v27 = vmul.f32 -1.442695, %v20493_v25  ;;  %v18139_v28 = vpop.f32.mrb[2].mxu0 }
 0x2a3   :  { %21078 = vpow2.f32 %v17156_v26  ;;  %v20494_v29 = vadd.f32 %v18139_v28, %v218_v16  ;;  %v835_v30 = vpop.f32.mrb[3].mxu0 }
 0x2a4   :  { %21080 = vpow2.f32 %v17155_v27  ;;  %v20495_v32 = vadd.f32 %v835_v30, %v218_v16 }
 0x2a5   :  { %v17158_v33 = vmul.f32 -1.442695, %v20494_v29 }
 0x2a6   :  { %v17157_v34 = vmul.f32 -1.442695, %v20495_v32 }
 0x2a7   :  { %21082 = vpow2.f32 %v17158_v33 }
 0x2a8   :  { %21084 = vpow2.f32 %v17157_v34 }
 0x2ad   :  { %v21079_v35 = vpop.eup %21078 }
 0x2ae   :  { %v21081_v12 = vpop.eup %21080  ;;  %v858_v38 = vadd.f32 1.0, %v21079_v35 }
 0x2af   :  { %v857_v39 = vadd.f32 1.0, %v21081_v12 }
 0x2b0   :  { %21086 = vrcp.f32 %v858_v38 }
 0x2b1   :  { %v21083_v40 = vpop.eup %21082  ;;  %21088 = vrcp.f32 %v857_v39 }
 0x2b2   :  { %v21085_v42 = vpop.eup %21084  ;;  %v860_v20 = vadd.f32 1.0, %v21083_v40 }
 0x2b3   :  { %v859_v43 = vadd.f32 1.0, %v21085_v42 }
 0x2b4   :  { %21090 = vrcp.f32 %v860_v20 }
 0x2b5   :  { %21092 = vrcp.f32 %v859_v43 }
 0x2ba   :  { %v21087_v13 = vpop.eup %21086 }
 0x2bb   :  { %v21089_v44 = vpop.eup %21088  ;;  %v870_v45 = vmul.f32 %v21087_v13, %v20492_v23 }
 0x2bc   :  { %v869_v46 = vmul.f32 %v21089_v44, %v20493_v25 }
 0x2bd   :  { %v882_v47 = vsel %vm877_vm1, %v870_v45, 0 }
 0x2be   :  { %v21091_v48 = vpop.eup %21090  ;;  %v21780_v49 = vand.u32 4294901760, %v882_v47  ;;  %v879_v51 = vsel %vm877_vm1, %v869_v46, 0 }
 0x2bf   :  { %v21093_v21 = vpop.eup %21092  ;;  %v21783_v53 = vand.u32 4294901760, %v879_v51  ;;  %v872_v54 = vmul.f32 %v21091_v48, %v20494_v29 }
 0x2c0   :  { %v974_v60 = vsub.f32 %v882_v47, %v21780_v49  ;;  %v871_v61 = vmul.f32 %v21093_v21, %v20495_v32 }
 0x2c1   :  { %v888_v3 = vsel %vm877_vm1, %v872_v54, 0  ;;  %v964_v4 = vsub.f32 %v879_v51, %v21783_v53 }
 0x2c2   :  { %v21788_v6 = vand.u32 4294901760, %v888_v3  ;;  %v885_v7 = vsel %vm877_vm1, %v871_v61, 0  ;;  %v975_v14 = vand.u32 4294901760, %v974_v60 }
 0x2c3   :  { %v21791_v16 = vand.u32 4294901760, %v885_v7  ;;  %v965_v19 = vand.u32 4294901760, %v964_v4 }
 0x2c4   :  { %v994_v23 = vsub.f32 %v888_v3, %v21788_v6  ;;  %v976_v24 = vsub.f32 %v974_v60, %v975_v14 }
 0x2c5   :  { %v984_v25 = vsub.f32 %v885_v7, %v21791_v16  ;;  %v966_v26 = vsub.f32 %v964_v4, %v965_v19  ;;  %v133_v7 = vld [vmem:[#allocation8 + $0x10] sm:$0xff] }
 0x2c6   :  { %v995_v27 = vand.u32 4294901760, %v994_v23  ;;  %v977_v30 = vand.u32 4294901760, %v976_v24 }
 0x2c7   :  { %v967_v28 = vand.u32 4294901760, %v966_v26  ;;  %v985_v29 = vand.u32 4294901760, %v984_v25 }
 0x2c8   :  { %v996_v32 = vsub.f32 %v994_v23, %v995_v27 }
 0x2c9   :  { %18156 = vmatprep.mubr.f32.mxu1 %v967_v28  ;;  %v986_v33 = vsub.f32 %v984_v25, %v985_v29 }
 0x2ca   :  { %18157 = vmatmul.mubr.f32.vlgmr.msra.gmra.mrb[0].mxu1 %v977_v30  ;;  %v997_v35 = vand.u32 4294901760, %v996_v32 }
 0x2cb   :  { %19647 = vmatpush3.bf16.msra.mxu1 %v21750_v41  ;;  %v987_v34 = vand.u32 4294901760, %v986_v33 }
 0x2cc   :  { %19649 = vmatprep.subr.bf16.mxu1 %v21753_v52 }
 0x2cd   :  { %18159 = vmatprep.mubr.f32.mxu1 %v987_v34 }
 0x2ce   :  { %18160 = vmatmul.mubr.f32.gmra.mrb[2].mxu1 %v997_v35 }
 0x2cf   :  { %19651 = vmatpush3.bf16.msra.mxu1 %v21753_v52  ;;  %18178 = vmatprep.mubr.f32.mxu1 %v21783_v53 }
 0x2d0   :  { %19653 = vmatprep.subr.bf16.mxu1 %v21755_v63 }
 0x2d3   :  { %19655 = vmatpush3.bf16.msra.mxu1 %v21755_v63 }
 0x2d4   :  { %19657 = vmatprep.subr.bf16.mxu1 %v21757_v50 }
 0x2d7   :  { %19659 = vmatpush3.bf16.msra.mxu1 %v21757_v50 }
 0x2d8   :  { %19661 = vmatprep.subr.bf16.mxu1 %v21759_v55 }
 0x2da   :  { %18179 = vmatmul.mubr.f32.vlgmr.msra.gmra.mrb[0].mxu1 %v21780_v49 }
 0x2db   :  { %18181 = vmatprep.mubr.f32.mxu1 %v21791_v16  ;;  %19663 = vmatpush3.bf16.msra.mxu1 %v21759_v55 }
 0x2dc   :  { %19665 = vmatprep.subr.bf16.mxu1 %v21761_v56 }
 0x2de   :  { %18182 = vmatmul.mubr.f32.gmra.mrb[2].mxu1 %v21788_v6 }
 0x2df   :  { %19667 = vmatpush3.bf16.msra.mxu1 %v21761_v56  ;;  %18200 = vmatprep.mubr.f32.mxu1 %v964_v4 }
 0x2e0   :  { %19669 = vmatprep.subr.bf16.mxu1 %v21763_v36 }
 0x2e3   :  { %19671 = vmatpush3.bf16.msra.mxu1 %v21763_v36 }
 0x2e4   :  { %19673 = vmatprep.subr.bf16.mxu1 %v21765_v37 }
 0x2e7   :  { %19675 = vmatpush3.bf16.msra.mxu1 %v21765_v37 }
 0x2e8   :  { %19677 = vmatprep.subr.bf16.mxu1 %v21716_v57 }
 0x2ea   :  { %18201 = vmatmul.mubr.f32.vlgmr.msra.gmra.mrb[0].mxu1 %v974_v60 }
 0x2eb   :  { %18203 = vmatprep.mubr.f32.mxu1 %v984_v25  ;;  %19679 = vmatpush3.bf16.msra.mxu1 %v21716_v57 }
 0x2ec   :  { %19681 = vmatprep.subr.bf16.mxu1 %v21726_v10 }
 0x2ee   :  { %18204 = vmatmul.mubr.f32.gmra.mrb[2].mxu1 %v994_v23  ;;  %v137_v23 = vld [vmem:[#allocation8 + $0x30] sm:$0xff] }
 0x2ef   :  { %19683 = vmatpush3.bf16.msra.mxu1 %v21726_v10  ;;  %18222 = vmatprep.mubr.f32.mxu1 %v965_v19  ;;  %v1648_v19 = vand.u32 4294901760, %v133_v7  ;;  %v1654_v25 = vand.u32 4294901760, %v137_v23 }
 0x2f0   :  { %19685 = vmatprep.subr.bf16.mxu1 %v21736_v22 }
 0x2f3   :  { %19687 = vmatpush3.bf16.msra.mxu1 %v21736_v22 }
 0x2f4   :  { %19689 = vmatprep.subr.bf16.mxu1 %v21746_v31 }
 0x2f7   :  { %19691 = vmatpush3.bf16.msra.mxu1 %v21746_v31 }
 0x2f8   :  { %19693 = vmatprep.subr.bf16.mxu1 %v21767_v58 }
 0x2fa   :  { %18223 = vmatmul.mubr.f32.vlgmr.msra.gmra.mrb[0].mxu1 %v975_v14  ;;  %v135_v14 = vld [vmem:[#allocation8 + $0x20] sm:$0xff] }
 0x2fb   :  { %18225 = vmatprep.mubr.f32.mxu1 %v985_v29  ;;  %19695 = vmatpush3.bf16.msra.mxu1 %v21767_v58  ;;  %v1651_v24 = vand.u32 4294901760, %v135_v14  ;;  %v1762_v29 = vsub.f32 %v133_v7, %v1648_v19 }
 0x2fc   :  { %19697 = vmatprep.subr.bf16.mxu1 %v21769_v59 }
 0x2fd   :  { %v1763_v32 = vand.u32 4294901760, %v1762_v29  ;;  %v1769_v35 = vsub.f32 %v135_v14, %v1651_v24 }
 0x2fe   :  { %18226 = vmatmul.mubr.f32.gmra.mrb[2].mxu1 %v995_v27  ;;  %v21897_v27 = vpack.c.bf16 %v1654_v25, %v1651_v24 }
 0x2ff   :  { %19699 = vmatpush3.bf16.msra.mxu1 %v21769_v59  ;;  %18244 = vmatprep.mubr.f32.mxu1 %v21783_v53  ;;  %v1764_v34 = vsub.f32 %v1762_v29, %v1763_v32 }
 0x300   :  { %19701 = vmatprep.subr.bf16.mxu1 %v21771_v9 }
 0x303   :  { %19703 = vmatpush3.bf16.msra.mxu1 %v21771_v9 }
 0x304   :  { %19705 = vmatprep.subr.bf16.mxu1 %v21773_v11 }
 0x307   :  { %19707 = vmatpush3.bf16.msra.mxu1 %v21773_v11 }
 0x308   :  { %19709 = vmatprep.subr.bf16.mxu1 %v21716_v57 }
 0x30a   :  { %18245 = vmatmul.mubr.f32.vlgmr.msra.gmra.mrb[0].mxu1 %v21780_v49 }
 0x30b   :  { %18247 = vmatprep.mubr.f32.mxu1 %v21791_v16  ;;  %19711 = vmatpush3.bf16.msra.mxu1 %v21716_v57  ;;  %v21847_v57 = vsub.s32 2, %v21663_v8 }
 0x30c   :  { %19713 = vmatprep.subr.bf16.mxu1 %v21726_v10 }
 0x30d   :  { %25289 = vst [vmem:[#allocation18_spill] sm:$0xff] %v21847_v57 }
 0x30e   :  { %18248 = vmatmul.mubr.f32.gmra.mrb[2].mxu1 %v21788_v6 }
 0x30f   :  { %19715 = vmatpush3.bf16.msra.mxu1 %v21726_v10  ;;  %18266 = vmatprep.mubr.f32.mxu1 %v21783_v53  ;;  %v876_v10 = vrot.slane %v21668_v17, %v21847_v57 }
 0x310   :  { %19717 = vmatprep.subr.bf16.mxu1 %v21736_v22 }
 0x313   :  { %19719 = vmatpush3.bf16.msra.mxu1 %v21736_v22 }
 0x314   :  { %19721 = vmatprep.subr.bf16.mxu1 %v21746_v31 }
 0x317   :  { %19723 = vmatpush3.bf16.msra.mxu1 %v21746_v31 }
 0x31a   :  { %18267 = vmatmul.mubr.f32.vlgmr.msra.gmra.mrb[0].mxu1 %v21780_v49 }
 0x31b   :  { %18269 = vmatprep.mubr.f32.mxu1 %v21791_v16 }
 0x31e   :  { %18270 = vmatmul.mubr.f32.gmra.mrb[2].mxu1 %v21788_v6  ;;  %v131_v6 = vld [vmem:[#allocation8] sm:$0xff] }
 0x31f   :  { %v1645_v16 = vand.u32 4294901760, %v131_v6 }
 0x321   :  { %v21895_v26 = vpack.c.bf16 %v1648_v19, %v1645_v16  ;;  %v1755_v28 = vsub.f32 %v131_v6, %v1645_v16 }
 0x323   :  { %19725 = vmatprep.subr.bf16.mxu0 %v21895_v26  ;;  %v1756_v30 = vand.u32 4294901760, %v1755_v28 }
 0x324   :  { %19727 = vmatpush3.bf16.msra.mxu0 %v21895_v26 }
 0x325   :  { %19729 = vmatprep.subr.bf16.mxu0 %v21897_v27  ;;  %v1757_v33 = vsub.f32 %v1755_v28, %v1756_v30 }
 0x328   :  { %19731 = vmatpush3.bf16.msra.mxu0 %v21897_v27 }
 0x3ed   :  { %v18268_v41 = vpop.f32.mrb[0].mxu1 }
 0x3ee   :  { %v20496_v52 = vadd.f32 %v18268_v41, %v876_v10  ;;  %v1534_v63 = vpop.f32.mrb[1].mxu1  ;;  %v1758_v41 = vand.u32 4294901760, %v1757_v33 }
 0x3ef   :  { %v20497_v22 = vadd.f32 %v1534_v63, %v876_v10  ;;  %v1770_v63 = vand.u32 4294901760, %v1769_v35 }
 0x3f0   :  { %v1557_v50 = vmul.f32 0.5, %v20496_v52  ;;  %v1765_v52 = vand.u32 4294901760, %v1764_v34 }
 0x3f1   :  { %v1556_v55 = vmul.f32 0.5, %v20497_v22  ;;  %v18271_v56 = vpop.f32.mrb[2].mxu1 }
 0x3f2   :  { %v21852_v31 = vadd.f32 %v1557_v50, %v21605_v2  ;;  %v20498_v36 = vadd.f32 %v18271_v56, %v876_v10  ;;  %v1546_v37 = vpop.f32.mrb[3].mxu1  ;;  %v21903_v50 = vpack.c.bf16 %v1765_v52, %v1758_v41 }
 0x3f3   :  { %v21855_v58 = vadd.f32 %v1556_v55, %v21601_v0  ;;  %v20499_v59 = vadd.f32 %v1546_v37, %v876_v10  ;;  %v1776_v10 = vsub.f32 %v137_v23, %v1654_v25  ;;  %v1771_v55 = vsub.f32 %v1769_v35, %v1770_v63 }
 0x3f4   :  { %25290 = vst [vmem:[#allocation19_spill] sm:$0xff] %v21852_v31  ;;  %v1559_v9 = vmul.f32 0.5, %v20498_v36  ;;  %v1567_v11 = vsel %vm145_vm0, %v21852_v31, 0.0  ;;  %19733 = vmatprep.subr.bf16.mxu0 %v21903_v50 }
 0x3f5   :  { %25291 = vst [vmem:[#allocation20_spill] sm:$0xff] %v21855_v58  ;;  %v1558_v12 = vmul.f32 0.5, %v20499_v59  ;;  %1568 = vadd.xlane.f32.xlu1 %v1567_v11  ;;  %v1564_v38 = vsel %vm145_vm0, %v21855_v58, 0.0  ;;  %v1777_v22 = vand.u32 4294901760, %v1776_v10  ;;  %v1772_v36 = vand.u32 4294901760, %v1771_v55 }
 0x3f6   :  { %v21862_v39 = vadd.f32 %v1559_v9, %v21611_v5  ;;  %1565 = vadd.xlane.f32.xlu0 %v1564_v38  ;;  %v21908_v9 = vpack.c.bf16 %v1762_v29, %v1755_v28  ;;  %v21910_v11 = vpack.c.bf16 %v1776_v10, %v1769_v35 }
 0x3f7   :  { %v21865_v2 = vadd.f32 %v1558_v12, %v21603_v1  ;;  %v1778_v56 = vsub.f32 %v1776_v10, %v1777_v22  ;;  %v21912_v12 = vpack.c.bf16 %v1763_v32, %v1756_v30  ;;  %v21914_v38 = vpack.c.bf16 %v1777_v22, %v1770_v63 }
 0x3f8   :  { %25292 = vst [vmem:[#allocation21_spill] sm:$0xff] %v21862_v39  ;;  %v1573_v0 = vsel %vm145_vm0, %v21862_v39, 0.0 }
 0x3f9   :  { %25293 = vst [vmem:[#allocation22_spill] sm:$0xff] %v21865_v2  ;;  %1574 = vadd.xlane.f32.xlu1 %v1573_v0  ;;  %v1570_v40 = vsel %vm145_vm0, %v21865_v2, 0.0  ;;  %v1779_v37 = vand.u32 4294901760, %v1778_v56  ;;  %v21917_v0 = vsub.s32 6, %v21663_v8 }
 0x3fa   :  { %1571 = vadd.xlane.f32.xlu0 %v1570_v40 }
 0x3fb   :  { %v21906_v59 = vpack.c.bf16 %v1779_v37, %v1772_v36  ;;  %25294 = vst [vmem:[#allocation23_spill] sm:$0xff] %v21917_v0  ;;  %v2269_v40 = vrot.slane %v21668_v17, %v21917_v0 }
 0x482   :  { %v1569_v42 = vpop.xlane.xlu1 %1568 }
 0x483   :  { %v1577_v20 = vmul.f32 0.03125, %v1569_v42  ;;  %v1566_v43 = vpop.xlane.xlu0 %1565 }
 0x484   :  { %v1576_v13 = vmul.f32 0.03125, %v1566_v43 }
 0x485   :  { %v21872_v44 = vsub.f32 %v21852_v31, %v1577_v20 }
 0x486   :  { %v21875_v5 = vsub.f32 %v21855_v58, %v1576_v13  ;;  %v1575_v1 = vpop.xlane.xlu1 %1574 }
 0x487   :  { %v1579_v45 = vmul.f32 0.03125, %v1575_v1  ;;  %v1572_v46 = vpop.xlane.xlu0 %1571  ;;  %v1585_v47 = vmul.f32 %v21872_v44, %v21872_v44 }
 0x488   :  { %v1578_v48 = vmul.f32 0.03125, %v1572_v46  ;;  %v1584_v49 = vmul.f32 %v21875_v5, %v21875_v5 }
 0x489   :  { %v21882_v51 = vsub.f32 %v21862_v39, %v1579_v45  ;;  %v1591_v21 = vsel %vm145_vm0, %v1585_v47, 0.0 }
 0x48a   :  { %v21886_v53 = vsub.f32 %v21865_v2, %v1578_v48  ;;  %1592 = vadd.xlane.f32.xlu1 %v1591_v21  ;;  %v1588_v54 = vsel %vm145_vm0, %v1584_v49, 0.0 }
 0x48b   :  { %1589 = vadd.xlane.f32.xlu0 %v1588_v54  ;;  %v1587_v60 = vmul.f32 %v21882_v51, %v21882_v51 }
 0x48c   :  { %v1586_v61 = vmul.f32 %v21886_v53, %v21886_v53 }
 0x48d   :  { %v1597_v3 = vsel %vm145_vm0, %v1587_v60, 0.0  ;;  %v21923_v60 = vsub.s32 3, %v21663_v8 }
 0x48e   :  { %1598 = vadd.xlane.f32.xlu1 %v1597_v3  ;;  %v1594_v4 = vsel %vm145_vm0, %v1586_v61, 0.0  ;;  %v21926_v61 = vsub.s32 4, %v21663_v8 }
 0x48f   :  { %1595 = vadd.xlane.f32.xlu0 %v1594_v4  ;;  %25295 = vst [vmem:[#allocation24_spill] sm:$0xff] %v21923_v60  ;;  %v1619_v3 = vrot.slane %v21668_v17, %v21923_v60 }
 0x490   :  { %25296 = vst [vmem:[#allocation25_spill] sm:$0xff] %v21926_v61  ;;  %v1627_v7 = vrot.slane %v21668_v17, %v21926_v61 }
 0x4a5   :  { %2271 = vrot.lane.b32.xlu0 %v2269_v40, %s21408_s15 }
 0x517   :  { %v1593_v42 = vpop.xlane.xlu1 %1592 }
 0x518   :  { %v1601_v20 = vmul.f32 0.03125, %v1593_v42  ;;  %v1590_v43 = vpop.xlane.xlu0 %1589 }
 0x519   :  { %v1600_v13 = vmul.f32 0.03125, %v1590_v43 }
 0x51a   :  { %v1605_v1 = vadd.f32 1e-05, %v1601_v20 }
 0x51b   :  { %v1604_v45 = vadd.f32 1e-05, %v1600_v13  ;;  %v1599_v46 = vpop.xlane.xlu1 %1598 }
 0x51c   :  { %21094 = vrsqrt.f32 %v1605_v1  ;;  %v1603_v47 = vmul.f32 0.03125, %v1599_v46  ;;  %v1596_v48 = vpop.xlane.xlu0 %1595 }
 0x51d   :  { %21096 = vrsqrt.f32 %v1604_v45  ;;  %v1602_v49 = vmul.f32 0.03125, %v1596_v48 }
 0x51e   :  { %v1607_v21 = vadd.f32 1e-05, %v1603_v47 }
 0x51f   :  { %v1606_v54 = vadd.f32 1e-05, %v1602_v49 }
 0x520   :  { %21098 = vrsqrt.f32 %v1607_v21 }
 0x521   :  { %21100 = vrsqrt.f32 %v1606_v54  ;;  %v136_v54 = vld [vmem:[#allocation8 + $0x28] sm:$0xff] }
 0x526   :  { %v21095_v4 = vpop.eup %21094 }
 0x527   :  { %v21097_v6 = vpop.eup %21096  ;;  %v1613_v14 = vmul.f32 %v21095_v4, %v21872_v44 }
 0x528   :  { %v1612_v16 = vmul.f32 %v21097_v6, %v21875_v5 }
 0x529   :  { %v1621_v19 = vmul.f32 %v1619_v3, %v1613_v14 }
 0x52a   :  { %v21099_v23 = vpop.eup %21098  ;;  %v1620_v24 = vmul.f32 %v1619_v3, %v1612_v16 }
 0x52b   :  { %v21101_v25 = vpop.eup %21100  ;;  %v1629_v28 = vadd.f32 %v1627_v7, %v1621_v19  ;;  %v1615_v29 = vmul.f32 %v21099_v23, %v21882_v51 }
 0x52c   :  { %v1614_v30 = vmul.f32 %v21101_v25, %v21886_v53  ;;  %v1628_v32 = vadd.f32 %v1627_v7, %v1620_v24 }
 0x52d   :  { %v1636_v33 = vsel %vm145_vm0, %v1629_v28, 0  ;;  %v1623_v34 = vmul.f32 %v1619_v3, %v1615_v29 }
 0x52e   :  { %v1633_v35 = vsel %vm145_vm0, %v1628_v32, 0  ;;  %v21938_v17 = vand.u32 4294901760, %v1636_v33  ;;  %v1622_v44 = vmul.f32 %v1619_v3, %v1614_v30  ;;  %v2309_v3 = vand.u32 4294901760, %v136_v54 }
 0x52f   :  { %v1713_v10 = vand.u32 4294901760, %v1633_v35  ;;  %v1631_v5 = vadd.f32 %v1627_v7, %v1623_v34 }
 0x530   :  { %v1724_v41 = vsub.f32 %v1636_v33, %v21938_v17  ;;  %v1630_v52 = vadd.f32 %v1627_v7, %v1622_v44  ;;  %v2427_v19 = vsub.f32 %v136_v54, %v2309_v3 }
 0x531   :  { %v1714_v63 = vsub.f32 %v1633_v35, %v1713_v10  ;;  %v1642_v22 = vsel %vm145_vm0, %v1631_v5, 0 }
 0x532   :  { %v1725_v51 = vand.u32 4294901760, %v1724_v41  ;;  %v1639_v53 = vsel %vm145_vm0, %v1630_v52, 0  ;;  %v1743_v55 = vand.u32 4294901760, %v1642_v22  ;;  %v2428_v28 = vand.u32 4294901760, %v2427_v19 }
 0x533   :  { %v1715_v56 = vand.u32 4294901760, %v1714_v63  ;;  %v1733_v36 = vand.u32 4294901760, %v1639_v53  ;;  %v21987_v52 = vsub.s32 5, %v21663_v8 }
 0x534   :  { %v1726_v37 = vsub.f32 %v1724_v41, %v1725_v51  ;;  %v1744_v40 = vsub.f32 %v1642_v22, %v1743_v55  ;;  %v2429_v32 = vsub.f32 %v2427_v19, %v2428_v28 }
 0x535   :  { %v1716_v42 = vsub.f32 %v1714_v63, %v1715_v56  ;;  %v1734_v20 = vsub.f32 %v1639_v53, %v1733_v36  ;;  %25297 = vst [vmem:[#allocation26_spill] sm:$0xff] %v21987_v52 }
 0x536   :  { %v1745_v43 = vand.u32 4294901760, %v1744_v40  ;;  %v1727_v45 = vand.u32 4294901760, %v1726_v37  ;;  %v2430_v34 = vand.u32 4294901760, %v2429_v32 }
 0x537   :  { %v1717_v13 = vand.u32 4294901760, %v1716_v42  ;;  %v1735_v1 = vand.u32 4294901760, %v1734_v20 }
 0x538   :  { %v1746_v46 = vsub.f32 %v1744_v40, %v1745_v43 }
 0x539   :  { %18280 = vmatprep.mubr.f32.mxu0 %v1717_v13  ;;  %v1736_v47 = vsub.f32 %v1734_v20, %v1735_v1 }
 0x53a   :  { %18281 = vmatmul.mubr.f32.vlgmr.msra.gmra.mrb[4].mxu0 %v1727_v45  ;;  %v1747_v49 = vand.u32 4294901760, %v1746_v46 }
 0x53b   :  { %19735 = vmatpush3.bf16.msra.mxu0 %v21903_v50  ;;  %v1737_v48 = vand.u32 4294901760, %v1736_v47  ;;  %v132_v50 = vld [vmem:[#allocation8 + $0x8] sm:$0xff] }
 0x53c   :  { %19737 = vmatprep.subr.bf16.mxu0 %v21906_v59 }
 0x53d   :  { %18283 = vmatprep.mubr.f32.mxu0 %v1737_v48 }
 0x53e   :  { %18284 = vmatmul.mubr.f32.gmra.mrb[6].mxu0 %v1747_v49 }
 0x53f   :  { %19739 = vmatpush3.bf16.msra.mxu0 %v21906_v59  ;;  %18294 = vmatprep.mubr.f32.mxu0 %v1713_v10  ;;  %v134_v59 = vld [vmem:[#allocation8 + $0x18] sm:$0xff] }
 0x540   :  { %19741 = vmatprep.subr.bf16.mxu0 %v21908_v9 }
 0x542   :  { %18295 = vmatmul.mubr.f32.vlgmr.msra.gmra.mrb[4].mxu0 %v21938_v17 }
 0x543   :  { %18297 = vmatprep.mubr.f32.mxu0 %v1733_v36  ;;  %19743 = vmatpush3.bf16.msra.mxu0 %v21908_v9  ;;  %v2303_v9 = vand.u32 4294901760, %v132_v50 }
 0x544   :  { %19745 = vmatprep.subr.bf16.mxu0 %v21910_v11 }
 0x546   :  { %18298 = vmatmul.mubr.f32.gmra.mrb[6].mxu0 %v1743_v55 }
 0x547   :  { %19747 = vmatpush3.bf16.msra.mxu0 %v21910_v11  ;;  %18308 = vmatprep.mubr.f32.mxu0 %v1714_v63  ;;  %v2306_v11 = vand.u32 4294901760, %v134_v59  ;;  %v21989_v63 = vld [vmem:[#allocation5] sm:$0xff] }
 0x548   :  { %19749 = vmatprep.subr.bf16.mxu0 %v21895_v26  ;;  %v2261_v22 = vrot.slane %v21989_v63, %v21987_v52 }
 0x549   :  { %v2420_v21 = vsub.f32 %v134_v59, %v2306_v11 }
 0x54a   :  { %18309 = vmatmul.mubr.f32.vlgmr.msra.gmra.mrb[4].mxu0 %v1724_v41 }
 0x54b   :  { %18311 = vmatprep.mubr.f32.mxu0 %v1734_v20  ;;  %19751 = vmatpush3.bf16.msra.mxu0 %v21895_v26  ;;  %v2421_v6 = vand.u32 4294901760, %v2420_v21 }
 0x54c   :  { %19753 = vmatprep.subr.bf16.mxu0 %v21897_v27 }
 0x54d   :  { %v2422_v16 = vsub.f32 %v2420_v21, %v2421_v6 }
 0x54e   :  { %18312 = vmatmul.mubr.f32.gmra.mrb[6].mxu0 %v1744_v40 }
 0x54f   :  { %19755 = vmatpush3.bf16.msra.mxu0 %v21897_v27  ;;  %18322 = vmatprep.mubr.f32.mxu0 %v1715_v56  ;;  %v2423_v25 = vand.u32 4294901760, %v2422_v16 }
 0x550   :  { %19757 = vmatprep.subr.bf16.mxu0 %v21912_v12 }
 0x552   :  { %18323 = vmatmul.mubr.f32.vlgmr.msra.gmra.mrb[4].mxu0 %v1725_v51  ;;  %v2272_v51 = vpop.permute.xlu0 %2271 }
 0x553   :  { %18325 = vmatprep.mubr.f32.mxu0 %v1735_v1  ;;  %19759 = vmatpush3.bf16.msra.mxu0 %v21912_v12  ;;  %v21965_v12 = vpack.c.bf16 %v2306_v11, %v2303_v9 }
 0x554   :  { %19761 = vmatprep.subr.bf16.mxu0 %v21914_v38 }
 0x556   :  { %18326 = vmatmul.mubr.f32.gmra.mrb[6].mxu0 %v1745_v43 }
 0x557   :  { %19763 = vmatpush3.bf16.msra.mxu0 %v21914_v38  ;;  %18336 = vmatprep.mubr.f32.mxu0 %v1713_v10  ;;  %v2413_v38 = vsub.f32 %v132_v50, %v2303_v9 }
 0x558   :  { %19765 = vmatprep.subr.bf16.mxu0 %v21895_v26 }
 0x559   :  { %v21978_v44 = vpack.c.bf16 %v2420_v21, %v2413_v38 }
 0x55a   :  { %18337 = vmatmul.mubr.f32.vlgmr.msra.gmra.mrb[4].mxu0 %v21938_v17 }
 0x55b   :  { %18339 = vmatprep.mubr.f32.mxu0 %v1733_v36  ;;  %19767 = vmatpush3.bf16.msra.mxu0 %v21895_v26  ;;  %v138_v26 = vld [vmem:[#allocation8 + $0x38] sm:$0xff] }
 0x55c   :  { %19769 = vmatprep.subr.bf16.mxu0 %v21897_v27  ;;  %v2312_v4 = vand.u32 4294901760, %v138_v26 }
 0x55e   :  { %18340 = vmatmul.mubr.f32.gmra.mrb[6].mxu0 %v1743_v55  ;;  %v21969_v7 = vpack.c.bf16 %v2312_v4, %v2309_v3  ;;  %v2434_v23 = vsub.f32 %v138_v26, %v2312_v4 }
 0x55f   :  { %19771 = vmatpush3.bf16.msra.mxu0 %v21897_v27  ;;  %18350 = vmatprep.mubr.f32.mxu0 %v1713_v10  ;;  %v2414_v27 = vand.u32 4294901760, %v2413_v38 }
 0x560   :  { %19773 = vmatprep.subr.bf16.mxu0 %v21965_v12  ;;  %v2435_v29 = vand.u32 4294901760, %v2434_v23  ;;  %v21980_v10 = vpack.c.bf16 %v2434_v23, %v2427_v19 }
 0x561   :  { %v2415_v14 = vsub.f32 %v2413_v38, %v2414_v27  ;;  %v21982_v5 = vpack.c.bf16 %v2421_v6, %v2414_v27 }
 0x562   :  { %18351 = vmatmul.mubr.f32.vlgmr.msra.gmra.mrb[4].mxu0 %v21938_v17  ;;  %v2436_v33 = vsub.f32 %v2434_v23, %v2435_v29  ;;  %v21984_v41 = vpack.c.bf16 %v2435_v29, %v2428_v28 }
 0x563   :  { %18353 = vmatprep.mubr.f32.mxu0 %v1733_v36  ;;  %19775 = vmatpush3.bf16.msra.mxu0 %v21965_v12  ;;  %v2416_v24 = vand.u32 4294901760, %v2415_v14 }
 0x564   :  { %19777 = vmatprep.subr.bf16.mxu0 %v21969_v7  ;;  %v2437_v35 = vand.u32 4294901760, %v2436_v33 }
 0x565   :  { %v21973_v30 = vpack.c.bf16 %v2423_v25, %v2416_v24 }
 0x566   :  { %18354 = vmatmul.mubr.f32.gmra.mrb[6].mxu0 %v1743_v55  ;;  %v21976_v17 = vpack.c.bf16 %v2437_v35, %v2430_v34 }
 0x567   :  { %19779 = vmatpush3.bf16.msra.mxu0 %v21969_v7 }
 0x568   :  { %19781 = vmatprep.subr.bf16.mxu0 %v21973_v30 }
 0x635   :  { %v21993_v53 = vpop.f32.mrb[4].mxu0 }
 0x636   :  { %v21996_v55 = vadd.f32 %v21993_v53, %v2261_v22  ;;  %v21998_v56 = vpop.f32.mrb[5].mxu0  ;;  %v22034_v50 = vadd.f32 %v21993_v53, %v2272_v51 }
 0x637   :  { %v22001_v36 = vadd.f32 %v2261_v22, %v21998_v56  ;;  %v22004_v37 = vadd.f32 %v2272_v51, %v21998_v56 }
 0x638   :  { %25298 = vst [vmem:[#allocation27_spill] sm:$0xff] %v21996_v55  ;;  %v2294_v40 = vsel %vm145_vm0, %v21996_v55, 0  ;;  %25304 = vst [vmem:[#allocation33_spill] sm:$0xff] %v22034_v50 }
 0x639   :  { %25299 = vst [vmem:[#allocation28_spill] sm:$0xff] %v22001_v36  ;;  %25300 = vst [vmem:[#allocation29_spill] sm:$0xff] %v22004_v37  ;;  %v22008_v42 = vand.u32 4294901760, %v2294_v40  ;;  %v22010_v20 = vpop.f32.mrb[6].mxu0  ;;  %3043 = vrot.lane.b32.xlu1 %v22004_v37, %s21409_s17  ;;  %v2291_v43 = vsel %vm145_vm0, %v22001_v36, 0  ;;  %v3048_v13 = vsel %vm3047_vm2, %v22001_v36, 0 }
 0x63a   :  { %v22019_v1 = vadd.f32 %v22010_v20, %v2261_v22  ;;  %v22022_v45 = vadd.f32 %v22010_v20, %v2272_v51  ;;  %v22024_v46 = vpop.f32.mrb[7].mxu0  ;;  %v22026_v47 = vand.u32 4294901760, %v2291_v43  ;;  %v22028_v48 = vand.u32 4294901760, %v3048_v13 }
 0x63b   :  { %v22031_v49 = vadd.f32 %v2261_v22, %v22024_v46  ;;  %v2382_v59 = vsub.f32 %v2294_v40, %v22008_v42  ;;  %v22055_v6 = vadd.f32 %v2272_v51, %v22024_v46  ;;  %v21410_v40 = vmov 0  }
 0x63c   :  { %25301 = vst [vmem:[#allocation30_spill] sm:$0xff] %v22019_v1  ;;  %25302 = vst [vmem:[#allocation31_spill] sm:$0xff] %v22022_v45  ;;  %3562 = vrot.lane.b32.xlu0 %v22022_v45, %s21409_s17  ;;  %v2372_v9 = vsub.f32 %v2291_v43, %v22026_v47  ;;  %v22041_v11 = vsub.f32 %v3048_v13, %v22028_v48  ;;  %v2300_v38 = vsel %vm145_vm0, %v22019_v1, 0  ;;  %20952 = vset.pattern.permute.xlu1 %v21410_v40  ;;  %v110_v43 = vld [vmem:[%s25174_s1 + $0x10] sm:$0xff] }
 0x63d   :  { %25303 = vst [vmem:[#allocation32_spill] sm:$0xff] %v22031_v49  ;;  %3045 = vrot.lane.b32.xlu1 %v22034_v50, %s21409_s17  ;;  %v2383_v21 = vand.u32 4294901760, %v2382_v59  ;;  %v2297_v54 = vsel %vm145_vm0, %v22031_v49, 0  ;;  %v22049_v26 = vand.u32 4294901760, %v2300_v38  ;;  %25305 = vst [vmem:[#allocation34_spill] sm:$0xff] %v22055_v6  ;;  %20953 = vset.pattern.permute.xlu0 %v21410_v40  ;;  %v3050_v13 = vsel %vm3047_vm2, %v21996_v55, 0 }
 0x63e   :  { %v2373_v3 = vand.u32 4294901760, %v2372_v9  ;;  %v3125_v4 = vand.u32 4294901760, %v22041_v11  ;;  %v22052_v27 = vand.u32 4294901760, %v2297_v54 }
 0x63f   :  { %v2384_v14 = vsub.f32 %v2382_v59, %v2383_v21  ;;  %v2402_v16 = vsub.f32 %v2300_v38, %v22049_v26 }
 0x640   :  { %v2374_v19 = vsub.f32 %v2372_v9, %v2373_v3  ;;  %v3126_v23 = vsub.f32 %v22041_v11, %v3125_v4  ;;  %v2392_v24 = vsub.f32 %v2297_v54, %v22052_v27 }
 0x641   :  { %3560 = vrot.lane.b32.xlu1 %v22055_v6, %s21409_s17  ;;  %v2403_v25 = vand.u32 4294901760, %v2402_v16  ;;  %v2385_v33 = vand.u32 4294901760, %v2384_v14 }
 0x642   :  { %v2375_v28 = vand.u32 4294901760, %v2374_v19  ;;  %v3127_v29 = vand.u32 4294901760, %v3126_v23  ;;  %v2393_v32 = vand.u32 4294901760, %v2392_v24 }
 0x643   :  { %v2404_v34 = vsub.f32 %v2402_v16, %v2403_v25 }
 0x644   :  { %18364 = vmatprep.mubr.f32.mxu0 %v2375_v28  ;;  %18444 = vmatprep.mubr.f32.mxu1 %v3127_v29  ;;  %v2394_v35 = vsub.f32 %v2392_v24, %v2393_v32 }
 0x645   :  { %18365 = vmatmul.mubr.f32.vlgmr.msra.gmra.mrb[8].mxu0 %v2385_v33  ;;  %v2405_v51 = vand.u32 4294901760, %v2404_v34 }
 0x646   :  { %19783 = vmatpush3.bf16.msra.mxu0 %v21973_v30  ;;  %v2395_v22 = vand.u32 4294901760, %v2394_v35  ;;  %v3564_v30 = vsel %vm3047_vm2, %v22031_v49, 0 }
 0x647   :  { %19785 = vmatprep.subr.bf16.mxu0 %v21976_v17 }
 0x648   :  { %18367 = vmatprep.mubr.f32.mxu0 %v2395_v22 }
 0x649   :  { %18368 = vmatmul.mubr.f32.gmra.mrb[10].mxu0 %v2405_v51 }
 0x64a   :  { %19787 = vmatpush3.bf16.msra.mxu0 %v21976_v17  ;;  %18378 = vmatprep.mubr.f32.mxu0 %v22026_v47  ;;  %v22084_v17 = vand.u32 4294901760, %v3564_v30 }
 0x64b   :  { %19789 = vmatprep.subr.bf16.mxu0 %v21978_v44 }
 0x64d   :  { %18379 = vmatmul.mubr.f32.vlgmr.msra.gmra.mrb[8].mxu0 %v22008_v42 }
 0x64e   :  { %18381 = vmatprep.mubr.f32.mxu0 %v22052_v27  ;;  %19791 = vmatpush3.bf16.msra.mxu0 %v21978_v44  ;;  %v22090_v44 = vsub.f32 %v3564_v30, %v22084_v17 }
 0x64f   :  { %19793 = vmatprep.subr.bf16.mxu0 %v21980_v10 }
 0x651   :  { %18382 = vmatmul.mubr.f32.gmra.mrb[10].mxu0 %v22049_v26 }
 0x652   :  { %19795 = vmatpush3.bf16.msra.mxu0 %v21980_v10  ;;  %18392 = vmatprep.mubr.f32.mxu0 %v2372_v9  ;;  %v3641_v10 = vand.u32 4294901760, %v22090_v44 }
 0x653   :  { %19797 = vmatprep.subr.bf16.mxu0 %v21965_v12 }
 0x655   :  { %18393 = vmatmul.mubr.f32.vlgmr.msra.gmra.mrb[8].mxu0 %v2382_v59 }
 0x656   :  { %18395 = vmatprep.mubr.f32.mxu0 %v2392_v24  ;;  %19799 = vmatpush3.bf16.msra.mxu0 %v21965_v12 }
 0x657   :  { %19801 = vmatprep.subr.bf16.mxu0 %v21969_v7 }
 0x659   :  { %18396 = vmatmul.mubr.f32.gmra.mrb[10].mxu0 %v2402_v16 }
 0x65a   :  { %19803 = vmatpush3.bf16.msra.mxu0 %v21969_v7  ;;  %18406 = vmatprep.mubr.f32.mxu0 %v2373_v3 }
 0x65b   :  { %19805 = vmatprep.subr.bf16.mxu0 %v21982_v5 }
 0x65d   :  { %18407 = vmatmul.mubr.f32.vlgmr.msra.gmra.mrb[8].mxu0 %v2383_v21 }
 0x65e   :  { %18409 = vmatprep.mubr.f32.mxu0 %v2393_v32  ;;  %19807 = vmatpush3.bf16.msra.mxu0 %v21982_v5  ;;  %v109_v5 = vld [vmem:[%s25174_s1 + $0x8] sm:$0xff] }
 0x65f   :  { %19809 = vmatprep.subr.bf16.mxu0 %v21984_v41  ;;  %2984 = vperm.xlu0 %20953, %v109_v5  }
 0x661   :  { %18410 = vmatmul.mubr.f32.gmra.mrb[10].mxu0 %v2403_v25 }
 0x662   :  { %19811 = vmatpush3.bf16.msra.mxu0 %v21984_v41  ;;  %18420 = vmatprep.mubr.f32.mxu0 %v22026_v47  ;;  %v108_v41 = vld [vmem:[%s25174_s1] sm:$0xff] }
 0x663   :  { %19813 = vmatprep.subr.bf16.mxu0 %v21965_v12  ;;  %2979 = vperm.xlu1 %20952, %v108_v41  }
 0x664   :  { %2989 = vperm.xlu0 %20953, %v110_v43  }
 0x665   :  { %18421 = vmatmul.mubr.f32.vlgmr.msra.gmra.mrb[8].mxu0 %v22008_v42 }
 0x666   :  { %18423 = vmatprep.mubr.f32.mxu0 %v22052_v27  ;;  %19815 = vmatpush3.bf16.msra.mxu0 %v21965_v12  ;;  %v3642_v12 = vsub.f32 %v22090_v44, %v3641_v10 }
 0x667   :  { %19817 = vmatprep.subr.bf16.mxu0 %v21969_v7 }
 0x669   :  { %18424 = vmatmul.mubr.f32.gmra.mrb[10].mxu0 %v22049_v26 }
 0x66a   :  { %19819 = vmatpush3.bf16.msra.mxu0 %v21969_v7  ;;  %18434 = vmatprep.mubr.f32.mxu0 %v22026_v47  ;;  %v3643_v7 = vand.u32 4294901760, %v3642_v12  ;;  %v22119_v47 = vand.u32 4294901760, %v3050_v13 }
 0x66c   :  { %v22125_v54 = vsub.f32 %v3050_v13, %v22119_v47 }
 0x66d   :  { %18435 = vmatmul.mubr.f32.vlgmr.msra.gmra.mrb[8].mxu0 %v22008_v42  ;;  %v3566_v42 = vsel %vm3047_vm2, %v22019_v1, 0 }
 0x66e   :  { %18437 = vmatprep.mubr.f32.mxu0 %v22052_v27  ;;  %v22127_v3 = vand.u32 4294901760, %v3566_v42  ;;  %v3135_v28 = vand.u32 4294901760, %v22125_v54 }
 0x670   :  { %v22138_v34 = vsub.f32 %v3566_v42, %v22127_v3  ;;  %v3136_v41 = vsub.f32 %v22125_v54, %v3135_v28 }
 0x671   :  { %18438 = vmatmul.mubr.f32.gmra.mrb[10].mxu0 %v22049_v26 }
 0x672   :  { %18486 = vmatprep.mubr.f32.mxu0 %v3643_v7  ;;  %v3651_v13 = vand.u32 4294901760, %v22138_v34 }
 0x6ab   :  { %v3044_v59 = vpop.permute.xlu1 %3043 }
 0x6ac   :  { %v3052_v9 = vsel %vm3047_vm2, %v3044_v59, 0 }
 0x6ad   :  { %v3057_v38 = vand.u32 4294901760, %v3052_v9 }
 0x6ae   :  { %v3563_v21 = vpop.permute.xlu0 %3562 }
 0x6af   :  { %v22129_v26 = vsub.f32 %v3052_v9, %v3057_v38  ;;  %v3570_v27 = vsel %vm3047_vm2, %v3563_v21, 0  ;;  %v3046_v14 = vpop.permute.xlu1 %3045  ;;  %v3137_v21 = vand.u32 4294901760, %v3136_v41  ;;  %v21411_v41 = vmov 1  }
 0x6b0   :  { %v3576_v16 = vand.u32 4294901760, %v3570_v27  ;;  %v3054_v19 = vsel %vm3047_vm2, %v3046_v14, 0  ;;  %v3652_v14 = vsub.f32 %v22138_v34, %v3651_v13  ;;  %20954 = vset.pattern.permute.xlu1 %v21411_v41 }
 0x6b1   :  { %v3146_v23 = vand.u32 4294901760, %v22129_v26  ;;  %v3060_v24 = vand.u32 4294901760, %v3054_v19 }
 0x6b2   :  { %v3668_v25 = vsub.f32 %v3570_v27, %v3576_v16 }
 0x6b3   :  { %v22135_v29 = vpack.c.bf16 %v3060_v24, %v3057_v38  ;;  %v3152_v32 = vsub.f32 %v3054_v19, %v3060_v24  ;;  %v3561_v33 = vpop.permute.xlu1 %3560  ;;  %v3147_v5 = vsub.f32 %v22129_v26, %v3146_v23 }
 0x6b4   :  { %v3568_v35 = vsel %vm3047_vm2, %v3561_v33, 0  ;;  %v3669_v22 = vand.u32 4294901760, %v3668_v25 }
 0x6b5   :  { %v3153_v51 = vand.u32 4294901760, %v3152_v32  ;;  %v3573_v30 = vand.u32 4294901760, %v3568_v35  ;;  %19821 = vmatprep.subr.bf16.mxu1 %v22135_v29  ;;  %v3148_v42 = vand.u32 4294901760, %v3147_v5  ;;  %v19828_v24 = vpack.c.bf16 %v3152_v32, %v22129_v26 }
 0x6b6   :  { %19823 = vmatpush3.bf16.xpose.msra.mxu1 %v22135_v29  ;;  %v3670_v38 = vsub.f32 %v3668_v25, %v3669_v22 }
 0x6b7   :  { %v19844_v12 = vpack.c.bf16 %v3576_v16, %v3573_v30  ;;  %v3661_v43 = vsub.f32 %v3568_v35, %v3573_v30  ;;  %v3154_v7 = vsub.f32 %v3152_v32, %v3153_v51  ;;  %v3653_v35 = vand.u32 4294901760, %v3652_v14 }
 0x6b8   :  { %v3671_v33 = vand.u32 4294901760, %v3670_v38  ;;  %v19836_v26 = vpack.c.bf16 %v3153_v51, %v3146_v23  ;;  %v21417_v23 = vmov 7   ;;  %v2920_v32 = vand.u32 127, %v199_v62  ;;  %v111_v62 = vld [vmem:[%s25174_s1 + $0x18] sm:$0xff] }
 0x6b9   :  { %v3662_v59 = vand.u32 4294901760, %v3661_v43  ;;  %19845 = vmatprep.subr.bf16.mxu0 %v19844_v12  ;;  %v3155_v9 = vand.u32 4294901760, %v3154_v7  ;;  %v19852_v5 = vpack.c.bf16 %v3668_v25, %v3661_v43 }
 0x6ba   :  { %19847 = vmatpush3.bf16.xpose.msra.mxu0 %v19844_v12 }
 0x6bb   :  { %v19824_v27 = vpack.c.bf16 %v3155_v9, %v3148_v42  ;;  %v3663_v19 = vsub.f32 %v3661_v43, %v3662_v59  ;;  %v19860_v25 = vpack.c.bf16 %v3669_v22, %v3662_v59  ;;  %v21419_v42 = vmov 0.0  }
 0x6bd   :  { %18445 = vmatmul.mubr.f32.vlgmr.msra.gmra.mrb[4].mxu1 %v3137_v21  ;;  %19825 = vmatprep.subr.bf16.mxu1 %v19824_v27  ;;  %v3664_v16 = vand.u32 4294901760, %v3663_v19 }
 0x6be   :  { %19827 = vmatpush3.bf16.xpose.msra.mxu1 %v19824_v27  ;;  %18451 = vmatprep.mubr.f32.mxu1 %v22028_v48 }
 0x6bf   :  { %19829 = vmatprep.subr.bf16.mxu1 %v19828_v24  ;;  %v19848_v30 = vpack.c.bf16 %v3671_v33, %v3664_v16 }
 0x6c1   :  { %18487 = vmatmul.mubr.f32.vlgmr.msra.gmra.mrb[12].mxu0 %v3653_v35  ;;  %19849 = vmatprep.subr.bf16.mxu0 %v19848_v30 }
 0x6c2   :  { %19851 = vmatpush3.bf16.xpose.msra.mxu0 %v19848_v30  ;;  %18493 = vmatprep.mubr.f32.mxu0 %v22084_v17 }
 0x6c3   :  { %19853 = vmatprep.subr.bf16.mxu0 %v19852_v5 }
 0x6c5   :  { %18452 = vmatmul.mubr.f32.vlgmr.msra.gmra.mrb[4].mxu1 %v22119_v47 }
 0x6c6   :  { %19831 = vmatpush3.bf16.xpose.msra.mxu1 %v19828_v24  ;;  %18458 = vmatprep.mubr.f32.mxu1 %v22041_v11 }
 0x6c7   :  { %19833 = vmatprep.subr.bf16.mxu1 %v22135_v29 }
 0x6c9   :  { %18494 = vmatmul.mubr.f32.vlgmr.msra.gmra.mrb[12].mxu0 %v22127_v3 }
 0x6ca   :  { %19855 = vmatpush3.bf16.xpose.msra.mxu0 %v19852_v5  ;;  %18500 = vmatprep.mubr.f32.mxu0 %v22090_v44 }
 0x6cb   :  { %19857 = vmatprep.subr.bf16.mxu0 %v19844_v12 }
 0x6cd   :  { %18459 = vmatmul.mubr.f32.vlgmr.msra.gmra.mrb[4].mxu1 %v22125_v54  ;;  %v21415_v54 = vmov 4  }
 0x6ce   :  { %19835 = vmatpush3.bf16.xpose.msra.mxu1 %v22135_v29  ;;  %18465 = vmatprep.mubr.f32.mxu1 %v3125_v4 }
 0x6cf   :  { %19837 = vmatprep.subr.bf16.mxu1 %v19836_v26 }
 0x6d1   :  { %18501 = vmatmul.mubr.f32.vlgmr.msra.gmra.mrb[12].mxu0 %v22138_v34 }
 0x6d2   :  { %19859 = vmatpush3.bf16.xpose.msra.mxu0 %v19844_v12  ;;  %18507 = vmatprep.mubr.f32.mxu0 %v3641_v10  ;;  %v21412_v10 = vmov 3  }
 0x6d3   :  { %19861 = vmatprep.subr.bf16.mxu0 %v19860_v25 }
 0x6d5   :  { %18466 = vmatmul.mubr.f32.vlgmr.msra.gmra.mrb[4].mxu1 %v3135_v28  ;;  %v21418_v28 = vmov 8  }
 0x6d6   :  { %19839 = vmatpush3.bf16.xpose.msra.mxu1 %v19836_v26  ;;  %18472 = vmatprep.mubr.f32.mxu1 %v22028_v48 }
 0x6d7   :  { %19841 = vmatprep.subr.bf16.mxu1 %v22135_v29 }
 0x6d9   :  { %18508 = vmatmul.mubr.f32.vlgmr.msra.gmra.mrb[12].mxu0 %v3651_v13 }
 0x6da   :  { %19863 = vmatpush3.bf16.xpose.msra.mxu0 %v19860_v25  ;;  %18514 = vmatprep.mubr.f32.mxu0 %v22084_v17 }
 0x6db   :  { %19865 = vmatprep.subr.bf16.mxu0 %v19844_v12 }
 0x6dd   :  { %18473 = vmatmul.mubr.f32.vlgmr.msra.gmra.mrb[4].mxu1 %v22119_v47 }
 0x6de   :  { %19843 = vmatpush3.bf16.xpose.msra.mxu1 %v22135_v29  ;;  %18479 = vmatprep.mubr.f32.mxu1 %v22028_v48  ;;  %v2918_v29 = vadd.s32 8, %v21663_v8  ;;  %v2985_v34 = vpop.permute.xlu0 %2984 }
 0x6e0   :  { %v2922_v22 = vsub.s32 %v2920_v32, %v2918_v29 }
 0x6e1   :  { %18515 = vmatmul.mubr.f32.vlgmr.msra.gmra.mrb[12].mxu0 %v22127_v3 }
 0x6e2   :  { %19867 = vmatpush3.bf16.xpose.msra.mxu0 %v19844_v12  ;;  %18521 = vmatprep.mubr.f32.mxu0 %v22084_v17  ;;  %v21413_v17 = vmov 2   ;;  %v22235_v43 = vpop.permute.xlu1 %2979  ;;  %vm2924_vm3 = vcmp.eq.s32.totalorder %v2922_v22, 4294967292  ;;  %vm2930_vm4 = vcmp.eq.s32.totalorder %v2922_v22, 4294967293  ;;  %vm2936_vm5 = vcmp.eq.s32.totalorder %v2922_v22, 4294967294 }
 0x6e3   :  { %v22237_v7 = vpop.permute.xlu0 %2989  ;;  %v22248_v9 = vsel %vm2924_vm3, 1.0, %v21419_v42  ;;  %v22251_v21 = vsel %vm2930_vm4, 1.0, %v21419_v42  ;;  %vm2942_vm6 = vcmp.eq.s32.totalorder %v2922_v22, 4294967295  ;;  %vm2948_vm7 = vcmp.eq.s32.totalorder %v2922_v22, 0 }
 0x6e4   :  { %25310 = vst [vmem:[#allocation39_spill] sm:$0xff] %v22248_v9  ;;  %v22260_v30 = vsel %vm2942_vm6, 1.0, %v21419_v42  ;;  %v22263_v26 = vsel %vm2948_vm7, 1.0, %v21419_v42  ;;  %vm2954_vm8 = vcmp.eq.s32.totalorder %v2922_v22, 1  ;;  %vm2960_vm9 = vcmp.eq.s32.totalorder %v2922_v22, 2 }
 0x6e5   :  { %18480 = vmatmul.mubr.f32.vlgmr.msra.gmra.mrb[4].mxu1 %v22119_v47  ;;  %v21414_v47 = vmov 6   ;;  %vm2966_vm10 = vcmp.eq.s32.totalorder %v2922_v22, 3  ;;  %v22272_v29 = vsel %vm2960_vm9, 1.0, %v21419_v42  ;;  %vm2972_vm11 = vcmp.eq.s32.totalorder %v2922_v22, 4 }
 0x6e9   :  { %18522 = vmatmul.mubr.f32.vlgmr.msra.gmra.mrb[12].mxu0 %v22127_v3  ;;  %v21416_v3 = vmov 5  }
 0x740   :  { %v22173_v11 = vpop.f32.mrb[8].mxu0 }
 0x741   :  { %25306 = vst [vmem:[#allocation35_spill] sm:$0xff] %v22173_v11  ;;  %v22175_v4 = vpop.f32.mrb[9].mxu0  ;;  %3024 = vperm.xlu0 %20953, %v22173_v11   ;;  %4079 = vperm.xlu1 %20954, %v22173_v11  }
 0x742   :  { %25307 = vst [vmem:[#allocation36_spill] sm:$0xff] %v22175_v4 }
 0x744   :  { %v22179_v44 = vpop.f32.mrb[10].mxu0 }
 0x745   :  { %25308 = vst [vmem:[#allocation37_spill] sm:$0xff] %v22179_v44  ;;  %v22181_v48 = vpop.f32.mrb[11].mxu0  ;;  %20956 = vset.pattern.permute.xlu0 %v21412_v10  ;;  %20955 = vset.pattern.permute.xlu1 %v21413_v17 }
 0x746   :  { %25309 = vst [vmem:[#allocation38_spill] sm:$0xff] %v22181_v48  ;;  %4127 = vperm.xlu0 %20956, %v22173_v11   ;;  %4103 = vperm.xlu1 %20955, %v22173_v11  }
 0x74a   :  { %20959 = vset.pattern.permute.xlu0 %v21414_v47  ;;  %20957 = vset.pattern.permute.xlu1 %v21415_v54 }
 0x74b   :  { %4199 = vperm.xlu0 %20959, %v22173_v11   ;;  %4151 = vperm.xlu1 %20957, %v22173_v11  }
 0x74f   :  { %20964 = vset.pattern.permute.xlu0 %v21413_v17  ;;  %20958 = vset.pattern.permute.xlu1 %v21416_v3 }
 0x750   :  { %4099 = vperm.xlu0 %20964, %v22175_v4   ;;  %4175 = vperm.xlu1 %20958, %v22173_v11  }
 0x754   :  { %20967 = vset.pattern.permute.xlu0 %v21416_v3  ;;  %20960 = vset.pattern.permute.xlu1 %v21417_v23 }
 0x755   :  { %4171 = vperm.xlu0 %20967, %v22175_v4   ;;  %4223 = vperm.xlu1 %20960, %v22173_v11  }
 0x759   :  { %20970 = vset.pattern.permute.xlu0 %v21418_v28  ;;  %20961 = vset.pattern.permute.xlu1 %v21418_v28 }
 0x75a   :  { %4243 = vperm.xlu0 %20970, %v22175_v4   ;;  %4247 = vperm.xlu1 %20961, %v22173_v11  }
 0x75e   :  { %20973 = vset.pattern.permute.xlu0 %v21413_v17  ;;  %20962 = vset.pattern.permute.xlu1 %v21410_v40 }
 0x75f   :  { %4111 = vperm.xlu0 %20973, %v22179_v44   ;;  %3019 = vperm.xlu1 %20962, %v22175_v4  }
 0x763   :  { %20976 = vset.pattern.permute.xlu0 %v21416_v3  ;;  %20963 = vset.pattern.permute.xlu1 %v21411_v41 }
 0x764   :  { %4183 = vperm.xlu0 %20976, %v22179_v44   ;;  %4075 = vperm.xlu1 %20963, %v22175_v4  }
 0x768   :  { %20981 = vset.pattern.permute.xlu0 %v21411_v41  ;;  %20965 = vset.pattern.permute.xlu1 %v21412_v10 }
 0x769   :  { %4083 = vperm.xlu0 %20981, %v22181_v48   ;;  %4123 = vperm.xlu1 %20965, %v22175_v4  }
 0x76d   :  { %20984 = vset.pattern.permute.xlu0 %v21415_v54  ;;  %20966 = vset.pattern.permute.xlu1 %v21415_v54 }
 0x76e   :  { %4155 = vperm.xlu0 %20984, %v22181_v48   ;;  %4147 = vperm.xlu1 %20966, %v22175_v4  }
 0x772   :  { %20987 = vset.pattern.permute.xlu0 %v21417_v23  ;;  %20968 = vset.pattern.permute.xlu1 %v21414_v47 }
 0x773   :  { %4227 = vperm.xlu0 %20987, %v22181_v48   ;;  %4195 = vperm.xlu1 %20968, %v22175_v4  }
 0x777   :  { %20969 = vset.pattern.permute.xlu1 %v21417_v23 }
 0x778   :  { %4219 = vperm.xlu1 %20969, %v22175_v4  }
 0x77c   :  { %20971 = vset.pattern.permute.xlu1 %v21410_v40 }
 0x77d   :  { %3034 = vperm.xlu1 %20971, %v22179_v44  }
 0x781   :  { %20972 = vset.pattern.permute.xlu1 %v21411_v41 }
 0x782   :  { %4087 = vperm.xlu1 %20972, %v22179_v44  }
 0x786   :  { %20974 = vset.pattern.permute.xlu1 %v21412_v10 }
 0x787   :  { %4135 = vperm.xlu1 %20974, %v22179_v44  }
 0x78b   :  { %20975 = vset.pattern.permute.xlu1 %v21415_v54  ;;  %v22268_v54 = vsel %vm2954_vm8, 1.0, %v21419_v42 }
 0x78c   :  { %4159 = vperm.xlu1 %20975, %v22179_v44  }
 0x790   :  { %20977 = vset.pattern.permute.xlu1 %v21414_v47 }
 0x791   :  { %4207 = vperm.xlu1 %20977, %v22179_v44  }
 0x795   :  { %20978 = vset.pattern.permute.xlu1 %v21417_v23 }
 0x796   :  { %4231 = vperm.xlu1 %20978, %v22179_v44  }
 0x79a   :  { %20979 = vset.pattern.permute.xlu1 %v21418_v28 }
 0x79b   :  { %4255 = vperm.xlu1 %20979, %v22179_v44  }
 0x79f   :  { %20980 = vset.pattern.permute.xlu1 %v21410_v40 }
 0x7a0   :  { %3029 = vperm.xlu1 %20980, %v22181_v48  }
 0x7a4   :  { %20982 = vset.pattern.permute.xlu1 %v21413_v17 }
 0x7a5   :  { %4107 = vperm.xlu1 %20982, %v22181_v48  }
 0x7a9   :  { %20983 = vset.pattern.permute.xlu1 %v21412_v10 }
 0x7aa   :  { %4131 = vperm.xlu1 %20983, %v22181_v48  }
 0x7ae   :  { %20985 = vset.pattern.permute.xlu1 %v21416_v3 }
 0x7af   :  { %4179 = vperm.xlu1 %20985, %v22181_v48  }
 0x7b3   :  { %20986 = vset.pattern.permute.xlu1 %v21414_v47 }
 0x7b4   :  { %4203 = vperm.xlu1 %20986, %v22181_v48  }
 0x7b8   :  { %20988 = vset.pattern.permute.xlu1 %v21418_v28  ;;  %v18481_v51 = vpop.f32.mrb[4].mxu1 }
 0x7b9   :  { %4251 = vperm.xlu1 %20988, %v22181_v48   ;;  %v22233_v12 = vpop.f32.mrb[5].mxu1 }
 0x7bc   :  { %v22242_v13 = vpop.f32.mrb[12].mxu0 }
 0x7bd   :  { %20989 = vset.pattern.permute.xlu1 %v21410_v40  ;;  %v22245_v59 = vpop.f32.mrb[13].mxu0  ;;  %v22256_v40 = vsel %vm2936_vm5, 1.0, %v21419_v42 }
 0x7be   :  { %2994 = vperm.xlu1 %20989, %v111_v62  }
 0x7c0   :  { %v3025_v38 = vpop.permute.xlu0 %3024  ;;  %v4080_v27 = vpop.permute.xlu1 %4079 }
 0x7c1   :  { %v3038_v14 = vmul.f32 %v22248_v9, %v3025_v38  ;;  %v4091_v24 = vmul.f32 %v22251_v21, %v4080_v27  ;;  %v22275_v38 = vsel %vm2966_vm10, 1.0, %v21419_v42 }
 0x7c3   :  { %v20500_v19 = vadd.f32 %v18481_v51, %v3038_v14 }
 0x7c5   :  { %v4095_v16 = vadd.f32 %v20500_v19, %v4091_v24  ;;  %v4104_v33 = vpop.permute.xlu1 %4103  ;;  %v4128_v5 = vpop.permute.xlu0 %4127  ;;  %v17177_v19 = vld [vmem:[%s25175_s2] ss:$0 sm:$0xff] }
 0x7c6   :  { %v4115_v35 = vmul.f32 %v22256_v40, %v4104_v33  ;;  %v4139_v25 = vmul.f32 %v22260_v30, %v4128_v5  ;;  %v22282_v33 = vmul.f32 %v17177_v19, %v2985_v34  ;;  %v2921_v5 = vsub.s32 %v2920_v32, %v21663_v8 }
 0x7c7   :  { %v22333_v58 = vmul.f32 %v17177_v19, %v22235_v43 }
 0x7c8   :  { %v4119_v41 = vadd.f32 %v4115_v35, %v4095_v16  ;;  %25311 = vst [vmem:[#allocation40_spill] sm:$0xff] %v22282_v33  ;;  %v22285_v35 = vsel %vm2972_vm11, 1.0, %v21419_v42  ;;  %vm2923_vm12 = vcmp.eq.s32.totalorder %v2921_v5, 4294967292  ;;  %vm3014_vm13 = vcmp.gt.f32.partialorder %v22282_v33, 0.5 }
 0x7c9   :  { %vm2929_vm15 = vcmp.eq.s32.totalorder %v2921_v5, 4294967293  ;;  %vm2935_vm3 = vcmp.eq.s32.totalorder %v2921_v5, 4294967294  ;;  %vm2941_vm4 = vcmp.eq.s32.totalorder %v2921_v5, 4294967295  ;;  %vm2947_vm5 = vcmp.eq.s32.totalorder %v2921_v5, 0  ;;  %25313 = vst [vmem:[#allocation42_spill] sm:$0xff] %v22333_v58 }
 0x7ca   :  { %v4152_v10 = vpop.permute.xlu1 %4151  ;;  %v4143_v17 = vadd.f32 %v4139_v25, %v4119_v41  ;;  %v4200_v51 = vpop.permute.xlu0 %4199  ;;  %vm2953_vm6 = vcmp.eq.s32.totalorder %v2921_v5, 1  ;;  %vm2959_vm7 = vcmp.eq.s32.totalorder %v2921_v5, 2  ;;  %vm2971_vm8 = vcmp.eq.s32.totalorder %v2921_v5, 4 }
 0x7cb   :  { %v4163_v47 = vmul.f32 %v22263_v26, %v4152_v10  ;;  %v4211_v27 = vmul.f32 %v22272_v29, %v4200_v51  ;;  %vm2965_vm9 = vcmp.eq.s32.totalorder %v2921_v5, 3  ;;  %vm3013_vm10 = vcmp.gt.f32.partialorder %v22333_v58, 0.5 }
 0x7cd   :  { %v4167_v23 = vadd.f32 %v4163_v47, %v4143_v17  ;;  %v22291_v17 = vsel %vm2923_vm12, 1.0, %v21419_v42 }
 0x7ce   :  { %25312 = vst [vmem:[#allocation41_spill] sm:$0xff] %v22291_v17 }
 0x7cf   :  { %v4176_v3 = vpop.permute.xlu1 %4175 }
 0x7d0   :  { %v4187_v28 = vmul.f32 %v22268_v54, %v4176_v3 }
 0x7d2   :  { %v4191_v62 = vadd.f32 %v4187_v28, %v4167_v23  ;;  %v22301_v23 = vsel %vm2929_vm15, 1.0, %v21419_v42  ;;  %vm14740_vm15 = vcmask 1045504  }
 0x7d4   :  { %v4224_v14 = vpop.permute.xlu1 %4223  ;;  %v4215_v24 = vadd.f32 %v4211_v27, %v4191_v62  ;;  %v22306_v27 = vsel %vm2935_vm3, 1.0, %v21419_v42  ;;  %vm14775_vm3 = vcmask 1044480  }
 0x7d5   :  { %v4235_v16 = vmul.f32 %v22275_v38, %v4224_v14  ;;  %v4100_v14 = vpop.permute.xlu0 %4099 }
 0x7d7   :  { %v4239_v25 = vadd.f32 %v4235_v16, %v4215_v24  ;;  %v22309_v16 = vsel %vm2941_vm4, 1.0, %v21419_v42  ;;  %vm14810_vm4 = vcmask 1043456  }
 0x7d9   :  { %v4248_v41 = vpop.permute.xlu1 %4247 }
 0x7da   :  { %v4259_v10 = vmul.f32 %v22285_v35, %v4248_v41  ;;  %v4114_v41 = vmul.f32 %v22306_v27, %v4100_v14  ;;  %v22321_v14 = vsel %vm2959_vm7, 1.0, %v21419_v42 }
 0x7dc   :  { %v4263_v22 = vadd.f32 %v4259_v10, %v4239_v25 }
 0x7de   :  { %v3020_v47 = vpop.permute.xlu1 %3019  ;;  %v22295_v34 = vsel %vm3014_vm13, %v4263_v22, -10000.0 }
 0x7df   :  { %v3037_v32 = vmul.f32 %v22291_v17, %v3020_v47  ;;  %v4274_v3 = vsel %vm4270_vm14, %v22295_v34, -inf }
 0x7e1   :  { %v20501_v51 = vadd.f32 %v22233_v12, %v3037_v32  ;;  %v22314_v12 = vsel %vm2947_vm5, 1.0, %v21419_v42  ;;  %vm14879_vm5 = vcmask 1041408  }
 0x7e2   :  { %4275 = vmax.xlane.f32.xlu1 %v4274_v3 }
 0x7e3   :  { %v4076_v28 = vpop.permute.xlu1 %4075 }
 0x7e4   :  { %v4090_v62 = vmul.f32 %v22301_v23, %v4076_v28  ;;  %v22318_v28 = vsel %vm2953_vm6, 1.0, %v21419_v42 }
 0x7e6   :  { %v4094_v24 = vadd.f32 %v20501_v51, %v4090_v62  ;;  %v4172_v51 = vpop.permute.xlu0 %4171 }
 0x7e8   :  { %v4124_v25 = vpop.permute.xlu1 %4123  ;;  %v4118_v10 = vadd.f32 %v4114_v41, %v4094_v24  ;;  %v4186_v24 = vmul.f32 %v22318_v28, %v4172_v51 }
 0x7e9   :  { %v4138_v22 = vmul.f32 %v22309_v16, %v4124_v25 }
 0x7eb   :  { %v4142_v32 = vadd.f32 %v4138_v22, %v4118_v10  ;;  %v22326_v10 = vsel %vm2971_vm8, 1.0, %v21419_v42  ;;  %v4244_v22 = vpop.permute.xlu0 %4243 }
 0x7ec   :  { %v4258_v51 = vmul.f32 %v22326_v10, %v4244_v22 }
 0x7ed   :  { %v4148_v47 = vpop.permute.xlu1 %4147 }
 0x7ee   :  { %v4162_v3 = vmul.f32 %v22314_v12, %v4148_v47  ;;  %v22329_v47 = vsel %vm2965_vm9, 1.0, %v21419_v42 }
 0x7ef   :  { %v4112_v31 = vpop.permute.xlu0 %4111 }
 0x7f0   :  { %v4166_v62 = vadd.f32 %v4162_v3, %v4142_v32 }
 0x7f2   :  { %v4196_v41 = vpop.permute.xlu1 %4195  ;;  %v4190_v25 = vadd.f32 %v4186_v24, %v4166_v62 }
 0x7f3   :  { %v4210_v39 = vmul.f32 %v22321_v14, %v4196_v41 }
 0x7f5   :  { %v4214_v32 = vadd.f32 %v4210_v39, %v4190_v25 }
 0x7f7   :  { %v4220_v2 = vpop.permute.xlu1 %4219 }
 0x7f8   :  { %v4234_v3 = vmul.f32 %v22329_v47, %v4220_v2 }
 0x7fa   :  { %v4238_v5 = vadd.f32 %v4234_v3, %v4214_v32  ;;  %v4184_v32 = vpop.permute.xlu0 %4183 }
 0x7fc   :  { %v3035_v62 = vpop.permute.xlu1 %3034  ;;  %v4262_v24 = vadd.f32 %v4258_v51, %v4238_v5 }
 0x7fd   :  { %v3040_v0 = vmul.f32 %v22248_v9, %v3035_v62 }
 0x7fe   :  { %v22339_v41 = vsel %vm3013_vm10, %v4262_v24, -10000.0  ;;  %v4084_v5 = vpop.permute.xlu0 %4083 }
 0x7ff   :  { %v4271_v42 = vsel %vm4270_vm14, %v22339_v41, -inf  ;;  %v4092_v61 = vmul.f32 %v22301_v23, %v4084_v5  ;;  %v20502_v60 = vadd.f32 %v22242_v13, %v3040_v0 }
 0x800   :  { %4272 = vmax.xlane.f32.xlu0 %v4271_v42 }
 0x801   :  { %v4088_v39 = vpop.permute.xlu1 %4087 }
 0x802   :  { %v4093_v42 = vmul.f32 %v22251_v21, %v4088_v39  ;;  %v4156_v62 = vpop.permute.xlu0 %4155 }
 0x803   :  { %v4164_v39 = vmul.f32 %v22314_v12, %v4156_v62 }
 0x804   :  { %v4097_v15 = vadd.f32 %v20502_v60, %v4093_v42 }
 0x806   :  { %v4136_v2 = vpop.permute.xlu1 %4135 }
 0x80b   :  { %v4160_v25 = vpop.permute.xlu1 %4159 }
 0x80c   :  { %v4165_v0 = vmul.f32 %v22263_v26, %v4160_v25  ;;  %v17178_v25 = vld [vmem:[%s25175_s2 + $0x1] ss:$0 sm:$0xff]  ;;  %s21420_s2 = smov 64  }
 0x810   :  { %v4208_v43 = vpop.permute.xlu1 %4207 }
 0x815   :  { %v4232_v19 = vpop.permute.xlu1 %4231 }
 0x81a   :  { %v4256_v22 = vpop.permute.xlu1 %4255 }
 0x81b   :  { %v4261_v62 = vmul.f32 %v22285_v35, %v4256_v22 }
 0x81f   :  { %v3030_v3 = vpop.permute.xlu1 %3029 }
 0x820   :  { %v3039_v51 = vmul.f32 %v22291_v17, %v3030_v3  ;;  %v4117_v3 = vmul.f32 %v22256_v40, %v4112_v31 }
 0x822   :  { %v20503_v24 = vadd.f32 %v22245_v59, %v3039_v51  ;;  %v4121_v9 = vadd.f32 %v4117_v3, %v4097_v15  ;;  %v4141_v59 = vmul.f32 %v22260_v30, %v4136_v2  ;;  %v4228_v15 = vpop.permute.xlu0 %4227 }
 0x823   :  { %v4236_v42 = vmul.f32 %v22329_v47, %v4228_v15 }
 0x824   :  { %v4108_v52 = vpop.permute.xlu1 %4107  ;;  %v4096_v57 = vadd.f32 %v20503_v24, %v4092_v61  ;;  %v4145_v61 = vadd.f32 %v4141_v59, %v4121_v9  ;;  %v4237_v9 = vmul.f32 %v22275_v38, %v4232_v19 }
 0x825   :  { %v4116_v18 = vmul.f32 %v22306_v27, %v4108_v52 }
 0x826   :  { %v4169_v52 = vadd.f32 %v4165_v0, %v4145_v61 }
 0x827   :  { %v4120_v17 = vadd.f32 %v4116_v18, %v4096_v57  ;;  %v4189_v18 = vmul.f32 %v22268_v54, %v4184_v32 }
 0x829   :  { %v4132_v58 = vpop.permute.xlu1 %4131  ;;  %v4193_v31 = vadd.f32 %v4189_v18, %v4169_v52 }
 0x82a   :  { %v4140_v33 = vmul.f32 %v22309_v16, %v4132_v58 }
 0x82c   :  { %v4144_v51 = vadd.f32 %v4140_v33, %v4120_v17  ;;  %v4213_v33 = vmul.f32 %v22272_v29, %v4208_v43  ;;  %v22367_v43 = vmul.f32 %v17178_v25, %v22237_v7 }
 0x82e   :  { %v4180_v5 = vpop.permute.xlu1 %4179  ;;  %v4168_v13 = vadd.f32 %v4164_v39, %v4144_v51  ;;  %v4217_v3 = vadd.f32 %v4213_v33, %v4193_v31  ;;  %25314 = vst [vmem:[#allocation43_spill] sm:$0xff] %v22367_v43  ;;  %vm3015_vm12 = vcmp.gt.f32.partialorder %v22367_v43, 0.5 }
 0x82f   :  { %v4188_v60 = vmul.f32 %v22318_v28, %v4180_v5 }
 0x830   :  { %v4241_v51 = vadd.f32 %v4237_v9, %v4217_v3 }
 0x831   :  { %v4192_v57 = vadd.f32 %v4188_v60, %v4168_v13  ;;  %v22380_v60 = vsub.s32 7, %v21663_v8 }
 0x832   :  { %v4265_v0 = vadd.f32 %v4261_v62, %v4241_v51 }
 0x833   :  { %v4204_v24 = vpop.permute.xlu1 %4203  ;;  %25316 = vst [vmem:[#allocation45_spill] sm:$0xff] %v22380_v60  ;;  %v2281_v52 = vrot.slane %v21989_v63, %v22380_v60 }
 0x834   :  { %v4212_v58 = vmul.f32 %v22321_v14, %v4204_v24 }
 0x836   :  { %v4216_v17 = vadd.f32 %v4212_v58, %v4192_v57 }
 0x838   :  { %v4252_v2 = vpop.permute.xlu1 %4251  ;;  %v4240_v59 = vadd.f32 %v4236_v42, %v4216_v17 }
 0x839   :  { %v4260_v32 = vmul.f32 %v22326_v10, %v4252_v2  ;;  %v21421_v2 = vmov 9  }
 0x83a   :  { %20991 = vset.pattern.permute.xlu0 %v21421_v2  ;;  %20990 = vset.pattern.permute.xlu1 %v21421_v2 }
 0x83b   :  { %v4264_v61 = vadd.f32 %v4260_v32, %v4240_v59 }
 0x83d   :  { %v2995_v5 = vpop.permute.xlu1 %2994  ;;  %v4268_v13 = vsel %vm3015_vm12, %v4264_v61, -10000.0 }
 0x83e   :  { %v22369_v39 = vmul.f32 %v17178_v25, %v2995_v5  ;;  %v4277_v7 = vsel %vm4270_vm14, %v4268_v13, -inf }
 0x840   :  { %25315 = vst [vmem:[#allocation44_spill] sm:$0xff] %v22369_v39  ;;  %vm3016_vm11 = vcmp.gt.f32.partialorder %v22369_v39, 0.5 }
 0x841   :  { %v4269_v19 = vsel %vm3016_vm11, %v4265_v0, -10000.0 }
 0x842   :  { %v4280_v22 = vsel %vm4270_vm14, %v4269_v19, -inf }
 0x843   :  { %4281 = vmax.xlane.f32.xlu0 %v4280_v22  ;;  %v21425_v22 = vmov 11  }
 0x847   :  { %4278 = vmax.xlane.f32.xlu0 %v4277_v7 }
 0x85d   :  { %2283 = vrot.lane.b32.xlu0 %v2281_v52, %s21420_s2 }
 0x86f   :  { %v4276_v24 = vpop.xlane.xlu1 %4275 }
 0x870   :  { %v4284_v58 = vsub.f32 %v22295_v34, %v4276_v24 }
 0x872   :  { %v4289_v18 = vmul.f32 1.442695, %v4284_v58 }
 0x874   :  { %21102 = vpow2.f32 %v4289_v18 }
 0x87e   :  { %v22386_v57 = vpop.eup %21102 }
 0x87f   :  { %v4298_v15 = vsel %vm4270_vm14, %v22386_v57, 0.0 }
 0x880   :  { %4299 = vadd.xlane.f32.xlu1 %v4298_v15 }
 0x88d   :  { %v4273_v31 = vpop.xlane.xlu0 %4272 }
 0x88e   :  { %v4283_v8 = vsub.f32 %v22339_v41, %v4273_v31 }
 0x890   :  { %v4287_v33 = vmul.f32 1.442695, %v4283_v8 }
 0x892   :  { %21104 = vpow2.f32 %v4287_v33  ;;  %v21427_v33 = vmov 13  }
 0x89c   :  { %v21105_v63 = vpop.eup %21104 }
 0x89d   :  { %v4295_v17 = vsel %vm4270_vm14, %v21105_v63, 0.0 }
 0x89e   :  { %4296 = vadd.xlane.f32.xlu1 %v4295_v17 }
 0x8d0   :  { %v4282_v34 = vpop.xlane.xlu0 %4281 }
 0x8d1   :  { %v4286_v41 = vsub.f32 %v4269_v19, %v4282_v34 }
 0x8d3   :  { %v4293_v62 = vmul.f32 1.442695, %v4286_v41 }
 0x8d4   :  { %v4279_v42 = vpop.xlane.xlu0 %4278 }
 0x8d5   :  { %v4285_v32 = vsub.f32 %v4268_v13, %v4279_v42  ;;  %21106 = vpow2.f32 %v4293_v62  ;;  %v21426_v13 = vmov 12   ;;  %v21429_v42 = vmov 14  }
 0x8d7   :  { %v4291_v59 = vmul.f32 1.442695, %v4285_v32 }
 0x8d8   :  { %v2284_v9 = vpop.permute.xlu0 %2283 }
 0x8d9   :  { %v22393_v25 = vadd.f32 %v21993_v53, %v2284_v9  ;;  %v22396_v3 = vadd.f32 %v2284_v9, %v21998_v56  ;;  %21108 = vpow2.f32 %v4291_v59  ;;  %v22411_v0 = vadd.f32 %v2284_v9, %v22024_v46 }
 0x8da   :  { %v22414_v61 = vadd.f32 %v22010_v20, %v2284_v9  ;;  %v21424_v46 = vmov 10  }
 0x8db   :  { %25317 = vst [vmem:[#allocation46_spill] sm:$0xff] %v22393_v25  ;;  %25318 = vst [vmem:[#allocation47_spill] sm:$0xff] %v22396_v3  ;;  %4343 = vrot.lane.b32.xlu0 %v22393_v25, %s21420_s2  ;;  %4341 = vrot.lane.b32.xlu1 %v22396_v3, %s21420_s2 }
 0x8dc   :  { %25319 = vst [vmem:[#allocation48_spill] sm:$0xff] %v22411_v0  ;;  %25320 = vst [vmem:[#allocation49_spill] sm:$0xff] %v22414_v61 }
 0x8df   :  { %v22402_v51 = vpop.eup %21106 }
 0x8e0   :  { %v4304_v53 = vsel %vm4270_vm14, %v22402_v51, 0.0 }
 0x8e3   :  { %v22406_v56 = vpop.eup %21108 }
 0x8e4   :  { %v4301_v5 = vsel %vm4270_vm14, %v22406_v56, 0.0 }
 0x8fa   :  { %4305 = vadd.xlane.f32.xlu0 %v4304_v53 }
 0x8ff   :  { %4302 = vadd.xlane.f32.xlu1 %v4301_v5 }
 0x90d   :  { %v4300_v20 = vpop.xlane.xlu1 %4299 }
 0x910   :  { %4857 = vrot.lane.b32.xlu0 %v22411_v0, %s21420_s2  ;;  %4859 = vrot.lane.b32.xlu1 %v22414_v61, %s21420_s2 }
 0x914   :  { %5621 = vrot.lane.b32.xlu0 %v22034_v50, %s21422_s22  ;;  %5619 = vrot.lane.b32.xlu1 %v22004_v37, %s21422_s22 }
 0x918   :  { %5617 = vrot.lane.b32.xlu0 %v21996_v55, %s21423_s28  ;;  %5615 = vrot.lane.b32.xlu1 %v22001_v36, %s21423_s28 }
 0x91c   :  { %6139 = vrot.lane.b32.xlu0 %v22022_v45, %s21422_s22  ;;  %6137 = vrot.lane.b32.xlu1 %v22055_v6, %s21422_s22 }
 0x920   :  { %6135 = vrot.lane.b32.xlu0 %v22019_v1, %s21423_s28  ;;  %6133 = vrot.lane.b32.xlu1 %v22031_v49, %s21423_s28 }
 0x924   :  { %5600 = vperm.xlu0 %20991, %v22173_v11   ;;  %5596 = vperm.xlu1 %20990, %v22175_v4  }
 0x928   :  { %5604 = vperm.xlu0 %20991, %v22181_v48   ;;  %20992 = vset.pattern.permute.xlu1 %v21424_v46 }
 0x929   :  { %6652 = vperm.xlu1 %20992, %v22175_v4  }
 0x92b   :  { %v4297_v19 = vpop.xlane.xlu1 %4296 }
 0x92c   :  { %21110 = vrcp.f32 %v4297_v19  ;;  %5608 = vperm.xlu0 %20991, %v22179_v44  }
 0x92d   :  { %6656 = vperm.xlu1 %20992, %v22173_v11   ;;  %21112 = vrcp.f32 %v4300_v20 }
 0x930   :  { %20994 = vset.pattern.permute.xlu0 %v21424_v46 }
 0x931   :  { %6660 = vperm.xlu0 %20994, %v22181_v48   ;;  %20993 = vset.pattern.permute.xlu1 %v21425_v22 }
 0x932   :  { %6676 = vperm.xlu1 %20993, %v22175_v4  }
 0x935   :  { %20997 = vset.pattern.permute.xlu0 %v21426_v13 }
 0x936   :  { %v21111_v7 = vpop.eup %21110  ;;  %6704 = vperm.xlu0 %20997, %v22173_v11   ;;  %6680 = vperm.xlu1 %20993, %v22173_v11  }
 0x937   :  { %v22438_v52 = vmul.f32 %v21111_v7, %v21105_v63  ;;  %v21113_v18 = vpop.eup %21112 }
 0x938   :  { %v22450_v31 = vmul.f32 %v21113_v18, %v22386_v57  ;;  %v21428_v57 = vmov 15  }
 0x939   :  { %25321 = vst [vmem:[#allocation50_spill] sm:$0xff] %v22438_v52  ;;  %v4348_v24 = vsel %vm4270_vm14, %v22438_v52, 0 }
 0x93a   :  { %21000 = vset.pattern.permute.xlu0 %v21425_v22  ;;  %20995 = vset.pattern.permute.xlu1 %v21426_v13  ;;  %v22442_v58 = vand.u32 4294901760, %v4348_v24  ;;  %25322 = vst [vmem:[#allocation51_spill] sm:$0xff] %v22450_v31  ;;  %v4351_v2 = vsel %vm4270_vm14, %v22450_v31, 0 }
 0x93b   :  { %6688 = vperm.xlu0 %21000, %v22179_v44   ;;  %6700 = vperm.xlu1 %20995, %v22175_v4   ;;  %v22463_v34 = vand.u32 4294901760, %v4351_v2 }
 0x93c   :  { %v22447_v15 = vsub.f32 %v4348_v24, %v22442_v58  ;;  %v21430_v24 = vmov 17  }
 0x93d   :  { %v4431_v9 = vsub.f32 %v4351_v2, %v22463_v34 }
 0x93e   :  { %v4422_v8 = vand.u32 4294901760, %v22447_v15 }
 0x93f   :  { %21003 = vset.pattern.permute.xlu0 %v21427_v33  ;;  %20996 = vset.pattern.permute.xlu1 %v21424_v46  ;;  %v4432_v32 = vand.u32 4294901760, %v4431_v9 }
 0x940   :  { %6732 = vperm.xlu0 %21003, %v22181_v48   ;;  %6664 = vperm.xlu1 %20996, %v22179_v44   ;;  %v4423_v63 = vsub.f32 %v22447_v15, %v4422_v8 }
 0x941   :  { %v4433_v19 = vsub.f32 %v4431_v9, %v4432_v32 }
 0x942   :  { %v4424_v17 = vand.u32 4294901760, %v4423_v63 }
 0x944   :  { %21006 = vset.pattern.permute.xlu0 %v21428_v57  ;;  %20998 = vset.pattern.permute.xlu1 %v21425_v22 }
 0x945   :  { %18528 = vmatprep.mubr.f32.mxu1 %v4424_v17  ;;  %6776 = vperm.xlu0 %21006, %v22173_v11   ;;  %v4434_v17 = vand.u32 4294901760, %v4433_v19 }
 0x946   :  { %6684 = vperm.xlu1 %20998, %v22181_v48  }
 0x949   :  { %21007 = vset.pattern.permute.xlu0 %v21429_v42 }
 0x94a   :  { %20999 = vset.pattern.permute.xlu1 %v21427_v33  ;;  %6748 = vperm.xlu0 %21007, %v22175_v4  }
 0x94b   :  { %6724 = vperm.xlu1 %20999, %v22175_v4  }
 0x94d   :  { %v4344_v41 = vpop.permute.xlu0 %4343  ;;  %v4342_v62 = vpop.permute.xlu1 %4341 }
 0x94e   :  { %v4357_v59 = vand.u32 4294901760, %v4344_v41  ;;  %v4354_v53 = vand.u32 4294901760, %v4342_v62  ;;  %6760 = vperm.xlu0 %21007, %v22179_v44  }
 0x94f   :  { %6728 = vperm.xlu1 %20999, %v22173_v11  }
 0x950   :  { %v4449_v5 = vsub.f32 %v4344_v41, %v4357_v59  ;;  %v19868_v20 = vpack.c.bf16 %v4357_v59, %v4354_v53  ;;  %v4442_v46 = vsub.f32 %v4342_v62, %v4354_v53  ;;  %v21431_v62 = vmov 16  }
 0x952   :  { %v4450_v22 = vand.u32 4294901760, %v4449_v5  ;;  %v4443_v7 = vand.u32 4294901760, %v4442_v46  ;;  %21011 = vset.pattern.permute.xlu0 %v21430_v24  ;;  %19869 = vmatprep.subr.bf16.mxu1 %v19868_v20 }
 0x953   :  { %21001 = vset.pattern.permute.xlu1 %v21426_v13  ;;  %6820 = vperm.xlu0 %21011, %v22175_v4   ;;  %v19876_v13 = vpack.c.bf16 %v4449_v5, %v4442_v46 }
 0x954   :  { %6708 = vperm.xlu1 %21001, %v22181_v48   ;;  %19871 = vmatpush3.bf16.msra.mxu1 %v19868_v20  ;;  %v4444_v18 = vsub.f32 %v4442_v46, %v4443_v7  ;;  %v4451_v63 = vsub.f32 %v4449_v5, %v4450_v22  ;;  %v19884_v53 = vpack.c.bf16 %v4450_v22, %v4443_v7 }
 0x956   :  { %v4445_v2 = vand.u32 4294901760, %v4444_v18  ;;  %v4452_v41 = vand.u32 4294901760, %v4451_v63 }
 0x957   :  { %18529 = vmatmul.mubr.f32.vlgmr.msra.gmra.mrb[6].mxu1 %v4434_v17  ;;  %21013 = vset.pattern.permute.xlu0 %v21431_v62 }
 0x958   :  { %6712 = vperm.xlu1 %21001, %v22179_v44   ;;  %18535 = vmatprep.mubr.f32.mxu1 %v22442_v58  ;;  %v19872_v59 = vpack.c.bf16 %v4452_v41, %v4445_v2 }
 0x959   :  { %6804 = vperm.xlu0 %21013, %v22181_v48  }
 0x95a   :  { %19873 = vmatprep.subr.bf16.mxu1 %v19872_v59 }
 0x95b   :  { %19875 = vmatpush3.bf16.msra.mxu1 %v19872_v59 }
 0x95c   :  { %21002 = vset.pattern.permute.xlu1 %v21429_v42  ;;  %19877 = vmatprep.subr.bf16.mxu1 %v19876_v13 }
 0x95d   :  { %21016 = vset.pattern.permute.xlu0 %v21430_v24  ;;  %6752 = vperm.xlu1 %21002, %v22173_v11  }
 0x95e   :  { %6832 = vperm.xlu0 %21016, %v22179_v44  }
 0x95f   :  { %18536 = vmatmul.mubr.f32.vlgmr.msra.gmra.mrb[6].mxu1 %v22463_v34 }
 0x960   :  { %19879 = vmatpush3.bf16.msra.mxu1 %v19876_v13  ;;  %18542 = vmatprep.mubr.f32.mxu1 %v22447_v15 }
 0x961   :  { %21004 = vset.pattern.permute.xlu1 %v21428_v57  ;;  %19881 = vmatprep.subr.bf16.mxu1 %v19868_v20 }
 0x962   :  { %6772 = vperm.xlu1 %21004, %v22175_v4  }
 0x966   :  { %21005 = vset.pattern.permute.xlu1 %v21427_v33 }
 0x967   :  { %6736 = vperm.xlu1 %21005, %v22179_v44   ;;  %18543 = vmatmul.mubr.f32.vlgmr.msra.gmra.mrb[6].mxu1 %v4431_v9 }
 0x968   :  { %19883 = vmatpush3.bf16.msra.mxu1 %v19868_v20  ;;  %18549 = vmatprep.mubr.f32.mxu1 %v4422_v8 }
 0x969   :  { %19885 = vmatprep.subr.bf16.mxu1 %v19884_v53 }
 0x96b   :  { %21008 = vset.pattern.permute.xlu1 %v21429_v42 }
 0x96c   :  { %6756 = vperm.xlu1 %21008, %v22181_v48  }
 0x96f   :  { %18550 = vmatmul.mubr.f32.vlgmr.msra.gmra.mrb[6].mxu1 %v4432_v32 }
 0x970   :  { %19887 = vmatpush3.bf16.msra.mxu1 %v19884_v53  ;;  %21009 = vset.pattern.permute.xlu1 %v21431_v62 }
 0x971   :  { %18556 = vmatprep.mubr.f32.mxu1 %v22442_v58  ;;  %19889 = vmatprep.subr.bf16.mxu1 %v19868_v20 }
 0x972   :  { %6796 = vperm.xlu1 %21009, %v22175_v4  }
 0x976   :  { %6800 = vperm.xlu1 %21009, %v22173_v11  }
 0x977   :  { %18557 = vmatmul.mubr.f32.vlgmr.msra.gmra.mrb[6].mxu1 %v22463_v34 }
 0x978   :  { %19891 = vmatpush3.bf16.msra.mxu1 %v19868_v20  ;;  %18563 = vmatprep.mubr.f32.mxu1 %v22442_v58 }
 0x97a   :  { %21010 = vset.pattern.permute.xlu1 %v21428_v57 }
 0x97b   :  { %6780 = vperm.xlu1 %21010, %v22181_v48  }
 0x97f   :  { %6784 = vperm.xlu1 %21010, %v22179_v44   ;;  %18564 = vmatmul.mubr.f32.vlgmr.msra.gmra.mrb[6].mxu1 %v22463_v34 }
 0x983   :  { %21012 = vset.pattern.permute.xlu1 %v21430_v24 }
 0x984   :  { %6824 = vperm.xlu1 %21012, %v22173_v11  }
 0x987   :  { %v4306_v15 = vpop.xlane.xlu0 %4305 }
 0x988   :  { %21014 = vset.pattern.permute.xlu1 %v21431_v62  ;;  %21114 = vrcp.f32 %v4306_v15 }
 0x989   :  { %6808 = vperm.xlu1 %21014, %v22179_v44  }
 0x98b   :  { %v4858_v8 = vpop.permute.xlu0 %4857 }
 0x98c   :  { %v4870_v33 = vand.u32 4294901760, %v4858_v8  ;;  %v4303_v58 = vpop.xlane.xlu1 %4302 }
 0x98d   :  { %21015 = vset.pattern.permute.xlu1 %v21430_v24  ;;  %21116 = vrcp.f32 %v4303_v58 }
 0x98e   :  { %v22503_v57 = vsub.f32 %v4858_v8, %v4870_v33  ;;  %6828 = vperm.xlu1 %21015, %v22181_v48  }
 0x98f   :  { %v5622_v34 = vpop.permute.xlu0 %5621 }
 0x990   :  { %v5629_v42 = vsel %vm3047_vm2, %v5622_v34, 0  ;;  %v4860_v9 = vpop.permute.xlu1 %4859  ;;  %v25210_v32 = vand.u32 4294901760, %v22503_v57 }
 0x991   :  { %v5635_v5 = vand.u32 4294901760, %v5629_v42  ;;  %v4873_v20 = vand.u32 4294901760, %v4860_v9 }
 0x992   :  { %v21115_v46 = vpop.eup %21114 }
 0x993   :  { %v22509_v19 = vmul.f32 %v21115_v46, %v22402_v51  ;;  %v22511_v22 = vsub.f32 %v5629_v42, %v5635_v5  ;;  %v22513_v7 = vpack.c.bf16 %v4873_v20, %v4870_v33  ;;  %v22515_v24 = vsub.f32 %v4860_v9, %v4873_v20  ;;  %v5618_v18 = vpop.permute.xlu0 %5617 }
 0x994   :  { %v5625_v63 = vsel %vm3047_vm2, %v5618_v18, 0  ;;  %v5620_v17 = vpop.permute.xlu1 %5619  ;;  %v4960_v51 = vsub.f32 %v22503_v57, %v25210_v32 }
 0x995   :  { %25323 = vst [vmem:[#allocation52_spill] sm:$0xff] %v22509_v19  ;;  %v25211_v2 = vand.u32 4294901760, %v22515_v24  ;;  %v22519_v41 = vand.u32 4294901760, %v5625_v63  ;;  %v5627_v62 = vsel %vm3047_vm2, %v5620_v17, 0  ;;  %19893 = vmatprep.subr.bf16.mxu1 %v22513_v7  ;;  %v25214_v59 = vand.u32 4294901760, %v22511_v22 }
 0x996   :  { %v5632_v13 = vand.u32 4294901760, %v5627_v62  ;;  %19895 = vmatpush3.bf16.msra.mxu1 %v22513_v7  ;;  %v4867_v53 = vsel %vm4270_vm14, %v22509_v19, 0  ;;  %v4961_v18 = vand.u32 4294901760, %v4960_v51 }
 0x997   :  { %v21117_v15 = vpop.eup %21116  ;;  %v22531_v8 = vsub.f32 %v5625_v63, %v22519_v41  ;;  %v4967_v33 = vsub.f32 %v22515_v24, %v25211_v2  ;;  %v22541_v20 = vand.u32 4294901760, %v4867_v53 }
 0x998   :  { %v22537_v58 = vmul.f32 %v21117_v15, %v22406_v56  ;;  %v22539_v34 = vpack.c.bf16 %v5635_v5, %v5632_v13  ;;  %v5720_v42 = vsub.f32 %v5627_v62, %v5632_v13  ;;  %v5616_v9 = vpop.permute.xlu1 %5615  ;;  %v5729_v56 = vsub.f32 %v22511_v22, %v25214_v59 }
 0x999   :  { %v5623_v46 = vsel %vm3047_vm2, %v5616_v9, 0  ;;  %v4968_v17 = vand.u32 4294901760, %v4967_v33  ;;  %v5710_v62 = vand.u32 4294901760, %v22531_v8  ;;  %v4947_v9 = vsub.f32 %v4867_v53, %v22541_v20 }
 0x99a   :  { %25324 = vst [vmem:[#allocation53_spill] sm:$0xff] %v22537_v58  ;;  %v5721_v32 = vand.u32 4294901760, %v5720_v42  ;;  %v22544_v63 = vand.u32 4294901760, %v5623_v46  ;;  %19917 = vmatprep.subr.bf16.mxu0 %v22539_v34  ;;  %v4864_v5 = vsel %vm4270_vm14, %v22537_v58, 0  ;;  %v5730_v59 = vand.u32 4294901760, %v5729_v56 }
 0x99b   :  { %19919 = vmatpush3.bf16.xpose.msra.mxu0 %v22539_v34  ;;  %v19896_v13 = vpack.c.bf16 %v4968_v17, %v4961_v18  ;;  %v22554_v15 = vand.u32 4294901760, %v4864_v5  ;;  %v5711_v19 = vsub.f32 %v22531_v8, %v5710_v62  ;;  %v4948_v52 = vand.u32 4294901760, %v4947_v9 }
 0x99c   :  { %v5699_v51 = vsub.f32 %v5623_v46, %v22544_v63  ;;  %v5722_v33 = vsub.f32 %v5720_v42, %v5721_v32  ;;  %v19924_v56 = vpack.c.bf16 %v22511_v22, %v5720_v42 }
 0x99d   :  { %19897 = vmatprep.subr.bf16.mxu1 %v19896_v13  ;;  %v4937_v2 = vsub.f32 %v4864_v5, %v22554_v15  ;;  %v4949_v17 = vsub.f32 %v4947_v9, %v4948_v52  ;;  %v5712_v11 = vand.u32 4294901760, %v5711_v19 }
 0x99e   :  { %v5723_v60 = vand.u32 4294901760, %v5722_v33  ;;  %v5700_v31 = vand.u32 4294901760, %v5699_v51 }
 0x99f   :  { %v4938_v58 = vand.u32 4294901760, %v4937_v2  ;;  %v4950_v53 = vand.u32 4294901760, %v4949_v17 }
 0x9a0   :  { %v19920_v48 = vpack.c.bf16 %v5730_v59, %v5723_v60  ;;  %v5701_v44 = vsub.f32 %v5699_v51, %v5700_v31  ;;  %v19900_v60 = vpack.c.bf16 %v22515_v24, %v22503_v57  ;;  %v25326_v59 = vand.u32 4294901760, %v22503_v57 }
 0x9a1   :  { %v4939_v18 = vsub.f32 %v4937_v2, %v4938_v58 }
 0x9a2   :  { %19921 = vmatprep.subr.bf16.mxu0 %v19920_v48  ;;  %v5702_v4 = vand.u32 4294901760, %v5701_v44 }
 0x9a3   :  { %v4940_v46 = vand.u32 4294901760, %v4939_v18 }
 0x9a4   :  { %18612 = vmatprep.mubr.f32.mxu0 %v5702_v4  ;;  %v25325_v4 = vand.u32 4294901760, %v22511_v22 }
 0x9a5   :  { %18570 = vmatprep.mubr.f32.mxu1 %v4940_v46  ;;  %18613 = vmatmul.mubr.f32.vlgmr.msra.gmra.mrb[14].mxu0 %v5712_v11  ;;  %v6138_v11 = vpop.permute.xlu1 %6137 }
 0x9a6   :  { %19923 = vmatpush3.bf16.xpose.msra.mxu0 %v19920_v48  ;;  %18571 = vmatmul.mubr.f32.vlgmr.msra.gmra.mrb[8].mxu1 %v4950_v53  ;;  %v19932_v44 = vpack.c.bf16 %v25325_v4, %v5721_v32  ;;  %v6140_v48 = vpop.permute.xlu0 %6139  ;;  %v6145_v5 = vsel %vm3047_vm2, %v6138_v11, 0 }
 0x9a7   :  { %19899 = vmatpush3.bf16.msra.mxu1 %v19896_v13  ;;  %18619 = vmatprep.mubr.f32.mxu0 %v22544_v63  ;;  %v6150_v32 = vand.u32 4294901760, %v6145_v5 }
 0x9a8   :  { %19925 = vmatprep.subr.bf16.mxu0 %v19924_v56  ;;  %18577 = vmatprep.mubr.f32.mxu1 %v22554_v15 }
 0x9a9   :  { %19901 = vmatprep.subr.bf16.mxu1 %v19900_v60  ;;  %v6134_v19 = vpop.permute.xlu1 %6133  ;;  %v6238_v57 = vsub.f32 %v6145_v5, %v6150_v32 }
 0x9aa   :  { %v6141_v22 = vsel %vm3047_vm2, %v6134_v19, 0 }
 0x9ad   :  { %18620 = vmatmul.mubr.f32.vlgmr.msra.gmra.mrb[14].mxu0 %v22519_v41 }
 0x9ae   :  { %19927 = vmatpush3.bf16.xpose.msra.mxu0 %v19924_v56  ;;  %18578 = vmatmul.mubr.f32.vlgmr.msra.gmra.mrb[8].mxu1 %v22541_v20 }
 0x9af   :  { %19903 = vmatpush3.bf16.msra.mxu1 %v19900_v60  ;;  %18626 = vmatprep.mubr.f32.mxu0 %v5699_v51  ;;  %v6216_v51 = vand.u32 4294901760, %v6141_v22 }
 0x9b0   :  { %19929 = vmatprep.subr.bf16.mxu0 %v22539_v34  ;;  %18584 = vmatprep.mubr.f32.mxu1 %v4937_v2  ;;  %v25327_v2 = vand.u32 4294901760, %v22515_v24 }
 0x9b1   :  { %19905 = vmatprep.subr.bf16.mxu1 %v22513_v7 }
 0x9b2   :  { %v19908_v42 = vpack.c.bf16 %v25327_v2, %v25326_v59 }
 0x9b5   :  { %18627 = vmatmul.mubr.f32.vlgmr.msra.gmra.mrb[14].mxu0 %v22531_v8  ;;  %v6147_v8 = vsel %vm3047_vm2, %v6140_v48, 0 }
 0x9b6   :  { %19931 = vmatpush3.bf16.xpose.msra.mxu0 %v22539_v34  ;;  %18585 = vmatmul.mubr.f32.vlgmr.msra.gmra.mrb[8].mxu1 %v4947_v9  ;;  %v6153_v13 = vand.u32 4294901760, %v6147_v8  ;;  %v6239_v9 = vand.u32 4294901760, %v6238_v57 }
 0x9b7   :  { %19907 = vmatpush3.bf16.msra.mxu1 %v22513_v7  ;;  %18633 = vmatprep.mubr.f32.mxu0 %v5700_v31  ;;  %v6136_v31 = vpop.permute.xlu0 %6135 }
 0x9b8   :  { %19933 = vmatprep.subr.bf16.mxu0 %v19932_v44  ;;  %18591 = vmatprep.mubr.f32.mxu1 %v4938_v58  ;;  %v6245_v24 = vsub.f32 %v6147_v8, %v6153_v13  ;;  %v6217_v58 = vsub.f32 %v6141_v22, %v6216_v51  ;;  %v6143_v33 = vsel %vm3047_vm2, %v6136_v31, 0  ;;  %v19940_v17 = vpack.c.bf16 %v6153_v13, %v6150_v32 }
 0x9b9   :  { %19909 = vmatprep.subr.bf16.mxu1 %v19908_v42  ;;  %v6240_v46 = vsub.f32 %v6238_v57, %v6239_v9 }
 0x9ba   :  { %v6246_v18 = vand.u32 4294901760, %v6245_v24 }
 0x9bb   :  { %v6241_v11 = vand.u32 4294901760, %v6240_v46 }
 0x9bc   :  { %v6247_v60 = vsub.f32 %v6245_v24, %v6246_v18 }
 0x9bd   :  { %18634 = vmatmul.mubr.f32.vlgmr.msra.gmra.mrb[14].mxu0 %v5710_v62  ;;  %v6226_v62 = vand.u32 4294901760, %v6143_v33 }
 0x9be   :  { %19935 = vmatpush3.bf16.xpose.msra.mxu0 %v19932_v44  ;;  %18592 = vmatmul.mubr.f32.vlgmr.msra.gmra.mrb[8].mxu1 %v4948_v52  ;;  %v6218_v52 = vand.u32 4294901760, %v6217_v58  ;;  %v6248_v48 = vand.u32 4294901760, %v6247_v60 }
 0x9bf   :  { %19911 = vmatpush3.bf16.msra.mxu1 %v19908_v42  ;;  %18640 = vmatprep.mubr.f32.mxu0 %v22544_v63  ;;  %v6227_v53 = vsub.f32 %v6143_v33, %v6226_v62 }
 0x9c0   :  { %19937 = vmatprep.subr.bf16.mxu0 %v22539_v34  ;;  %18598 = vmatprep.mubr.f32.mxu1 %v22554_v15  ;;  %v6219_v56 = vsub.f32 %v6217_v58, %v6218_v52 }
 0x9c1   :  { %19913 = vmatprep.subr.bf16.mxu1 %v22513_v7  ;;  %v6228_v4 = vand.u32 4294901760, %v6227_v53 }
 0x9c2   :  { %v6220_v44 = vand.u32 4294901760, %v6219_v56 }
 0x9c5   :  { %18641 = vmatmul.mubr.f32.vlgmr.msra.gmra.mrb[14].mxu0 %v22519_v41 }
 0x9c6   :  { %19939 = vmatpush3.bf16.xpose.msra.mxu0 %v22539_v34  ;;  %18599 = vmatmul.mubr.f32.vlgmr.msra.gmra.mrb[8].mxu1 %v22541_v20  ;;  %v19944_v34 = vpack.c.bf16 %v6248_v48, %v6241_v11  ;;  %v25330_v48 = vld [vmem:[#allocation39_spill] sm:$0xff] }
 0x9c7   :  { %19915 = vmatpush3.bf16.msra.mxu1 %v22513_v7  ;;  %18647 = vmatprep.mubr.f32.mxu0 %v22544_v63  ;;  %v6229_v7 = vsub.f32 %v6227_v53, %v6228_v4 }
 0x9c8   :  { %18605 = vmatprep.mubr.f32.mxu1 %v22554_v15  ;;  %19941 = vmatprep.subr.bf16.mxu1 %v19940_v17  ;;  %v19948_v15 = vpack.c.bf16 %v6245_v24, %v6238_v57  ;;  %v5601_v24 = vpop.permute.xlu0 %5600 }
 0x9c9   :  { %v6230_v63 = vand.u32 4294901760, %v6229_v7 }
 0x9cd   :  { %18648 = vmatmul.mubr.f32.vlgmr.msra.gmra.mrb[14].mxu0 %v22519_v41  ;;  %v19956_v41 = vpack.c.bf16 %v6246_v18, %v6239_v9 }
 0x9ce   :  { %18606 = vmatmul.mubr.f32.vlgmr.msra.gmra.mrb[8].mxu1 %v22541_v20  ;;  %v5597_v20 = vpop.permute.xlu1 %5596 }
 0x9cf   :  { %18654 = vmatprep.mubr.f32.mxu1 %v6220_v44 }
 0x9d0   :  { %19943 = vmatpush3.bf16.xpose.msra.mxu1 %v19940_v17 }
 0x9d1   :  { %19945 = vmatprep.subr.bf16.mxu1 %v19944_v34 }
 0x9d2   :  { %v6653_v19 = vpop.permute.xlu1 %6652 }
 0x9d3   :  { %v6667_v6 = vmul.f32 %v22301_v23, %v6653_v19 }
 0x9d6   :  { %v6657_v59 = vpop.permute.xlu1 %6656 }
 0x9d7   :  { %18655 = vmatmul.mubr.f32.vlgmr.msra.gmra.mrb[10].mxu1 %v6230_v63  ;;  %v25331_v63 = vld [vmem:[#allocation41_spill] sm:$0xff] }
 0x9d8   :  { %19947 = vmatpush3.bf16.xpose.msra.mxu1 %v19944_v34  ;;  %18661 = vmatprep.mubr.f32.mxu1 %v6216_v51  ;;  %v5612_v34 = vmul.f32 %v25330_v48, %v5601_v24 }
 0x9d9   :  { %19949 = vmatprep.subr.bf16.mxu1 %v19948_v15 }
 0x9da   :  { %v6677_v2 = vpop.permute.xlu1 %6676 }
 0x9db   :  { %v6691_v37 = vmul.f32 %v22306_v27, %v6677_v2 }
 0x9de   :  { %v6681_v42 = vpop.permute.xlu1 %6680 }
 0x9df   :  { %18662 = vmatmul.mubr.f32.vlgmr.msra.gmra.mrb[10].mxu1 %v6226_v62  ;;  %v6692_v50 = vmul.f32 %v22256_v40, %v6681_v42 }
 0x9e0   :  { %19951 = vmatpush3.bf16.xpose.msra.mxu1 %v19948_v15  ;;  %18668 = vmatprep.mubr.f32.mxu1 %v6217_v58  ;;  %v5611_v15 = vmul.f32 %v25331_v63, %v5597_v20 }
 0x9e1   :  { %19953 = vmatprep.subr.bf16.mxu1 %v19940_v17 }
 0x9e2   :  { %v6701_v5 = vpop.permute.xlu1 %6700 }
 0x9e6   :  { %v22598_v32 = vpop.permute.xlu1 %6664 }
 0x9e7   :  { %18669 = vmatmul.mubr.f32.vlgmr.msra.gmra.mrb[10].mxu1 %v6227_v53 }
 0x9e8   :  { %19955 = vmatpush3.bf16.xpose.msra.mxu1 %v19940_v17  ;;  %18675 = vmatprep.mubr.f32.mxu1 %v6218_v52 }
 0x9e9   :  { %19957 = vmatprep.subr.bf16.mxu1 %v19956_v41 }
 0x9ea   :  { %v22600_v13 = vpop.permute.xlu1 %6684 }
 0x9ee   :  { %v6725_v31 = vpop.permute.xlu1 %6724 }
 0x9ef   :  { %18676 = vmatmul.mubr.f32.vlgmr.msra.gmra.mrb[10].mxu1 %v6228_v4 }
 0x9f0   :  { %19959 = vmatpush3.bf16.xpose.msra.mxu1 %v19956_v41  ;;  %18682 = vmatprep.mubr.f32.mxu1 %v6216_v51 }
 0x9f1   :  { %19961 = vmatprep.subr.bf16.mxu1 %v19940_v17 }
 0x9f2   :  { %v6729_v57 = vpop.permute.xlu1 %6728 }
 0x9f3   :  { %v6740_v0 = vmul.f32 %v22263_v26, %v6729_v57 }
 0x9f6   :  { %v22602_v58 = vpop.permute.xlu1 %6708 }
 0x9f7   :  { %18683 = vmatmul.mubr.f32.vlgmr.msra.gmra.mrb[10].mxu1 %v6226_v62 }
 0x9f8   :  { %19963 = vmatpush3.bf16.xpose.msra.mxu1 %v19940_v17  ;;  %18689 = vmatprep.mubr.f32.mxu1 %v6216_v51  ;;  %v22604_v51 = vpop.permute.xlu0 %5604 }
 0x9fa   :  { %v22606_v33 = vpop.permute.xlu1 %6712 }
 0x9fc   :  { %v22608_v9 = vpop.permute.xlu0 %5608 }
 0x9fe   :  { %v6753_v18 = vpop.permute.xlu1 %6752 }
 0x9ff   :  { %18690 = vmatmul.mubr.f32.vlgmr.msra.gmra.mrb[10].mxu1 %v6226_v62  ;;  %v6764_v42 = vmul.f32 %v22268_v54, %v6753_v18 }
 0xa00   :  { %v22610_v62 = vpop.permute.xlu0 %6660 }
 0xa02   :  { %v6773_v52 = vpop.permute.xlu1 %6772 }
 0xa04   :  { %v6705_v17 = vpop.permute.xlu0 %6704 }
 0xa05   :  { %v6716_v61 = vmul.f32 %v22260_v30, %v6705_v17 }
 0xa06   :  { %v22612_v46 = vpop.permute.xlu1 %6736 }
 0xa08   :  { %v22614_v53 = vpop.permute.xlu0 %6688 }
 0xa0a   :  { %v22616_v56 = vpop.permute.xlu1 %6756 }
 0xa0c   :  { %v22618_v60 = vpop.permute.xlu0 %6732 }
 0xa0e   :  { %v6797_v11 = vpop.permute.xlu1 %6796 }
 0xa10   :  { %v6777_v4 = vpop.permute.xlu0 %6776 }
 0xa12   :  { %v6801_v44 = vpop.permute.xlu1 %6800 }
 0xa13   :  { %v6812_v57 = vmul.f32 %v22275_v38, %v6801_v44 }
 0xa14   :  { %v6749_v7 = vpop.permute.xlu0 %6748 }
 0xa15   :  { %v6763_v2 = vmul.f32 %v22318_v28, %v6749_v7 }
 0xa16   :  { %v22622_v41 = vpop.permute.xlu1 %6780 }
 0xa52   :  { %v22594_v8 = vpop.f32.mrb[6].mxu1 }
 0xa53   :  { %25328 = vst [vmem:[#allocation54_spill] sm:$0xff] %v22594_v8  ;;  %v22596_v22 = vpop.f32.mrb[7].mxu1  ;;  %v6668_v8 = vmul.f32 %v22251_v21, %v6657_v59  ;;  %v6715_v59 = vmul.f32 %v22309_v16, %v6701_v5  ;;  %v6787_v5 = vmul.f32 %v22321_v14, %v6773_v52 }
 0xa54   :  { %25329 = vst [vmem:[#allocation55_spill] sm:$0xff] %v22596_v22 }
 0xaa0   :  { %v18649_v22 = vpop.f32.mrb[14].mxu0 }
 0xaa1   :  { %v20508_v1 = vadd.f32 %v18649_v22, %v5612_v34  ;;  %v22625_v49 = vpop.f32.mrb[8].mxu1  ;;  %v6123_v45 = vpop.f32.mrb[15].mxu0 }
 0xaa2   :  { %25332 = vst [vmem:[#allocation39_spill] sm:$0xff] %v22625_v49  ;;  %v20509_v55 = vadd.f32 %v6123_v45, %v5611_v15  ;;  %v22628_v36 = vpop.f32.mrb[9].mxu1  ;;  %v6785_v22 = vpop.permute.xlu1 %6784  ;;  %v6739_v45 = vmul.f32 %v22314_v12, %v6725_v31 }
 0xaa3   :  { %25333 = vst [vmem:[#allocation41_spill] sm:$0xff] %v22628_v36  ;;  %v6672_v24 = vadd.f32 %v20508_v1, %v6668_v8  ;;  %v6761_v49 = vpop.permute.xlu0 %6760 }
 0xaa4   :  { %v6671_v20 = vadd.f32 %v20509_v55, %v6667_v6  ;;  %v6788_v6 = vmul.f32 %v22272_v29, %v6777_v4 }
 0xaa5   :  { %v6696_v3 = vadd.f32 %v6692_v50, %v6672_v24 }
 0xaa6   :  { %v6695_v34 = vadd.f32 %v6691_v37, %v6671_v20  ;;  %v6825_v8 = vpop.permute.xlu1 %6824 }
 0xaa7   :  { %v6720_v19 = vadd.f32 %v6716_v61, %v6696_v3  ;;  %v6821_v17 = vpop.permute.xlu0 %6820  ;;  %v6811_v61 = vmul.f32 %v22329_v47, %v6797_v11  ;;  %v6836_v18 = vmul.f32 %v22285_v35, %v6825_v8 }
 0xaa8   :  { %v6719_v15 = vadd.f32 %v6715_v59, %v6695_v34  ;;  %v6835_v7 = vmul.f32 %v22326_v10, %v6821_v17 }
 0xaa9   :  { %v6744_v1 = vadd.f32 %v6740_v0, %v6720_v19 }
 0xaaa   :  { %v6743_v55 = vadd.f32 %v6739_v45, %v6719_v15  ;;  %v5614_v45 = vmul.f32 %v25330_v48, %v22608_v9  ;;  %v5613_v15 = vmul.f32 %v25331_v63, %v22604_v51  ;;  %v6693_v9 = vmul.f32 %v22306_v27, %v22600_v13 }
 0xaab   :  { %v6768_v50 = vadd.f32 %v6764_v42, %v6744_v1  ;;  %v6670_v1 = vmul.f32 %v22251_v21, %v22598_v32  ;;  %v6718_v51 = vmul.f32 %v22260_v30, %v22606_v33  ;;  %v6717_v32 = vmul.f32 %v22309_v16, %v22602_v58 }
 0xaac   :  { %v6767_v37 = vadd.f32 %v6763_v2, %v6743_v55  ;;  %v6766_v13 = vmul.f32 %v22268_v54, %v6761_v49  ;;  %v6765_v33 = vmul.f32 %v22318_v28, %v22616_v56  ;;  %v6790_v58 = vmul.f32 %v22272_v29, %v6785_v22 }
 0xaad   :  { %v6792_v3 = vadd.f32 %v6788_v6, %v6768_v50  ;;  %v6669_v6 = vmul.f32 %v22301_v23, %v22610_v62  ;;  %v6742_v62 = vmul.f32 %v22263_v26, %v22612_v46  ;;  %v6789_v46 = vmul.f32 %v22321_v14, %v22622_v41 }
 0xaae   :  { %v6791_v31 = vadd.f32 %v6787_v5, %v6767_v37  ;;  %v6694_v5 = vmul.f32 %v22256_v40, %v22614_v53  ;;  %v6741_v53 = vmul.f32 %v22314_v12, %v22618_v60 }
 0xaaf   :  { %v6816_v0 = vadd.f32 %v6812_v57, %v6792_v3  ;;  %v6805_v57 = vpop.permute.xlu0 %6804 }
 0xab0   :  { %v6815_v24 = vadd.f32 %v6811_v61, %v6791_v31  ;;  %v6809_v61 = vpop.permute.xlu1 %6808 }
 0xab1   :  { %v6840_v20 = vadd.f32 %v6836_v18, %v6816_v0 }
 0xab2   :  { %v6839_v4 = vadd.f32 %v6835_v7, %v6815_v24 }
 0xab3   :  { %v6844_v52 = vsel %vm3014_vm13, %v6840_v20, -10000.0  ;;  %v6833_v20 = vpop.permute.xlu0 %6832 }
 0xab4   :  { %v6850_v34 = vsel %vm4270_vm14, %v6844_v52, -inf  ;;  %v6843_v44 = vsel %vm3013_vm10, %v6839_v4, -10000.0 }
 0xab5   :  { %6851 = vmax.xlane.f32.xlu0 %v6850_v34  ;;  %v6847_v11 = vsel %vm4270_vm14, %v6843_v44, -inf  ;;  %v6814_v34 = vmul.f32 %v22275_v38, %v6809_v61 }
 0xab6   :  { %6848 = vmax.xlane.f32.xlu1 %v6847_v11  ;;  %v6829_v11 = vpop.permute.xlu1 %6828 }
 0xab7   :  { %v6837_v56 = vmul.f32 %v22326_v10, %v6829_v11  ;;  %v25340_v11 = vld [vmem:[#allocation33_spill] sm:$0xff] }
 0xad2   :  { %v18691_v42 = vpop.f32.mrb[10].mxu1 }
 0xad3   :  { %v20510_v2 = vadd.f32 %v18691_v42, %v5614_v45  ;;  %v6641_v55 = vpop.f32.mrb[11].mxu1  ;;  %v6813_v45 = vmul.f32 %v22329_v47, %v6805_v57 }
 0xad4   :  { %v20511_v50 = vadd.f32 %v6641_v55, %v5613_v15  ;;  %v6838_v15 = vmul.f32 %v22285_v35, %v6833_v20  ;;  %v25336_v20 = vld [vmem:[#allocation48_spill] sm:$0xff] }
 0xad5   :  { %v6674_v8 = vadd.f32 %v20510_v2, %v6670_v1 }
 0xad6   :  { %v6673_v37 = vadd.f32 %v20511_v50, %v6669_v6 }
 0xad7   :  { %v6698_v17 = vadd.f32 %v6694_v5, %v6674_v8  ;;  %v21432_v5 = vmov 19   ;;  %v21433_v8 = vmov 18  }
 0xad8   :  { %v6697_v3 = vadd.f32 %v6693_v9, %v6673_v37  ;;  %21019 = vset.pattern.permute.xlu0 %v21432_v5  ;;  %21017 = vset.pattern.permute.xlu1 %v21433_v8 }
 0xad9   :  { %v6722_v31 = vadd.f32 %v6718_v51, %v6698_v17 }
 0xada   :  { %v6721_v18 = vadd.f32 %v6717_v32, %v6697_v3 }
 0xadb   :  { %v6746_v0 = vadd.f32 %v6742_v62, %v6722_v31 }
 0xadc   :  { %v6745_v7 = vadd.f32 %v6741_v53, %v6721_v18 }
 0xadd   :  { %v6770_v24 = vadd.f32 %v6766_v13, %v6746_v0 }
 0xade   :  { %v6769_v4 = vadd.f32 %v6765_v33, %v6745_v7 }
 0xadf   :  { %v6794_v60 = vadd.f32 %v6790_v58, %v6770_v24 }
 0xae0   :  { %v6793_v49 = vadd.f32 %v6789_v46, %v6769_v4  ;;  %v25337_v46 = vld [vmem:[#allocation47_spill] sm:$0xff]  ;;  %v25338_v4 = vld [vmem:[#allocation49_spill] sm:$0xff] }
 0xae1   :  { %v6818_v42 = vadd.f32 %v6814_v34, %v6794_v60  ;;  %v25339_v34 = vld [vmem:[#allocation29_spill] sm:$0xff]  ;;  %v25341_v60 = vld [vmem:[#allocation28_spill] sm:$0xff] }
 0xae2   :  { %v6817_v1 = vadd.f32 %v6813_v45, %v6793_v49  ;;  %v25342_v45 = vld [vmem:[#allocation27_spill] sm:$0xff]  ;;  %v25343_v49 = vld [vmem:[#allocation34_spill] sm:$0xff] }
 0xae3   :  { %v6842_v22 = vadd.f32 %v6838_v15, %v6818_v42  ;;  %v25344_v15 = vld [vmem:[#allocation31_spill] sm:$0xff]  ;;  %v25345_v42 = vld [vmem:[#allocation32_spill] sm:$0xff] }
 0xae4   :  { %v6841_v2 = vadd.f32 %v6837_v56, %v6817_v1  ;;  %v25346_v56 = vld [vmem:[#allocation30_spill] sm:$0xff]  ;;  %v25347_v1 = vld [vmem:[#allocation35_spill] sm:$0xff] }
 0xae5   :  { %v6846_v55 = vsel %vm3016_vm11, %v6842_v22, -10000.0  ;;  %v25348_v22 = vld [vmem:[#allocation36_spill] sm:$0xff] }
 0xae6   :  { %v6856_v41 = vsel %vm4270_vm14, %v6846_v55, -inf  ;;  %v6845_v6 = vsel %vm3015_vm12, %v6841_v2, -10000.0  ;;  %v25349_v2 = vld [vmem:[#allocation37_spill] sm:$0xff] }
 0xae7   :  { %6857 = vmax.xlane.f32.xlu1 %v6856_v41  ;;  %v6853_v50 = vsel %vm4270_vm14, %v6845_v6, -inf  ;;  %v21437_v41 = vmov 20  }
 0xae8   :  { %6854 = vmax.xlane.f32.xlu0 %v6853_v50  ;;  %v21439_v50 = vmov 21  }
 0xb42   :  { %v6852_v9 = vpop.xlane.xlu0 %6851 }
 0xb43   :  { %v6860_v37 = vsub.f32 %v6844_v52, %v6852_v9  ;;  %v6849_v51 = vpop.xlane.xlu1 %6848  ;;  %v21441_v9 = vmov 24  }
 0xb44   :  { %v6859_v17 = vsub.f32 %v6843_v44, %v6849_v51 }
 0xb45   :  { %v6865_v32 = vmul.f32 1.442695, %v6860_v37 }
 0xb46   :  { %v6863_v57 = vmul.f32 1.442695, %v6859_v17 }
 0xb47   :  { %21118 = vpow2.f32 %v6865_v32 }
 0xb48   :  { %21120 = vpow2.f32 %v6863_v57 }
 0xb51   :  { %v22687_v3 = vpop.eup %21118 }
 0xb52   :  { %v22689_v62 = vpop.eup %21120  ;;  %v6874_v61 = vsel %vm4270_vm14, %v22687_v3, 0.0 }
 0xb53   :  { %6875 = vadd.xlane.f32.xlu1 %v6874_v61  ;;  %v6871_v31 = vsel %vm4270_vm14, %v22689_v62, 0.0 }
 0xb54   :  { %6872 = vadd.xlane.f32.xlu0 %v6871_v31 }
 0xb74   :  { %v6858_v53 = vpop.xlane.xlu1 %6857 }
 0xb75   :  { %v6862_v52 = vsub.f32 %v6846_v55, %v6858_v53  ;;  %v6855_v18 = vpop.xlane.xlu0 %6854  ;;  %v25350_v55 = vld [vmem:[#allocation38_spill] sm:$0xff] }
 0xb76   :  { %v6861_v44 = vsub.f32 %v6845_v6, %v6855_v18  ;;  %v21438_v6 = vmov 22  }
 0xb77   :  { %v6869_v13 = vmul.f32 1.442695, %v6862_v52 }
 0xb78   :  { %v6867_v0 = vmul.f32 1.442695, %v6861_v44 }
 0xb79   :  { %21122 = vpow2.f32 %v6869_v13 }
 0xb7a   :  { %21124 = vpow2.f32 %v6867_v0  ;;  %v21443_v0 = vmov 26  }
 0xb83   :  { %v22695_v33 = vpop.eup %21122 }
 0xb84   :  { %v22697_v7 = vpop.eup %21124  ;;  %v6880_v58 = vsel %vm4270_vm14, %v22695_v33, 0.0 }
 0xb85   :  { %6881 = vadd.xlane.f32.xlu1 %v6880_v58  ;;  %v6877_v24 = vsel %vm4270_vm14, %v22697_v7, 0.0 }
 0xb86   :  { %6878 = vadd.xlane.f32.xlu0 %v6877_v24 }
 0xb96   :  { %6913 = vrot.lane.b32.xlu1 %v22393_v25, %s21434_s29 }
 0xb9a   :  { %7425 = vrot.lane.b32.xlu1 %v25336_v20, %s21434_s29 }
 0xb9c   :  { %6911 = vrot.lane.b32.xlu0 %v25337_v46, %s21434_s29 }
 0xb9e   :  { %7427 = vrot.lane.b32.xlu1 %v25338_v4, %s21434_s29 }
 0xba0   :  { %8155 = vrot.lane.b32.xlu0 %v25339_v34, %s21435_s30 }
 0xba2   :  { %8157 = vrot.lane.b32.xlu1 %v25340_v11, %s21435_s30 }
 0xba4   :  { %8151 = vrot.lane.b32.xlu0 %v25341_v60, %s21436_s11 }
 0xba6   :  { %8153 = vrot.lane.b32.xlu1 %v25342_v45, %s21436_s11 }
 0xba8   :  { %8673 = vrot.lane.b32.xlu0 %v25343_v49, %s21435_s30 }
 0xbaa   :  { %8675 = vrot.lane.b32.xlu1 %v25344_v15, %s21435_s30 }
 0xbac   :  { %8669 = vrot.lane.b32.xlu0 %v25345_v42, %s21436_s11 }
 0xbae   :  { %8671 = vrot.lane.b32.xlu1 %v25346_v56, %s21436_s11 }
 0xbb0   :  { %9192 = vperm.xlu0 %21019, %v25347_v1  }
 0xbb2   :  { %8136 = vperm.xlu1 %21017, %v25347_v1  }
 0xbb4   :  { %21020 = vset.pattern.permute.xlu0 %v21433_v8 }
 0xbb5   :  { %8132 = vperm.xlu0 %21020, %v25348_v22  }
 0xbb6   :  { %21018 = vset.pattern.permute.xlu1 %v21432_v5 }
 0xbb7   :  { %9188 = vperm.xlu1 %21018, %v25348_v22  }
 0xbb9   :  { %8144 = vperm.xlu0 %21020, %v25349_v2  }
 0xbbb   :  { %21021 = vset.pattern.permute.xlu1 %v21433_v8  ;;  %v21440_v8 = vmov 23  }
 0xbbc   :  { %8140 = vperm.xlu1 %21021, %v25350_v55  }
 0xbbd   :  { %21025 = vset.pattern.permute.xlu0 %v21437_v41 }
 0xbbe   :  { %9220 = vperm.xlu0 %21025, %v25350_v55  }
 0xbc0   :  { %21022 = vset.pattern.permute.xlu1 %v21437_v41 }
 0xbc1   :  { %9212 = vperm.xlu1 %21022, %v25348_v22  }
 0xbc2   :  { %21028 = vset.pattern.permute.xlu0 %v21438_v6 }
 0xbc3   :  { %9264 = vperm.xlu0 %21028, %v25347_v1  }
 0xbc5   :  { %9216 = vperm.xlu1 %21022, %v25347_v1  }
 0xbc7   :  { %21029 = vset.pattern.permute.xlu0 %v21439_v50 }
 0xbc8   :  { %9236 = vperm.xlu0 %21029, %v25348_v22  }
 0xbc9   :  { %21023 = vset.pattern.permute.xlu1 %v21432_v5  ;;  %v21442_v5 = vmov 25  }
 0xbca   :  { %9196 = vperm.xlu1 %21023, %v25350_v55  }
 0xbcc   :  { %9248 = vperm.xlu0 %21029, %v25349_v2  }
 0xbce   :  { %9200 = vperm.xlu1 %21023, %v25349_v2  }
 0xbd0   :  { %21034 = vset.pattern.permute.xlu0 %v21440_v8 }
 0xbd1   :  { %9292 = vperm.xlu0 %21034, %v25350_v55  }
 0xbd2   :  { %21024 = vset.pattern.permute.xlu1 %v21439_v50 }
 0xbd3   :  { %9240 = vperm.xlu1 %21024, %v25347_v1  }
 0xbd5   :  { %21035 = vset.pattern.permute.xlu0 %v21441_v9 }
 0xbd6   :  { %9308 = vperm.xlu0 %21035, %v25348_v22  }
 0xbd7   :  { %21026 = vset.pattern.permute.xlu1 %v21438_v6 }
 0xbd8   :  { %9260 = vperm.xlu1 %21026, %v25348_v22  }
 0xbda   :  { %9320 = vperm.xlu0 %21035, %v25349_v2  }
 0xbdc   :  { %21027 = vset.pattern.permute.xlu1 %v21437_v41 }
 0xbdd   :  { %9224 = vperm.xlu1 %21027, %v25349_v2  }
 0xbde   :  { %21040 = vset.pattern.permute.xlu0 %v21442_v5 }
 0xbdf   :  { %9336 = vperm.xlu0 %21040, %v25347_v1  }
 0xbe0   :  { %v6876_v53 = vpop.xlane.xlu1 %6875 }
 0xbe1   :  { %21030 = vset.pattern.permute.xlu1 %v21439_v50  ;;  %v6873_v37 = vpop.xlane.xlu0 %6872 }
 0xbe2   :  { %21126 = vrcp.f32 %v6873_v37  ;;  %9244 = vperm.xlu1 %21030, %v25350_v55  }
 0xbe3   :  { %9344 = vperm.xlu0 %21040, %v25349_v2   ;;  %21128 = vrcp.f32 %v6876_v53 }
 0xbe6   :  { %21031 = vset.pattern.permute.xlu1 %v21440_v8 }
 0xbe7   :  { %9284 = vperm.xlu1 %21031, %v25348_v22  }
 0xbeb   :  { %9288 = vperm.xlu1 %21031, %v25347_v1  }
 0xbec   :  { %v21127_v51 = vpop.eup %21126 }
 0xbed   :  { %v22743_v17 = vmul.f32 %v21127_v51, %v22689_v62  ;;  %v21129_v18 = vpop.eup %21128 }
 0xbee   :  { %v22762_v44 = vmul.f32 %v21129_v18, %v22687_v3 }
 0xbef   :  { %25351 = vst [vmem:[#allocation40_spill] sm:$0xff] %v22743_v17  ;;  %21032 = vset.pattern.permute.xlu1 %v21438_v6  ;;  %v6918_v32 = vsel %vm4270_vm14, %v22743_v17, 0 }
 0xbf0   :  { %9268 = vperm.xlu1 %21032, %v25350_v55   ;;  %v22748_v57 = vand.u32 4294901760, %v6918_v32  ;;  %25352 = vst [vmem:[#allocation42_spill] sm:$0xff] %v22762_v44  ;;  %v6921_v13 = vsel %vm4270_vm14, %v22762_v44, 0 }
 0xbf1   :  { %v22768_v58 = vand.u32 4294901760, %v6921_v13 }
 0xbf2   :  { %v22751_v61 = vsub.f32 %v6918_v32, %v22748_v57 }
 0xbf3   :  { %v22772_v41 = vsub.f32 %v6921_v13, %v22768_v58 }
 0xbf4   :  { %9272 = vperm.xlu1 %21032, %v25349_v2   ;;  %v25254_v31 = vand.u32 4294901760, %v22751_v61 }
 0xbf5   :  { %v25253_v50 = vand.u32 4294901760, %v22772_v41 }
 0xbf6   :  { %v6993_v62 = vsub.f32 %v22751_v61, %v25254_v31 }
 0xbf8   :  { %21033 = vset.pattern.permute.xlu1 %v21441_v9  ;;  %v6994_v52 = vand.u32 4294901760, %v6993_v62 }
 0xbf9   :  { %9312 = vperm.xlu1 %21033, %v25347_v1  }
 0xbfa   :  { %18696 = vmatprep.mubr.f32.mxu0 %v6994_v52 }
 0xbfd   :  { %21036 = vset.pattern.permute.xlu1 %v21442_v5 }
 0xbfe   :  { %9332 = vperm.xlu1 %21036, %v25348_v22  }
 0xc02   :  { %21037 = vset.pattern.permute.xlu1 %v21440_v8 }
 0xc03   :  { %9296 = vperm.xlu1 %21037, %v25349_v2  }
 0xc07   :  { %21038 = vset.pattern.permute.xlu1 %v21441_v9 }
 0xc08   :  { %9316 = vperm.xlu1 %21038, %v25350_v55  }
 0xc0c   :  { %21039 = vset.pattern.permute.xlu1 %v21443_v0 }
 0xc0d   :  { %9356 = vperm.xlu1 %21039, %v25348_v22  }
 0xc11   :  { %9360 = vperm.xlu1 %21039, %v25347_v1  }
 0xc12   :  { %v6882_v24 = vpop.xlane.xlu1 %6881 }
 0xc13   :  { %21130 = vrcp.f32 %v6882_v24  ;;  %v6879_v3 = vpop.xlane.xlu0 %6878 }
 0xc14   :  { %21132 = vrcp.f32 %v6879_v3 }
 0xc15   :  { %21041 = vset.pattern.permute.xlu1 %v21442_v5  ;;  %v7003_v5 = vsub.f32 %v22772_v41, %v25253_v50 }
 0xc16   :  { %9340 = vperm.xlu1 %21041, %v25350_v55   ;;  %v6914_v6 = vpop.permute.xlu1 %6913 }
 0xc17   :  { %v6927_v8 = vand.u32 4294901760, %v6914_v6  ;;  %v6912_v9 = vpop.permute.xlu0 %6911 }
 0xc18   :  { %v6924_v37 = vand.u32 4294901760, %v6912_v9 }
 0xc19   :  { %v22776_v51 = vsub.f32 %v6914_v6, %v6927_v8 }
 0xc1a   :  { %v22778_v32 = vpack.c.bf16 %v6927_v8, %v6924_v37  ;;  %v22780_v62 = vsub.f32 %v6912_v9, %v6924_v37  ;;  %21042 = vset.pattern.permute.xlu1 %v21443_v0  ;;  %v7426_v53 = vpop.permute.xlu1 %7425  ;;  %v7004_v37 = vand.u32 4294901760, %v7003_v5 }
 0xc1b   :  { %v25259_v52 = vand.u32 4294901760, %v22776_v51  ;;  %v7438_v18 = vand.u32 4294901760, %v7426_v53  ;;  %9364 = vperm.xlu1 %21042, %v25350_v55  }
 0xc1c   :  { %v7013_v13 = vand.u32 4294901760, %v22780_v62  ;;  %19965 = vmatprep.subr.bf16.mxu0 %v22778_v32 }
 0xc1d   :  { %v21131_v24 = vpop.eup %21130  ;;  %v22789_v3 = vsub.f32 %v7426_v53, %v7438_v18  ;;  %19967 = vmatpush3.bf16.msra.mxu0 %v22778_v32  ;;  %v7021_v0 = vsub.f32 %v22776_v51, %v25259_v52 }
 0xc1e   :  { %v21133_v6 = vpop.eup %21132  ;;  %v22796_v8 = vmul.f32 %v21131_v24, %v22695_v33  ;;  %v7428_v9 = vpop.permute.xlu1 %7427  ;;  %v7014_v50 = vsub.f32 %v22780_v62, %v7013_v13 }
 0xc1f   :  { %v22800_v31 = vmul.f32 %v21133_v6, %v22697_v7  ;;  %v7441_v36 = vand.u32 4294901760, %v7428_v9  ;;  %9368 = vperm.xlu1 %21042, %v25349_v2   ;;  %v7022_v17 = vand.u32 4294901760, %v7021_v0 }
 0xc20   :  { %25353 = vst [vmem:[#allocation56_spill] sm:$0xff] %v22796_v8  ;;  %18697 = vmatmul.mubr.f32.vlgmr.msra.gmra.mrb[16].mxu0 %v7004_v37  ;;  %v7015_v44 = vand.u32 4294901760, %v7014_v50  ;;  %v7435_v52 = vsel %vm4270_vm14, %v22796_v8, 0  ;;  %v25355_v50 = vand.u32 4294901760, %v22789_v3 }
 0xc21   :  { %25354 = vst [vmem:[#allocation57_spill] sm:$0xff] %v22800_v31  ;;  %v22806_v33 = vpack.c.bf16 %v7441_v36, %v7438_v18  ;;  %v22808_v24 = vsub.f32 %v7428_v9, %v7441_v36  ;;  %18703 = vmatprep.mubr.f32.mxu0 %v22748_v57  ;;  %v7432_v7 = vsel %vm4270_vm14, %v22800_v31, 0  ;;  %v22813_v6 = vand.u32 4294901760, %v7435_v52 }
 0xc22   :  { %v19968_v5 = vpack.c.bf16 %v7022_v17, %v7015_v44  ;;  %v7528_v0 = vsub.f32 %v22789_v3, %v25355_v50  ;;  %v22820_v18 = vand.u32 4294901760, %v7432_v7  ;;  %v19972_v36 = vpack.c.bf16 %v22776_v51, %v22780_v62 }
 0xc23   :  { %v25264_v53 = vand.u32 4294901760, %v22808_v24  ;;  %19989 = vmatprep.subr.bf16.mxu1 %v22806_v33  ;;  %v22826_v17 = vsub.f32 %v7435_v52, %v22813_v6 }
 0xc24   :  { %19969 = vmatprep.subr.bf16.mxu0 %v19968_v5  ;;  %19991 = vmatpush3.bf16.msra.mxu1 %v22806_v33  ;;  %v7505_v9 = vsub.f32 %v7432_v7, %v22820_v18  ;;  %v7529_v50 = vand.u32 4294901760, %v7528_v0  ;;  %v8156_v7 = vpop.permute.xlu0 %8155  ;;  %v19996_v0 = vpack.c.bf16 %v22808_v24, %v22789_v3 }
 0xc25   :  { %19971 = vmatpush3.bf16.msra.mxu0 %v19968_v5  ;;  %v7535_v44 = vsub.f32 %v22808_v24, %v25264_v53  ;;  %v25266_v37 = vand.u32 4294901760, %v22826_v17 }
 0xc26   :  { %19973 = vmatprep.subr.bf16.mxu0 %v19972_v36  ;;  %v7506_v31 = vand.u32 4294901760, %v7505_v9 }
 0xc27   :  { %v7536_v8 = vand.u32 4294901760, %v7535_v44  ;;  %v7517_v62 = vsub.f32 %v22826_v17, %v25266_v37  ;;  %v8158_v44 = vpop.permute.xlu1 %8157 }
 0xc28   :  { %18704 = vmatmul.mubr.f32.vlgmr.msra.gmra.mrb[16].mxu0 %v22768_v58  ;;  %v7507_v5 = vsub.f32 %v7505_v9, %v7506_v31 }
 0xc29   :  { %19975 = vmatpush3.bf16.msra.mxu0 %v19972_v36  ;;  %18710 = vmatprep.mubr.f32.mxu0 %v22751_v61  ;;  %v19992_v52 = vpack.c.bf16 %v7536_v8, %v7529_v50  ;;  %v7518_v55 = vand.u32 4294901760, %v7517_v62  ;;  %v25356_v8 = vand.u32 4294901760, %v22776_v51  ;;  %v8152_v50 = vpop.permute.xlu0 %8151  ;;  %v25357_v62 = vand.u32 4294901760, %v22751_v61 }
 0xc2a   :  { %19977 = vmatprep.subr.bf16.mxu0 %v22778_v32  ;;  %v7508_v53 = vand.u32 4294901760, %v7507_v5  ;;  %v25358_v61 = vand.u32 4294901760, %v22772_v41 }
 0xc2b   :  { %19993 = vmatprep.subr.bf16.mxu1 %v19992_v52  ;;  %v19980_v36 = vpack.c.bf16 %v25356_v8, %v7013_v13  ;;  %v8154_v51 = vpop.permute.xlu1 %8153 }
 0xc2c   :  { %18738 = vmatprep.mubr.f32.mxu1 %v7508_v53  ;;  %v8163_v53 = vsel %vm3047_vm2, %v8156_v7, 0 }
 0xc2d   :  { %18739 = vmatmul.mubr.f32.vlgmr.msra.gmra.mrb[12].mxu1 %v7518_v55  ;;  %v8165_v55 = vsel %vm3047_vm2, %v8158_v44, 0  ;;  %v8168_v37 = vand.u32 4294901760, %v8163_v53  ;;  %v8674_v44 = vpop.permute.xlu0 %8673 }
 0xc2e   :  { %19995 = vmatpush3.bf16.msra.mxu1 %v19992_v52  ;;  %18745 = vmatprep.mubr.f32.mxu1 %v22820_v18  ;;  %v8159_v52 = vsel %vm3047_vm2, %v8152_v50, 0  ;;  %v8171_v5 = vand.u32 4294901760, %v8165_v55 }
 0xc2f   :  { %19997 = vmatprep.subr.bf16.mxu1 %v19996_v0  ;;  %v22852_v2 = vand.u32 4294901760, %v8159_v52  ;;  %v22861_v7 = vsub.f32 %v8163_v53, %v8168_v37  ;;  %v8676_v50 = vpop.permute.xlu1 %8675 }
 0xc30   :  { %18711 = vmatmul.mubr.f32.vlgmr.msra.gmra.mrb[16].mxu0 %v22772_v41  ;;  %v22857_v13 = vsub.f32 %v8165_v55, %v8171_v5  ;;  %v25359_v41 = vand.u32 4294901760, %v22789_v3 }
 0xc31   :  { %19979 = vmatpush3.bf16.msra.mxu0 %v22778_v32  ;;  %18717 = vmatprep.mubr.f32.mxu0 %v25357_v62  ;;  %v22864_v8 = vsub.f32 %v8159_v52, %v22852_v2  ;;  %v25270_v55 = vand.u32 4294901760, %v22861_v7  ;;  %v8670_v53 = vpop.permute.xlu0 %8669 }
 0xc32   :  { %19981 = vmatprep.subr.bf16.mxu0 %v19980_v36  ;;  %v25361_v3 = vand.u32 4294901760, %v22857_v13 }
 0xc33   :  { %v25269_v52 = vand.u32 4294901760, %v22864_v8  ;;  %v8672_v22 = vpop.permute.xlu1 %8671 }
 0xc35   :  { %18746 = vmatmul.mubr.f32.vlgmr.msra.gmra.mrb[12].mxu1 %v22813_v6 }
 0xc36   :  { %19999 = vmatpush3.bf16.msra.mxu1 %v19996_v0  ;;  %18752 = vmatprep.mubr.f32.mxu1 %v7505_v9  ;;  %v8161_v9 = vsel %vm3047_vm2, %v8154_v51, 0  ;;  %v22878_v51 = vpack.c.bf16 %v8171_v5, %v8168_v37  ;;  %v8683_v0 = vsel %vm3047_vm2, %v8676_v50, 0 }
 0xc37   :  { %20001 = vmatprep.subr.bf16.mxu1 %v22806_v33  ;;  %v8689_v5 = vand.u32 4294901760, %v8683_v0 }
 0xc38   :  { %18718 = vmatmul.mubr.f32.vlgmr.msra.gmra.mrb[16].mxu0 %v25358_v61  ;;  %v22874_v61 = vand.u32 4294901760, %v8161_v9 }
 0xc39   :  { %19983 = vmatpush3.bf16.msra.mxu0 %v19980_v36  ;;  %18724 = vmatprep.mubr.f32.mxu0 %v22748_v57  ;;  %v25360_v36 = vand.u32 4294901760, %v22808_v24  ;;  %v8265_v24 = vsub.f32 %v22857_v13, %v25361_v3 }
 0xc3a   :  { %19985 = vmatprep.subr.bf16.mxu0 %v22778_v32  ;;  %v22891_v37 = vsub.f32 %v8161_v9, %v22874_v61  ;;  %v22904_v9 = vsub.f32 %v8683_v0, %v8689_v5 }
 0xc3b   :  { %v20004_v62 = vpack.c.bf16 %v25360_v36, %v25359_v41  ;;  %v8681_v41 = vsel %vm3047_vm2, %v8674_v44, 0  ;;  %v8266_v44 = vand.u32 4294901760, %v8265_v24 }
 0xc3c   :  { %v8686_v50 = vand.u32 4294901760, %v8681_v41  ;;  %v25271_v3 = vand.u32 4294901760, %v22891_v37 }
 0xc3d   :  { %18753 = vmatmul.mubr.f32.vlgmr.msra.gmra.mrb[12].mxu1 %v22826_v17 }
 0xc3e   :  { %20003 = vmatpush3.bf16.msra.mxu1 %v22806_v33  ;;  %18759 = vmatprep.mubr.f32.mxu1 %v7506_v31  ;;  %v8677_v31 = vsel %vm3047_vm2, %v8670_v53, 0  ;;  %v25362_v53 = vand.u32 4294901760, %v22826_v17  ;;  %v8247_v0 = vsub.f32 %v22891_v37, %v25271_v3 }
 0xc3f   :  { %20005 = vmatprep.subr.bf16.mxu1 %v20004_v62  ;;  %v22899_v36 = vand.u32 4294901760, %v8677_v31 }
 0xc40   :  { %18725 = vmatmul.mubr.f32.vlgmr.msra.gmra.mrb[16].mxu0 %v22768_v58 }
 0xc41   :  { %19987 = vmatpush3.bf16.msra.mxu0 %v22778_v32  ;;  %18731 = vmatprep.mubr.f32.mxu0 %v22748_v57  ;;  %v8237_v32 = vsub.f32 %v22864_v8, %v25269_v52  ;;  %v8258_v57 = vsub.f32 %v22861_v7, %v25270_v55  ;;  %v8774_v55 = vsub.f32 %v8681_v41, %v8686_v50 }
 0xc42   :  { %20013 = vmatprep.subr.bf16.mxu0 %v22878_v51  ;;  %v8753_v24 = vsub.f32 %v8677_v31, %v22899_v36  ;;  %v20036_v41 = vpack.c.bf16 %v8689_v5, %v8686_v50  ;;  %v20020_v31 = vpack.c.bf16 %v22857_v13, %v22861_v7 }
 0xc43   :  { %v8238_v52 = vand.u32 4294901760, %v8237_v32  ;;  %v8259_v56 = vand.u32 4294901760, %v8258_v57  ;;  %v8775_v32 = vand.u32 4294901760, %v8774_v55 }
 0xc45   :  { %18760 = vmatmul.mubr.f32.vlgmr.msra.gmra.mrb[12].mxu1 %v25362_v53  ;;  %v20016_v17 = vpack.c.bf16 %v8266_v44, %v8259_v56  ;;  %v8679_v53 = vsel %vm3047_vm2, %v8672_v22, 0  ;;  %v8248_v56 = vand.u32 4294901760, %v8247_v0  ;;  %v8776_v3 = vsub.f32 %v8774_v55, %v8775_v32 }
 0xc46   :  { %20007 = vmatpush3.bf16.msra.mxu1 %v20004_v62  ;;  %18766 = vmatprep.mubr.f32.mxu1 %v22820_v18  ;;  %v8782_v62 = vand.u32 4294901760, %v22904_v9  ;;  %v22916_v57 = vand.u32 4294901760, %v8679_v53 }
 0xc47   :  { %20009 = vmatprep.subr.bf16.mxu1 %v22806_v33 }
 0xc48   :  { %18732 = vmatmul.mubr.f32.vlgmr.msra.gmra.mrb[16].mxu0 %v22768_v58  ;;  %v8754_v58 = vand.u32 4294901760, %v8753_v24  ;;  %v8783_v22 = vsub.f32 %v22904_v9, %v8782_v62 }
 0xc49   :  { %18780 = vmatprep.mubr.f32.mxu0 %v8238_v52  ;;  %v8763_v52 = vsub.f32 %v8679_v53, %v22916_v57 }
 0xc4a   :  { %20015 = vmatpush3.bf16.xpose.msra.mxu0 %v22878_v51  ;;  %v8755_v44 = vsub.f32 %v8753_v24, %v8754_v58  ;;  %v8784_v5 = vand.u32 4294901760, %v8783_v22 }
 0xc4b   :  { %20017 = vmatprep.subr.bf16.mxu0 %v20016_v17 }
 0xc4c   :  { %v8756_v50 = vand.u32 4294901760, %v8755_v44 }
 0xc4d   :  { %18767 = vmatmul.mubr.f32.vlgmr.msra.gmra.mrb[12].mxu1 %v22813_v6 }
 0xc4e   :  { %20011 = vmatpush3.bf16.msra.mxu1 %v22806_v33  ;;  %18773 = vmatprep.mubr.f32.mxu1 %v22820_v18  ;;  %v8764_v33 = vand.u32 4294901760, %v8763_v52  ;;  %v8777_v18 = vand.u32 4294901760, %v8776_v3  ;;  %v25364_v3 = vand.u32 4294901760, %v22857_v13  ;;  %v20052_v13 = vpack.c.bf16 %v8782_v62, %v8775_v32 }
 0xc4f   :  { %20037 = vmatprep.subr.bf16.mxu1 %v20036_v41 }
 0xc50   :  { %v20040_v0 = vpack.c.bf16 %v8784_v5, %v8777_v18  ;;  %v8765_v53 = vsub.f32 %v8763_v52, %v8764_v33 }
 0xc51   :  { %18781 = vmatmul.mubr.f32.vlgmr.msra.gmra.mrb[18].mxu0 %v8248_v56  ;;  %v20044_v56 = vpack.c.bf16 %v22904_v9, %v8774_v55  ;;  %v25366_v55 = vand.u32 4294901760, %v22891_v37 }
 0xc52   :  { %20019 = vmatpush3.bf16.xpose.msra.mxu0 %v20016_v17  ;;  %18787 = vmatprep.mubr.f32.mxu0 %v22852_v2  ;;  %v8766_v17 = vand.u32 4294901760, %v8765_v53 }
 0xc53   :  { %20021 = vmatprep.subr.bf16.mxu0 %v20020_v31 }
 0xc55   :  { %18774 = vmatmul.mubr.f32.vlgmr.msra.gmra.mrb[12].mxu1 %v22813_v6  ;;  %v25363_v6 = vand.u32 4294901760, %v22861_v7  ;;  %v8137_v7 = vpop.permute.xlu1 %8136 }
 0xc56   :  { %18822 = vmatprep.mubr.f32.mxu1 %v8756_v50 }
 0xc57   :  { %20039 = vmatpush3.bf16.xpose.msra.mxu1 %v20036_v41  ;;  %v20028_v22 = vpack.c.bf16 %v25364_v3, %v25363_v6 }
 0xc58   :  { %20041 = vmatprep.subr.bf16.mxu1 %v20040_v0 }
 0xc59   :  { %18788 = vmatmul.mubr.f32.vlgmr.msra.gmra.mrb[18].mxu0 %v22874_v61 }
 0xc5a   :  { %20023 = vmatpush3.bf16.xpose.msra.mxu0 %v20020_v31  ;;  %18794 = vmatprep.mubr.f32.mxu0 %v22864_v8  ;;  %v25365_v31 = vand.u32 4294901760, %v22864_v8  ;;  %v9189_v8 = vpop.permute.xlu1 %9188 }
 0xc5b   :  { %20025 = vmatprep.subr.bf16.mxu0 %v22878_v51  ;;  %v9203_v49 = vmul.f32 %v22301_v23, %v9189_v8 }
 0xc5e   :  { %18823 = vmatmul.mubr.f32.vlgmr.msra.gmra.mrb[14].mxu1 %v8766_v17 }
 0xc5f   :  { %20043 = vmatpush3.bf16.xpose.msra.mxu1 %v20040_v0  ;;  %18829 = vmatprep.mubr.f32.mxu1 %v22899_v36 }
 0xc60   :  { %20045 = vmatprep.subr.bf16.mxu1 %v20044_v56 }
 0xc61   :  { %18795 = vmatmul.mubr.f32.vlgmr.msra.gmra.mrb[18].mxu0 %v22891_v37  ;;  %v22953_v37 = vpop.permute.xlu1 %8140 }
 0xc62   :  { %20027 = vmatpush3.bf16.xpose.msra.mxu0 %v22878_v51  ;;  %18801 = vmatprep.mubr.f32.mxu0 %v25365_v31 }
 0xc63   :  { %20029 = vmatprep.subr.bf16.mxu0 %v20028_v22 }
 0xc66   :  { %18830 = vmatmul.mubr.f32.vlgmr.msra.gmra.mrb[14].mxu1 %v22916_v57 }
 0xc67   :  { %20047 = vmatpush3.bf16.xpose.msra.mxu1 %v20044_v56  ;;  %18836 = vmatprep.mubr.f32.mxu1 %v8753_v24 }
 0xc68   :  { %20049 = vmatprep.subr.bf16.mxu1 %v20036_v41 }
 0xc69   :  { %18802 = vmatmul.mubr.f32.vlgmr.msra.gmra.mrb[18].mxu0 %v25366_v55 }
 0xc6a   :  { %20031 = vmatpush3.bf16.xpose.msra.mxu0 %v20028_v22  ;;  %18808 = vmatprep.mubr.f32.mxu0 %v22852_v2 }
 0xc6b   :  { %20033 = vmatprep.subr.bf16.mxu0 %v22878_v51 }
 0xc6e   :  { %18837 = vmatmul.mubr.f32.vlgmr.msra.gmra.mrb[14].mxu1 %v8763_v52 }
 0xc6f   :  { %20051 = vmatpush3.bf16.xpose.msra.mxu1 %v20036_v41  ;;  %18843 = vmatprep.mubr.f32.mxu1 %v8754_v58 }
 0xc70   :  { %20053 = vmatprep.subr.bf16.mxu1 %v20052_v13 }
 0xc71   :  { %18809 = vmatmul.mubr.f32.vlgmr.msra.gmra.mrb[18].mxu0 %v22874_v61 }
 0xc72   :  { %20035 = vmatpush3.bf16.xpose.msra.mxu0 %v22878_v51  ;;  %18815 = vmatprep.mubr.f32.mxu0 %v22852_v2  ;;  %v9213_v51 = vpop.permute.xlu1 %9212 }
 0xc73   :  { %v9227_v20 = vmul.f32 %v22306_v27, %v9213_v51 }
 0xc76   :  { %18844 = vmatmul.mubr.f32.vlgmr.msra.gmra.mrb[14].mxu1 %v8764_v33  ;;  %v9217_v2 = vpop.permute.xlu1 %9216 }
 0xc77   :  { %20055 = vmatpush3.bf16.xpose.msra.mxu1 %v20052_v13  ;;  %18850 = vmatprep.mubr.f32.mxu1 %v22899_v36  ;;  %v9228_v60 = vmul.f32 %v22256_v40, %v9217_v2 }
 0xc78   :  { %20057 = vmatprep.subr.bf16.mxu1 %v20036_v41 }
 0xc79   :  { %18816 = vmatmul.mubr.f32.vlgmr.msra.gmra.mrb[18].mxu0 %v22874_v61 }
 0xc7a   :  { %v22955_v9 = vpop.permute.xlu1 %9196 }
 0xc7e   :  { %18851 = vmatmul.mubr.f32.vlgmr.msra.gmra.mrb[14].mxu1 %v22916_v57  ;;  %v22957_v24 = vpop.permute.xlu1 %9200 }
 0xc7f   :  { %20059 = vmatpush3.bf16.xpose.msra.mxu1 %v20036_v41  ;;  %18857 = vmatprep.mubr.f32.mxu1 %v22899_v36  ;;  %v9193_v41 = vpop.permute.xlu0 %9192 }
 0xc80   :  { %v9204_v15 = vmul.f32 %v22251_v21, %v9193_v41 }
 0xc82   :  { %v9241_v62 = vpop.permute.xlu1 %9240 }
 0xc83   :  { %v8133_v44 = vpop.permute.xlu0 %8132 }
 0xc86   :  { %18858 = vmatmul.mubr.f32.vlgmr.msra.gmra.mrb[14].mxu1 %v22916_v57  ;;  %v9261_v32 = vpop.permute.xlu1 %9260 }
 0xc87   :  { %v8145_v33 = vpop.permute.xlu0 %8144 }
 0xc8a   :  { %v22959_v61 = vpop.permute.xlu1 %9224 }
 0xc8b   :  { %v22973_v53 = vpop.permute.xlu0 %9220 }
 0xc8e   :  { %v22961_v58 = vpop.permute.xlu1 %9244 }
 0xc8f   :  { %v9265_v56 = vpop.permute.xlu0 %9264 }
 0xc92   :  { %v9285_v52 = vpop.permute.xlu1 %9284 }
 0xc93   :  { %v9237_v3 = vpop.permute.xlu0 %9236 }
 0xc94   :  { %v9251_v39 = vmul.f32 %v22309_v16, %v9237_v3 }
 0xc96   :  { %v9289_v5 = vpop.permute.xlu1 %9288 }
 0xc97   :  { %v9249_v31 = vpop.permute.xlu0 %9248  ;;  %v9300_v2 = vmul.f32 %v22268_v54, %v9289_v5 }
 0xc9a   :  { %v22971_v0 = vpop.permute.xlu1 %9268 }
 0xc9b   :  { %v22979_v13 = vpop.permute.xlu0 %9292 }
 0xc9e   :  { %v22975_v17 = vpop.permute.xlu1 %9272 }
 0xca2   :  { %v9313_v6 = vpop.permute.xlu1 %9312 }
 0xca6   :  { %v9333_v22 = vpop.permute.xlu1 %9332 }
 0xca7   :  { %v9347_v5 = vmul.f32 %v22329_v47, %v9333_v22  ;;  %v9230_v22 = vmul.f32 %v22256_v40, %v22959_v61 }
 0xcaa   :  { %v22977_v55 = vpop.permute.xlu1 %9296 }
 0xd1b   :  { %v22963_v36 = vpop.f32.mrb[16].mxu0 }
 0xd1c   :  { %25367 = vst [vmem:[#allocation58_spill] sm:$0xff] %v22963_v36  ;;  %v22965_v57 = vpop.f32.mrb[17].mxu0  ;;  %v22981_v36 = vpop.permute.xlu1 %9316 }
 0xd1d   :  { %25368 = vst [vmem:[#allocation59_spill] sm:$0xff] %v22965_v57  ;;  %v8147_v57 = vmul.f32 %v25331_v63, %v8133_v44 }
 0xd20   :  { %v9357_v4 = vpop.permute.xlu1 %9356 }
 0xd28   :  { %v22967_v50 = vpop.f32.mrb[12].mxu1 }
 0xd29   :  { %25369 = vst [vmem:[#allocation60_spill] sm:$0xff] %v22967_v50  ;;  %v22969_v18 = vpop.f32.mrb[13].mxu1  ;;  %v9309_v50 = vpop.permute.xlu0 %9308 }
 0xd2a   :  { %25370 = vst [vmem:[#allocation61_spill] sm:$0xff] %v22969_v18  ;;  %v8148_v18 = vmul.f32 %v25330_v48, %v8137_v7  ;;  %v9252_v7 = vmul.f32 %v22260_v30, %v9241_v62 }
 0xd2d   :  { %v22989_v46 = vpop.permute.xlu0 %9320 }
 0xd31   :  { %v9337_v51 = vpop.permute.xlu0 %9336 }
 0xd32   :  { %v9348_v62 = vmul.f32 %v22275_v38, %v9337_v51 }
 0xd4c   :  { %v18817_v1 = vpop.f32.mrb[18].mxu0 }
 0xd4d   :  { %v20516_v42 = vadd.f32 %v18817_v1, %v8148_v18  ;;  %v8659_v45 = vpop.f32.mrb[19].mxu0  ;;  %v9276_v1 = vmul.f32 %v22263_v26, %v9265_v56 }
 0xd4e   :  { %v20517_v11 = vadd.f32 %v8659_v45, %v8147_v57  ;;  %v9275_v45 = vmul.f32 %v22314_v12, %v9261_v32  ;;  %v9299_v57 = vmul.f32 %v22318_v28, %v9285_v52  ;;  %v9206_v52 = vmul.f32 %v22251_v21, %v22957_v24 }
 0xd4f   :  { %v9208_v34 = vadd.f32 %v20516_v42, %v9204_v15  ;;  %v9361_v15 = vpop.permute.xlu1 %9360  ;;  %v9229_v24 = vmul.f32 %v22306_v27, %v22973_v53  ;;  %v9278_v53 = vmul.f32 %v22263_v26, %v22975_v17  ;;  %v9326_v17 = vmul.f32 %v22272_v29, %v22989_v46 }
 0xd50   :  { %v9207_v25 = vadd.f32 %v20517_v11, %v9203_v49  ;;  %v9324_v49 = vmul.f32 %v22272_v29, %v9313_v6  ;;  %v9372_v6 = vmul.f32 %v22285_v35, %v9361_v15 }
 0xd51   :  { %v9232_v44 = vadd.f32 %v9228_v60, %v9208_v34  ;;  %v9323_v60 = vmul.f32 %v22321_v14, %v9309_v50 }
 0xd52   :  { %v9231_v41 = vadd.f32 %v9227_v20, %v9207_v25  ;;  %v8150_v20 = vmul.f32 %v25330_v48, %v8145_v33  ;;  %v9205_v33 = vmul.f32 %v22301_v23, %v22955_v9 }
 0xd53   :  { %v9256_v18 = vadd.f32 %v9252_v7, %v9232_v44  ;;  %v9341_v7 = vpop.permute.xlu1 %9340 }
 0xd54   :  { %v9255_v8 = vadd.f32 %v9251_v39, %v9231_v41  ;;  %v8149_v39 = vmul.f32 %v25331_v63, %v22953_v37 }
 0xd55   :  { %v9280_v42 = vadd.f32 %v9276_v1, %v9256_v18  ;;  %v9371_v1 = vmul.f32 %v22326_v10, %v9357_v4  ;;  %v9253_v4 = vmul.f32 %v22309_v16, %v22961_v58  ;;  %v9302_v58 = vmul.f32 %v22268_v54, %v22977_v55 }
 0xd56   :  { %v9279_v11 = vadd.f32 %v9275_v45, %v9255_v8  ;;  %v9349_v55 = vmul.f32 %v22329_v47, %v9341_v7 }
 0xd57   :  { %v9304_v34 = vadd.f32 %v9300_v2, %v9280_v42  ;;  %v9254_v42 = vmul.f32 %v22260_v30, %v9249_v31 }
 0xd58   :  { %v9303_v25 = vadd.f32 %v9299_v57, %v9279_v11 }
 0xd59   :  { %v9328_v32 = vadd.f32 %v9324_v49, %v9304_v34  ;;  %v18859_v56 = vpop.f32.mrb[14].mxu1  ;;  %v9365_v49 = vpop.permute.xlu1 %9364 }
 0xd5a   :  { %v9327_v3 = vadd.f32 %v9323_v60, %v9303_v25  ;;  %v20518_v50 = vadd.f32 %v18859_v56, %v8150_v20  ;;  %v9177_v44 = vpop.f32.mrb[15].mxu1  ;;  %v9277_v60 = vmul.f32 %v22314_v12, %v22971_v0  ;;  %v9325_v56 = vmul.f32 %v22321_v14, %v22981_v36 }
 0xd5b   :  { %v9352_v41 = vadd.f32 %v9348_v62, %v9328_v32  ;;  %v20519_v18 = vadd.f32 %v9177_v44, %v8149_v39  ;;  %v9301_v62 = vmul.f32 %v22318_v28, %v22979_v13  ;;  %v9345_v32 = vpop.permute.xlu0 %9344  ;;  %v9373_v13 = vmul.f32 %v22326_v10, %v9365_v49 }
 0xd5c   :  { %v9351_v37 = vadd.f32 %v9347_v5, %v9327_v3  ;;  %v9210_v45 = vadd.f32 %v20518_v50, %v9206_v52  ;;  %v9350_v0 = vmul.f32 %v22275_v38, %v9345_v32 }
 0xd5d   :  { %v9376_v8 = vadd.f32 %v9372_v6, %v9352_v41  ;;  %v9209_v2 = vadd.f32 %v20519_v18, %v9205_v33  ;;  %v9369_v52 = vpop.permute.xlu1 %9368 }
 0xd5e   :  { %v9375_v15 = vadd.f32 %v9371_v1, %v9351_v37  ;;  %v9234_v51 = vadd.f32 %v9230_v22, %v9210_v45  ;;  %v9374_v41 = vmul.f32 %v22285_v35, %v9369_v52  ;;  %v21444_v45 = vmov 28   ;;  %v25378_v52 = vld [vmem:[#allocation33_spill] sm:$0xff] }
 0xd5f   :  { %v9380_v9 = vsel %vm3014_vm13, %v9376_v8, -10000.0  ;;  %v9233_v57 = vadd.f32 %v9229_v24, %v9209_v2  ;;  %21045 = vset.pattern.permute.xlu0 %v21444_v45  ;;  %v21445_v8 = vmov 27  }
 0xd60   :  { %v9386_v11 = vsel %vm4270_vm14, %v9380_v9, -inf  ;;  %v9379_v61 = vsel %vm3013_vm10, %v9375_v15, -10000.0  ;;  %v9258_v34 = vadd.f32 %v9254_v42, %v9234_v51  ;;  %21043 = vset.pattern.permute.xlu1 %v21445_v8 }
 0xd61   :  { %9387 = vmax.xlane.f32.xlu1 %v9386_v11  ;;  %v9383_v31 = vsel %vm4270_vm14, %v9379_v61, -inf  ;;  %v9257_v25 = vadd.f32 %v9253_v4, %v9233_v57 }
 0xd62   :  { %9384 = vmax.xlane.f32.xlu0 %v9383_v31  ;;  %v9282_v20 = vadd.f32 %v9278_v53, %v9258_v34 }
 0xd63   :  { %v9281_v39 = vadd.f32 %v9277_v60, %v9257_v25 }
 0xd64   :  { %v9306_v5 = vadd.f32 %v9302_v58, %v9282_v20 }
 0xd65   :  { %v9305_v3 = vadd.f32 %v9301_v62, %v9281_v39  ;;  %v25372_v39 = vld [vmem:[#allocation46_spill] sm:$0xff] }
 0xd66   :  { %v9330_v6 = vadd.f32 %v9326_v17, %v9306_v5  ;;  %v25373_v17 = vld [vmem:[#allocation47_spill] sm:$0xff]  ;;  %v25374_v5 = vld [vmem:[#allocation48_spill] sm:$0xff] }
 0xd67   :  { %v9329_v50 = vadd.f32 %v9325_v56, %v9305_v3  ;;  %v25375_v56 = vld [vmem:[#allocation29_spill] sm:$0xff] }
 0xd68   :  { %v9354_v44 = vadd.f32 %v9350_v0, %v9330_v6  ;;  %v25376_v3 = vld [vmem:[#allocation49_spill] sm:$0xff]  ;;  %v25377_v0 = vld [vmem:[#allocation28_spill] sm:$0xff]  ;;  %v25379_v6 = vld [vmem:[#allocation34_spill] sm:$0xff] }
 0xd69   :  { %v9353_v33 = vadd.f32 %v9349_v55, %v9329_v50  ;;  %v25380_v55 = vld [vmem:[#allocation27_spill] sm:$0xff]  ;;  %v25381_v50 = vld [vmem:[#allocation32_spill] sm:$0xff] }
 0xd6a   :  { %v9378_v46 = vadd.f32 %v9374_v41, %v9354_v44  ;;  %v25382_v44 = vld [vmem:[#allocation31_spill] sm:$0xff]  ;;  %v25384_v41 = vld [vmem:[#allocation30_spill] sm:$0xff] }
 0xd6b   :  { %v9377_v1 = vadd.f32 %v9373_v13, %v9353_v33  ;;  %v25383_v13 = vld [vmem:[#allocation35_spill] sm:$0xff]  ;;  %v25385_v33 = vld [vmem:[#allocation36_spill] sm:$0xff] }
 0xd6c   :  { %v9382_v22 = vsel %vm3016_vm11, %v9378_v46, -10000.0  ;;  %v21449_v46 = vmov 29  }
 0xd6d   :  { %v9381_v18 = vsel %vm3015_vm12, %v9377_v1, -10000.0  ;;  %v9392_v7 = vsel %vm4270_vm14, %v9382_v22, -inf  ;;  %v25386_v1 = vld [vmem:[#allocation37_spill] sm:$0xff] }
 0xd6e   :  { %v9389_v36 = vsel %vm4270_vm14, %v9381_v18, -inf }
 0xd6f   :  { %9390 = vmax.xlane.f32.xlu0 %v9389_v36  ;;  %v21450_v36 = vmov 31  }
 0xd73   :  { %9393 = vmax.xlane.f32.xlu0 %v9392_v7  ;;  %v21452_v7 = vmov 32  }
 0xdee   :  { %v9388_v24 = vpop.xlane.xlu1 %9387 }
 0xdef   :  { %v9396_v2 = vsub.f32 %v9380_v9, %v9388_v24  ;;  %v9385_v15 = vpop.xlane.xlu0 %9384  ;;  %v21455_v24 = vmov 35  }
 0xdf0   :  { %v9395_v42 = vsub.f32 %v9379_v61, %v9385_v15 }
 0xdf1   :  { %v9401_v51 = vmul.f32 1.442695, %v9396_v2 }
 0xdf2   :  { %v9399_v4 = vmul.f32 1.442695, %v9395_v42 }
 0xdf3   :  { %21134 = vpow2.f32 %v9401_v51 }
 0xdf4   :  { %21136 = vpow2.f32 %v9399_v4 }
 0xdfc   :  { %v9391_v11 = vpop.xlane.xlu0 %9390 }
 0xdfd   :  { %v23046_v57 = vpop.eup %21134  ;;  %v9397_v49 = vsub.f32 %v9381_v18, %v9391_v11  ;;  %v25387_v18 = vld [vmem:[#allocation38_spill] sm:$0xff] }
 0xdfe   :  { %v23048_v53 = vpop.eup %21136  ;;  %v9410_v34 = vsel %vm4270_vm14, %v23046_v57, 0.0 }
 0xdff   :  { %9411 = vadd.xlane.f32.xlu1 %v9410_v34  ;;  %v9407_v31 = vsel %vm4270_vm14, %v23048_v53, 0.0  ;;  %v9403_v9 = vmul.f32 1.442695, %v9397_v49 }
 0xe00   :  { %9408 = vadd.xlane.f32.xlu0 %v9407_v31  ;;  %v9394_v61 = vpop.xlane.xlu0 %9393 }
 0xe01   :  { %21138 = vpow2.f32 %v9403_v9  ;;  %v9398_v60 = vsub.f32 %v9382_v22, %v9394_v61  ;;  %v21451_v22 = vmov 30  }
 0xe03   :  { %v9405_v25 = vmul.f32 1.442695, %v9398_v60 }
 0xe05   :  { %21140 = vpow2.f32 %v9405_v25 }
 0xe0b   :  { %v23054_v58 = vpop.eup %21138 }
 0xe0c   :  { %v9413_v20 = vsel %vm4270_vm14, %v23054_v58, 0.0 }
 0xe0d   :  { %9414 = vadd.xlane.f32.xlu0 %v9413_v20 }
 0xe0f   :  { %v23058_v62 = vpop.eup %21140 }
 0xe10   :  { %v9416_v32 = vsel %vm4270_vm14, %v23058_v62, 0.0 }
 0xe11   :  { %9417 = vadd.xlane.f32.xlu1 %v9416_v32 }
 0xe22   :  { %9449 = vrot.lane.b32.xlu1 %v25372_v39, %s21446_s12 }
 0xe23   :  { %9447 = vrot.lane.b32.xlu0 %v25373_v17, %s21446_s12 }
 0xe26   :  { %9961 = vrot.lane.b32.xlu1 %v25374_v5, %s21446_s12 }
 0xe27   :  { %10691 = vrot.lane.b32.xlu0 %v25375_v56, %s21447_s13 }
 0xe2a   :  { %9963 = vrot.lane.b32.xlu1 %v25376_v3, %s21446_s12 }
 0xe2b   :  { %10687 = vrot.lane.b32.xlu0 %v25377_v0, %s21448_s7 }
 0xe2e   :  { %10693 = vrot.lane.b32.xlu1 %v25378_v52, %s21447_s13 }
 0xe2f   :  { %11209 = vrot.lane.b32.xlu0 %v25379_v6, %s21447_s13 }
 0xe32   :  { %10689 = vrot.lane.b32.xlu1 %v25380_v55, %s21448_s7 }
 0xe33   :  { %11205 = vrot.lane.b32.xlu0 %v25381_v50, %s21448_s7 }
 0xe36   :  { %11211 = vrot.lane.b32.xlu1 %v25382_v44, %s21447_s13 }
 0xe37   :  { %11728 = vperm.xlu0 %21045, %v25383_v13  }
 0xe3a   :  { %11207 = vrot.lane.b32.xlu1 %v25384_v41, %s21448_s7 }
 0xe3b   :  { %21046 = vset.pattern.permute.xlu0 %v21445_v8 }
 0xe3c   :  { %10668 = vperm.xlu0 %21046, %v25385_v33  }
 0xe3e   :  { %10672 = vperm.xlu1 %21043, %v25383_v13  }
 0xe40   :  { %10680 = vperm.xlu0 %21046, %v25386_v1  }
 0xe42   :  { %21044 = vset.pattern.permute.xlu1 %v21444_v45 }
 0xe43   :  { %11724 = vperm.xlu1 %21044, %v25385_v33  }
 0xe44   :  { %21051 = vset.pattern.permute.xlu0 %v21449_v46 }
 0xe45   :  { %11756 = vperm.xlu0 %21051, %v25387_v18  }
 0xe47   :  { %21047 = vset.pattern.permute.xlu1 %v21445_v8  ;;  %v21453_v8 = vmov 33  }
 0xe48   :  { %10676 = vperm.xlu1 %21047, %v25387_v18  }
 0xe49   :  { %21054 = vset.pattern.permute.xlu0 %v21450_v36 }
 0xe4a   :  { %11800 = vperm.xlu0 %21054, %v25383_v13  }
 0xe4c   :  { %21048 = vset.pattern.permute.xlu1 %v21449_v46 }
 0xe4d   :  { %11748 = vperm.xlu1 %21048, %v25385_v33  }
 0xe4e   :  { %21055 = vset.pattern.permute.xlu0 %v21451_v22 }
 0xe4f   :  { %11772 = vperm.xlu0 %21055, %v25385_v33  }
 0xe51   :  { %11752 = vperm.xlu1 %21048, %v25383_v13  }
 0xe53   :  { %11784 = vperm.xlu0 %21055, %v25386_v1  }
 0xe55   :  { %21049 = vset.pattern.permute.xlu1 %v21444_v45  ;;  %v21454_v45 = vmov 34  }
 0xe56   :  { %11732 = vperm.xlu1 %21049, %v25387_v18  }
 0xe57   :  { %21060 = vset.pattern.permute.xlu0 %v21452_v7 }
 0xe58   :  { %11828 = vperm.xlu0 %21060, %v25387_v18  }
 0xe5a   :  { %11736 = vperm.xlu1 %21049, %v25386_v1  }
 0xe5c   :  { %21061 = vset.pattern.permute.xlu0 %v21453_v8 }
 0xe5d   :  { %11844 = vperm.xlu0 %21061, %v25385_v33  }
 0xe5e   :  { %21050 = vset.pattern.permute.xlu1 %v21451_v22 }
 0xe5f   :  { %11776 = vperm.xlu1 %21050, %v25383_v13  }
 0xe61   :  { %11856 = vperm.xlu0 %21061, %v25386_v1  }
 0xe63   :  { %21052 = vset.pattern.permute.xlu1 %v21450_v36 }
 0xe64   :  { %11796 = vperm.xlu1 %21052, %v25385_v33  }
 0xe65   :  { %21066 = vset.pattern.permute.xlu0 %v21454_v45 }
 0xe66   :  { %11872 = vperm.xlu0 %21066, %v25383_v13  }
 0xe68   :  { %21053 = vset.pattern.permute.xlu1 %v21449_v46 }
 0xe69   :  { %11760 = vperm.xlu1 %21053, %v25386_v1  }
 0xe6a   :  { %11880 = vperm.xlu0 %21066, %v25386_v1  }
 0xe6d   :  { %21056 = vset.pattern.permute.xlu1 %v21451_v22 }
 0xe6e   :  { %11780 = vperm.xlu1 %21056, %v25387_v18   ;;  %21069 = vset.pattern.permute.xlu0 %v21455_v24 }
 0xe72   :  { %21057 = vset.pattern.permute.xlu1 %v21452_v7 }
 0xe73   :  { %11820 = vperm.xlu1 %21057, %v25385_v33  }
 0xe77   :  { %11824 = vperm.xlu1 %21057, %v25383_v13  }
 0xe7b   :  { %21058 = vset.pattern.permute.xlu1 %v21450_v36 }
 0xe7c   :  { %11804 = vperm.xlu1 %21058, %v25387_v18  }
 0xe80   :  { %11808 = vperm.xlu1 %21058, %v25386_v1  }
 0xe84   :  { %21059 = vset.pattern.permute.xlu1 %v21453_v8 }
 0xe85   :  { %11848 = vperm.xlu1 %21059, %v25383_v13  }
 0xe89   :  { %21062 = vset.pattern.permute.xlu1 %v21454_v45 }
 0xe8a   :  { %11868 = vperm.xlu1 %21062, %v25385_v33  }
 0xe8c   :  { %v9412_v2 = vpop.xlane.xlu1 %9411 }
 0xe8d   :  { %21142 = vrcp.f32 %v9412_v2  ;;  %v9409_v15 = vpop.xlane.xlu0 %9408 }
 0xe8e   :  { %21144 = vrcp.f32 %v9409_v15  ;;  %21063 = vset.pattern.permute.xlu1 %v21452_v7 }
 0xe8f   :  { %11832 = vperm.xlu1 %21063, %v25386_v1  }
 0xe93   :  { %21064 = vset.pattern.permute.xlu1 %v21453_v8 }
 0xe94   :  { %11852 = vperm.xlu1 %21064, %v25387_v18  }
 0xe97   :  { %v21143_v42 = vpop.eup %21142 }
 0xe98   :  { %v21145_v51 = vpop.eup %21144  ;;  %v23108_v4 = vmul.f32 %v21143_v42, %v23046_v57  ;;  %21065 = vset.pattern.permute.xlu1 %v21455_v24 }
 0xe99   :  { %v23111_v11 = vmul.f32 %v21145_v51, %v23048_v53  ;;  %11892 = vperm.xlu1 %21065, %v25385_v33  }
 0xe9a   :  { %25388 = vst [vmem:[#allocation29_spill] sm:$0xff] %v23108_v4  ;;  %v9457_v49 = vsel %vm4270_vm14, %v23108_v4, 0  ;;  %v9415_v34 = vpop.xlane.xlu0 %9414 }
 0xe9b   :  { %25389 = vst [vmem:[#allocation28_spill] sm:$0xff] %v23111_v11  ;;  %v9454_v31 = vsel %vm4270_vm14, %v23111_v11, 0  ;;  %v23118_v9 = vand.u32 4294901760, %v9457_v49  ;;  %21146 = vrcp.f32 %v9415_v34 }
 0xe9c   :  { %v23120_v61 = vand.u32 4294901760, %v9454_v31 }
 0xe9d   :  { %11896 = vperm.xlu1 %21065, %v25383_v13   ;;  %v23127_v53 = vsub.f32 %v9457_v49, %v23118_v9 }
 0xe9e   :  { %v23124_v57 = vsub.f32 %v9454_v31, %v23120_v61  ;;  %v9448_v60 = vpop.permute.xlu0 %9447  ;;  %v9418_v25 = vpop.xlane.xlu1 %9417 }
 0xe9f   :  { %v9460_v20 = vand.u32 4294901760, %v9448_v60  ;;  %21148 = vrcp.f32 %v9418_v25  ;;  %v9538_v52 = vand.u32 4294901760, %v23127_v53 }
 0xea0   :  { %v9528_v32 = vand.u32 4294901760, %v23124_v57 }
 0xea1   :  { %v23130_v56 = vsub.f32 %v9448_v60, %v9460_v20  ;;  %21067 = vset.pattern.permute.xlu1 %v21454_v45  ;;  %v9539_v46 = vsub.f32 %v23127_v53, %v9538_v52 }
 0xea2   :  { %v9529_v0 = vsub.f32 %v23124_v57, %v9528_v32  ;;  %11876 = vperm.xlu1 %21067, %v25387_v18   ;;  %v9450_v6 = vpop.permute.xlu1 %9449 }
 0xea3   :  { %v9549_v55 = vand.u32 4294901760, %v23130_v56  ;;  %v9463_v50 = vand.u32 4294901760, %v9450_v6 }
 0xea4   :  { %v9530_v44 = vand.u32 4294901760, %v9529_v0 }
 0xea5   :  { %v21147_v13 = vpop.eup %21146  ;;  %v23138_v41 = vpack.c.bf16 %v9463_v50, %v9460_v20  ;;  %v23140_v33 = vsub.f32 %v9450_v6, %v9463_v50  ;;  %v9550_v45 = vsub.f32 %v23130_v56, %v9549_v55 }
 0xea6   :  { %18864 = vmatprep.mubr.f32.mxu0 %v9530_v44  ;;  %v23146_v36 = vmul.f32 %v21147_v13, %v23054_v58  ;;  %21068 = vset.pattern.permute.xlu1 %v21455_v24  ;;  %v9962_v22 = vpop.permute.xlu1 %9961  ;;  %v9540_v24 = vand.u32 4294901760, %v9539_v46 }
 0xea7   :  { %v9556_v7 = vand.u32 4294901760, %v23140_v33  ;;  %v9974_v8 = vand.u32 4294901760, %v9962_v22  ;;  %11900 = vperm.xlu1 %21068, %v25387_v18   ;;  %20061 = vmatprep.subr.bf16.mxu0 %v23138_v41  ;;  %v9551_v60 = vand.u32 4294901760, %v9550_v45  ;;  %v20068_v46 = vpack.c.bf16 %v23140_v33, %v23130_v56 }
 0xea8   :  { %25390 = vst [vmem:[#allocation33_spill] sm:$0xff] %v23146_v36  ;;  %20063 = vmatpush3.bf16.msra.mxu0 %v23138_v41  ;;  %v9968_v2 = vsel %vm4270_vm14, %v23146_v36, 0 }
 0xea9   :  { %v21149_v58 = vpop.eup %21148  ;;  %v23157_v15 = vsub.f32 %v9962_v22, %v9974_v8  ;;  %v9557_v42 = vsub.f32 %v23140_v33, %v9556_v7  ;;  %v23160_v51 = vand.u32 4294901760, %v9968_v2 }
 0xeaa   :  { %v23163_v18 = vmul.f32 %v21149_v58, %v23058_v62  ;;  %v9964_v49 = vpop.permute.xlu1 %9963 }
 0xeab   :  { %v10063_v34 = vand.u32 4294901760, %v23157_v15  ;;  %v9977_v31 = vand.u32 4294901760, %v9964_v49  ;;  %11904 = vperm.xlu1 %21068, %v25386_v1   ;;  %18865 = vmatmul.mubr.f32.vlgmr.msra.gmra.mrb[20].mxu0 %v9540_v24  ;;  %v9558_v25 = vand.u32 4294901760, %v9557_v42  ;;  %v23169_v20 = vsub.f32 %v9968_v2, %v23160_v51 }
 0xeac   :  { %25391 = vst [vmem:[#allocation34_spill] sm:$0xff] %v23163_v18  ;;  %18871 = vmatprep.mubr.f32.mxu0 %v23120_v61  ;;  %v9971_v0 = vsel %vm4270_vm14, %v23163_v18, 0 }
 0xead   :  { %v23173_v6 = vpack.c.bf16 %v9977_v31, %v9974_v8  ;;  %v23175_v62 = vsub.f32 %v9964_v49, %v9977_v31  ;;  %v20064_v50 = vpack.c.bf16 %v9558_v25, %v9551_v60  ;;  %v23177_v44 = vand.u32 4294901760, %v9971_v0  ;;  %v10692_v25 = vpop.permute.xlu0 %10691 }
 0xeae   :  { %v10042_v1 = vand.u32 4294901760, %v23169_v20  ;;  %v10064_v8 = vsub.f32 %v23157_v15, %v10063_v34 }
 0xeaf   :  { %v10070_v13 = vand.u32 4294901760, %v23175_v62  ;;  %20065 = vmatprep.subr.bf16.mxu0 %v20064_v50  ;;  %20085 = vmatprep.subr.bf16.mxu1 %v23173_v6  ;;  %v23185_v22 = vsub.f32 %v9971_v0, %v23177_v44  ;;  %v20092_v0 = vpack.c.bf16 %v23175_v62, %v23157_v15 }
 0xeb0   :  { %20067 = vmatpush3.bf16.msra.mxu0 %v20064_v50  ;;  %20087 = vmatpush3.bf16.msra.mxu1 %v23173_v6  ;;  %v10043_v45 = vsub.f32 %v23169_v20, %v10042_v1  ;;  %v10065_v42 = vand.u32 4294901760, %v10064_v8  ;;  %v10694_v50 = vpop.permute.xlu1 %10693 }
 0xeb1   :  { %20069 = vmatprep.subr.bf16.mxu0 %v20068_v46  ;;  %v10052_v2 = vand.u32 4294901760, %v23185_v22  ;;  %v10071_v58 = vsub.f32 %v23175_v62, %v10070_v13  ;;  %v10688_v8 = vpop.permute.xlu0 %10687  ;;  %v10699_v62 = vsel %vm3047_vm2, %v10692_v25, 0 }
 0xeb2   :  { %v10044_v33 = vand.u32 4294901760, %v10043_v45  ;;  %v10701_v45 = vsel %vm3047_vm2, %v10694_v50, 0  ;;  %v10704_v56 = vand.u32 4294901760, %v10699_v62 }
 0xeb3   :  { %18872 = vmatmul.mubr.f32.vlgmr.msra.gmra.mrb[20].mxu0 %v23118_v9  ;;  %v10053_v24 = vsub.f32 %v23185_v22, %v10052_v2  ;;  %v10072_v49 = vand.u32 4294901760, %v10071_v58  ;;  %v10695_v58 = vsel %vm3047_vm2, %v10688_v8, 0 }
 0xeb4   :  { %18906 = vmatprep.mubr.f32.mxu1 %v10044_v33  ;;  %20071 = vmatpush3.bf16.msra.mxu0 %v20068_v46  ;;  %v20076_v46 = vpack.c.bf16 %v9556_v7, %v9549_v55  ;;  %v10707_v33 = vand.u32 4294901760, %v10701_v45  ;;  %v23217_v55 = vand.u32 4294901760, %v10695_v58  ;;  %v23225_v7 = vsub.f32 %v10699_v62, %v10704_v56 }
 0xeb5   :  { %18878 = vmatprep.mubr.f32.mxu0 %v23124_v57  ;;  %20073 = vmatprep.subr.bf16.mxu0 %v23138_v41  ;;  %v10054_v31 = vand.u32 4294901760, %v10053_v24  ;;  %v20088_v60 = vpack.c.bf16 %v10072_v49, %v10065_v42  ;;  %v10690_v24 = vpop.permute.xlu1 %10689  ;;  %v11210_v57 = vpop.permute.xlu0 %11209 }
 0xeb6   :  { %v23228_v42 = vsub.f32 %v10695_v58, %v23217_v55  ;;  %v11217_v50 = vsel %vm3047_vm2, %v11210_v57, 0 }
 0xeb7   :  { %18907 = vmatmul.mubr.f32.vlgmr.msra.gmra.mrb[16].mxu1 %v10054_v31  ;;  %20089 = vmatprep.subr.bf16.mxu1 %v20088_v60  ;;  %v10697_v31 = vsel %vm3047_vm2, %v10690_v24, 0 }
 0xeb8   :  { %20091 = vmatpush3.bf16.msra.mxu1 %v20088_v60  ;;  %18913 = vmatprep.mubr.f32.mxu1 %v23160_v51  ;;  %v10772_v15 = vand.u32 4294901760, %v23228_v42 }
 0xeb9   :  { %20093 = vmatprep.subr.bf16.mxu1 %v20092_v0  ;;  %v11212_v49 = vpop.permute.xlu1 %11211 }
 0xeba   :  { %v11219_v25 = vsel %vm3047_vm2, %v11212_v49, 0  ;;  %v10773_v58 = vsub.f32 %v23228_v42, %v10772_v15 }
 0xebb   :  { %18879 = vmatmul.mubr.f32.vlgmr.msra.gmra.mrb[20].mxu0 %v23127_v53  ;;  %v20100_v53 = vpack.c.bf16 %v10070_v13, %v10063_v34  ;;  %v23245_v13 = vpack.c.bf16 %v10707_v33, %v10704_v56  ;;  %v11225_v8 = vand.u32 4294901760, %v11219_v25 }
 0xebc   :  { %20075 = vmatpush3.bf16.msra.mxu0 %v23138_v41  ;;  %18885 = vmatprep.mubr.f32.mxu0 %v9528_v32  ;;  %v23221_v32 = vsub.f32 %v10701_v45, %v10707_v33 }
 0xebd   :  { %20077 = vmatprep.subr.bf16.mxu0 %v20076_v46  ;;  %v11208_v33 = vpop.permute.xlu1 %11207 }
 0xebe   :  { %v10800_v60 = vand.u32 4294901760, %v23221_v32 }
 0xebf   :  { %18914 = vmatmul.mubr.f32.vlgmr.msra.gmra.mrb[16].mxu1 %v23177_v44 }
 0xec0   :  { %20095 = vmatpush3.bf16.msra.mxu1 %v20092_v0  ;;  %18920 = vmatprep.mubr.f32.mxu1 %v23169_v20  ;;  %v10793_v0 = vand.u32 4294901760, %v23225_v7  ;;  %v10801_v20 = vsub.f32 %v23221_v32, %v10800_v60 }
 0xec1   :  { %20097 = vmatprep.subr.bf16.mxu1 %v23173_v6 }
 0xec2   :  { %v10802_v24 = vand.u32 4294901760, %v10801_v20 }
 0xec3   :  { %18886 = vmatmul.mubr.f32.vlgmr.msra.gmra.mrb[20].mxu0 %v9538_v52  ;;  %v11206_v52 = vpop.permute.xlu0 %11205 }
 0xec4   :  { %20079 = vmatpush3.bf16.msra.mxu0 %v20076_v46  ;;  %18892 = vmatprep.mubr.f32.mxu0 %v23120_v61  ;;  %v23241_v46 = vand.u32 4294901760, %v10697_v31  ;;  %v11213_v34 = vsel %vm3047_vm2, %v11206_v52, 0 }
 0xec5   :  { %20081 = vmatprep.subr.bf16.mxu0 %v23138_v41  ;;  %v23254_v45 = vand.u32 4294901760, %v11213_v34 }
 0xec6   :  { %v23257_v62 = vsub.f32 %v10697_v31, %v23241_v46  ;;  %v10774_v31 = vand.u32 4294901760, %v10773_v58 }
 0xec7   :  { %18921 = vmatmul.mubr.f32.vlgmr.msra.gmra.mrb[16].mxu1 %v23185_v22  ;;  %v23274_v57 = vsub.f32 %v11213_v34, %v23254_v45  ;;  %v11215_v22 = vsel %vm3047_vm2, %v11208_v33, 0 }
 0xec8   :  { %20099 = vmatpush3.bf16.msra.mxu1 %v23173_v6  ;;  %18927 = vmatprep.mubr.f32.mxu1 %v10042_v1  ;;  %v11222_v1 = vand.u32 4294901760, %v11217_v50  ;;  %v10782_v49 = vand.u32 4294901760, %v23257_v62  ;;  %v23283_v34 = vand.u32 4294901760, %v11215_v22 }
 0xec9   :  { %20101 = vmatprep.subr.bf16.mxu1 %v20100_v53  ;;  %v11290_v20 = vand.u32 4294901760, %v23274_v57 }
 0xeca   :  { %v23270_v56 = vsub.f32 %v11217_v50, %v11222_v1  ;;  %v10783_v50 = vsub.f32 %v23257_v62, %v10782_v49  ;;  %v20132_v58 = vpack.c.bf16 %v11225_v8, %v11222_v1 }
 0xecb   :  { %18893 = vmatmul.mubr.f32.vlgmr.msra.gmra.mrb[20].mxu0 %v23118_v9 }
 0xecc   :  { %20083 = vmatpush3.bf16.msra.mxu0 %v23138_v41  ;;  %18899 = vmatprep.mubr.f32.mxu0 %v23120_v61  ;;  %v10794_v61 = vsub.f32 %v23225_v7, %v10793_v0  ;;  %v23267_v41 = vsub.f32 %v11219_v25, %v11225_v8  ;;  %v11311_v25 = vand.u32 4294901760, %v23270_v56  ;;  %v10784_v33 = vand.u32 4294901760, %v10783_v50 }
 0xecd   :  { %20109 = vmatprep.subr.bf16.mxu0 %v23245_v13  ;;  %v20116_v8 = vpack.c.bf16 %v23221_v32, %v23225_v7  ;;  %v10673_v7 = vpop.permute.xlu1 %10672 }
 0xece   :  { %v10795_v52 = vand.u32 4294901760, %v10794_v61  ;;  %v11299_v61 = vsub.f32 %v11215_v22, %v23283_v34 }
 0xecf   :  { %18928 = vmatmul.mubr.f32.vlgmr.msra.gmra.mrb[16].mxu1 %v10052_v2  ;;  %v11318_v2 = vand.u32 4294901760, %v23267_v41 }
 0xed0   :  { %20103 = vmatpush3.bf16.msra.mxu1 %v20100_v53  ;;  %18934 = vmatprep.mubr.f32.mxu1 %v23160_v51  ;;  %v20112_v53 = vpack.c.bf16 %v10802_v24, %v10795_v52  ;;  %v11291_v24 = vsub.f32 %v23274_v57, %v11290_v20 }
 0xed1   :  { %20105 = vmatprep.subr.bf16.mxu1 %v23173_v6  ;;  %v20148_v32 = vpack.c.bf16 %v11318_v2, %v11311_v25 }
 0xed3   :  { %18900 = vmatmul.mubr.f32.vlgmr.msra.gmra.mrb[20].mxu0 %v23118_v9  ;;  %v11319_v9 = vsub.f32 %v23267_v41, %v11318_v2 }
 0xed4   :  { %18948 = vmatprep.mubr.f32.mxu0 %v10774_v31  ;;  %v11312_v31 = vsub.f32 %v23270_v56, %v11311_v25 }
 0xed5   :  { %20111 = vmatpush3.bf16.xpose.msra.mxu0 %v23245_v13  ;;  %v11320_v1 = vand.u32 4294901760, %v11319_v9  ;;  %v20140_v9 = vpack.c.bf16 %v23267_v41, %v23270_v56 }
 0xed6   :  { %20113 = vmatprep.subr.bf16.mxu0 %v20112_v53  ;;  %v11313_v52 = vand.u32 4294901760, %v11312_v31 }
 0xed7   :  { %18935 = vmatmul.mubr.f32.vlgmr.msra.gmra.mrb[16].mxu1 %v23177_v44 }
 0xed8   :  { %20107 = vmatpush3.bf16.msra.mxu1 %v23173_v6  ;;  %18941 = vmatprep.mubr.f32.mxu1 %v23160_v51  ;;  %v11300_v6 = vand.u32 4294901760, %v11299_v61  ;;  %v11292_v51 = vand.u32 4294901760, %v11291_v24  ;;  %v20136_v22 = vpack.c.bf16 %v11320_v1, %v11313_v52 }
 0xed9   :  { %20133 = vmatprep.subr.bf16.mxu1 %v20132_v58 }
 0xeda   :  { %v11301_v50 = vsub.f32 %v11299_v61, %v11300_v6 }
 0xedc   :  { %18949 = vmatmul.mubr.f32.vlgmr.msra.gmra.mrb[22].mxu0 %v10784_v33 }
 0xedd   :  { %20115 = vmatpush3.bf16.xpose.msra.mxu0 %v20112_v53  ;;  %18955 = vmatprep.mubr.f32.mxu0 %v23217_v55  ;;  %v11302_v53 = vand.u32 4294901760, %v11301_v50 }
 0xede   :  { %20117 = vmatprep.subr.bf16.mxu0 %v20116_v8 }
 0xedf   :  { %18942 = vmatmul.mubr.f32.vlgmr.msra.gmra.mrb[16].mxu1 %v23177_v44  ;;  %v20124_v44 = vpack.c.bf16 %v10800_v60, %v10793_v0 }
 0xee0   :  { %18990 = vmatprep.mubr.f32.mxu1 %v11292_v51 }
 0xee1   :  { %20135 = vmatpush3.bf16.xpose.msra.mxu1 %v20132_v58 }
 0xee2   :  { %20137 = vmatprep.subr.bf16.mxu1 %v20136_v22 }
 0xee4   :  { %18956 = vmatmul.mubr.f32.vlgmr.msra.gmra.mrb[22].mxu0 %v23241_v46 }
 0xee5   :  { %20119 = vmatpush3.bf16.xpose.msra.mxu0 %v20116_v8  ;;  %18962 = vmatprep.mubr.f32.mxu0 %v23228_v42  ;;  %v11725_v42 = vpop.permute.xlu1 %11724 }
 0xee6   :  { %20121 = vmatprep.subr.bf16.mxu0 %v23245_v13  ;;  %v11739_v36 = vmul.f32 %v22301_v23, %v11725_v42 }
 0xee8   :  { %18991 = vmatmul.mubr.f32.vlgmr.msra.gmra.mrb[18].mxu1 %v11302_v53 }
 0xee9   :  { %20139 = vmatpush3.bf16.xpose.msra.mxu1 %v20136_v22  ;;  %18997 = vmatprep.mubr.f32.mxu1 %v23254_v45  ;;  %v10677_v60 = vpop.permute.xlu1 %10676 }
 0xeea   :  { %20141 = vmatprep.subr.bf16.mxu1 %v20140_v9 }
 0xeec   :  { %18963 = vmatmul.mubr.f32.vlgmr.msra.gmra.mrb[22].mxu0 %v23257_v62 }
 0xeed   :  { %20123 = vmatpush3.bf16.xpose.msra.mxu0 %v23245_v13  ;;  %18969 = vmatprep.mubr.f32.mxu0 %v10772_v15  ;;  %v11749_v0 = vpop.permute.xlu1 %11748 }
 0xeee   :  { %20125 = vmatprep.subr.bf16.mxu0 %v20124_v44  ;;  %v11763_v5 = vmul.f32 %v22306_v27, %v11749_v0 }
 0xef0   :  { %18998 = vmatmul.mubr.f32.vlgmr.msra.gmra.mrb[18].mxu1 %v23283_v34 }
 0xef1   :  { %20143 = vmatpush3.bf16.xpose.msra.mxu1 %v20140_v9  ;;  %19004 = vmatprep.mubr.f32.mxu1 %v23274_v57  ;;  %v11753_v15 = vpop.permute.xlu1 %11752  ;;  %v11729_v57 = vpop.permute.xlu0 %11728 }
 0xef2   :  { %20145 = vmatprep.subr.bf16.mxu1 %v20132_v58  ;;  %v11764_v11 = vmul.f32 %v22256_v40, %v11753_v15 }
 0xef4   :  { %18970 = vmatmul.mubr.f32.vlgmr.msra.gmra.mrb[22].mxu0 %v10782_v49 }
 0xef5   :  { %20127 = vmatpush3.bf16.xpose.msra.mxu0 %v20124_v44  ;;  %18976 = vmatprep.mubr.f32.mxu0 %v23217_v55  ;;  %v10669_v25 = vpop.permute.xlu0 %10668  ;;  %v10684_v44 = vmul.f32 %v25330_v48, %v10673_v7 }
 0xef6   :  { %20129 = vmatprep.subr.bf16.mxu0 %v23245_v13 }
 0xef8   :  { %19005 = vmatmul.mubr.f32.vlgmr.msra.gmra.mrb[18].mxu1 %v11299_v61 }
 0xef9   :  { %20147 = vmatpush3.bf16.xpose.msra.mxu1 %v20132_v58  ;;  %19011 = vmatprep.mubr.f32.mxu1 %v11290_v20  ;;  %v10681_v20 = vpop.permute.xlu0 %10680 }
 0xefa   :  { %20149 = vmatprep.subr.bf16.mxu1 %v20148_v32 }
 0xefc   :  { %18977 = vmatmul.mubr.f32.vlgmr.msra.gmra.mrb[22].mxu0 %v23241_v46 }
 0xefd   :  { %20131 = vmatpush3.bf16.xpose.msra.mxu0 %v23245_v13  ;;  %18983 = vmatprep.mubr.f32.mxu0 %v23217_v55  ;;  %v23323_v55 = vpop.permute.xlu1 %11732  ;;  %v11757_v24 = vpop.permute.xlu0 %11756 }
 0xf00   :  { %19012 = vmatmul.mubr.f32.vlgmr.msra.gmra.mrb[18].mxu1 %v11300_v6 }
 0xf01   :  { %20151 = vmatpush3.bf16.xpose.msra.mxu1 %v20148_v32  ;;  %19018 = vmatprep.mubr.f32.mxu1 %v23254_v45  ;;  %v11737_v13 = vpop.permute.xlu1 %11736  ;;  %v11801_v8 = vpop.permute.xlu0 %11800  ;;  %v10683_v32 = vmul.f32 %v25331_v63, %v10669_v25 }
 0xf02   :  { %20153 = vmatprep.subr.bf16.mxu1 %v20132_v58 }
 0xf04   :  { %18984 = vmatmul.mubr.f32.vlgmr.msra.gmra.mrb[22].mxu0 %v23241_v46 }
 0xf05   :  { %v11777_v62 = vpop.permute.xlu1 %11776  ;;  %v11773_v6 = vpop.permute.xlu0 %11772 }
 0xf06   :  { %v11788_v7 = vmul.f32 %v22260_v30, %v11777_v62  ;;  %v11787_v37 = vmul.f32 %v22309_v16, %v11773_v6 }
 0xf08   :  { %19019 = vmatmul.mubr.f32.vlgmr.msra.gmra.mrb[18].mxu1 %v23283_v34 }
 0xf09   :  { %20155 = vmatpush3.bf16.xpose.msra.mxu1 %v20132_v58  ;;  %19025 = vmatprep.mubr.f32.mxu1 %v23254_v45  ;;  %v11797_v41 = vpop.permute.xlu1 %11796  ;;  %v11785_v52 = vpop.permute.xlu0 %11784 }
 0xf0d   :  { %v23325_v56 = vpop.permute.xlu1 %11760  ;;  %v23343_v50 = vpop.permute.xlu0 %11828 }
 0xf0e   :  { %v11837_v59 = vmul.f32 %v22318_v28, %v23343_v50 }
 0xf10   :  { %19026 = vmatmul.mubr.f32.vlgmr.msra.gmra.mrb[18].mxu1 %v23283_v34 }
 0xf11   :  { %v23327_v46 = vpop.permute.xlu1 %11780  ;;  %v11845_v9 = vpop.permute.xlu0 %11844 }
 0xf15   :  { %v11821_v2 = vpop.permute.xlu1 %11820  ;;  %v23353_v17 = vpop.permute.xlu0 %11856 }
 0xf19   :  { %v11825_v34 = vpop.permute.xlu1 %11824  ;;  %v11873_v0 = vpop.permute.xlu0 %11872 }
 0xf1a   :  { %v11836_v15 = vmul.f32 %v22268_v54, %v11825_v34 }
 0xf1d   :  { %v23337_v33 = vpop.permute.xlu1 %11804 }
 0xf21   :  { %v23339_v31 = vpop.permute.xlu1 %11808 }
 0xf25   :  { %v11849_v1 = vpop.permute.xlu1 %11848 }
 0xf29   :  { %v11869_v51 = vpop.permute.xlu1 %11868 }
 0xf2d   :  { %v23341_v22 = vpop.permute.xlu1 %11832 }
 0xf31   :  { %v23345_v53 = vpop.permute.xlu1 %11852 }
 0xf32   :  { %v11861_v19 = vmul.f32 %v22321_v14, %v23345_v53 }
 0xfa6   :  { %v23329_v49 = vpop.f32.mrb[20].mxu0 }
 0xfa7   :  { %25392 = vst [vmem:[#allocation27_spill] sm:$0xff] %v23329_v49  ;;  %v23331_v45 = vpop.f32.mrb[21].mxu0  ;;  %v11893_v49 = vpop.permute.xlu1 %11892 }
 0xfa8   :  { %25393 = vst [vmem:[#allocation32_spill] sm:$0xff] %v23331_v45 }
 0xfb2   :  { %v23333_v58 = vpop.f32.mrb[16].mxu1 }
 0xfb3   :  { %25394 = vst [vmem:[#allocation31_spill] sm:$0xff] %v23333_v58  ;;  %v23335_v61 = vpop.f32.mrb[17].mxu1 }
 0xfb4   :  { %25395 = vst [vmem:[#allocation35_spill] sm:$0xff] %v23335_v61  ;;  %v11740_v61 = vmul.f32 %v22251_v21, %v11729_v57 }
 0xfd7   :  { %v18985_v58 = vpop.f32.mrb[22].mxu0 }
 0xfd8   :  { %v20524_v45 = vadd.f32 %v18985_v58, %v10684_v44  ;;  %v11195_v18 = vpop.f32.mrb[23].mxu0  ;;  %v11812_v58 = vmul.f32 %v22263_v26, %v11801_v8  ;;  %v11897_v44 = vpop.permute.xlu1 %11896 }
 0xfd9   :  { %v20525_v4 = vadd.f32 %v11195_v18, %v10683_v32  ;;  %v11811_v18 = vmul.f32 %v22314_v12, %v11797_v41  ;;  %v11884_v41 = vmul.f32 %v22275_v38, %v11873_v0 }
 0xfda   :  { %v11744_v3 = vadd.f32 %v20524_v45, %v11740_v61  ;;  %v11835_v61 = vmul.f32 %v22318_v28, %v11821_v2 }
 0xfdb   :  { %v11743_v39 = vadd.f32 %v20525_v4, %v11739_v36  ;;  %v10686_v36 = vmul.f32 %v25330_v48, %v10681_v20  ;;  %v11741_v20 = vmul.f32 %v22301_v23, %v23323_v55 }
 0xfdc   :  { %v11768_v25 = vadd.f32 %v11764_v11, %v11744_v3  ;;  %v11860_v3 = vmul.f32 %v22272_v29, %v11849_v1  ;;  %v11883_v1 = vmul.f32 %v22329_v47, %v11869_v51  ;;  %v11789_v51 = vmul.f32 %v22309_v16, %v23327_v46 }
 0xfdd   :  { %v11767_v57 = vadd.f32 %v11763_v5, %v11743_v39  ;;  %v10685_v39 = vmul.f32 %v25331_v63, %v10677_v60  ;;  %v11859_v5 = vmul.f32 %v22321_v14, %v11845_v9  ;;  %v11766_v60 = vmul.f32 %v22256_v40, %v23325_v56 }
 0xfde   :  { %v11792_v43 = vadd.f32 %v11788_v7, %v11768_v25  ;;  %v11908_v9 = vmul.f32 %v22285_v35, %v11897_v44  ;;  %v11814_v56 = vmul.f32 %v22263_v26, %v23339_v31  ;;  %v11838_v46 = vmul.f32 %v22268_v54, %v23341_v22 }
 0xfdf   :  { %v11791_v42 = vadd.f32 %v11787_v37, %v11767_v57  ;;  %v11742_v37 = vmul.f32 %v22251_v21, %v11737_v13  ;;  %v11765_v57 = vmul.f32 %v22306_v27, %v11757_v24 }
 0xfe0   :  { %v11816_v45 = vadd.f32 %v11812_v58, %v11792_v43  ;;  %v11877_v43 = vpop.permute.xlu1 %11876  ;;  %v11907_v58 = vmul.f32 %v22326_v10, %v11893_v49  ;;  %v11813_v49 = vmul.f32 %v22314_v12, %v23337_v33  ;;  %v11862_v33 = vmul.f32 %v22272_v29, %v23353_v17 }
 0xfe1   :  { %v11815_v4 = vadd.f32 %v11811_v18, %v11791_v42 }
 0xfe2   :  { %v11840_v11 = vadd.f32 %v11836_v15, %v11816_v45  ;;  %v11790_v15 = vmul.f32 %v22260_v30, %v11785_v52 }
 0xfe3   :  { %v11839_v62 = vadd.f32 %v11835_v61, %v11815_v4  ;;  %v19027_v8 = vpop.f32.mrb[18].mxu1 }
 0xfe4   :  { %v20526_v34 = vadd.f32 %v19027_v8, %v10686_v36  ;;  %v11713_v6 = vpop.f32.mrb[19].mxu1  ;;  %v11864_v2 = vadd.f32 %v11860_v3, %v11840_v11  ;;  %v11901_v44 = vpop.permute.xlu1 %11900 }
 0xfe5   :  { %v20527_v32 = vadd.f32 %v11713_v6, %v10685_v39  ;;  %v11863_v7 = vadd.f32 %v11859_v5, %v11839_v62  ;;  %v11881_v39 = vpop.permute.xlu0 %11880  ;;  %v11909_v50 = vmul.f32 %v22326_v10, %v11901_v44 }
 0xfe6   :  { %v11746_v25 = vadd.f32 %v20526_v34, %v11742_v37  ;;  %v11888_v13 = vadd.f32 %v11884_v41, %v11864_v2  ;;  %v11886_v22 = vmul.f32 %v22275_v38, %v11881_v39  ;;  %v11885_v34 = vmul.f32 %v22329_v47, %v11877_v43  ;;  %v25401_v39 = vld [vmem:[#allocation49_spill] sm:$0xff] }
 0xfe7   :  { %v11745_v18 = vadd.f32 %v20527_v32, %v11741_v20  ;;  %v11887_v42 = vadd.f32 %v11883_v1, %v11863_v7 }
 0xfe8   :  { %v11770_v55 = vadd.f32 %v11766_v60, %v11746_v25  ;;  %v11912_v45 = vadd.f32 %v11908_v9, %v11888_v13  ;;  %v11905_v37 = vpop.permute.xlu1 %11904 }
 0xfe9   :  { %v11769_v0 = vadd.f32 %v11765_v57, %v11745_v18  ;;  %v11911_v61 = vadd.f32 %v11907_v58, %v11887_v42  ;;  %v11910_v20 = vmul.f32 %v22285_v35, %v11905_v37 }
 0xfea   :  { %v11794_v4 = vadd.f32 %v11790_v15, %v11770_v55  ;;  %v11916_v24 = vsel %vm3014_vm13, %v11912_v45, -10000.0  ;;  %vm13259_vm13 = vcmask 195584  }
 0xfeb   :  { %v11793_v36 = vadd.f32 %v11789_v51, %v11769_v0  ;;  %v11922_v52 = vsel %vm4270_vm14, %v11916_v24, -inf  ;;  %v11915_v3 = vsel %vm3013_vm10, %v11911_v61, -10000.0 }
 0xfec   :  { %v11818_v11 = vadd.f32 %v11814_v56, %v11794_v4  ;;  %11923 = vmax.xlane.f32.xlu1 %v11922_v52  ;;  %v11919_v31 = vsel %vm4270_vm14, %v11915_v3, -inf }
 0xfed   :  { %v11817_v5 = vadd.f32 %v11813_v49, %v11793_v36  ;;  %11920 = vmax.xlane.f32.xlu0 %v11919_v31  ;;  %v25399_v31 = vld [vmem:[#allocation47_spill] sm:$0xff] }
 0xfee   :  { %v11842_v62 = vadd.f32 %v11838_v46, %v11818_v11  ;;  %v25398_v11 = vld [vmem:[#allocation46_spill] sm:$0xff] }
 0xfef   :  { %v11841_v8 = vadd.f32 %v11837_v59, %v11817_v5  ;;  %v25400_v59 = vld [vmem:[#allocation48_spill] sm:$0xff] }
 0xff0   :  { %v11866_v41 = vadd.f32 %v11862_v33, %v11842_v62  ;;  %v25402_v5 = vld [vmem:[#allocation40_spill] sm:$0xff] }
 0xff1   :  { %v11865_v6 = vadd.f32 %v11861_v19, %v11841_v8  ;;  %v6891_v33 = vmul.f32 %v25331_v63, %v25402_v5  ;;  %v25403_v19 = vld [vmem:[#allocation28_spill] sm:$0xff]  ;;  %v7939_v37 = vmul.f32 %v22301_v23, %v25402_v5 }
 0xff2   :  { %v11890_v2 = vadd.f32 %v11886_v22, %v11866_v41  ;;  %v9427_v8 = vmul.f32 %v25331_v63, %v25403_v19 }
 0xff3   :  { %v11889_v1 = vadd.f32 %v11885_v34, %v11865_v6  ;;  %v6895_v62 = vsel %vm4270_vm14, %v6891_v33, 0.0  ;;  %v7943_v41 = vsel %vm4270_vm14, %v7939_v37, 0.0  ;;  %v25404_v34 = vld [vmem:[#allocation29_spill] sm:$0xff] }
 0xff4   :  { %v11914_v17 = vadd.f32 %v11910_v20, %v11890_v2  ;;  %v9431_v22 = vsel %vm4270_vm14, %v9427_v8, 0.0  ;;  %v9428_v6 = vmul.f32 %v25330_v48, %v25404_v34  ;;  %v25405_v2 = vld [vmem:[#allocation42_spill] sm:$0xff] }
 0xff5   :  { %v11913_v32 = vadd.f32 %v11909_v50, %v11889_v1  ;;  %v6892_v50 = vmul.f32 %v25330_v48, %v25405_v2 }
 0xff6   :  { %v11918_v25 = vsel %vm3016_vm11, %v11914_v17, -10000.0  ;;  %v9434_v20 = vsel %vm4270_vm14, %v9428_v6, 0.0 }
 0xff7   :  { %v11917_v60 = vsel %vm3015_vm12, %v11913_v32, -10000.0  ;;  %v11928_v43 = vsel %vm4270_vm14, %v11918_v25, -inf  ;;  %v6898_v1 = vsel %vm4270_vm14, %v6892_v50, 0.0  ;;  %v7940_v32 = vmul.f32 %v22251_v21, %v25405_v2 }
 0xff8   :  { %v11925_v53 = vsel %vm4270_vm14, %v11917_v60, -inf  ;;  %v7964_v50 = vmul.f32 %v22256_v40, %v25405_v2 }
 0xff9   :  { %11926 = vmax.xlane.f32.xlu0 %v11925_v53  ;;  %v7946_v17 = vsel %vm4270_vm14, %v7940_v32, 0.0 }
 0xffd   :  { %11929 = vmax.xlane.f32.xlu0 %v11928_v43 }
0x1079   :  { %v11924_v13 = vpop.xlane.xlu1 %11923 }
0x107a   :  { %v11932_v57 = vsub.f32 %v11916_v24, %v11924_v13  ;;  %v11921_v58 = vpop.xlane.xlu0 %11920 }
0x107b   :  { %v11931_v18 = vsub.f32 %v11915_v3, %v11921_v58 }
0x107c   :  { %v11937_v42 = vmul.f32 1.442695, %v11932_v57 }
0x107d   :  { %v11935_v15 = vmul.f32 1.442695, %v11931_v18 }
0x107e   :  { %21150 = vpow2.f32 %v11937_v42 }
0x107f   :  { %21152 = vpow2.f32 %v11935_v15 }
0x1086   :  { %v11927_v55 = vpop.xlane.xlu0 %11926 }
0x1087   :  { %v11933_v45 = vsub.f32 %v11917_v60, %v11927_v55 }
0x1088   :  { %v21151_v51 = vpop.eup %21150 }
0x1089   :  { %v21153_v0 = vpop.eup %21152  ;;  %v11939_v61 = vmul.f32 1.442695, %v11933_v45  ;;  %v11946_v56 = vsel %vm4270_vm14, %v21151_v51, 0.0  ;;  %v7963_v45 = vmul.f32 %v22306_v27, %v25402_v5 }
0x108a   :  { %v11930_v44 = vpop.xlane.xlu0 %11929  ;;  %11947 = vadd.xlane.f32.xlu1 %v11946_v56  ;;  %v11943_v4 = vsel %vm4270_vm14, %v21153_v0, 0.0 }
0x108b   :  { %21154 = vpow2.f32 %v11939_v61  ;;  %v11934_v49 = vsub.f32 %v11918_v25, %v11930_v44  ;;  %11944 = vadd.xlane.f32.xlu0 %v11943_v4  ;;  %v10475_v44 = vmul.f32 %v22301_v23, %v25403_v19 }
0x108d   :  { %v11941_v24 = vmul.f32 1.442695, %v11934_v49 }
0x108f   :  { %21156 = vpow2.f32 %v11941_v24 }
0x1095   :  { %v23408_v36 = vpop.eup %21154 }
0x1096   :  { %v11949_v52 = vsel %vm4270_vm14, %v23408_v36, 0.0 }
0x1097   :  { %11950 = vadd.xlane.f32.xlu0 %v11949_v52  ;;  %v25406_v52 = vld [vmem:[#allocation57_spill] sm:$0xff] }
0x1099   :  { %v23412_v3 = vpop.eup %21156 }
0x109a   :  { %v11952_v46 = vsel %vm4270_vm14, %v23412_v3, 0.0 }
0x109b   :  { %11953 = vadd.xlane.f32.xlu1 %v11952_v46  ;;  %v6893_v46 = vmul.f32 %v25331_v63, %v25406_v52 }
0x109d   :  { %v6901_v6 = vsel %vm4270_vm14, %v6893_v46, 0.0 }
0x10ac   :  { %11985 = vrot.lane.b32.xlu1 %v25398_v11, %s21456_s16 }
0x10ad   :  { %11983 = vrot.lane.b32.xlu0 %v25399_v31, %s21456_s16  ;;  %v7967_v31 = vsel %vm4270_vm14, %v7963_v45, 0.0 }
0x10b0   :  { %12497 = vrot.lane.b32.xlu1 %v25400_v59, %s21456_s16 }
0x10b4   :  { %12499 = vrot.lane.b32.xlu1 %v25401_v39, %s21456_s16 }
0x10cc   :  { %6896 = vadd.xlane.f32.xlu0 %v6895_v62  ;;  %v10479_v62 = vsel %vm4270_vm14, %v10475_v44, 0.0 }
0x10d0   :  { %9432 = vadd.xlane.f32.xlu0 %v9431_v22 }
0x10d4   :  { %7944 = vadd.xlane.f32.xlu0 %v7943_v41 }
0x10d8   :  { %9435 = vadd.xlane.f32.xlu0 %v9434_v20  ;;  %6899 = vadd.xlane.f32.xlu1 %v6898_v1 }
0x10dc   :  { %7947 = vadd.xlane.f32.xlu0 %v7946_v17 }
0x1117   :  { %v11948_v7 = vpop.xlane.xlu1 %11947 }
0x1118   :  { %21158 = vrcp.f32 %v11948_v7  ;;  %v11945_v60 = vpop.xlane.xlu0 %11944 }
0x1119   :  { %21160 = vrcp.f32 %v11945_v60 }
0x1122   :  { %v21159_v53 = vpop.eup %21158 }
0x1123   :  { %v21161_v9 = vpop.eup %21160  ;;  %v23438_v25 = vmul.f32 %v21159_v53, %v21151_v51 }
0x1124   :  { %v23440_v43 = vmul.f32 %v21161_v9, %v21153_v0  ;;  %v11951_v13 = vpop.xlane.xlu0 %11950  ;;  %v10476_v9 = vmul.f32 %v22251_v21, %v25404_v34 }
0x1125   :  { %21162 = vrcp.f32 %v11951_v13  ;;  %v11964_v57 = vmul.f32 %v25330_v48, %v23438_v25  ;;  %v11993_v58 = vsel %vm4270_vm14, %v23438_v25, 0 }
0x1126   :  { %v11963_v18 = vmul.f32 %v25331_v63, %v23440_v43  ;;  %v11990_v42 = vsel %vm4270_vm14, %v23440_v43, 0  ;;  %v23450_v15 = vand.u32 4294901760, %v11993_v58  ;;  %v13011_v59 = vmul.f32 %v22301_v23, %v23440_v43 }
0x1127   :  { %v11970_v55 = vsel %vm4270_vm14, %v11964_v57, 0.0  ;;  %v23455_v51 = vand.u32 4294901760, %v11990_v42 }
0x1128   :  { %v11984_v0 = vpop.permute.xlu0 %11983  ;;  %11971 = vadd.xlane.f32.xlu0 %v11970_v55  ;;  %v11954_v61 = vpop.xlane.xlu1 %11953  ;;  %v11967_v56 = vsel %vm4270_vm14, %v11963_v18, 0.0  ;;  %v23461_v4 = vsub.f32 %v11993_v58, %v23450_v15  ;;  %v13015_v17 = vsel %vm4270_vm14, %v13011_v59, 0.0  ;;  %v10482_v59 = vsel %vm4270_vm14, %v10476_v9, 0.0 }
0x1129   :  { %v11996_v49 = vand.u32 4294901760, %v11984_v0  ;;  %21164 = vrcp.f32 %v11954_v61  ;;  %11968 = vadd.xlane.f32.xlu1 %v11967_v56  ;;  %v23464_v24 = vsub.f32 %v11990_v42, %v23455_v51  ;;  %v10499_v42 = vmul.f32 %v22306_v27, %v25403_v19  ;;  %v25407_v61 = vld [vmem:[#allocation56_spill] sm:$0xff] }
0x112a   :  { %v12074_v8 = vand.u32 4294901760, %v23461_v4  ;;  %v6894_v56 = vmul.f32 %v25330_v48, %v25407_v61 }
0x112b   :  { %v23468_v11 = vsub.f32 %v11984_v0, %v11996_v49  ;;  %v12064_v39 = vand.u32 4294901760, %v23464_v24 }
0x112c   :  { %7968 = vadd.xlane.f32.xlu0 %v7967_v31  ;;  %v11986_v33 = vpop.permute.xlu1 %11985  ;;  %v12075_v13 = vsub.f32 %v23461_v4, %v12074_v8 }
0x112d   :  { %v12085_v22 = vand.u32 4294901760, %v23468_v11  ;;  %v11999_v37 = vand.u32 4294901760, %v11986_v33  ;;  %10480 = vadd.xlane.f32.xlu1 %v10479_v62  ;;  %v12065_v41 = vsub.f32 %v23464_v24, %v12064_v39 }
0x112f   :  { %v21163_v20 = vpop.eup %21162  ;;  %v23483_v1 = vpack.c.bf16 %v11999_v37, %v11996_v49  ;;  %v23485_v32 = vsub.f32 %v11986_v33, %v11999_v37  ;;  %v12066_v7 = vand.u32 4294901760, %v12065_v41  ;;  %v12086_v57 = vsub.f32 %v23468_v11, %v12085_v22 }
0x1130   :  { %v23489_v60 = vmul.f32 %v21163_v20, %v23408_v36  ;;  %13016 = vadd.xlane.f32.xlu0 %v13015_v17  ;;  %v12498_v53 = vpop.permute.xlu1 %12497  ;;  %v7970_v36 = vsel %vm4270_vm14, %v7964_v50, 0.0  ;;  %v12076_v33 = vand.u32 4294901760, %v12075_v13  ;;  %v10503_v20 = vsel %vm4270_vm14, %v10499_v42, 0.0 }
0x1131   :  { %v12092_v58 = vand.u32 4294901760, %v23485_v32  ;;  %v12510_v18 = vand.u32 4294901760, %v12498_v53  ;;  %19032 = vmatprep.mubr.f32.mxu0 %v12066_v7  ;;  %6902 = vadd.xlane.f32.xlu1 %v6901_v6  ;;  %v12087_v62 = vand.u32 4294901760, %v12086_v57  ;;  %v6904_v57 = vsel %vm4270_vm14, %v6894_v56, 0.0 }
0x1132   :  { %20157 = vmatprep.subr.bf16.mxu0 %v23483_v1  ;;  %v12504_v55 = vsel %vm4270_vm14, %v23489_v60, 0 }
0x1133   :  { %v21165_v45 = vpop.eup %21164  ;;  %v23506_v0 = vsub.f32 %v12498_v53, %v12510_v18  ;;  %20159 = vmatpush3.bf16.msra.mxu0 %v23483_v1  ;;  %v12093_v44 = vsub.f32 %v23485_v32, %v12092_v58  ;;  %v23514_v49 = vand.u32 4294901760, %v12504_v55 }
0x1134   :  { %v23517_v46 = vmul.f32 %v21165_v45, %v23412_v3  ;;  %7971 = vadd.xlane.f32.xlu0 %v7970_v36  ;;  %v12500_v31 = vpop.permute.xlu1 %12499  ;;  %v7941_v3 = vmul.f32 %v22301_v23, %v25406_v52  ;;  %v25408_v36 = vld [vmem:[#allocation33_spill] sm:$0xff] }
0x1135   :  { %v12599_v37 = vand.u32 4294901760, %v23506_v0  ;;  %v12513_v41 = vand.u32 4294901760, %v12500_v31  ;;  %10483 = vadd.xlane.f32.xlu1 %v10482_v59  ;;  %v12094_v6 = vand.u32 4294901760, %v12093_v44  ;;  %v23522_v50 = vsub.f32 %v12504_v55, %v23514_v49 }
0x1136   :  { %19033 = vmatmul.mubr.f32.vlgmr.msra.gmra.mrb[24].mxu0 %v12076_v33  ;;  %v12507_v17 = vsel %vm4270_vm14, %v23517_v46, 0  ;;  %v9429_v42 = vmul.f32 %v25331_v63, %v25408_v36  ;;  %v7949_v59 = vsel %vm4270_vm14, %v7941_v3, 0.0 }
0x1137   :  { %v23529_v7 = vpack.c.bf16 %v12513_v41, %v12510_v18  ;;  %v23531_v53 = vsub.f32 %v12500_v31, %v12513_v41  ;;  %19039 = vmatprep.mubr.f32.mxu0 %v23455_v51  ;;  %v20160_v9 = vpack.c.bf16 %v12094_v6, %v12087_v62  ;;  %v25286_v13 = vand.u32 4294901760, %v23522_v50  ;;  %v25409_v62 = vld [vmem:[#allocation34_spill] sm:$0xff] }
0x1138   :  { %10504 = vadd.xlane.f32.xlu0 %v10503_v20  ;;  %v23538_v55 = vand.u32 4294901760, %v12507_v17  ;;  %v20164_v18 = vpack.c.bf16 %v23485_v32, %v23468_v11  ;;  %v12600_v56 = vsub.f32 %v23506_v0, %v12599_v37  ;;  %v9430_v41 = vmul.f32 %v25330_v48, %v25409_v62 }
0x1139   :  { %v12606_v45 = vand.u32 4294901760, %v23531_v53  ;;  %6905 = vadd.xlane.f32.xlu1 %v6904_v57  ;;  %20161 = vmatprep.subr.bf16.mxu0 %v20160_v9  ;;  %v12579_v44 = vsub.f32 %v23522_v50, %v25286_v13  ;;  %v9437_v20 = vsel %vm4270_vm14, %v9429_v42, 0.0  ;;  %v7942_v13 = vmul.f32 %v22251_v21, %v25407_v61 }
0x113a   :  { %20181 = vmatprep.subr.bf16.mxu1 %v23529_v7  ;;  %20163 = vmatpush3.bf16.msra.mxu0 %v20160_v9  ;;  %v23551_v31 = vsub.f32 %v12507_v17, %v23538_v55  ;;  %v13012_v17 = vmul.f32 %v22251_v21, %v23438_v25  ;;  %v12601_v57 = vand.u32 4294901760, %v12600_v56  ;;  %v9440_v42 = vsel %vm4270_vm14, %v9430_v41, 0.0 }
0x113b   :  { %20183 = vmatpush3.bf16.msra.mxu1 %v23529_v7  ;;  %20165 = vmatprep.subr.bf16.mxu0 %v20164_v18  ;;  %v12580_v33 = vand.u32 4294901760, %v12579_v44  ;;  %v12607_v6 = vsub.f32 %v23531_v53, %v12606_v45  ;;  %v7952_v41 = vsel %vm4270_vm14, %v7942_v13, 0.0  ;;  %v13035_v11 = vmul.f32 %v22306_v27, %v23440_v43 }
0x113c   :  { %7950 = vadd.xlane.f32.xlu0 %v7949_v59  ;;  %v12588_v9 = vand.u32 4294901760, %v23551_v31  ;;  %v13018_v56 = vsel %vm4270_vm14, %v13012_v17, 0.0  ;;  %v7988_v32 = vmul.f32 %v22260_v30, %v25405_v2 }
0x113d   :  { %19074 = vmatprep.mubr.f32.mxu1 %v12580_v33  ;;  %9438 = vadd.xlane.f32.xlu1 %v9437_v20  ;;  %v12608_v3 = vand.u32 4294901760, %v12607_v6  ;;  %v7987_v6 = vmul.f32 %v22309_v16, %v25402_v5  ;;  %v10477_v20 = vmul.f32 %v22301_v23, %v25408_v36 }
0x113e   :  { %19040 = vmatmul.mubr.f32.vlgmr.msra.gmra.mrb[24].mxu0 %v23450_v15  ;;  %v12589_v44 = vsub.f32 %v23551_v31, %v12588_v9 }
0x113f   :  { %20167 = vmatpush3.bf16.msra.mxu0 %v20164_v18  ;;  %19046 = vmatprep.mubr.f32.mxu0 %v23464_v24  ;;  %v20184_v59 = vpack.c.bf16 %v12608_v3, %v12601_v57  ;;  %v20188_v18 = vpack.c.bf16 %v23531_v53, %v23506_v0  ;;  %v7991_v17 = vsel %vm4270_vm14, %v7987_v6, 0.0  ;;  %v10500_v57 = vmul.f32 %v22256_v40, %v25404_v34 }
0x1140   :  { %20169 = vmatprep.subr.bf16.mxu0 %v23483_v1  ;;  %9441 = vadd.xlane.f32.xlu0 %v9440_v42  ;;  %v12590_v33 = vand.u32 4294901760, %v12589_v44  ;;  %v20172_v3 = vpack.c.bf16 %v12092_v58, %v12085_v22  ;;  %v10485_v13 = vsel %vm4270_vm14, %v10477_v20, 0.0  ;;  %v7965_v44 = vmul.f32 %v22306_v27, %v25406_v52 }
0x1141   :  { %13019 = vadd.xlane.f32.xlu1 %v13018_v56  ;;  %20185 = vmatprep.subr.bf16.mxu1 %v20184_v59  ;;  %v10506_v42 = vsel %vm4270_vm14, %v10500_v57, 0.0  ;;  %v13039_v22 = vsel %vm4270_vm14, %v13035_v11, 0.0  ;;  %v7994_v56 = vsel %vm4270_vm14, %v7988_v32, 0.0  ;;  %v13036_v0 = vmul.f32 %v22256_v40, %v23438_v25 }
0x1142   :  { %19075 = vmatmul.mubr.f32.vlgmr.msra.gmra.mrb[20].mxu1 %v12590_v33  ;;  %v7973_v24 = vsel %vm4270_vm14, %v7965_v44, 0.0  ;;  %v10523_v33 = vmul.f32 %v22309_v16, %v25403_v19 }
0x1143   :  { %20187 = vmatpush3.bf16.msra.mxu1 %v20184_v59  ;;  %19081 = vmatprep.mubr.f32.mxu1 %v23514_v49  ;;  %v7966_v59 = vmul.f32 %v22256_v40, %v25407_v61  ;;  %v13042_v53 = vsel %vm4270_vm14, %v13036_v0, 0.0  ;;  %v8037_v0 = vmul.f32 %v22318_v28, %v25406_v52 }
0x1144   :  { %20189 = vmatprep.subr.bf16.mxu1 %v20188_v18  ;;  %7953 = vadd.xlane.f32.xlu0 %v7952_v41  ;;  %v10527_v41 = vsel %vm4270_vm14, %v10523_v33, 0.0  ;;  %v8035_v33 = vmul.f32 %v22318_v28, %v25402_v5 }
0x1145   :  { %7992 = vadd.xlane.f32.xlu1 %v7991_v17  ;;  %v7976_v6 = vsel %vm4270_vm14, %v7966_v59, 0.0  ;;  %v10524_v17 = vmul.f32 %v22260_v30, %v25404_v34 }
0x1146   :  { %19047 = vmatmul.mubr.f32.vlgmr.msra.gmra.mrb[24].mxu0 %v23461_v4  ;;  %v20196_v4 = vpack.c.bf16 %v12606_v45, %v12599_v37  ;;  %v8011_v45 = vmul.f32 %v22314_v12, %v25402_v5 }
0x1147   :  { %20171 = vmatpush3.bf16.msra.mxu0 %v23483_v1  ;;  %19053 = vmatprep.mubr.f32.mxu0 %v12064_v39  ;;  %v10478_v39 = vmul.f32 %v22251_v21, %v25409_v62  ;;  %v10530_v57 = vsel %vm4270_vm14, %v10524_v17, 0.0  ;;  %v8038_v17 = vmul.f32 %v22268_v54, %v25407_v61 }
0x1148   :  { %20173 = vmatprep.subr.bf16.mxu0 %v20172_v3  ;;  %10486 = vadd.xlane.f32.xlu0 %v10485_v13  ;;  %v8015_v20 = vsel %vm4270_vm14, %v8011_v45, 0.0  ;;  %v10525_v13 = vmul.f32 %v22309_v16, %v25408_v36  ;;  %v10550_v45 = vmul.f32 %v22263_v26, %v25409_v62 }
0x1149   :  { %10507 = vadd.xlane.f32.xlu1 %v10506_v42  ;;  %v10488_v58 = vsel %vm4270_vm14, %v10478_v39, 0.0  ;;  %v8012_v42 = vmul.f32 %v22263_v26, %v25405_v2 }
0x114a   :  { %19082 = vmatmul.mubr.f32.vlgmr.msra.gmra.mrb[20].mxu1 %v23538_v55  ;;  %v10533_v11 = vsel %vm4270_vm14, %v10525_v13, 0.0  ;;  %v13084_v13 = vmul.f32 %v22263_v26, %v23438_v25 }
0x114b   :  { %20191 = vmatpush3.bf16.msra.mxu1 %v20188_v18  ;;  %19088 = vmatprep.mubr.f32.mxu1 %v23522_v50  ;;  %v10501_v18 = vmul.f32 %v22306_v27, %v25408_v36 }
0x114c   :  { %20193 = vmatprep.subr.bf16.mxu1 %v23529_v7  ;;  %7974 = vadd.xlane.f32.xlu0 %v7973_v24  ;;  %v8013_v24 = vmul.f32 %v22314_v12, %v25406_v52 }
0x114d   :  { %13040 = vadd.xlane.f32.xlu1 %v13039_v22  ;;  %v10509_v37 = vsel %vm4270_vm14, %v10501_v18, 0.0  ;;  %v10526_v22 = vmul.f32 %v22260_v30, %v25409_v62  ;;  %v10548_v18 = vmul.f32 %v22263_v26, %v25404_v34 }
0x114e   :  { %19054 = vmatmul.mubr.f32.vlgmr.msra.gmra.mrb[24].mxu0 %v12074_v8  ;;  %v25410_v8 = vand.u32 4294901760, %v23522_v50  ;;  %v7989_v50 = vmul.f32 %v22309_v16, %v25406_v52  ;;  %v8021_v39 = vsel %vm4270_vm14, %v8013_v24, 0.0  ;;  %v8059_v24 = vmul.f32 %v22321_v14, %v25402_v5 }
0x114f   :  { %20175 = vmatpush3.bf16.msra.mxu0 %v20172_v3  ;;  %19060 = vmatprep.mubr.f32.mxu0 %v23455_v51  ;;  %v13059_v3 = vmul.f32 %v22309_v16, %v23440_v43  ;;  %v10536_v59 = vsel %vm4270_vm14, %v10526_v22, 0.0  ;;  %v10572_v22 = vmul.f32 %v22268_v54, %v25404_v34 }
0x1150   :  { %20177 = vmatprep.subr.bf16.mxu0 %v23483_v1  ;;  %10489 = vadd.xlane.f32.xlu0 %v10488_v58  ;;  %v13060_v58 = vmul.f32 %v22260_v30, %v23438_v25 }
0x1151   :  { %7995 = vadd.xlane.f32.xlu1 %v7994_v56  ;;  %v13063_v44 = vsel %vm4270_vm14, %v13059_v3, 0.0  ;;  %v8014_v56 = vmul.f32 %v22263_v26, %v25407_v61  ;;  %v10573_v3 = vmul.f32 %v22318_v28, %v25408_v36 }
0x1152   :  { %19089 = vmatmul.mubr.f32.vlgmr.msra.gmra.mrb[20].mxu1 %v23551_v31 }
0x1153   :  { %20195 = vmatpush3.bf16.msra.mxu1 %v23529_v7  ;;  %19095 = vmatprep.mubr.f32.mxu1 %v25410_v8  ;;  %v10549_v8 = vmul.f32 %v22314_v12, %v25408_v36 }
0x1154   :  { %20197 = vmatprep.subr.bf16.mxu1 %v20196_v4  ;;  %7977 = vadd.xlane.f32.xlu0 %v7976_v6  ;;  %v8039_v6 = vsel %vm4270_vm14, %v8035_v33, 0.0  ;;  %v10597_v33 = vmul.f32 %v22321_v14, %v25408_v36 }
0x1155   :  { %10528 = vadd.xlane.f32.xlu1 %v10527_v41  ;;  %v10557_v41 = vsel %vm4270_vm14, %v10549_v8, 0.0  ;;  %v8060_v8 = vmul.f32 %v22272_v29, %v25405_v2 }
0x1156   :  { %19061 = vmatmul.mubr.f32.vlgmr.msra.gmra.mrb[24].mxu0 %v23450_v15 }
0x1157   :  { %20179 = vmatpush3.bf16.msra.mxu0 %v23483_v1  ;;  %19067 = vmatprep.mubr.f32.mxu0 %v23455_v51  ;;  %v7997_v51 = vsel %vm4270_vm14, %v7989_v50, 0.0  ;;  %v10502_v1 = vmul.f32 %v22256_v40, %v25409_v62  ;;  %v13083_v50 = vmul.f32 %v22314_v12, %v23440_v43 }
0x1158   :  { %10510 = vadd.xlane.f32.xlu0 %v10509_v37  ;;  %v10554_v37 = vsel %vm4270_vm14, %v10548_v18, 0.0  ;;  %v8085_v18 = vmul.f32 %v22329_v47, %v25406_v52 }
0x1159   :  { %13043 = vadd.xlane.f32.xlu1 %v13042_v53  ;;  %v10512_v31 = vsel %vm4270_vm14, %v10502_v1, 0.0  ;;  %v8045_v53 = vsel %vm4270_vm14, %v8037_v0, 0.0  ;;  %v8036_v1 = vmul.f32 %v22268_v54, %v25405_v2  ;;  %v10595_v0 = vmul.f32 %v22321_v14, %v25403_v19 }
0x115a   :  { %19096 = vmatmul.mubr.f32.vlgmr.msra.gmra.mrb[20].mxu1 %v12588_v9  ;;  %v7990_v9 = vmul.f32 %v22260_v30, %v25407_v61 }
0x115b   :  { %20199 = vmatpush3.bf16.msra.mxu1 %v20196_v4  ;;  %19102 = vmatprep.mubr.f32.mxu1 %v23514_v49  ;;  %v8024_v4 = vsel %vm4270_vm14, %v8014_v56, 0.0  ;;  %v13107_v56 = vmul.f32 %v22318_v28, %v23440_v43 }
0x115c   :  { %20201 = vmatprep.subr.bf16.mxu1 %v23529_v7  ;;  %7998 = vadd.xlane.f32.xlu0 %v7997_v51  ;;  %v13087_v51 = vsel %vm4270_vm14, %v13083_v50, 0.0  ;;  %v8093_v50 = vsel %vm4270_vm14, %v8085_v18, 0.0 }
0x115d   :  { %8016 = vadd.xlane.f32.xlu1 %v8015_v20  ;;  %v10560_v20 = vsel %vm4270_vm14, %v10550_v45, 0.0  ;;  %v10599_v45 = vsel %vm4270_vm14, %v10595_v0, 0.0 }
0x115e   :  { %19068 = vmatmul.mubr.f32.vlgmr.msra.gmra.mrb[24].mxu0 %v23450_v15  ;;  %v8000_v15 = vsel %vm4270_vm14, %v7990_v9, 0.0  ;;  %v10571_v9 = vmul.f32 %v22318_v28, %v25403_v19 }
0x1160   :  { %10513 = vadd.xlane.f32.xlu0 %v10512_v31  ;;  %v8042_v31 = vsel %vm4270_vm14, %v8036_v1, 0.0 }
0x1161   :  { %10531 = vadd.xlane.f32.xlu1 %v10530_v57  ;;  %v8048_v57 = vsel %vm4270_vm14, %v8038_v17, 0.0  ;;  %v13179_v17 = vmul.f32 %v22326_v10, %v23440_v43 }
0x1162   :  { %19103 = vmatmul.mubr.f32.vlgmr.msra.gmra.mrb[20].mxu1 %v23538_v55 }
0x1163   :  { %20203 = vmatpush3.bf16.msra.mxu1 %v23529_v7  ;;  %19109 = vmatprep.mubr.f32.mxu1 %v23514_v49  ;;  %v8018_v49 = vsel %vm4270_vm14, %v8012_v42, 0.0  ;;  %v10547_v7 = vmul.f32 %v22314_v12, %v25403_v19  ;;  %v8061_v42 = vmul.f32 %v22321_v14, %v25406_v52 }
0x1164   :  { %8001 = vadd.xlane.f32.xlu0 %v8000_v15  ;;  %v10575_v15 = vsel %vm4270_vm14, %v10571_v9, 0.0  ;;  %v8083_v9 = vmul.f32 %v22329_v47, %v25402_v5 }
0x1165   :  { %13064 = vadd.xlane.f32.xlu1 %v13063_v44  ;;  %v10551_v32 = vsel %vm4270_vm14, %v10547_v7, 0.0  ;;  %v10581_v44 = vsel %vm4270_vm14, %v10573_v3, 0.0  ;;  %v10574_v7 = vmul.f32 %v22268_v54, %v25409_v62  ;;  %v10621_v3 = vmul.f32 %v22329_v47, %v25408_v36 }
0x1168   :  { %10534 = vadd.xlane.f32.xlu0 %v10533_v11  ;;  %v13090_v11 = vsel %vm4270_vm14, %v13084_v13, 0.0  ;;  %v10596_v13 = vmul.f32 %v22272_v29, %v25404_v34 }
0x1169   :  { %8019 = vadd.xlane.f32.xlu1 %v8018_v49  ;;  %v8069_v49 = vsel %vm4270_vm14, %v8061_v42, 0.0  ;;  %v10629_v42 = vsel %vm4270_vm14, %v10621_v3, 0.0 }
0x116a   :  { %19110 = vmatmul.mubr.f32.vlgmr.msra.gmra.mrb[20].mxu1 %v23538_v55  ;;  %v13066_v55 = vsel %vm4270_vm14, %v13060_v58, 0.0  ;;  %v8062_v58 = vmul.f32 %v22272_v29, %v25407_v61 }
0x116c   :  { %8022 = vadd.xlane.f32.xlu0 %v8021_v39  ;;  %v8063_v39 = vsel %vm4270_vm14, %v8059_v24, 0.0  ;;  %v10602_v24 = vsel %vm4270_vm14, %v10596_v13, 0.0 }
0x116d   :  { %10552 = vadd.xlane.f32.xlu1 %v10551_v32  ;;  %v10584_v32 = vsel %vm4270_vm14, %v10574_v7, 0.0 }
0x1170   :  { %10537 = vadd.xlane.f32.xlu0 %v10536_v59  ;;  %v10578_v59 = vsel %vm4270_vm14, %v10572_v22, 0.0  ;;  %v10622_v22 = vmul.f32 %v22275_v38, %v25409_v62 }
0x1171   :  { %13067 = vadd.xlane.f32.xlu1 %v13066_v55  ;;  %v8072_v55 = vsel %vm4270_vm14, %v8062_v58, 0.0  ;;  %v8084_v58 = vmul.f32 %v22275_v38, %v25405_v2 }
0x1174   :  { %8025 = vadd.xlane.f32.xlu0 %v8024_v4  ;;  %v13111_v4 = vsel %vm4270_vm14, %v13107_v56, 0.0  ;;  %v10632_v56 = vsel %vm4270_vm14, %v10622_v22, 0.0  ;;  %v8107_v22 = vmul.f32 %v22326_v10, %v25402_v5 }
0x1175   :  { %8040 = vadd.xlane.f32.xlu1 %v8039_v6  ;;  %v10605_v6 = vsel %vm4270_vm14, %v10597_v33, 0.0  ;;  %v25411_v33 = vld [vmem:[#allocation16_spill] sm:$0xff] }
0x1176   :  { %v8111_v5 = vsel %vm4270_vm14, %v8107_v22, 0.0  ;;  %v25419_v22 = vld [vmem:[#allocation58_spill] sm:$0xff] }
0x1178   :  { %10558 = vadd.xlane.f32.xlu0 %v10557_v41  ;;  %v8066_v41 = vsel %vm4270_vm14, %v8060_v8, 0.0  ;;  %v8090_v8 = vsel %vm4270_vm14, %v8084_v58, 0.0 }
0x1179   :  { %10555 = vadd.xlane.f32.xlu1 %v10554_v37  ;;  %v6897_v37 = vpop.xlane.xlu0 %6896 }
0x117c   :  { %8046 = vadd.xlane.f32.xlu0 %v8045_v53  ;;  %v10644_v53 = vmul.f32 %v22285_v35, %v25404_v34 }
0x117d   :  { %13088 = vadd.xlane.f32.xlu1 %v13087_v51  ;;  %v13108_v51 = vmul.f32 %v22268_v54, %v23438_v25  ;;  %v9433_v1 = vpop.xlane.xlu0 %9432 }
0x1180   :  { %10561 = vadd.xlane.f32.xlu0 %v10560_v20  ;;  %v10650_v20 = vsel %vm4270_vm14, %v10644_v53, 0.0 }
0x1181   :  { %8043 = vadd.xlane.f32.xlu1 %v8042_v31  ;;  %v13114_v31 = vsel %vm4270_vm14, %v13108_v51, 0.0 }
0x1184   :  { %8049 = vadd.xlane.f32.xlu0 %v8048_v57  ;;  %v13183_v57 = vsel %vm4270_vm14, %v13179_v17, 0.0 }
0x1185   :  { %10576 = vadd.xlane.f32.xlu1 %v10575_v15  ;;  %v8087_v15 = vsel %vm4270_vm14, %v8083_v9, 0.0 }
0x1188   :  { %10582 = vadd.xlane.f32.xlu0 %v10581_v44  ;;  %v7945_v44 = vpop.xlane.xlu0 %7944 }
0x1189   :  { %13091 = vadd.xlane.f32.xlu1 %v13090_v11  ;;  %v13180_v11 = vmul.f32 %v22285_v35, %v23438_v25 }
0x118c   :  { %8070 = vadd.xlane.f32.xlu0 %v8069_v49  ;;  %v13131_v49 = vmul.f32 %v22321_v14, %v23440_v43  ;;  %v9436_v7 = vpop.xlane.xlu0 %9435 }
0x118d   :  { %8064 = vadd.xlane.f32.xlu1 %v8063_v39  ;;  %v13186_v39 = vsel %vm4270_vm14, %v13180_v11, 0.0 }
0x1190   :  { %10585 = vadd.xlane.f32.xlu0 %v10584_v32  ;;  %v13135_v32 = vsel %vm4270_vm14, %v13131_v49, 0.0  ;;  %v7948_v18 = vpop.xlane.xlu0 %7947 }
0x1191   :  { %10579 = vadd.xlane.f32.xlu1 %v10578_v59  ;;  %v23779_v59 = vld [vmem:[%s25182_s9] sm:$0xff] }
0x1194   :  { %8073 = vadd.xlane.f32.xlu0 %v8072_v55  ;;  %v8110_v55 = vmul.f32 %v22285_v35, %v25407_v61 }
0x1195   :  { %13112 = vadd.xlane.f32.xlu1 %v13111_v4  ;;  %v23786_v4 = vrot.slane %v23779_v59, %v25411_v33 }
0x1196   :  { %v8120_v53 = vsel %vm4270_vm14, %v8110_v55, 0.0 }
0x1198   :  { %10606 = vadd.xlane.f32.xlu0 %v10605_v6  ;;  %v10619_v6 = vmul.f32 %v22329_v47, %v25403_v19 }
0x1199   :  { %8067 = vadd.xlane.f32.xlu1 %v8066_v41  ;;  %v25412_v41 = vld [vmem:[#allocation17_spill] sm:$0xff] }
0x119a   :  { %v23793_v0 = vrot.slane %v23779_v59, %v25412_v41  ;;  %v10623_v17 = vsel %vm4270_vm14, %v10619_v6, 0.0 }
0x119c   :  { %8094 = vadd.xlane.f32.xlu0 %v8093_v50  ;;  %v6900_v50 = vpop.xlane.xlu1 %6899 }
0x119d   :  { %10600 = vadd.xlane.f32.xlu1 %v10599_v45  ;;  %v25413_v45 = vld [vmem:[#allocation50_spill] sm:$0xff] }
0x119e   :  { %v4315_v51 = vmul.f32 %v25331_v63, %v25413_v45  ;;  %v5371_v11 = vmul.f32 %v22301_v23, %v25413_v45 }
0x11a0   :  { %10651 = vadd.xlane.f32.xlu0 %v10650_v20  ;;  %v6907_v20 = vmul.f32 %v6897_v37, %v23786_v4  ;;  %v4319_v37 = vsel %vm4270_vm14, %v4315_v51, 0.0  ;;  %v5375_v6 = vsel %vm4270_vm14, %v5371_v11, 0.0 }
0x11a1   :  { %13115 = vadd.xlane.f32.xlu1 %v13114_v31  ;;  %v13132_v31 = vmul.f32 %v22272_v29, %v23438_v25 }
0x11a4   :  { %13184 = vadd.xlane.f32.xlu0 %v13183_v57  ;;  %v25414_v57 = vld [vmem:[#allocation18_spill] sm:$0xff] }
0x11a5   :  { %8088 = vadd.xlane.f32.xlu1 %v8087_v15  ;;  %v23806_v3 = vrot.slane %v23779_v59, %v25414_v57  ;;  %v7955_v15 = vmul.f32 %v7945_v44, %v23793_v0 }
0x11a8   :  { %10630 = vadd.xlane.f32.xlu0 %v10629_v42  ;;  %v9443_v42 = vmul.f32 %v9433_v1, %v23786_v4  ;;  %v25416_v1 = vld [vmem:[#allocation32_spill] sm:$0xff] }
0x11a9   :  { %10603 = vadd.xlane.f32.xlu1 %v10602_v24  ;;  %v25415_v24 = vld [vmem:[#allocation59_spill] sm:$0xff] }
0x11aa   :  { %v20513_v49 = vadd.f32 %v25415_v24, %v6907_v20  ;;  %v20521_v55 = vadd.f32 %v25416_v1, %v9443_v42  ;;  %v6908_v20 = vmul.f32 %v6900_v50, %v23786_v4  ;;  %v9444_v24 = vmul.f32 %v9436_v7, %v23786_v4 }
0x11ac   :  { %13187 = vadd.xlane.f32.xlu0 %v13186_v39  ;;  %v13138_v39 = vsel %vm4270_vm14, %v13132_v31, 0.0  ;;  %v7959_v44 = vadd.f32 %v20513_v49, %v7955_v15  ;;  %v10620_v31 = vmul.f32 %v22275_v38, %v25404_v34 }
0x11ad   :  { %13136 = vadd.xlane.f32.xlu1 %v13135_v32 }
0x11ae   :  { %v10626_v34 = vsel %vm4270_vm14, %v10620_v31, 0.0 }
0x11b0   :  { %10633 = vadd.xlane.f32.xlu0 %v10632_v56 }
0x11b1   :  { %8091 = vadd.xlane.f32.xlu1 %v8090_v8 }
0x11b4   :  { %8121 = vadd.xlane.f32.xlu0 %v8120_v53  ;;  %v25417_v53 = vld [vmem:[#allocation53_spill] sm:$0xff] }
0x11b5   :  { %10624 = vadd.xlane.f32.xlu1 %v10623_v17  ;;  %v23802_v9 = vpop.xlane.xlu0 %11971  ;;  %v4317_v51 = vmul.f32 %v25331_v63, %v25417_v53  ;;  %v5373_v31 = vmul.f32 %v22301_v23, %v25417_v53 }
0x11b6   :  { %v23809_v13 = vpop.xlane.xlu1 %11968 }
0x11b7   :  { %v4325_v50 = vsel %vm4270_vm14, %v4317_v51, 0.0 }
0x11b8   :  { %4320 = vadd.xlane.f32.xlu0 %v4319_v37  ;;  %v7956_v37 = vmul.f32 %v7948_v18, %v23793_v0 }
0x11b9   :  { %13139 = vadd.xlane.f32.xlu1 %v13138_v39  ;;  %v7969_v32 = vpop.xlane.xlu0 %7968  ;;  %v25418_v39 = vld [vmem:[#allocation52_spill] sm:$0xff] }
0x11ba   :  { %v7979_v58 = vmul.f32 %v7969_v32, %v23806_v3  ;;  %v10481_v56 = vpop.xlane.xlu1 %10480  ;;  %v4318_v32 = vmul.f32 %v25330_v48, %v25418_v39 }
0x11bb   :  { %v10491_v8 = vmul.f32 %v10481_v56, %v23793_v0  ;;  %v25420_v56 = vld [vmem:[#allocation61_spill] sm:$0xff] }
0x11bc   :  { %v23826_v17 = vadd.f32 %v7979_v58, %v7959_v44  ;;  %5376 = vadd.xlane.f32.xlu0 %v5375_v6  ;;  %v20512_v44 = vadd.f32 %v25419_v22, %v6908_v20  ;;  %v13155_v58 = vmul.f32 %v22329_v47, %v23440_v43  ;;  %v25421_v6 = vld [vmem:[#allocation27_spill] sm:$0xff]  ;;  %v4328_v20 = vsel %vm4270_vm14, %v4318_v32, 0.0 }
0x11bd   :  { %v10495_v15 = vadd.f32 %v20521_v55, %v10491_v8  ;;  %8112 = vadd.xlane.f32.xlu1 %v8111_v5  ;;  %v23831_v42 = vpop.xlane.xlu0 %13016  ;;  %v20520_v51 = vadd.f32 %v25421_v6, %v9444_v24  ;;  %v5381_v32 = vsel %vm4270_vm14, %v5373_v31, 0.0 }
0x11be   :  { %v6903_v11 = vpop.xlane.xlu1 %6902  ;;  %v7960_v7 = vadd.f32 %v20512_v44, %v7956_v37  ;;  %v13159_v43 = vsel %vm4270_vm14, %v13155_v58, 0.0  ;;  %v8108_v37 = vmul.f32 %v22285_v35, %v25405_v2  ;;  %v10643_v2 = vmul.f32 %v22326_v10, %v25403_v19 }
0x11bf   :  { %v6909_v49 = vmul.f32 %v6903_v11, %v23786_v4  ;;  %v13156_v19 = vmul.f32 %v22275_v38, %v23438_v25 }
0x11c0   :  { %4326 = vadd.xlane.f32.xlu0 %v4325_v50  ;;  %v8114_v58 = vsel %vm4270_vm14, %v8108_v37, 0.0  ;;  %v10647_v31 = vsel %vm4270_vm14, %v10643_v2, 0.0 }
0x11c1   :  { %v20515_v18 = vadd.f32 %v25420_v56, %v6909_v49  ;;  %10627 = vadd.xlane.f32.xlu1 %v10626_v34  ;;  %v7972_v1 = vpop.xlane.xlu0 %7971  ;;  %v5374_v34 = vmul.f32 %v22251_v21, %v25418_v39  ;;  %v13162_v25 = vsel %vm4270_vm14, %v13156_v19, 0.0  ;;  %v8086_v19 = vmul.f32 %v22275_v38, %v25407_v61 }
0x11c2   :  { %v7980_v55 = vmul.f32 %v7972_v1, %v23806_v3  ;;  %v10484_v8 = vpop.xlane.xlu1 %10483  ;;  %v25422_v1 = vld [vmem:[#allocation60_spill] sm:$0xff]  ;;  %v8109_v61 = vmul.f32 %v22326_v10, %v25406_v52  ;;  %v10645_v52 = vmul.f32 %v22326_v10, %v25408_v36 }
0x11c3   :  { %v10492_v5 = vmul.f32 %v10484_v8, %v23793_v0 }
0x11c4   :  { %v23850_v11 = vadd.f32 %v7980_v55, %v7960_v7  ;;  %4329 = vadd.xlane.f32.xlu0 %v4328_v20 }
0x11c5   :  { %v10496_v49 = vadd.f32 %v20520_v51, %v10492_v5  ;;  %13160 = vadd.xlane.f32.xlu1 %v13159_v43  ;;  %v10505_v50 = vpop.xlane.xlu0 %10504  ;;  %v5384_v5 = vsel %vm4270_vm14, %v5374_v34, 0.0  ;;  %v25423_v43 = vld [vmem:[#allocation35_spill] sm:$0xff]  ;;  %v5402_v34 = vmul.f32 %v22256_v40, %v25418_v39 }
0x11c6   :  { %v10515_v24 = vmul.f32 %v10505_v50, %v23806_v3  ;;  %v6906_v22 = vpop.xlane.xlu1 %6905 }
0x11c7   :  { %v6910_v44 = vmul.f32 %v6906_v22, %v23786_v4 }
0x11c8   :  { %v23860_v56 = vadd.f32 %v10515_v24, %v10495_v15  ;;  %5382 = vadd.xlane.f32.xlu0 %v5381_v32  ;;  %v5401_v15 = vmul.f32 %v22306_v27, %v25417_v53 }
0x11c9   :  { %v20514_v7 = vadd.f32 %v25422_v1, %v6910_v44  ;;  %8115 = vadd.xlane.f32.xlu1 %v8114_v58  ;;  %v7951_v55 = vpop.xlane.xlu0 %7950  ;;  %v25424_v44 = vld [vmem:[#allocation24_spill] sm:$0xff]  ;;  %v25425_v58 = vld [vmem:[#allocation31_spill] sm:$0xff]  ;;  %v10598_v1 = vmul.f32 %v22272_v29, %v25409_v62 }
0x11ca   :  { %v7957_v8 = vmul.f32 %v7951_v55, %v23793_v0  ;;  %v9439_v6 = vpop.xlane.xlu1 %9438  ;;  %v23880_v32 = vrot.slane %v23779_v59, %v25424_v44  ;;  %v5513_v44 = vmul.f32 %v22321_v14, %v25417_v53 }
0x11cb   :  { %v9445_v51 = vmul.f32 %v9439_v6, %v23786_v4 }
0x11cc   :  { %v7961_v20 = vadd.f32 %v20515_v18, %v7957_v8  ;;  %5385 = vadd.xlane.f32.xlu0 %v5384_v5  ;;  %v5409_v18 = vsel %vm4270_vm14, %v5401_v15, 0.0  ;;  %v5412_v5 = vsel %vm4270_vm14, %v5402_v34, 0.0  ;;  %v5429_v15 = vmul.f32 %v22309_v16, %v25417_v53 }
0x11cd   :  { %v20523_v37 = vadd.f32 %v25423_v43, %v9445_v51  ;;  %10648 = vadd.xlane.f32.xlu1 %v10647_v31  ;;  %v9442_v50 = vpop.xlane.xlu0 %9441  ;;  %v10608_v43 = vsel %vm4270_vm14, %v10598_v1, 0.0  ;;  %v8096_v1 = vsel %vm4270_vm14, %v8086_v19, 0.0 }
0x11ce   :  { %v9446_v24 = vmul.f32 %v9442_v50, %v23786_v4  ;;  %v23876_v22 = vpop.xlane.xlu1 %13019 }
0x11d0   :  { %v20522_v2 = vadd.f32 %v25425_v58, %v9446_v24  ;;  %5410 = vadd.xlane.f32.xlu0 %v5409_v18 }
0x11d1   :  { %13163 = vadd.xlane.f32.xlu1 %v13162_v25  ;;  %v7954_v55 = vpop.xlane.xlu0 %7953  ;;  %v5437_v25 = vsel %vm4270_vm14, %v5429_v15, 0.0  ;;  %v5457_v15 = vmul.f32 %v22314_v12, %v25417_v53 }
0x11d2   :  { %v7958_v8 = vmul.f32 %v7954_v55, %v23793_v0  ;;  %v7993_v6 = vpop.xlane.xlu1 %7992 }
0x11d3   :  { %v8003_v51 = vmul.f32 %v7993_v6, %v23880_v32 }
0x11d4   :  { %v7962_v31 = vadd.f32 %v20514_v7, %v7958_v8  ;;  %5413 = vadd.xlane.f32.xlu0 %v5412_v5  ;;  %v5430_v7 = vmul.f32 %v22260_v30, %v25418_v39 }
0x11d5   :  { %v23898_v50 = vadd.f32 %v8003_v51, %v23826_v17  ;;  %10609 = vadd.xlane.f32.xlu1 %v10608_v43  ;;  %v10487_v24 = vpop.xlane.xlu0 %10486  ;;  %v8117_v43 = vsel %vm4270_vm14, %v8109_v61, 0.0 }
0x11d6   :  { %v10493_v18 = vmul.f32 %v10487_v24, %v23793_v0  ;;  %v10508_v58 = vpop.xlane.xlu1 %10507  ;;  %v5440_v5 = vsel %vm4270_vm14, %v5430_v7, 0.0  ;;  %v10646_v7 = vmul.f32 %v22285_v35, %v25409_v62  ;;  %v25426_v62 = vld [vmem:[#allocation51_spill] sm:$0xff] }
0x11d7   :  { %v10516_v34 = vmul.f32 %v10508_v58, %v23806_v3  ;;  %v5465_v58 = vsel %vm4270_vm14, %v5457_v15, 0.0 }
0x11d8   :  { %v10497_v55 = vadd.f32 %v20523_v37, %v10493_v18  ;;  %5438 = vadd.xlane.f32.xlu0 %v5437_v25 }
0x11d9   :  { %v23908_v17 = vadd.f32 %v10516_v34, %v10496_v49  ;;  %v7975_v8 = vpop.xlane.xlu0 %7974  ;;  %8097 = vadd.xlane.f32.xlu1 %v8096_v1  ;;  %v5458_v34 = vmul.f32 %v22263_v26, %v25418_v39 }
0x11da   :  { %v7981_v6 = vmul.f32 %v7975_v8, %v23806_v3  ;;  %v23911_v51 = vpop.xlane.xlu1 %13040 }
0x11dc   :  { %v7985_v37 = vadd.f32 %v7981_v6, %v7961_v20  ;;  %5441 = vadd.xlane.f32.xlu0 %v5440_v5  ;;  %v10653_v20 = vsel %vm4270_vm14, %v10645_v52, 0.0  ;;  %v5468_v5 = vsel %vm4270_vm14, %v5458_v34, 0.0  ;;  %v13014_v34 = vmul.f32 %v22251_v21, %v23517_v46 }
0x11dd   :  { %v10490_v49 = vpop.xlane.xlu0 %10489  ;;  %8118 = vadd.xlane.f32.xlu1 %v8117_v43  ;;  %v10656_v43 = vsel %vm4270_vm14, %v10646_v7, 0.0 }
0x11de   :  { %v10494_v19 = vmul.f32 %v10490_v49, %v23793_v0  ;;  %v7996_v24 = vpop.xlane.xlu1 %7995 }
0x11df   :  { %v8004_v18 = vmul.f32 %v7996_v24, %v23880_v32 }
0x11e0   :  { %v10498_v25 = vadd.f32 %v20522_v2, %v10494_v19  ;;  %5466 = vadd.xlane.f32.xlu0 %v5465_v58  ;;  %v11966_v2 = vmul.f32 %v25330_v48, %v23517_v46 }
0x11e1   :  { %v23928_v36 = vadd.f32 %v8004_v18, %v23850_v11  ;;  %v7978_v1 = vpop.xlane.xlu0 %7977  ;;  %10654 = vadd.xlane.f32.xlu1 %v10653_v20  ;;  %v4316_v11 = vmul.f32 %v25330_v48, %v25426_v62  ;;  %v25427_v18 = vld [vmem:[#allocation25_spill] sm:$0xff] }
0x11e2   :  { %v7982_v61 = vmul.f32 %v7978_v1, %v23806_v3  ;;  %v10529_v8 = vpop.xlane.xlu1 %10528  ;;  %v23946_v58 = vrot.slane %v23779_v59, %v25427_v18  ;;  %v5541_v18 = vmul.f32 %v22329_v47, %v25417_v53 }
0x11e3   :  { %v10539_v6 = vmul.f32 %v10529_v8, %v23880_v32  ;;  %v4322_v48 = vsel %vm4270_vm14, %v4316_v11, 0.0 }
0x11e4   :  { %v7986_v15 = vadd.f32 %v7982_v61, %v7962_v31  ;;  %5469 = vadd.xlane.f32.xlu0 %v5468_v5  ;;  %v11976_v31 = vsel %vm4270_vm14, %v11966_v2, 0.0  ;;  %v13038_v5 = vmul.f32 %v22256_v40, %v23517_v46 }
0x11e5   :  { %v23939_v52 = vadd.f32 %v10539_v6, %v23860_v56  ;;  %v10511_v49 = vpop.xlane.xlu0 %10510  ;;  %10657 = vadd.xlane.f32.xlu1 %v10656_v43  ;;  %v5372_v56 = vmul.f32 %v22251_v21, %v25426_v62  ;;  %v13024_v6 = vsel %vm4270_vm14, %v13014_v34, 0.0  ;;  %v5399_v43 = vmul.f32 %v22306_v27, %v25413_v45 }
0x11e6   :  { %v10517_v19 = vmul.f32 %v10511_v49, %v23806_v3  ;;  %v23942_v24 = vpop.xlane.xlu1 %13043  ;;  %v13048_v34 = vsel %vm4270_vm14, %v13038_v5, 0.0 }
0x11e8   :  { %v10521_v20 = vadd.f32 %v10517_v19, %v10497_v55  ;;  %11977 = vadd.xlane.f32.xlu0 %v11976_v31  ;;  %v5378_v55 = vsel %vm4270_vm14, %v5372_v56, 0.0  ;;  %v5403_v56 = vsel %vm4270_vm14, %v5399_v43, 0.0 }
0x11e9   :  { %v7999_v7 = vpop.xlane.xlu0 %7998  ;;  %4323 = vadd.xlane.f32.xlu1 %v4322_v48 }
0x11ea   :  { %v8005_v1 = vmul.f32 %v7999_v7, %v23880_v32  ;;  %v8017_v61 = vpop.xlane.xlu1 %8016 }
0x11eb   :  { %v8027_v8 = vmul.f32 %v8017_v61, %v23946_v58 }
0x11ec   :  { %v8009_v2 = vadd.f32 %v8005_v1, %v7985_v37  ;;  %13025 = vadd.xlane.f32.xlu0 %v13024_v6  ;;  %v13062_v37 = vmul.f32 %v22260_v30, %v23517_v46 }
0x11ed   :  { %v23963_v21 = vadd.f32 %v8027_v8, %v23898_v50  ;;  %v10514_v11 = vpop.xlane.xlu0 %10513  ;;  %5379 = vadd.xlane.f32.xlu1 %v5378_v55  ;;  %v5400_v50 = vmul.f32 %v22256_v40, %v25426_v62  ;;  %v5427_v40 = vmul.f32 %v22309_v16, %v25413_v45 }
0x11ee   :  { %v10518_v49 = vmul.f32 %v10514_v11, %v23806_v3  ;;  %v10532_v19 = vpop.xlane.xlu1 %10531  ;;  %v13072_v6 = vsel %vm4270_vm14, %v13062_v37, 0.0  ;;  %v5428_v37 = vmul.f32 %v22260_v30, %v25426_v62 }
0x11ef   :  { %v10540_v31 = vmul.f32 %v10532_v19, %v23880_v32  ;;  %v5406_v55 = vsel %vm4270_vm14, %v5400_v50, 0.0 }
0x11f0   :  { %v10522_v48 = vadd.f32 %v10518_v49, %v10498_v25  ;;  %13049 = vadd.xlane.f32.xlu0 %v13048_v34  ;;  %v13086_v25 = vmul.f32 %v22263_v26, %v23517_v46  ;;  %v5431_v34 = vsel %vm4270_vm14, %v5427_v40, 0.0  ;;  %v5434_v30 = vsel %vm4270_vm14, %v5428_v37, 0.0 }
0x11f1   :  { %v23974_v7 = vadd.f32 %v10540_v31, %v23908_v17  ;;  %v8002_v1 = vpop.xlane.xlu0 %8001  ;;  %5404 = vadd.xlane.f32.xlu1 %v5403_v56  ;;  %v13110_v31 = vmul.f32 %v22268_v54, %v23517_v46  ;;  %v5456_v37 = vmul.f32 %v22263_v26, %v25426_v62 }
0x11f2   :  { %v8006_v61 = vmul.f32 %v8002_v1, %v23880_v32  ;;  %v23977_v8 = vpop.xlane.xlu1 %13064  ;;  %v13096_v19 = vsel %vm4270_vm14, %v13086_v25, 0.0 }
0x11f3   :  { %v13120_v25 = vsel %vm4270_vm14, %v13110_v31, 0.0  ;;  %v11965_v31 = vmul.f32 %v25331_v63, %v23489_v60  ;;  %v5462_v63 = vsel %vm4270_vm14, %v5456_v37, 0.0 }
0x11f4   :  { %v23982_v5 = vadd.f32 %v8006_v61, %v7986_v15  ;;  %13073 = vadd.xlane.f32.xlu0 %v13072_v6 }
0x11f5   :  { %v10535_v17 = vpop.xlane.xlu0 %10534  ;;  %5407 = vadd.xlane.f32.xlu1 %v5406_v55 }
0x11f6   :  { %v10541_v43 = vmul.f32 %v10535_v17, %v23880_v32  ;;  %v8020_v11 = vpop.xlane.xlu1 %8019 }
0x11f7   :  { %v8028_v49 = vmul.f32 %v8020_v11, %v23946_v58 }
0x11f8   :  { %v23992_v15 = vadd.f32 %v10541_v43, %v10521_v20  ;;  %13097 = vadd.xlane.f32.xlu0 %v13096_v19  ;;  %v13158_v20 = vmul.f32 %v22275_v38, %v23517_v46 }
0x11f9   :  { %v23998_v56 = vadd.f32 %v8028_v49, %v23928_v36  ;;  %v8023_v50 = vpop.xlane.xlu0 %8022  ;;  %5432 = vadd.xlane.f32.xlu1 %v5431_v34  ;;  %v5455_v36 = vmul.f32 %v22314_v12, %v25413_v45  ;;  %v25428_v49 = vld [vmem:[#allocation26_spill] sm:$0xff] }
0x11fa   :  { %v8029_v1 = vmul.f32 %v8023_v50, %v23946_v58  ;;  %v10553_v61 = vpop.xlane.xlu1 %10552  ;;  %v24018_v19 = vrot.slane %v23779_v59, %v25428_v49  ;;  %v5569_v49 = vmul.f32 %v22326_v10, %v25417_v53 }
0x11fb   :  { %v10563_v6 = vmul.f32 %v10553_v61, %v23946_v58 }
0x11fc   :  { %v24005_v55 = vadd.f32 %v8029_v1, %v8009_v2  ;;  %13121 = vadd.xlane.f32.xlu0 %v13120_v25  ;;  %v13168_v2 = vsel %vm4270_vm14, %v13158_v20, 0.0  ;;  %v13013_v25 = vmul.f32 %v22301_v23, %v23489_v60  ;;  %v13037_v23 = vmul.f32 %v22306_v27, %v23489_v60 }
0x11fd   :  { %v24011_v40 = vadd.f32 %v10563_v6, %v23939_v52  ;;  %v10538_v17 = vpop.xlane.xlu0 %10537  ;;  %5435 = vadd.xlane.f32.xlu1 %v5434_v30  ;;  %v5459_v52 = vsel %vm4270_vm14, %v5455_v36, 0.0  ;;  %v11973_v6 = vsel %vm4270_vm14, %v11965_v31, 0.0 }
0x11fe   :  { %v10542_v43 = vmul.f32 %v10538_v17, %v23880_v32  ;;  %v24014_v11 = vpop.xlane.xlu1 %13067  ;;  %v13021_v17 = vsel %vm4270_vm14, %v13013_v25, 0.0  ;;  %v13045_v37 = vsel %vm4270_vm14, %v13037_v23, 0.0  ;;  %v13109_v23 = vmul.f32 %v22318_v28, %v23489_v60 }
0x1200   :  { %v24023_v34 = vadd.f32 %v10542_v43, %v10522_v48  ;;  %13169 = vadd.xlane.f32.xlu0 %v13168_v2  ;;  %v5483_v48 = vmul.f32 %v22318_v28, %v25413_v45  ;;  %v5484_v2 = vmul.f32 %v22268_v54, %v25426_v62 }
0x1201   :  { %v24028_v50 = vpop.xlane.xlu0 %8025  ;;  %5460 = vadd.xlane.f32.xlu1 %v5459_v52 }
0x1202   :  { %v8041_v1 = vpop.xlane.xlu1 %8040  ;;  %v5487_v43 = vsel %vm4270_vm14, %v5483_v48, 0.0  ;;  %v5490_v27 = vsel %vm4270_vm14, %v5484_v2, 0.0 }
0x1203   :  { %v8051_v61 = vmul.f32 %v8041_v1, %v24018_v19  ;;  %v13061_v1 = vmul.f32 %v22309_v16, %v23489_v60  ;;  %v5512_v16 = vmul.f32 %v22272_v29, %v25426_v62 }
0x1204   :  { %11974 = vadd.xlane.f32.xlu0 %v11973_v6 }
0x1205   :  { %v24038_v20 = vadd.f32 %v8051_v61, %v23963_v21  ;;  %v24040_v26 = vpop.xlane.xlu0 %10558  ;;  %5463 = vadd.xlane.f32.xlu1 %v5462_v63  ;;  %v5511_v61 = vmul.f32 %v22321_v14, %v25413_v45  ;;  %v13069_v25 = vsel %vm4270_vm14, %v13061_v1, 0.0  ;;  %v13085_v63 = vmul.f32 %v22314_v12, %v23489_v60 }
0x1206   :  { %v10556_v30 = vpop.xlane.xlu1 %10555  ;;  %v13134_v12 = vmul.f32 %v22272_v29, %v23517_v46  ;;  %v13117_v1 = vsel %vm4270_vm14, %v13109_v23, 0.0 }
0x1207   :  { %v10564_v36 = vmul.f32 %v10556_v30, %v23946_v58  ;;  %v5515_v48 = vsel %vm4270_vm14, %v5511_v61, 0.0 }
0x1208   :  { %13022 = vadd.xlane.f32.xlu0 %v13021_v17  ;;  %v13093_v17 = vsel %vm4270_vm14, %v13085_v63, 0.0  ;;  %v13144_v61 = vsel %vm4270_vm14, %v13134_v12, 0.0 }
0x1209   :  { %v24050_v21 = vadd.f32 %v10564_v36, %v23974_v7  ;;  %v24052_v31 = vpop.xlane.xlu0 %8046  ;;  %5488 = vadd.xlane.f32.xlu1 %v5487_v43  ;;  %v5518_v43 = vsel %vm4270_vm14, %v5512_v16, 0.0 }
0x120a   :  { %v24054_v52 = vpop.xlane.xlu1 %13088 }
0x120c   :  { %13046 = vadd.xlane.f32.xlu0 %v13045_v37 }
0x120d   :  { %v24062_v6 = vpop.xlane.xlu0 %10561  ;;  %5491 = vadd.xlane.f32.xlu1 %v5490_v27  ;;  %v13181_v27 = vmul.f32 %v22326_v10, %v23489_v60 }
0x120e   :  { %v24064_v7 = vpop.xlane.xlu1 %8043 }
0x120f   :  { %v13189_v16 = vsel %vm4270_vm14, %v13181_v27, 0.0 }
0x1210   :  { %13070 = vadd.xlane.f32.xlu0 %v13069_v25  ;;  %v13182_v25 = vmul.f32 %v22285_v35, %v23517_v46 }
0x1211   :  { %v24072_v30 = vpop.xlane.xlu0 %8049  ;;  %5516 = vadd.xlane.f32.xlu1 %v5515_v48 }
0x1212   :  { %v24074_v36 = vpop.xlane.xlu1 %10576  ;;  %v13192_v23 = vsel %vm4270_vm14, %v13182_v25, 0.0 }
0x1214   :  { %13094 = vadd.xlane.f32.xlu0 %v13093_v17  ;;  %v5485_v17 = vmul.f32 %v22318_v28, %v25417_v53  ;;  %v13157_v28 = vmul.f32 %v22329_v47, %v23489_v60 }
0x1215   :  { %v24082_v2 = vpop.xlane.xlu0 %10582  ;;  %5519 = vadd.xlane.f32.xlu1 %v5518_v43  ;;  %v13133_v43 = vmul.f32 %v22321_v14, %v23489_v60  ;;  %v5540_v14 = vmul.f32 %v22275_v38, %v25426_v62 }
0x1216   :  { %v24084_v37 = vpop.xlane.xlu1 %13091 }
0x1217   :  { %v13141_v27 = vsel %vm4270_vm14, %v13133_v43, 0.0 }
0x1218   :  { %13118 = vadd.xlane.f32.xlu0 %v13117_v1  ;;  %v5493_v1 = vsel %vm4270_vm14, %v5485_v17, 0.0  ;;  %v13165_v17 = vsel %vm4270_vm14, %v13157_v28, 0.0 }
0x1219   :  { %v24092_v63 = vpop.xlane.xlu0 %8070  ;;  %13145 = vadd.xlane.f32.xlu1 %v13144_v61  ;;  %v5486_v61 = vmul.f32 %v22268_v54, %v25418_v39  ;;  %v5539_v54 = vmul.f32 %v22329_v47, %v25413_v45 }
0x121a   :  { %v24094_v48 = vpop.xlane.xlu1 %8064 }
0x121c   :  { %13190 = vadd.xlane.f32.xlu0 %v13189_v16 }
0x121d   :  { %v24102_v12 = vpop.xlane.xlu0 %10585  ;;  %13193 = vadd.xlane.f32.xlu1 %v13192_v23  ;;  %v5496_v23 = vsel %vm4270_vm14, %v5486_v61, 0.0  ;;  %v5543_v61 = vsel %vm4270_vm14, %v5539_v54, 0.0 }
0x121e   :  { %v24104_v46 = vpop.xlane.xlu1 %10579 }
0x1220   :  { %5494 = vadd.xlane.f32.xlu0 %v5493_v1  ;;  %v5521_v1 = vsel %vm4270_vm14, %v5513_v44, 0.0  ;;  %v5546_v44 = vsel %vm4270_vm14, %v5540_v14, 0.0  ;;  %v5568_v14 = vmul.f32 %v22285_v35, %v25426_v62  ;;  %v13052_v62 = vmul.f32 %v23942_v24, %v23806_v3 }
0x1221   :  { %v24112_v25 = vpop.xlane.xlu0 %8073  ;;  %13142 = vadd.xlane.f32.xlu1 %v13141_v27  ;;  %v5514_v27 = vmul.f32 %v22272_v29, %v25418_v39  ;;  %v5567_v29 = vmul.f32 %v22326_v10, %v25413_v45  ;;  %v11979_v45 = vmul.f32 %v23809_v13, %v23786_v4  ;;  %v13075_v24 = vmul.f32 %v23977_v8, %v23880_v32 }
0x1222   :  { %v24114_v16 = vpop.xlane.xlu1 %13112  ;;  %v5574_v41 = vsel %vm4270_vm14, %v5568_v14, 0.0 }
0x1223   :  { %v5571_v47 = vsel %vm4270_vm14, %v5567_v29, 0.0 }
0x1224   :  { %5497 = vadd.xlane.f32.xlu0 %v5496_v23 }
0x1225   :  { %v24122_v43 = vpop.xlane.xlu0 %10606  ;;  %13166 = vadd.xlane.f32.xlu1 %v13165_v17  ;;  %v5524_v17 = vsel %vm4270_vm14, %v5514_v27, 0.0  ;;  %v11980_v27 = vmul.f32 %v23802_v9, %v23786_v4  ;;  %v13027_v9 = vmul.f32 %v23831_v42, %v23793_v0  ;;  %v13076_v42 = vmul.f32 %v24014_v11, %v23880_v32 }
0x1226   :  { %v24124_v60 = vpop.xlane.xlu1 %8067 }
0x1228   :  { %5522 = vadd.xlane.f32.xlu0 %v5521_v1 }
0x1229   :  { %v24132_v28 = vpop.xlane.xlu0 %8094  ;;  %5544 = vadd.xlane.f32.xlu1 %v5543_v61  ;;  %v5549_v61 = vsel %vm4270_vm14, %v5541_v18, 0.0  ;;  %v13028_v18 = vmul.f32 %v23876_v22, %v23793_v0  ;;  %v13051_v22 = vmul.f32 %v23911_v51, %v23806_v3 }
0x122a   :  { %v24134_v23 = vpop.xlane.xlu1 %10600 }
0x122c   :  { %5525 = vadd.xlane.f32.xlu0 %v5524_v17 }
0x122d   :  { %v24142_v54 = vpop.xlane.xlu0 %10651  ;;  %5547 = vadd.xlane.f32.xlu1 %v5546_v44 }
0x122e   :  { %v24144_v1 = vpop.xlane.xlu1 %13115 }
0x1230   :  { %5550 = vadd.xlane.f32.xlu0 %v5549_v61  ;;  %v5577_v61 = vsel %vm4270_vm14, %v5569_v49, 0.0 }
0x1231   :  { %v19069_v17 = vpop.f32.mrb[24].mxu0  ;;  %v24156_v44 = vpop.xlane.xlu0 %13184  ;;  %5572 = vadd.xlane.f32.xlu1 %v5571_v47  ;;  %v5542_v47 = vmul.f32 %v22275_v38, %v25418_v39  ;;  %v5570_v38 = vmul.f32 %v22285_v35, %v25418_v39 }
0x1232   :  { %v20528_v10 = vadd.f32 %v19069_v17, %v11980_v27  ;;  %v12487_v53 = vpop.f32.mrb[25].mxu0  ;;  %v8089_v57 = vpop.xlane.xlu1 %8088 }
0x1233   :  { %v20529_v29 = vadd.f32 %v12487_v53, %v11979_v45 }
0x1234   :  { %v13032_v13 = vadd.f32 %v20528_v10, %v13028_v18  ;;  %5578 = vadd.xlane.f32.xlu0 %v5577_v61  ;;  %v5552_v10 = vsel %vm4270_vm14, %v5542_v47, 0.0  ;;  %v25430_v47 = vld [vmem:[#allocation45_spill] sm:$0xff] }
0x1235   :  { %v13031_v27 = vadd.f32 %v20529_v29, %v13027_v9  ;;  %v24170_v17 = vpop.xlane.xlu0 %10630  ;;  %5575 = vadd.xlane.f32.xlu1 %v5574_v41  ;;  %v5580_v9 = vsel %vm4270_vm14, %v5570_v38, 0.0 }
0x1236   :  { %v13056_v49 = vadd.f32 %v13052_v62, %v13032_v13  ;;  %v10604_v45 = vpop.xlane.xlu1 %10603  ;;  %v25429_v62 = vld [vmem:[#allocation23_spill] sm:$0xff] }
0x1237   :  { %v13055_v18 = vadd.f32 %v13051_v22, %v13031_v27  ;;  %v24190_v13 = vrot.slane %v23779_v59, %v25429_v62  ;;  %v24196_v22 = vrot.slane %v23779_v59, %v25430_v47  ;;  %v24211_v59 = vld [vmem:[%s25182_s9 + $0x8] ss:$0 sm:$0xff]  ;;  %s21457_s9 = smov 24  }
0x1238   :  { %v13080_v14 = vadd.f32 %v13076_v42, %v13056_v49 }
0x1239   :  { %v13079_v51 = vadd.f32 %v13075_v24, %v13055_v18  ;;  %v24179_v53 = vpop.xlane.xlu0 %13187  ;;  %5553 = vadd.xlane.f32.xlu1 %v5552_v10  ;;  %v8075_v27 = vmul.f32 %v24094_v48, %v24190_v13  ;;  %v8099_v24 = vmul.f32 %v8089_v57, %v24196_v22  ;;  %v13099_v18 = vmul.f32 %v24054_v52, %v23946_v58 }
0x123a   :  { %v13137_v41 = vpop.xlane.xlu1 %13136  ;;  %v13123_v57 = vmul.f32 %v24114_v16, %v24018_v19  ;;  %v10587_v16 = vmul.f32 %v24074_v36, %v24018_v19 }
0x123b   :  { %v8079_v10 = vadd.f32 %v8075_v27, %v24038_v20  ;;  %v13103_v48 = vadd.f32 %v13099_v18, %v13079_v51  ;;  %v8052_v20 = vmul.f32 %v24064_v7, %v24018_v19  ;;  %v8076_v51 = vmul.f32 %v24124_v60, %v24190_v13 }
0x123c   :  { %v10611_v60 = vmul.f32 %v24134_v23, %v24190_v13 }
0x123d   :  { %v24182_v11 = vpop.f32.mrb[20].mxu1  ;;  %v24184_v29 = vpop.xlane.xlu0 %10633  ;;  %5581 = vadd.xlane.f32.xlu1 %v5580_v9  ;;  %v8103_v47 = vadd.f32 %v8099_v24, %v8079_v10  ;;  %v13127_v27 = vadd.f32 %v13123_v57, %v13103_v48 }
0x123e   :  { %v24186_v8 = vpop.f32.mrb[21].mxu1  ;;  %v8092_v61 = vpop.xlane.xlu1 %8091 }
0x123f   :  { %v8100_v10 = vmul.f32 %v8092_v61, %v24196_v22  ;;  %v13100_v61 = vmul.f32 %v24084_v37, %v23946_v58  ;;  %v13124_v37 = vmul.f32 %v24144_v1, %v24018_v19  ;;  %v8030_v1 = vmul.f32 %v24028_v50, %v23946_v58 }
0x1241   :  { %v24192_v35 = vpop.xlane.xlu0 %8121  ;;  %v8034_v50 = vadd.f32 %v8030_v1, %v23982_v5 }
0x1242   :  { %v10625_v39 = vpop.xlane.xlu1 %10624 }
0x1245   :  { %v24200_v42 = vpop.xlane.xlu0 %4320 }
0x1246   :  { %25431 = vst [vmem:[#allocation30_spill] sm:$0xff] %v24200_v42  ;;  %v13140_v49 = vpop.xlane.xlu1 %13139 }
0x1249   :  { %v24206_v38 = vpop.xlane.xlu0 %5376 }
0x124a   :  { %25432 = vst [vmem:[#allocation36_spill] sm:$0xff] %v24206_v38  ;;  %v8113_v9 = vpop.xlane.xlu1 %8112  ;;  %v13147_v38 = vmul.f32 %v13137_v41, %v24190_v13  ;;  %v10588_v41 = vmul.f32 %v24104_v46, %v24018_v19  ;;  %v10635_v46 = vmul.f32 %v10625_v39, %v24196_v22 }
0x124b   :  { %v8123_v62 = vmul.f32 %v24211_v59, %v8113_v9  ;;  %v13195_v9 = vmul.f32 %v24211_v59, %v24156_v44 }
0x124c   :  { %v13151_v18 = vadd.f32 %v13147_v38, %v13127_v27  ;;  %v10612_v38 = vmul.f32 %v10604_v45, %v24190_v13 }
0x124d   :  { %v8127_v33 = vadd.f32 %v8123_v62, %v8103_v47  ;;  %v24216_v42 = vpop.xlane.xlu0 %4326  ;;  %v8056_v47 = vadd.f32 %v8052_v20, %v23998_v56  ;;  %v10591_v56 = vadd.f32 %v10587_v16, %v24011_v40 }
0x124e   :  { %v10628_v52 = vpop.xlane.xlu1 %10627 }
0x124f   :  { %13207 = vrot.lane.b32.xlu0 %v8127_v33, %s21402_s26  ;;  %v8080_v33 = vadd.f32 %v8076_v51, %v8056_v47  ;;  %v10592_v51 = vadd.f32 %v10588_v41, %v24050_v21  ;;  %v10615_v44 = vadd.f32 %v10611_v60, %v10591_v56  ;;  %v10636_v47 = vmul.f32 %v10628_v52, %v24196_v22 }
0x1250   :  { %v8054_v56 = vmul.f32 %v24072_v30, %v24018_v19  ;;  %v10565_v30 = vmul.f32 %v24040_v26, %v23946_v58 }
0x1251   :  { %v24224_v24 = vpop.xlane.xlu0 %4329  ;;  %v8104_v20 = vadd.f32 %v8100_v10, %v8080_v33  ;;  %v10616_v39 = vadd.f32 %v10612_v38, %v10592_v51  ;;  %v10639_v16 = vadd.f32 %v10635_v46, %v10615_v44  ;;  %v13148_v10 = vmul.f32 %v13140_v49, %v24190_v13  ;;  %v21239_v33 = vld [vmem:[#allocation8] sm:$0xff] }
0x1252   :  { %v13161_v62 = vpop.xlane.xlu1 %13160  ;;  %v8058_v51 = vadd.f32 %v8054_v56, %v8034_v50 }
0x1253   :  { %v13171_v7 = vmul.f32 %v13161_v62, %v24196_v22  ;;  %v13104_v62 = vadd.f32 %v13100_v61, %v13080_v14  ;;  %v10640_v52 = vadd.f32 %v10636_v47, %v10616_v39 }
0x1255   :  { %v13175_v48 = vadd.f32 %v13171_v7, %v13151_v18  ;;  %v24237_v36 = vpop.xlane.xlu0 %5382  ;;  %v13128_v14 = vadd.f32 %v13124_v37, %v13104_v62  ;;  %v8101_v62 = vmul.f32 %v24132_v28, %v24196_v22 }
0x1256   :  { %v8116_v57 = vpop.xlane.xlu1 %8115 }
0x1257   :  { %v13199_v27 = vadd.f32 %v13195_v9, %v13175_v48  ;;  %v8124_v23 = vmul.f32 %v24211_v59, %v8116_v57  ;;  %v10660_v9 = vmul.f32 %v24211_v59, %v24142_v54  ;;  %v13152_v49 = vadd.f32 %v13148_v10, %v13128_v14 }
0x1258   :  { %v8078_v54 = vmul.f32 %v24112_v25, %v24190_v13  ;;  %v10566_v25 = vmul.f32 %v24062_v6, %v23946_v58  ;;  %v10613_v6 = vmul.f32 %v24122_v43, %v24190_v13 }
0x1259   :  { %v8128_v18 = vadd.f32 %v8124_v23, %v8104_v20  ;;  %v24247_v40 = vpop.xlane.xlu0 %5385  ;;  %13239 = vrot.lane.b32.xlu0 %v13199_v27, %s21457_s9  ;;  %v10664_v57 = vadd.f32 %v10660_v9, %v10640_v52  ;;  %v8053_v20 = vmul.f32 %v24052_v31, %v24018_v19  ;;  %v13196_v27 = vmul.f32 %v24211_v59, %v24179_v53  ;;  %v21240_v52 = vld [vmem:[#allocation8 + $0x10] sm:$0xff] }
0x125a   :  { %v10649_v45 = vpop.xlane.xlu1 %10648  ;;  %v8077_v23 = vmul.f32 %v24092_v63, %v24190_v13  ;;  %v10589_v53 = vmul.f32 %v24082_v2, %v24018_v19  ;;  %v8082_v26 = vadd.f32 %v8078_v54, %v8058_v51  ;;  %v10569_v63 = vadd.f32 %v10565_v30, %v23992_v15 }
0x125b   :  { %v10659_v21 = vmul.f32 %v24211_v59, %v10649_v45  ;;  %13209 = vrot.lane.b32.xlu1 %v8128_v18, %s21402_s26  ;;  %v8057_v5 = vadd.f32 %v8053_v20, %v24005_v55  ;;  %v10590_v55 = vmul.f32 %v24102_v12, %v24018_v19  ;;  %v10570_v28 = vadd.f32 %v10566_v25, %v24023_v34 }
0x125c   :  { %v10593_v39 = vadd.f32 %v10589_v53, %v10569_v63  ;;  %v8126_v15 = vmul.f32 %v24211_v59, %v24192_v35  ;;  %v10638_v35 = vmul.f32 %v24184_v29, %v24196_v22 }
0x125d   :  { %v10663_v7 = vadd.f32 %v10659_v21, %v10639_v16  ;;  %v24255_v41 = vpop.xlane.xlu0 %5410  ;;  %13272 = vrot.lane.b32.xlu0 %v21239_v33, %s21408_s15  ;;  %v8081_v37 = vadd.f32 %v8077_v23, %v8057_v5  ;;  %v10637_v21 = vmul.f32 %v24170_v17, %v24196_v22  ;;  %v10594_v43 = vadd.f32 %v10590_v55, %v10570_v28  ;;  %v25433_v5 = vld [vmem:[#allocation54_spill] sm:$0xff] }
0x125e   :  { %v13164_v60 = vpop.xlane.xlu1 %13163 }
0x125f   :  { %v13172_v48 = vmul.f32 %v13164_v60, %v24196_v22  ;;  %13223 = vrot.lane.b32.xlu1 %v10663_v7, %s21404_s14  ;;  %v8105_v16 = vadd.f32 %v8101_v62, %v8081_v37  ;;  %v10617_v7 = vadd.f32 %v10613_v6, %v10593_v39 }
0x1261   :  { %v13176_v61 = vadd.f32 %v13172_v48, %v13152_v49  ;;  %v24266_v38 = vpop.xlane.xlu0 %5413  ;;  %v10641_v9 = vadd.f32 %v10637_v21, %v10617_v7 }
0x1262   :  { %v10610_v46 = vpop.xlane.xlu1 %10609 }
0x1263   :  { %13225 = vrot.lane.b32.xlu1 %v10664_v57, %s21404_s14  ;;  %v13200_v44 = vadd.f32 %v13196_v27, %v13176_v61  ;;  %v10614_v14 = vmul.f32 %v10610_v46, %v24190_v13 }
0x1265   :  { %v24280_v31 = vpop.xlane.xlu0 %5438  ;;  %v10618_v49 = vadd.f32 %v10614_v14, %v10594_v43 }
0x1266   :  { %v8098_v47 = vpop.xlane.xlu1 %8097 }
0x1267   :  { %v8102_v18 = vmul.f32 %v8098_v47, %v24196_v22  ;;  %13241 = vrot.lane.b32.xlu1 %v13200_v44, %s21457_s9  ;;  %v10642_v57 = vadd.f32 %v10638_v35, %v10618_v49 }
0x1269   :  { %v8106_v45 = vadd.f32 %v8102_v18, %v8082_v26  ;;  %v24296_v2 = vpop.xlane.xlu0 %5441 }
0x126a   :  { %v8119_v10 = vpop.xlane.xlu1 %8118 }
0x126b   :  { %v8125_v12 = vmul.f32 %v24211_v59, %v8119_v10  ;;  %13274 = vrot.lane.b32.xlu1 %v21240_v52, %s21408_s15  ;;  %v8130_v60 = vadd.f32 %v8126_v15, %v8106_v45 }
0x126d   :  { %v8129_v33 = vadd.f32 %v8125_v12, %v8105_v16  ;;  %v24306_v34 = vpop.xlane.xlu0 %5466 }
0x126e   :  { %v10655_v1 = vpop.xlane.xlu1 %10654 }
0x126f   :  { %v10661_v17 = vmul.f32 %v24211_v59, %v10655_v1  ;;  %13213 = vrot.lane.b32.xlu1 %v8130_v60, %s21402_s26  ;;  %13211 = vrot.lane.b32.xlu0 %v8129_v33, %s21402_s26 }
0x1271   :  { %v10665_v48 = vadd.f32 %v10661_v17, %v10641_v9  ;;  %v24313_v56 = vpop.xlane.xlu0 %5469 }
0x1272   :  { %v10658_v61 = vpop.xlane.xlu1 %10657 }
0x1273   :  { %v10662_v20 = vmul.f32 %v24211_v59, %v10658_v61  ;;  %13227 = vrot.lane.b32.xlu0 %v10665_v48, %s21404_s14 }
0x1275   :  { %v10666_v46 = vadd.f32 %v10662_v20, %v10642_v57  ;;  %v11978_v50 = vpop.xlane.xlu0 %11977 }
0x1276   :  { %v4324_v54 = vpop.xlane.xlu1 %4323  ;;  %v11982_v43 = vmul.f32 %v11978_v50, %v23786_v4 }
0x1277   :  { %13229 = vrot.lane.b32.xlu1 %v10666_v46, %s21404_s14  ;;  %v4336_v23 = vmul.f32 %v23786_v4, %v4324_v54  ;;  %v4337_v54 = vmul.f32 %v23786_v4, %v24216_v42  ;;  %v4338_v42 = vmul.f32 %v23786_v4, %v24224_v24 }
0x1278   :  { %v20530_v9 = vadd.f32 %v24182_v11, %v11982_v43  ;;  %v25435_v43 = vld [vmem:[#allocation39_spill] sm:$0xff] }
0x1279   :  { %v13026_v27 = vpop.xlane.xlu0 %13025  ;;  %v20504_v25 = vadd.f32 %v25433_v5, %v4336_v23 }
0x127a   :  { %v5380_v30 = vpop.xlane.xlu1 %5379  ;;  %v13030_v60 = vmul.f32 %v13026_v27, %v23793_v0 }
0x127b   :  { %v5392_v44 = vmul.f32 %v23793_v0, %v5380_v30 }
0x127c   :  { %v13034_v61 = vadd.f32 %v20530_v9, %v13030_v60  ;;  %v5477_v60 = vmul.f32 %v23946_v58, %v24306_v34  ;;  %v5478_v34 = vmul.f32 %v23946_v58, %v24313_v56  ;;  %v21241_v56 = vld [vmem:[#allocation8 + $0x30] sm:$0xff] }
0x127d   :  { %v13050_v51 = vpop.xlane.xlu0 %13049  ;;  %v5396_v47 = vadd.f32 %v20504_v25, %v5392_v44  ;;  %v5393_v44 = vmul.f32 %v23793_v0, %v24237_v36 }
0x127e   :  { %v24319_v29 = vpop.xlane.xlu1 %5404  ;;  %v13054_v49 = vmul.f32 %v13050_v51, %v23806_v3 }
0x1280   :  { %v13058_v20 = vadd.f32 %v13054_v49, %v13034_v61 }
0x1281   :  { %v13074_v53 = vpop.xlane.xlu0 %13073 }
0x1282   :  { %v5408_v62 = vpop.xlane.xlu1 %5407  ;;  %v13078_v57 = vmul.f32 %v13074_v53, %v23880_v32 }
0x1283   :  { %v5420_v26 = vmul.f32 %v23806_v3, %v5408_v62 }
0x1284   :  { %v13082_v30 = vadd.f32 %v13078_v57, %v13058_v20 }
0x1285   :  { %v5424_v18 = vadd.f32 %v5420_v26, %v5396_v47  ;;  %v13098_v63 = vpop.xlane.xlu0 %13097  ;;  %v25434_v47 = vld [vmem:[#allocation41_spill] sm:$0xff] }
0x1286   :  { %v24324_v37 = vpop.xlane.xlu1 %5432  ;;  %v13102_v46 = vmul.f32 %v13098_v63, %v23946_v58  ;;  %v20507_v26 = vadd.f32 %v25434_v47, %v4337_v54 }
0x1288   :  { %v13106_v5 = vadd.f32 %v13102_v46, %v13082_v30 }
0x1289   :  { %v13122_v55 = vpop.xlane.xlu0 %13121 }
0x128a   :  { %v5436_v6 = vpop.xlane.xlu1 %5435  ;;  %v13126_v11 = vmul.f32 %v13122_v55, %v24018_v19 }
0x128b   :  { %v5448_v45 = vmul.f32 %v23880_v32, %v5436_v6 }
0x128c   :  { %v13130_v55 = vadd.f32 %v13126_v11, %v13106_v5 }
0x128d   :  { %v5452_v28 = vadd.f32 %v5448_v45, %v5424_v18  ;;  %v13170_v39 = vpop.xlane.xlu0 %13169  ;;  %v5421_v18 = vmul.f32 %v23806_v3, %v24255_v41 }
0x128e   :  { %v24327_v16 = vpop.xlane.xlu1 %5460  ;;  %v13174_v24 = vmul.f32 %v13170_v39, %v24196_v22 }
0x1291   :  { %v11975_v10 = vpop.xlane.xlu0 %11974 }
0x1292   :  { %v5464_v21 = vpop.xlane.xlu1 %5463  ;;  %v11981_v23 = vmul.f32 %v11975_v10, %v23786_v4  ;;  %v5394_v10 = vmul.f32 %v23793_v0, %v24247_v40 }
0x1293   :  { %v5476_v15 = vmul.f32 %v23946_v58, %v5464_v21  ;;  %v5449_v21 = vmul.f32 %v23880_v32, %v24280_v31 }
0x1294   :  { %v20531_v6 = vadd.f32 %v24186_v8, %v11981_v23  ;;  %v20506_v8 = vadd.f32 %v25435_v43, %v4338_v42 }
0x1295   :  { %v5480_v14 = vadd.f32 %v5476_v15, %v5452_v28  ;;  %v13023_v12 = vpop.xlane.xlu0 %13022  ;;  %v5397_v28 = vadd.f32 %v20507_v26, %v5393_v44 }
0x1296   :  { %v24330_v52 = vpop.xlane.xlu1 %5488  ;;  %v13029_v25 = vmul.f32 %v13023_v12, %v23793_v0  ;;  %v5398_v49 = vadd.f32 %v20506_v8, %v5394_v10 }
0x1298   :  { %v13033_v15 = vadd.f32 %v20531_v6, %v13029_v25 }
0x1299   :  { %v13047_v7 = vpop.xlane.xlu0 %13046 }
0x129a   :  { %v5492_v33 = vpop.xlane.xlu1 %5491  ;;  %v13053_v36 = vmul.f32 %v13047_v7, %v23806_v3  ;;  %v5422_v7 = vmul.f32 %v23806_v3, %v24266_v38 }
0x129b   :  { %v5504_v1 = vmul.f32 %v24018_v19, %v5492_v33  ;;  %v5425_v33 = vadd.f32 %v5421_v18, %v5397_v28 }
0x129c   :  { %v5426_v46 = vadd.f32 %v5422_v7, %v5398_v49  ;;  %v25437_v7 = vld [vmem:[#allocation36_spill] sm:$0xff] }
0x129d   :  { %v5508_v17 = vadd.f32 %v5504_v1, %v5480_v14  ;;  %v13071_v35 = vpop.xlane.xlu0 %13070  ;;  %v13057_v1 = vadd.f32 %v13053_v36, %v13033_v15 }
0x129e   :  { %v24337_v48 = vpop.xlane.xlu1 %5516  ;;  %v13077_v41 = vmul.f32 %v13071_v35, %v23880_v32  ;;  %v5450_v35 = vmul.f32 %v23880_v32, %v24296_v2 }
0x12a0   :  { %v13081_v61 = vadd.f32 %v13077_v41, %v13057_v1  ;;  %v5454_v23 = vadd.f32 %v5450_v35, %v5426_v46  ;;  %v25436_v41 = vld [vmem:[#allocation30_spill] sm:$0xff] }
0x12a1   :  { %v13095_v50 = vpop.xlane.xlu0 %13094 }
0x12a2   :  { %v5520_v27 = vpop.xlane.xlu1 %5519  ;;  %v13101_v31 = vmul.f32 %v13095_v50, %v23946_v58  ;;  %v5482_v5 = vadd.f32 %v5478_v34, %v5454_v23 }
0x12a3   :  { %v5532_v51 = vmul.f32 %v24190_v13, %v5520_v27 }
0x12a4   :  { %v13105_v30 = vadd.f32 %v13101_v31, %v13081_v61  ;;  %v25438_v31 = vld [vmem:[#allocation55_spill] sm:$0xff] }
0x12a5   :  { %v24349_v53 = vadd.f32 %v5532_v51, %v5508_v17  ;;  %v13119_v62 = vpop.xlane.xlu0 %13118  ;;  %v5453_v17 = vadd.f32 %v5449_v21, %v5425_v33  ;;  %v21242_v33 = vld [vmem:[#allocation8 + $0x20] sm:$0xff] }
0x12a6   :  { %v13146_v63 = vpop.xlane.xlu1 %13145  ;;  %v13125_v57 = vmul.f32 %v13119_v62, %v24018_v19 }
0x12a7   :  { %v13150_v45 = vmul.f32 %v13146_v63, %v24190_v13  ;;  %v5481_v54 = vadd.f32 %v5477_v60, %v5453_v17  ;;  %v5391_v60 = vmul.f32 %v23793_v0, %v25437_v7 }
0x12a8   :  { %v13129_v51 = vadd.f32 %v13125_v57, %v13105_v30 }
0x12a9   :  { %v13154_v14 = vadd.f32 %v13150_v45, %v13130_v55  ;;  %v13191_v12 = vpop.xlane.xlu0 %13190 }
0x12aa   :  { %v13194_v40 = vpop.xlane.xlu1 %13193  ;;  %v13197_v18 = vmul.f32 %v24211_v59, %v13191_v12 }
0x12ab   :  { %v13178_v9 = vadd.f32 %v13174_v24, %v13154_v14  ;;  %v13198_v39 = vmul.f32 %v24211_v59, %v13194_v40  ;;  %v4335_v14 = vmul.f32 %v23786_v4, %v25436_v41 }
0x12ad   :  { %v13202_v20 = vadd.f32 %v13198_v39, %v13178_v9  ;;  %v5495_v38 = vpop.xlane.xlu0 %5494  ;;  %v20505_v9 = vadd.f32 %v25438_v31, %v4335_v14  ;;  %v5419_v39 = vmul.f32 %v23806_v3, %v24319_v29  ;;  %v5503_v3 = vmul.f32 %v24018_v19, %v24330_v52 }
0x12ae   :  { %v5505_v50 = vmul.f32 %v24018_v19, %v5495_v38  ;;  %v13143_v27 = vpop.xlane.xlu1 %13142 }
0x12af   :  { %v13149_v11 = vmul.f32 %v13143_v27, %v24190_v13  ;;  %13245 = vrot.lane.b32.xlu1 %v13202_v20, %s21457_s9  ;;  %v5395_v17 = vadd.f32 %v20505_v9, %v5391_v60  ;;  %v5475_v20 = vmul.f32 %v23946_v58, %v24327_v16 }
0x12b0   :  { %v5509_v2 = vadd.f32 %v5505_v50, %v5481_v54  ;;  %v5531_v50 = vmul.f32 %v24190_v13, %v24337_v48 }
0x12b1   :  { %v5498_v44 = vpop.xlane.xlu0 %5497  ;;  %v13153_v47 = vadd.f32 %v13149_v11, %v13129_v51  ;;  %v5423_v0 = vadd.f32 %v5419_v39, %v5395_v17 }
0x12b2   :  { %v5506_v25 = vmul.f32 %v24018_v19, %v5498_v44  ;;  %v13167_v62 = vpop.xlane.xlu1 %13166 }
0x12b3   :  { %v13173_v26 = vmul.f32 %v13167_v62, %v24196_v22  ;;  %13278 = vrot.lane.b32.xlu1 %v21241_v56, %s21408_s15 }
0x12b4   :  { %v5510_v42 = vadd.f32 %v5506_v25, %v5482_v5 }
0x12b5   :  { %v13177_v63 = vadd.f32 %v13173_v26, %v13153_v47  ;;  %v5523_v55 = vpop.xlane.xlu0 %5522 }
0x12b6   :  { %v5533_v6 = vmul.f32 %v24190_v13, %v5523_v55  ;;  %v5545_v36 = vpop.xlane.xlu1 %5544 }
0x12b7   :  { %v13201_v45 = vadd.f32 %v13197_v18, %v13177_v63  ;;  %v5559_v11 = vmul.f32 %v24196_v22, %v5545_v36 }
0x12b8   :  { %v5537_v28 = vadd.f32 %v5533_v6, %v5509_v2 }
0x12b9   :  { %v5526_v10 = vpop.xlane.xlu0 %5525  ;;  %13243 = vrot.lane.b32.xlu0 %v13201_v45, %s21457_s9 }
0x12ba   :  { %v5534_v21 = vmul.f32 %v24190_v13, %v5526_v10  ;;  %v5548_v24 = vpop.xlane.xlu1 %5547 }
0x12bb   :  { %v5560_v15 = vmul.f32 %v24196_v22, %v5548_v24 }
0x12bc   :  { %v5538_v43 = vadd.f32 %v5534_v21, %v5510_v42 }
0x12bd   :  { %v5564_v12 = vadd.f32 %v5560_v15, %v24349_v53  ;;  %v5551_v8 = vpop.xlane.xlu0 %5550  ;;  %13276 = vrot.lane.b32.xlu0 %v21242_v33, %s21408_s15  ;;  %v5447_v53 = vmul.f32 %v23880_v32, %v24324_v37 }
0x12be   :  { %v5561_v40 = vmul.f32 %v24196_v22, %v5551_v8  ;;  %v5573_v1 = vpop.xlane.xlu1 %5572 }
0x12bf   :  { %v5451_v54 = vadd.f32 %v5447_v53, %v5423_v0  ;;  %v5587_v51 = vmul.f32 %v24211_v59, %v5573_v1 }
0x12c0   :  { %v5565_v49 = vadd.f32 %v5561_v40, %v5537_v28 }
0x12c1   :  { %v5579_v4 = vpop.xlane.xlu0 %5578  ;;  %v5479_v37 = vadd.f32 %v5475_v20, %v5451_v54 }
0x12c2   :  { %v5589_v35 = vmul.f32 %v24211_v59, %v5579_v4  ;;  %v5576_v61 = vpop.xlane.xlu1 %5575 }
0x12c3   :  { %v5588_v57 = vmul.f32 %v24211_v59, %v5576_v61  ;;  %v5507_v30 = vadd.f32 %v5503_v3, %v5479_v37 }
0x12c4   :  { %v24404_v38 = vadd.f32 %v5589_v35, %v5565_v49 }
0x12c5   :  { %v5592_v46 = vadd.f32 %v5588_v57, %v5564_v12  ;;  %v13208_v34 = vpop.permute.xlu0 %13207  ;;  %v5535_v2 = vadd.f32 %v5531_v50, %v5507_v30 }
0x12c6   :  { %v5554_v29 = vpop.xlane.xlu1 %5553 }
0x12c7   :  { %v5562_v32 = vmul.f32 %v24196_v22, %v5554_v29  ;;  %v5563_v52 = vadd.f32 %v5559_v11, %v5535_v2 }
0x12c9   :  { %v5566_v27 = vadd.f32 %v5562_v32, %v5538_v43  ;;  %v5591_v62 = vadd.f32 %v5587_v51, %v5563_v52 }
0x12ca   :  { %v5582_v58 = vpop.xlane.xlu1 %5581 }
0x12cb   :  { %v5590_v16 = vmul.f32 %v24211_v59, %v5582_v58  ;;  %v13240_v23 = vpop.permute.xlu0 %13239  ;;  %v13251_v13 = vsel %vm3047_vm2, %v5591_v62, %v13208_v34 }
0x12cd   :  { %v5594_v19 = vadd.f32 %v5590_v16, %v5566_v27 }
0x12ce   :  { %v13210_v44 = vpop.permute.xlu1 %13209 }
0x12cf   :  { %v13252_v5 = vsel %vm3047_vm2, %v5592_v46, %v13210_v44  ;;  %v13273_v25 = vpop.permute.xlu0 %13272 }
0x12d0   :  { %v13297_v47 = vand.u32 4294901760, %v13273_v25 }
0x12d2   :  { %v13224_v48 = vpop.permute.xlu1 %13223  ;;  %v13407_v22 = vsub.f32 %v13273_v25, %v13297_v47 }
0x12d3   :  { %v13255_v26 = vsel %vm4270_vm14, %v13251_v13, %v13224_v48 }
0x12d4   :  { %v13260_v56 = vsel %vm13259_vm13, %v13255_v26, %v13240_v23  ;;  %v13408_v10 = vand.u32 4294901760, %v13407_v22 }
0x12d5   :  { %v13285_v42 = vsel %vm145_vm0, %v13260_v56, 0 }
0x12d6   :  { %v24419_v59 = vand.u32 4294901760, %v13285_v42  ;;  %v13226_v18 = vpop.permute.xlu1 %13225  ;;  %v13409_v41 = vsub.f32 %v13407_v22, %v13408_v10 }
0x12d7   :  { %v13256_v63 = vsel %vm4270_vm14, %v13252_v5, %v13226_v18 }
0x12d8   :  { %v24423_v55 = vsub.f32 %v13285_v42, %v24419_v59  ;;  %v13410_v7 = vand.u32 4294901760, %v13409_v41  ;;  %v25440_v41 = vld [vmem:[#allocation19_spill] sm:$0xff] }
0x12da   :  { %v13242_v6 = vpop.permute.xlu1 %13241  ;;  %v13367_v36 = vand.u32 4294901760, %v24423_v55 }
0x12db   :  { %v13261_v45 = vsel %vm13259_vm13, %v13256_v63, %v13242_v6 }
0x12dc   :  { %v13368_v28 = vsub.f32 %v24423_v55, %v13367_v36  ;;  %v13288_v4 = vsel %vm145_vm0, %v13261_v45, 0 }
0x12dd   :  { %v24442_v61 = vand.u32 4294901760, %v13288_v4 }
0x12de   :  { %v13275_v21 = vpop.permute.xlu1 %13274  ;;  %v13369_v24 = vand.u32 4294901760, %v13368_v28 }
0x12df   :  { %v13300_v15 = vand.u32 4294901760, %v13275_v21  ;;  %v13376_v54 = vsub.f32 %v13288_v4, %v24442_v61 }
0x12e0   :  { %19120 = vmatprep.mubr.f32.mxu0 %v13369_v24 }
0x12e1   :  { %v24430_v14 = vpack.c.bf16 %v13300_v15, %v13297_v47  ;;  %v13414_v43 = vsub.f32 %v13275_v21, %v13300_v15  ;;  %v13212_v39 = vpop.permute.xlu0 %13211  ;;  %v13377_v27 = vand.u32 4294901760, %v13376_v54 }
0x12e2   :  { %v13214_v31 = vpop.permute.xlu1 %13213  ;;  %v13253_v3 = vsel %vm3047_vm2, %v24404_v38, %v13212_v39 }
0x12e3   :  { %v13415_v12 = vand.u32 4294901760, %v13414_v43  ;;  %20205 = vmatprep.subr.bf16.mxu0 %v24430_v14  ;;  %v24433_v8 = vpack.c.bf16 %v13414_v43, %v13407_v22  ;;  %v13254_v17 = vsel %vm3047_vm2, %v5594_v19, %v13214_v31  ;;  %v13378_v51 = vsub.f32 %v13376_v54, %v13377_v27 }
0x12e4   :  { %20207 = vmatpush3.bf16.msra.mxu0 %v24430_v14  ;;  %vm14660_vm2 = vcmask 1042432  }
0x12e5   :  { %v13416_v33 = vsub.f32 %v13414_v43, %v13415_v12  ;;  %v24436_v60 = vpack.c.bf16 %v13415_v12, %v13408_v10  ;;  %v13228_v0 = vpop.permute.xlu0 %13227  ;;  %v13379_v48 = vand.u32 4294901760, %v13378_v51  ;;  %v25441_v43 = vld [vmem:[#allocation20_spill] sm:$0xff] }
0x12e6   :  { %v13257_v34 = vsel %vm4270_vm14, %v13253_v3, %v13228_v0 }
0x12e7   :  { %v13417_v40 = vand.u32 4294901760, %v13416_v33 }
0x12e9   :  { %v20212_v1 = vpack.c.bf16 %v13417_v40, %v13410_v7  ;;  %v13230_v9 = vpop.permute.xlu1 %13229 }
0x12ea   :  { %v13258_v53 = vsel %vm4270_vm14, %v13254_v17, %v13230_v9  ;;  %v25443_v9 = vld [vmem:[#allocation21_spill] sm:$0xff]  ;;  %vm14705_vm14 = vcmask 1046528  }
0x1321   :  { %v13246_v49 = vpop.permute.xlu1 %13245 }
0x1322   :  { %v13263_v35 = vsel %vm13259_vm13, %v13258_v53, %v13246_v49 }
0x1323   :  { %v13294_v20 = vsel %vm145_vm0, %v13263_v35, 0 }
0x1324   :  { %v24448_v29 = vand.u32 4294901760, %v13294_v20 }
0x1325   :  { %v13279_v57 = vpop.permute.xlu1 %13278 }
0x1326   :  { %v13306_v46 = vand.u32 4294901760, %v13279_v57  ;;  %v13396_v11 = vsub.f32 %v13294_v20, %v24448_v29 }
0x1328   :  { %v13428_v50 = vsub.f32 %v13279_v57, %v13306_v46  ;;  %v13397_v5 = vand.u32 4294901760, %v13396_v11 }
0x132a   :  { %v13429_v38 = vand.u32 4294901760, %v13428_v50  ;;  %v13398_v26 = vsub.f32 %v13396_v11, %v13397_v5 }
0x132b   :  { %v13244_v32 = vpop.permute.xlu0 %13243 }
0x132c   :  { %v13262_v37 = vsel %vm13259_vm13, %v13257_v34, %v13244_v32  ;;  %v13430_v62 = vsub.f32 %v13428_v50, %v13429_v38  ;;  %v13399_v18 = vand.u32 4294901760, %v13398_v26 }
0x132d   :  { %v13291_v30 = vsel %vm145_vm0, %v13262_v37, 0 }
0x132e   :  { %v24454_v58 = vand.u32 4294901760, %v13291_v30  ;;  %v13431_v42 = vand.u32 4294901760, %v13430_v62 }
0x132f   :  { %v13277_v16 = vpop.permute.xlu0 %13276 }
0x1330   :  { %v13386_v23 = vsub.f32 %v13291_v30, %v24454_v58  ;;  %v13303_v2 = vand.u32 4294901760, %v13277_v16 }
0x1332   :  { %v13421_v19 = vsub.f32 %v13277_v16, %v13303_v2  ;;  %v20208_v52 = vpack.c.bf16 %v13306_v46, %v13303_v2  ;;  %v13387_v44 = vand.u32 4294901760, %v13386_v23  ;;  %v24530_v2 = vld [vmem:[#allocation10 + $0x8] sm:$0xff] }
0x1334   :  { %v13422_v25 = vand.u32 4294901760, %v13421_v19  ;;  %20209 = vmatprep.subr.bf16.mxu0 %v20208_v52  ;;  %v13388_v47 = vsub.f32 %v13386_v23, %v13387_v44  ;;  %v20224_v6 = vpack.c.bf16 %v13428_v50, %v13421_v19 }
0x1335   :  { %20211 = vmatpush3.bf16.msra.mxu0 %v20208_v52 }
0x1336   :  { %v13423_v13 = vsub.f32 %v13421_v19, %v13422_v25  ;;  %20213 = vmatprep.subr.bf16.mxu0 %v20212_v1  ;;  %v13389_v22 = vand.u32 4294901760, %v13388_v47  ;;  %v20240_v45 = vpack.c.bf16 %v13429_v38, %v13422_v25  ;;  %v24532_v38 = vld [vmem:[#allocation10 + $0x10] sm:$0xff]  ;;  %v14002_v19 = vand.u32 4294901760, %v24530_v2 }
0x1338   :  { %19121 = vmatmul.mubr.f32.vlgmr.msra.gmra.mrb[26].mxu0 %v13379_v48  ;;  %v13424_v56 = vand.u32 4294901760, %v13423_v13  ;;  %v14116_v13 = vsub.f32 %v24530_v2, %v14002_v19 }
0x1339   :  { %19123 = vmatprep.mubr.f32.mxu0 %v13389_v22  ;;  %20215 = vmatpush3.bf16.msra.mxu0 %v20212_v1  ;;  %v25442_v1 = vld [vmem:[#allocation22_spill] sm:$0xff] }
0x133a   :  { %v20216_v63 = vpack.c.bf16 %v13431_v42, %v13424_v56  ;;  %v14117_v22 = vand.u32 4294901760, %v14116_v13 }
0x133c   :  { %19124 = vmatmul.mubr.f32.gmra.mrb[28].mxu0 %v13399_v18  ;;  %20217 = vmatprep.subr.bf16.mxu0 %v20216_v63  ;;  %v14118_v56 = vsub.f32 %v14116_v13, %v14117_v22 }
0x133d   :  { %20219 = vmatpush3.bf16.msra.mxu0 %v20216_v63  ;;  %19134 = vmatprep.mubr.f32.mxu0 %v24419_v59 }
0x133e   :  { %20221 = vmatprep.subr.bf16.mxu0 %v24433_v8 }
0x1340   :  { %19135 = vmatmul.mubr.f32.vlgmr.msra.gmra.mrb[26].mxu0 %v24442_v61 }
0x1341   :  { %19137 = vmatprep.mubr.f32.mxu0 %v24454_v58  ;;  %20223 = vmatpush3.bf16.msra.mxu0 %v24433_v8 }
0x1342   :  { %20225 = vmatprep.subr.bf16.mxu0 %v20224_v6 }
0x1344   :  { %19138 = vmatmul.mubr.f32.gmra.mrb[28].mxu0 %v24448_v29 }
0x1345   :  { %20227 = vmatpush3.bf16.msra.mxu0 %v20224_v6  ;;  %19148 = vmatprep.mubr.f32.mxu0 %v24423_v55  ;;  %v24480_v55 = vld [vmem:[#allocation5 + $0x8] sm:$0xff]  ;;  %v14119_v6 = vand.u32 4294901760, %v14118_v56 }
0x1346   :  { %20229 = vmatprep.subr.bf16.mxu0 %v24430_v14 }
0x1348   :  { %19149 = vmatmul.mubr.f32.vlgmr.msra.gmra.mrb[26].mxu0 %v13376_v54 }
0x1349   :  { %19151 = vmatprep.mubr.f32.mxu0 %v13386_v23  ;;  %20231 = vmatpush3.bf16.msra.mxu0 %v24430_v14  ;;  %v24528_v23 = vld [vmem:[#allocation10] sm:$0xff] }
0x134a   :  { %20233 = vmatprep.subr.bf16.mxu0 %v20208_v52  ;;  %v13999_v51 = vand.u32 4294901760, %v24528_v23 }
0x134c   :  { %19152 = vmatmul.mubr.f32.gmra.mrb[28].mxu0 %v13396_v11  ;;  %v24540_v25 = vpack.c.bf16 %v14002_v19, %v13999_v51  ;;  %v14109_v47 = vsub.f32 %v24528_v23, %v13999_v51 }
0x134d   :  { %20235 = vmatpush3.bf16.msra.mxu0 %v20208_v52  ;;  %19162 = vmatprep.mubr.f32.mxu0 %v13367_v36  ;;  %v25439_v36 = vld [vmem:[#allocation16_spill] sm:$0xff] }
0x134e   :  { %20237 = vmatprep.subr.bf16.mxu0 %v24436_v60  ;;  %v13267_v28 = vrot.slane %v24480_v55, %v25439_v36  ;;  %20253 = vmatprep.subr.bf16.mxu1 %v24540_v25  ;;  %v14110_v48 = vand.u32 4294901760, %v14109_v47 }
0x134f   :  { %20255 = vmatpush3.bf16.msra.mxu1 %v24540_v25 }
0x1350   :  { %19163 = vmatmul.mubr.f32.vlgmr.msra.gmra.mrb[26].mxu0 %v13377_v27  ;;  %v14111_v26 = vsub.f32 %v14109_v47, %v14110_v48 }
0x1351   :  { %19165 = vmatprep.mubr.f32.mxu0 %v13387_v44  ;;  %20239 = vmatpush3.bf16.msra.mxu0 %v24436_v60  ;;  %v14005_v44 = vand.u32 4294901760, %v24532_v38 }
0x1352   :  { %20241 = vmatprep.subr.bf16.mxu0 %v20240_v45  ;;  %v14112_v63 = vand.u32 4294901760, %v14111_v26 }
0x1353   :  { %v14123_v42 = vsub.f32 %v24532_v38, %v14005_v44 }
0x1354   :  { %19166 = vmatmul.mubr.f32.gmra.mrb[28].mxu0 %v13397_v5 }
0x1355   :  { %20243 = vmatpush3.bf16.msra.mxu0 %v20240_v45  ;;  %19176 = vmatprep.mubr.f32.mxu0 %v24419_v59  ;;  %v14124_v45 = vand.u32 4294901760, %v14123_v42 }
0x1356   :  { %20245 = vmatprep.subr.bf16.mxu0 %v24430_v14 }
0x1358   :  { %19177 = vmatmul.mubr.f32.vlgmr.msra.gmra.mrb[26].mxu0 %v24442_v61 }
0x1359   :  { %19179 = vmatprep.mubr.f32.mxu0 %v24454_v58  ;;  %20247 = vmatpush3.bf16.msra.mxu0 %v24430_v14 }
0x135a   :  { %20249 = vmatprep.subr.bf16.mxu0 %v20208_v52 }
0x135c   :  { %19180 = vmatmul.mubr.f32.gmra.mrb[28].mxu0 %v24448_v29 }
0x135d   :  { %20251 = vmatpush3.bf16.msra.mxu0 %v20208_v52  ;;  %19190 = vmatprep.mubr.f32.mxu0 %v24419_v59  ;;  %v24536_v52 = vld [vmem:[#allocation10 + $0x18] sm:$0xff] }
0x135e   :  { %v14008_v5 = vand.u32 4294901760, %v24536_v52 }
0x1360   :  { %19191 = vmatmul.mubr.f32.vlgmr.msra.gmra.mrb[26].mxu0 %v24442_v61  ;;  %v24542_v62 = vpack.c.bf16 %v14008_v5, %v14005_v44  ;;  %v14130_v18 = vsub.f32 %v24536_v52, %v14008_v5 }
0x1361   :  { %19193 = vmatprep.mubr.f32.mxu0 %v24454_v58 }
0x1362   :  { %20257 = vmatprep.subr.bf16.mxu1 %v24542_v62 }
0x1363   :  { %20259 = vmatpush3.bf16.msra.mxu1 %v24542_v62 }
0x1364   :  { %19194 = vmatmul.mubr.f32.gmra.mrb[28].mxu0 %v24448_v29 }
0x1433   :  { %v19192_v10 = vpop.f32.mrb[26].mxu0 }
0x1434   :  { %v20532_v21 = vadd.f32 %v19192_v10, %v13267_v28  ;;  %v13888_v24 = vpop.f32.mrb[27].mxu0  ;;  %v24552_v10 = vpack.c.bf16 %v14119_v6, %v14112_v63 }
0x1435   :  { %v20533_v15 = vadd.f32 %v13888_v24, %v13267_v28 }
0x1436   :  { %v24485_v14 = vadd.f32 %v20532_v21, %v25440_v41  ;;  %v14125_v21 = vsub.f32 %v14123_v42, %v14124_v45  ;;  %20261 = vmatprep.subr.bf16.mxu1 %v24552_v10 }
0x1437   :  { %v24488_v59 = vadd.f32 %v20533_v15, %v25441_v43  ;;  %v19195_v12 = vpop.f32.mrb[28].mxu0  ;;  %v24554_v15 = vpack.c.bf16 %v14116_v13, %v14109_v47 }
0x1438   :  { %v13900_v8 = vpop.f32.mrb[29].mxu0  ;;  %v13917_v33 = vsel %vm145_vm0, %v24485_v14, 0.0  ;;  %v20534_v7 = vadd.f32 %v19195_v12, %v13267_v28  ;;  %v14126_v41 = vand.u32 4294901760, %v14125_v21 }
0x1439   :  { %v20535_v60 = vadd.f32 %v13900_v8, %v13267_v28  ;;  %13918 = vadd.xlane.f32.xlu1 %v13917_v33  ;;  %v13914_v40 = vsel %vm145_vm0, %v24488_v59, 0.0  ;;  %v14131_v28 = vand.u32 4294901760, %v14130_v18  ;;  %v24559_v8 = vpack.c.bf16 %v14130_v18, %v14123_v42 }
0x143a   :  { %13915 = vadd.xlane.f32.xlu0 %v13914_v40  ;;  %v24498_v39 = vadd.f32 %v20534_v7, %v25443_v9  ;;  %v24561_v33 = vpack.c.bf16 %v14117_v22, %v14110_v48 }
0x143b   :  { %v24495_v31 = vadd.f32 %v20535_v60, %v25442_v1  ;;  %v14132_v24 = vsub.f32 %v14130_v18, %v14131_v28  ;;  %v24563_v7 = vpack.c.bf16 %v14131_v28, %v14124_v45 }
0x143c   :  { %v13923_v4 = vsel %vm145_vm0, %v24498_v39, 0.0 }
0x143d   :  { %v13920_v49 = vsel %vm145_vm0, %v24495_v31, 0.0  ;;  %v14133_v43 = vand.u32 4294901760, %v14132_v24 }
0x143e   :  { %13921 = vadd.xlane.f32.xlu0 %v13920_v49 }
0x143f   :  { %v24557_v12 = vpack.c.bf16 %v14133_v43, %v14126_v41 }
0x1442   :  { %13924 = vadd.xlane.f32.xlu0 %v13923_v4 }
0x14c6   :  { %v13919_v17 = vpop.xlane.xlu1 %13918 }
0x14c7   :  { %v13927_v53 = vmul.f32 0.03125, %v13919_v17  ;;  %v13916_v35 = vpop.xlane.xlu0 %13915 }
0x14c8   :  { %v13926_v61 = vmul.f32 0.03125, %v13916_v35 }
0x14c9   :  { %v24505_v57 = vsub.f32 %v24485_v14, %v13927_v53 }
0x14ca   :  { %v24508_v0 = vsub.f32 %v24488_v59, %v13926_v61 }
0x14cb   :  { %v13922_v20 = vpop.xlane.xlu0 %13921  ;;  %v13935_v46 = vmul.f32 %v24505_v57, %v24505_v57 }
0x14cc   :  { %v13928_v54 = vmul.f32 0.03125, %v13922_v20  ;;  %v13934_v3 = vmul.f32 %v24508_v0, %v24508_v0 }
0x14cd   :  { %v13941_v29 = vsel %vm145_vm0, %v13935_v46, 0.0 }
0x14ce   :  { %v24516_v34 = vsub.f32 %v24495_v31, %v13928_v54  ;;  %13942 = vadd.xlane.f32.xlu1 %v13941_v29  ;;  %v13938_v32 = vsel %vm145_vm0, %v13934_v3, 0.0  ;;  %v25444_v54 = vld [vmem:[#allocation17_spill] sm:$0xff] }
0x14cf   :  { %13939 = vadd.xlane.f32.xlu0 %v13938_v32  ;;  %v13925_v37 = vpop.xlane.xlu0 %13924  ;;  %v13969_v3 = vrot.slane %v24480_v55, %v25444_v54 }
0x14d0   :  { %v13929_v50 = vmul.f32 0.03125, %v13925_v37  ;;  %v13936_v27 = vmul.f32 %v24516_v34, %v24516_v34 }
0x14d2   :  { %v24522_v30 = vsub.f32 %v24498_v39, %v13929_v50  ;;  %v13944_v11 = vsel %vm145_vm0, %v13936_v27, 0.0  ;;  %v25445_v50 = vld [vmem:[#allocation18_spill] sm:$0xff] }
0x14d3   :  { %13945 = vadd.xlane.f32.xlu0 %v13944_v11  ;;  %v13977_v27 = vrot.slane %v24480_v55, %v25445_v50 }
0x14d4   :  { %v13937_v58 = vmul.f32 %v24522_v30, %v24522_v30 }
0x14d6   :  { %v13947_v16 = vsel %vm145_vm0, %v13937_v58, 0.0 }
0x14d7   :  { %13948 = vadd.xlane.f32.xlu1 %v13947_v16 }
0x155b   :  { %v13943_v60 = vpop.xlane.xlu1 %13942 }
0x155c   :  { %v13951_v40 = vmul.f32 0.03125, %v13943_v60  ;;  %v13940_v1 = vpop.xlane.xlu0 %13939 }
0x155d   :  { %v13950_v9 = vmul.f32 0.03125, %v13940_v1 }
0x155e   :  { %v13955_v49 = vadd.f32 1e-05, %v13951_v40 }
0x155f   :  { %v13954_v4 = vadd.f32 1e-05, %v13950_v9 }
0x1560   :  { %21166 = vrsqrt.f32 %v13955_v49  ;;  %v13946_v17 = vpop.xlane.xlu0 %13945 }
0x1561   :  { %21168 = vrsqrt.f32 %v13954_v4  ;;  %v13952_v53 = vmul.f32 0.03125, %v13946_v17 }
0x1563   :  { %v13956_v35 = vadd.f32 1e-05, %v13952_v53 }
0x1564   :  { %v13949_v61 = vpop.xlane.xlu1 %13948 }
0x1565   :  { %21170 = vrsqrt.f32 %v13956_v35  ;;  %v13953_v20 = vmul.f32 0.03125, %v13949_v61 }
0x1567   :  { %v13957_v46 = vadd.f32 1e-05, %v13953_v20 }
0x1569   :  { %21172 = vrsqrt.f32 %v13957_v46 }
0x156a   :  { %v21167_v29 = vpop.eup %21166 }
0x156b   :  { %v21169_v32 = vpop.eup %21168  ;;  %v13963_v37 = vmul.f32 %v21167_v29, %v24505_v57 }
0x156c   :  { %v13962_v11 = vmul.f32 %v21169_v32, %v24508_v0 }
0x156d   :  { %v13971_v58 = vmul.f32 %v13969_v3, %v13963_v37 }
0x156e   :  { %v13970_v16 = vmul.f32 %v13969_v3, %v13962_v11 }
0x156f   :  { %v21171_v51 = vpop.eup %21170  ;;  %v13979_v19 = vadd.f32 %v13977_v27, %v13971_v58 }
0x1570   :  { %v13964_v44 = vmul.f32 %v21171_v51, %v24516_v34  ;;  %v13978_v5 = vadd.f32 %v13977_v27, %v13970_v16 }
0x1571   :  { %v13990_v47 = vsel %vm145_vm0, %v13979_v19, 0 }
0x1572   :  { %v13987_v13 = vsel %vm145_vm0, %v13978_v5, 0  ;;  %v24574_v48 = vand.u32 4294901760, %v13990_v47  ;;  %v13972_v22 = vmul.f32 %v13969_v3, %v13964_v44 }
0x1573   :  { %v21173_v57 = vpop.eup %21172  ;;  %v24576_v26 = vand.u32 4294901760, %v13987_v13 }
0x1574   :  { %v13965_v56 = vmul.f32 %v21173_v57, %v24522_v30  ;;  %v14078_v0 = vsub.f32 %v13990_v47, %v24574_v48  ;;  %v13980_v42 = vadd.f32 %v13977_v27, %v13972_v22  ;;  %v24630_v57 = vld [vmem:[#allocation5 + $0x10] sm:$0xff] }
0x1575   :  { %v14068_v18 = vsub.f32 %v13987_v13, %v24576_v26 }
0x1576   :  { %v14079_v63 = vand.u32 4294901760, %v14078_v0  ;;  %v13993_v34 = vsel %vm145_vm0, %v13980_v42, 0  ;;  %v13973_v6 = vmul.f32 %v13969_v3, %v13965_v56 }
0x1577   :  { %v14069_v45 = vand.u32 4294901760, %v14068_v18  ;;  %v14087_v28 = vand.u32 4294901760, %v13993_v34 }
0x1578   :  { %v14080_v21 = vsub.f32 %v14078_v0, %v14079_v63  ;;  %v13981_v24 = vadd.f32 %v13977_v27, %v13973_v6 }
0x1579   :  { %v14070_v41 = vsub.f32 %v14068_v18, %v14069_v45  ;;  %v14088_v43 = vsub.f32 %v13993_v34, %v14087_v28  ;;  %v25448_v34 = vld [vmem:[#allocation45_spill] sm:$0xff] }
0x157a   :  { %v13996_v60 = vsel %vm145_vm0, %v13981_v24, 0  ;;  %v14081_v9 = vand.u32 4294901760, %v14080_v21  ;;  %v25449_v24 = vld [vmem:[#allocation25_spill] sm:$0xff] }
0x157b   :  { %v14071_v40 = vand.u32 4294901760, %v14070_v41  ;;  %v14089_v1 = vand.u32 4294901760, %v14088_v43  ;;  %v14097_v30 = vand.u32 4294901760, %v13996_v60  ;;  %v24655_v41 = vrot.slane %v24630_v57, %v25449_v24 }
0x157d   :  { %19204 = vmatprep.mubr.f32.mxu1 %v14071_v40  ;;  %v14090_v49 = vsub.f32 %v14088_v43, %v14089_v1  ;;  %v14098_v4 = vsub.f32 %v13996_v60, %v14097_v30 }
0x157e   :  { %19205 = vmatmul.mubr.f32.vlgmr.msra.gmra.mrb[22].mxu1 %v14081_v9 }
0x157f   :  { %v14091_v17 = vand.u32 4294901760, %v14090_v49  ;;  %20263 = vmatpush3.bf16.msra.mxu1 %v24552_v10  ;;  %v14099_v53 = vand.u32 4294901760, %v14098_v4  ;;  %v21243_v10 = vld [vmem:[%s25177_s4] sm:$0x7] }
0x1580   :  { %20265 = vmatprep.subr.bf16.mxu1 %v24557_v12 }
0x1581   :  { %19207 = vmatprep.mubr.f32.mxu1 %v14091_v17  ;;  %v14100_v35 = vsub.f32 %v14098_v4, %v14099_v53 }
0x1583   :  { %v14101_v61 = vand.u32 4294901760, %v14100_v35  ;;  %20267 = vmatpush3.bf16.msra.mxu1 %v24557_v12 }
0x1584   :  { %20269 = vmatprep.subr.bf16.mxu1 %v24554_v15 }
0x1585   :  { %19208 = vmatmul.mubr.f32.gmra.mrb[24].mxu1 %v14101_v61 }
0x1586   :  { %19218 = vmatprep.mubr.f32.mxu1 %v24576_v26 }
0x1589   :  { %19219 = vmatmul.mubr.f32.vlgmr.msra.gmra.mrb[22].mxu1 %v24574_v48 }
0x158a   :  { %19221 = vmatprep.mubr.f32.mxu1 %v14087_v28  ;;  %20271 = vmatpush3.bf16.msra.mxu1 %v24554_v15  ;;  %v13985_v15 = vrot.slane %v21243_v10, %v25445_v50  ;;  %v25450_v10 = vld [vmem:[#allocation24_spill] sm:$0xff] }
0x158b   :  { %20273 = vmatprep.subr.bf16.mxu1 %v24559_v8 }
0x158d   :  { %19222 = vmatmul.mubr.f32.gmra.mrb[24].mxu1 %v14097_v30 }
0x158e   :  { %20275 = vmatpush3.bf16.msra.mxu1 %v24559_v8  ;;  %19232 = vmatprep.mubr.f32.mxu1 %v14068_v18 }
0x158f   :  { %20277 = vmatprep.subr.bf16.mxu1 %v24540_v25 }
0x1591   :  { %19233 = vmatmul.mubr.f32.vlgmr.msra.gmra.mrb[22].mxu1 %v14078_v0  ;;  %v25446_v0 = vld [vmem:[#allocation23_spill] sm:$0xff] }
0x1592   :  { %19235 = vmatprep.mubr.f32.mxu1 %v14088_v43  ;;  %20279 = vmatpush3.bf16.msra.mxu1 %v24540_v25  ;;  %v24634_v42 = vrot.slane %v24630_v57, %v25446_v0 }
0x1593   :  { %20281 = vmatprep.subr.bf16.mxu1 %v24542_v62 }
0x1595   :  { %19236 = vmatmul.mubr.f32.gmra.mrb[24].mxu1 %v14098_v4 }
0x1596   :  { %20283 = vmatpush3.bf16.msra.mxu1 %v24542_v62  ;;  %19246 = vmatprep.mubr.f32.mxu1 %v14069_v45 }
0x1597   :  { %20285 = vmatprep.subr.bf16.mxu1 %v24561_v33 }
0x1599   :  { %19247 = vmatmul.mubr.f32.vlgmr.msra.gmra.mrb[22].mxu1 %v14079_v63 }
0x159a   :  { %19249 = vmatprep.mubr.f32.mxu1 %v14089_v1  ;;  %20287 = vmatpush3.bf16.msra.mxu1 %v24561_v33 }
0x159b   :  { %20289 = vmatprep.subr.bf16.mxu1 %v24563_v7 }
0x159d   :  { %19250 = vmatmul.mubr.f32.gmra.mrb[24].mxu1 %v14099_v53 }
0x159e   :  { %20291 = vmatpush3.bf16.msra.mxu1 %v24563_v7  ;;  %19260 = vmatprep.mubr.f32.mxu1 %v24576_v26 }
0x159f   :  { %20293 = vmatprep.subr.bf16.mxu1 %v24540_v25 }
0x15a1   :  { %19261 = vmatmul.mubr.f32.vlgmr.msra.gmra.mrb[22].mxu1 %v24574_v48 }
0x15a2   :  { %19263 = vmatprep.mubr.f32.mxu1 %v14087_v28  ;;  %20295 = vmatpush3.bf16.msra.mxu1 %v24540_v25 }
0x15a3   :  { %20297 = vmatprep.subr.bf16.mxu1 %v24542_v62 }
0x15a5   :  { %19264 = vmatmul.mubr.f32.gmra.mrb[24].mxu1 %v14097_v30 }
0x15a6   :  { %20299 = vmatpush3.bf16.msra.mxu1 %v24542_v62  ;;  %19274 = vmatprep.mubr.f32.mxu1 %v24576_v26  ;;  %v117_v26 = vld [vmem:[#allocation5 + $0x18] sm:$0x7] }
0x15a7   :  { %v24648_v45 = vrot.slane %v117_v26, %v25444_v54 }
0x15a9   :  { %19275 = vmatmul.mubr.f32.vlgmr.msra.gmra.mrb[22].mxu1 %v24574_v48 }
0x15aa   :  { %19277 = vmatprep.mubr.f32.mxu1 %v14087_v28  ;;  %v24651_v28 = vrot.slane %v117_v26, %v25445_v50 }
0x15ad   :  { %19278 = vmatmul.mubr.f32.gmra.mrb[24].mxu1 %v14097_v30 }
0x167c   :  { %v19276_v12 = vpop.f32.mrb[22].mxu1 }
0x167d   :  { %v20536_v8 = vadd.f32 %v19276_v12, %v13985_v15  ;;  %v14590_v25 = vpop.f32.mrb[23].mxu1  ;;  %v24676_v12 = vrot.slane %v24480_v55, %v25449_v24 }
0x167e   :  { %v20537_v33 = vadd.f32 %v14590_v25, %v13985_v15 }
0x167f   :  { %v17181_v7 = vmul.f32 -1.442695, %v20536_v8 }
0x1680   :  { %v17180_v20 = vmul.f32 -1.442695, %v20537_v33  ;;  %v19279_v46 = vpop.f32.mrb[24].mxu1 }
0x1681   :  { %21174 = vpow2.f32 %v17181_v7  ;;  %v24612_v62 = vadd.f32 %v19279_v46, %v13985_v15  ;;  %v14602_v3 = vpop.f32.mrb[25].mxu1 }
0x1682   :  { %21176 = vpow2.f32 %v17180_v20  ;;  %v24614_v29 = vadd.f32 %v14602_v3, %v13985_v15  ;;  %v24672_v15 = vrot.slane %v24480_v55, %v25450_v10 }
0x1683   :  { %v17183_v32 = vmul.f32 -1.442695, %v24612_v62 }
0x1684   :  { %v17182_v37 = vmul.f32 -1.442695, %v24614_v29 }
0x1685   :  { %21178 = vpow2.f32 %v17183_v32 }
0x1686   :  { %21180 = vpow2.f32 %v17182_v37 }
0x168b   :  { %v21175_v27 = vpop.eup %21174 }
0x168c   :  { %v21177_v11 = vpop.eup %21176  ;;  %v14625_v58 = vadd.f32 1.0, %v21175_v27 }
0x168d   :  { %v14624_v16 = vadd.f32 1.0, %v21177_v11 }
0x168e   :  { %21182 = vrcp.f32 %v14625_v58 }
0x168f   :  { %v21179_v51 = vpop.eup %21178  ;;  %21184 = vrcp.f32 %v14624_v16 }
0x1690   :  { %v21181_v19 = vpop.eup %21180  ;;  %v14627_v5 = vadd.f32 1.0, %v21179_v51 }
0x1691   :  { %v14626_v44 = vadd.f32 1.0, %v21181_v19 }
0x1693   :  { %21186 = vrcp.f32 %v14626_v44 }
0x1694   :  { %21188 = vrcp.f32 %v14627_v5 }
0x1698   :  { %v21183_v47 = vpop.eup %21182 }
0x1699   :  { %v21185_v13 = vpop.eup %21184  ;;  %14642 = vrot.lane.b32.xlu1 %v21183_v47, %s21409_s17 }
0x169a   :  { %14640 = vrot.lane.b32.xlu0 %v21185_v13, %s21409_s17 }
0x169d   :  { %v21187_v48 = vpop.eup %21186 }
0x169e   :  { %14644 = vrot.lane.b32.xlu1 %v21187_v48, %s21409_s17  ;;  %14958 = vrot.lane.b32.xlu0 %v24528_v23, %s21420_s2  ;;  %v21189_v22 = vpop.eup %21188  ;;  %v25447_v23 = vld [vmem:[#allocation26_spill] sm:$0xff] }
0x169f   :  { %v24638_v18 = vrot.slane %v24630_v57, %v25447_v23 }
0x16a2   :  { %14646 = vrot.lane.b32.xlu1 %v21189_v22, %s21409_s17  ;;  %14962 = vrot.lane.b32.xlu0 %v24532_v38, %s21420_s2 }
0x16a6   :  { %14960 = vrot.lane.b32.xlu1 %v24530_v2, %s21420_s2  ;;  %v24642_v2 = vrot.slane %v24630_v57, %v25448_v34 }
0x16aa   :  { %14964 = vrot.lane.b32.xlu1 %v24536_v52, %s21420_s2  ;;  %v24645_v52 = vrot.slane %v117_v26, %v25439_v36 }
0x170b   :  { %v14643_v56 = vpop.permute.xlu1 %14642 }
0x170c   :  { %v14653_v63 = vmul.f32 %v20536_v8, %v14643_v56  ;;  %v14641_v38 = vpop.permute.xlu0 %14640 }
0x170d   :  { %v14652_v6 = vmul.f32 %v20537_v33, %v14641_v38 }
0x170e   :  { %v14662_v21 = vrot.slane %v14653_v63, 5 }
0x170f   :  { %v14661_v43 = vrot.slane %v14652_v6, 5 }
0x1710   :  { %v14675_v60 = vsel %vm14660_vm2, %v14662_v21, 0.0  ;;  %v14645_v20 = vpop.permute.xlu1 %14644 }
0x1711   :  { %v14695_v40 = vmul.f32 %v24638_v18, %v14675_v60  ;;  %v14730_v1 = vmul.f32 %v24634_v42, %v14675_v60  ;;  %v14765_v30 = vmul.f32 %v24642_v2, %v14675_v60  ;;  %v14800_v9 = vmul.f32 %v24645_v52, %v14675_v60 }
0x1712   :  { %v24663_v49 = vmul.f32 %v24648_v45, %v14675_v60  ;;  %v24666_v4 = vmul.f32 %v24651_v28, %v14675_v60  ;;  %v14663_v17 = vsel %vm14660_vm2, %v14661_v43, %v14662_v21  ;;  %v14673_v53 = vsel %vm14660_vm2, 0.0, %v14661_v43 }
0x1713   :  { %v14709_v35 = vrot.slane %v14695_v40, 1  ;;  %v14744_v61 = vrot.slane %v14730_v1, 2  ;;  %v14779_v8 = vrot.slane %v14765_v30, 3  ;;  %v14814_v25 = vrot.slane %v14800_v9, 4 }
0x1714   :  { %v14848_v33 = vrot.slane %v24663_v49, 5  ;;  %v14883_v7 = vrot.slane %v24666_v4, 6  ;;  %v14693_v46 = vmul.f32 %v24638_v18, %v14673_v53  ;;  %v14694_v3 = vmul.f32 %v24638_v18, %v14663_v17  ;;  %v14647_v60 = vpop.permute.xlu1 %14646 }
0x1715   :  { %v14728_v32 = vmul.f32 %v24634_v42, %v14673_v53  ;;  %v14729_v37 = vmul.f32 %v24634_v42, %v14663_v17  ;;  %v14763_v27 = vmul.f32 %v24642_v2, %v14673_v53  ;;  %v14764_v11 = vmul.f32 %v24642_v2, %v14663_v17 }
0x1716   :  { %v14798_v58 = vmul.f32 %v24645_v52, %v14673_v53  ;;  %v14799_v16 = vmul.f32 %v24645_v52, %v14663_v17  ;;  %v14706_v51 = vrot.slane %v14693_v46, 1  ;;  %v14707_v19 = vrot.slane %v14694_v3, 1 }
0x1717   :  { %v14741_v44 = vrot.slane %v14728_v32, 2  ;;  %v14742_v5 = vrot.slane %v14729_v37, 2  ;;  %v14681_v47 = vmul.f32 %v24655_v41, %v14673_v53  ;;  %v14682_v13 = vmul.f32 %v24655_v41, %v14663_v17 }
0x1718   :  { %v14776_v48 = vrot.slane %v14763_v27, 3  ;;  %v14777_v22 = vrot.slane %v14764_v11, 3  ;;  %v14708_v26 = vsel %vm14705_vm14, %v14706_v51, %v14707_v19  ;;  %v14710_v56 = vsel %vm14705_vm14, %v14707_v19, %v14709_v35  ;;  %v24713_v19 = vpop.permute.xlu1 %14960 }
0x1719   :  { %v14811_v63 = vrot.slane %v14798_v58, 4  ;;  %v14812_v38 = vrot.slane %v14799_v16, 4  ;;  %v14720_v6 = vadd.f32 %v14708_v26, %v14681_v47  ;;  %v14721_v21 = vadd.f32 %v14710_v56, %v14682_v13 }
0x171a   :  { %v14743_v24 = vsel %vm14740_vm15, %v14741_v44, %v14742_v5  ;;  %v14745_v43 = vsel %vm14740_vm15, %v14742_v5, %v14744_v61  ;;  %v14778_v40 = vsel %vm14775_vm3, %v14776_v48, %v14777_v22  ;;  %v14780_v1 = vsel %vm14775_vm3, %v14777_v22, %v14779_v8 }
0x171b   :  { %v14833_v30 = vmul.f32 %v24648_v45, %v14673_v53  ;;  %v14834_v9 = vmul.f32 %v24648_v45, %v14663_v17  ;;  %v14755_v49 = vadd.f32 %v14743_v24, %v14720_v6  ;;  %v14756_v4 = vadd.f32 %v14745_v43, %v14721_v21 }
0x171c   :  { %v24699_v35 = vmul.f32 %v24651_v28, %v14673_v53  ;;  %v24702_v46 = vmul.f32 %v24651_v28, %v14663_v17  ;;  %v14654_v61 = vmul.f32 %v24614_v29, %v14645_v20  ;;  %v14655_v37 = vmul.f32 %v24612_v62, %v14647_v60 }
0x171d   :  { %v14845_v3 = vrot.slane %v14833_v30, 5  ;;  %v14846_v32 = vrot.slane %v14834_v9, 5  ;;  %v14790_v27 = vadd.f32 %v14778_v40, %v14755_v49  ;;  %v14791_v8 = vadd.f32 %v14780_v1, %v14756_v4 }
0x171e   :  { %v14881_v11 = vrot.slane %v24702_v46, 6  ;;  %v24709_v58 = vrot.slane %v24480_v55, %v25447_v23  ;;  %v14813_v53 = vsel %vm14810_vm4, %v14811_v63, %v14812_v38  ;;  %v14815_v16 = vsel %vm14810_vm4, %v14812_v38, %v14814_v25 }
0x171f   :  { %v14664_v17 = vrot.slane %v14654_v61, 5  ;;  %v14665_v51 = vrot.slane %v14655_v37, 5  ;;  %v14825_v44 = vadd.f32 %v14813_v53, %v14790_v27  ;;  %v14826_v29 = vadd.f32 %v14815_v16, %v14791_v8 }
0x1720   :  { %v14847_v62 = vsel %vm14660_vm2, %v14845_v3, %v14846_v32  ;;  %v14880_v20 = vrot.slane %v24699_v35, 6  ;;  %v14849_v5 = vsel %vm14660_vm2, %v14846_v32, %v14848_v33  ;;  %v14884_v55 = vsel %vm14879_vm5, %v14881_v11, %v14883_v7 }
0x1721   :  { %v14674_v23 = vsel %vm14660_vm2, 0.0, %v14664_v17  ;;  %v14666_v25 = vsel %vm14660_vm2, %v14664_v17, %v14665_v51  ;;  %v14860_v47 = vadd.f32 %v14849_v5, %v14826_v29  ;;  %v14676_v48 = vsel %vm14660_vm2, %v14665_v51, 0.0 }
0x1722   :  { %v14696_v13 = vmul.f32 %v24638_v18, %v14674_v23  ;;  %v14986_v22 = vand.u32 4294901760, %v24713_v19  ;;  %v24726_v26 = vadd.f32 %v14847_v62, %v14825_v44  ;;  %v14731_v56 = vmul.f32 %v24634_v42, %v14674_v23  ;;  %v14959_v62 = vpop.permute.xlu0 %14958 }
0x1723   :  { %v14766_v33 = vmul.f32 %v24642_v2, %v14674_v23  ;;  %v14801_v63 = vmul.f32 %v24645_v52, %v14674_v23  ;;  %v14895_v7 = vadd.f32 %v14884_v55, %v14860_v47  ;;  %v14683_v38 = vmul.f32 %v24655_v41, %v14674_v23 }
0x1724   :  { %v14711_v6 = vrot.slane %v14696_v13, 1  ;;  %v24733_v21 = vmul.f32 %v24648_v45, %v14674_v23  ;;  %v14746_v24 = vrot.slane %v14731_v56, 2  ;;  %v24736_v60 = vmul.f32 %v24651_v28, %v14674_v23 }
0x1725   :  { %v14781_v43 = vrot.slane %v14766_v33, 3  ;;  %v14684_v40 = vmul.f32 %v24655_v41, %v14666_v25  ;;  %v14903_v1 = vadd.f32 %v24672_v15, %v14895_v7  ;;  %v14816_v30 = vrot.slane %v14801_v63, 4 }
0x1726   :  { %v14697_v9 = vmul.f32 %v24638_v18, %v14666_v25  ;;  %v14698_v49 = vmul.f32 %v24638_v18, %v14676_v48  ;;  %v14732_v4 = vmul.f32 %v24634_v42, %v14666_v25  ;;  %v14733_v3 = vmul.f32 %v24634_v42, %v14676_v48 }
0x1727   :  { %v14767_v32 = vmul.f32 %v24642_v2, %v14666_v25  ;;  %v14768_v61 = vmul.f32 %v24642_v2, %v14676_v48  ;;  %v14802_v8 = vmul.f32 %v24645_v52, %v14666_v25  ;;  %v14803_v41 = vmul.f32 %v24645_v52, %v14676_v48 }
0x1728   :  { %v14712_v37 = vrot.slane %v14697_v9, 1  ;;  %v14714_v27 = vrot.slane %v14698_v49, 1  ;;  %v14747_v53 = vrot.slane %v14732_v4, 2  ;;  %v14749_v16 = vrot.slane %v14733_v3, 2  ;;  %v24763_v3 = vpop.permute.xlu1 %14964 }
0x1729   :  { %v14782_v17 = vrot.slane %v14767_v32, 3  ;;  %v14784_v51 = vrot.slane %v14768_v61, 3  ;;  %v14817_v29 = vrot.slane %v14802_v8, 4  ;;  %v14819_v42 = vrot.slane %v14803_v41, 4 }
0x172a   :  { %v14713_v18 = vsel %vm14705_vm14, %v14711_v6, %v14712_v37  ;;  %v14715_v44 = vsel %vm14705_vm14, %v14712_v37, %v14714_v27  ;;  %v14748_v2 = vsel %vm14740_vm15, %v14746_v24, %v14747_v53  ;;  %v14750_v23 = vsel %vm14740_vm15, %v14747_v53, %v14749_v16 }
0x172b   :  { %v14722_v5 = vadd.f32 %v14713_v18, %v14683_v38  ;;  %v14723_v55 = vadd.f32 %v14715_v44, %v14684_v40  ;;  %v14783_v47 = vsel %vm14775_vm3, %v14781_v43, %v14782_v17  ;;  %v14785_v52 = vsel %vm14775_vm3, %v14782_v17, %v14784_v51 }
0x172c   :  { %v14818_v13 = vsel %vm14810_vm4, %v14816_v30, %v14817_v29  ;;  %v14820_v56 = vsel %vm14810_vm4, %v14817_v29, %v14819_v42  ;;  %v14837_v7 = vmul.f32 %v24648_v45, %v14666_v25  ;;  %v14838_v6 = vmul.f32 %v24648_v45, %v14676_v48  ;;  %v24768_v45 = vpop.permute.xlu0 %14962 }
0x172d   :  { %v14757_v33 = vadd.f32 %v14748_v2, %v14722_v5  ;;  %v14758_v63 = vadd.f32 %v14750_v23, %v14723_v55  ;;  %v14871_v38 = vmul.f32 %v24651_v28, %v14666_v25  ;;  %v14872_v24 = vmul.f32 %v24651_v28, %v14676_v48 }
0x172e   :  { %v24761_v40 = vsub.f32 %v24713_v19, %v14986_v22  ;;  %v14983_v43 = vand.u32 4294901760, %v14959_v62  ;;  %v14851_v4 = vrot.slane %v14837_v7, 5  ;;  %v14853_v30 = vrot.slane %v14838_v6, 5 }
0x172f   :  { %v14792_v9 = vadd.f32 %v14783_v47, %v14757_v33  ;;  %v14793_v49 = vadd.f32 %v14785_v52, %v14758_v63  ;;  %v14886_v32 = vrot.slane %v14871_v38, 6  ;;  %v14888_v61 = vrot.slane %v14872_v24, 6 }
0x1730   :  { %v15101_v37 = vand.u32 4294901760, %v24761_v40  ;;  %v24766_v27 = vpack.c.bf16 %v14986_v22, %v14983_v43  ;;  %v14882_v28 = vsel %vm14879_vm5, %v14880_v20, %v14881_v11  ;;  %v14850_v19 = vrot.slane %v24733_v21, 5 }
0x1731   :  { %v14827_v25 = vadd.f32 %v14818_v13, %v14792_v9  ;;  %v14828_v48 = vadd.f32 %v14820_v56, %v14793_v49  ;;  %v14854_v8 = vsel %vm14660_vm2, %v14851_v4, %v14853_v30  ;;  %v24778_v53 = vsub.f32 %v14959_v62, %v14983_v43 }
0x1732   :  { %v15102_v41 = vsub.f32 %v24761_v40, %v15101_v37  ;;  %v14992_v22 = vand.u32 4294901760, %v24763_v3  ;;  %20301 = vmatprep.subr.bf16.mxu0 %v24766_v27  ;;  %v14989_v46 = vand.u32 4294901760, %v24768_v45  ;;  %v14894_v35 = vadd.f32 %v14882_v28, %v24726_v26 }
0x1733   :  { %v14862_v16 = vadd.f32 %v14854_v8, %v14828_v48  ;;  %20303 = vmatpush3.bf16.msra.mxu0 %v24766_v27  ;;  %v14911_v11 = vmul.f32 %v24676_v12, %v14903_v1  ;;  %v14885_v20 = vrot.slane %v24736_v60, 6  ;;  %v14889_v21 = vsel %vm14879_vm5, %v14886_v32, %v14888_v61 }
0x1734   :  { %v15094_v17 = vand.u32 4294901760, %v24778_v53  ;;  %v14852_v51 = vsel %vm14660_vm2, %v14850_v19, %v14851_v4  ;;  %v24790_v44 = vpack.c.bf16 %v14992_v22, %v14989_v46  ;;  %v14902_v29 = vadd.f32 %v24672_v15, %v14894_v35 }
0x1735   :  { %v14897_v18 = vadd.f32 %v14889_v21, %v14862_v16  ;;  %v15103_v62 = vand.u32 4294901760, %v15102_v41  ;;  %v14919_v26 = vadd.f32 %v24709_v58, %v14911_v11  ;;  %v14861_v5 = vadd.f32 %v14852_v51, %v14827_v25 }
0x1736   :  { %v15095_v42 = vsub.f32 %v24778_v53, %v15094_v17  ;;  %20305 = vmatprep.subr.bf16.mxu0 %v24790_v44  ;;  %v14910_v60 = vmul.f32 %v24676_v12, %v14902_v29  ;;  %v14887_v1 = vsel %vm14879_vm5, %v14885_v20, %v14886_v32  ;;  %v24806_v6 = vpack.c.bf16 %v15101_v37, %v15094_v17 }
0x1737   :  { %v14905_v55 = vadd.f32 %v24672_v15, %v14897_v18  ;;  %20307 = vmatpush3.bf16.msra.mxu0 %v24790_v44  ;;  %v17185_v23 = vmul.f32 -1.442695, %v14919_v26  ;;  %v14896_v47 = vadd.f32 %v14887_v1, %v14861_v5  ;;  %v24812_v19 = vsub.f32 %v24763_v3, %v14992_v22 }
0x1738   :  { %v15096_v2 = vand.u32 4294901760, %v15095_v42  ;;  %v14918_v52 = vadd.f32 %v24709_v58, %v14910_v60 }
0x1739   :  { %v14913_v13 = vmul.f32 %v24676_v12, %v14905_v55  ;;  %21190 = vpow2.f32 %v17185_v23  ;;  %v14904_v33 = vadd.f32 %v24672_v15, %v14896_v47  ;;  %v15115_v41 = vand.u32 4294901760, %v24812_v19 }
0x173a   :  { %v24802_v56 = vpack.c.bf16 %v15103_v62, %v15096_v2  ;;  %v17184_v63 = vmul.f32 -1.442695, %v14918_v52 }
0x173b   :  { %v14921_v7 = vadd.f32 %v24709_v58, %v14913_v13  ;;  %v14912_v38 = vmul.f32 %v24676_v12, %v14904_v33 }
0x173c   :  { %20309 = vmatprep.subr.bf16.mxu0 %v24802_v56  ;;  %21192 = vpow2.f32 %v17184_v63 }
0x173d   :  { %v17187_v24 = vmul.f32 -1.442695, %v14921_v7  ;;  %v14920_v43 = vadd.f32 %v24709_v58, %v14912_v38  ;;  %v24815_v58 = vsub.f32 %v24768_v45, %v14989_v46  ;;  %v15116_v46 = vsub.f32 %v24812_v19, %v15115_v41 }
0x173f   :  { %21194 = vpow2.f32 %v17187_v24  ;;  %v17186_v9 = vmul.f32 -1.442695, %v14920_v43  ;;  %v15108_v16 = vand.u32 4294901760, %v24815_v58  ;;  %v15117_v23 = vand.u32 4294901760, %v15116_v46 }
0x1741   :  { %21196 = vpow2.f32 %v17186_v9  ;;  %v15109_v51 = vsub.f32 %v24815_v58, %v15108_v16 }
0x1743   :  { %v21191_v49 = vpop.eup %21190  ;;  %v15110_v2 = vand.u32 4294901760, %v15109_v51 }
0x1744   :  { %v14935_v4 = vadd.f32 1.0, %v21191_v49 }
0x1745   :  { %v20312_v38 = vpack.c.bf16 %v15117_v23, %v15110_v2  ;;  %v21248_v2 = vld [vmem:[%s25179_s6] sm:$0xff]  ;;  %v21249_v23 = vld [vmem:[#allocation7 + $0x18] sm:$0xff] }
0x1746   :  { %v21193_v30 = vpop.eup %21192  ;;  %21198 = vrcp.f32 %v14935_v4 }
0x1747   :  { %v14934_v15 = vadd.f32 1.0, %v21193_v30  ;;  %v20316_v30 = vpack.c.bf16 %v24761_v40, %v24778_v53  ;;  %v20336_v40 = vpack.c.bf16 %v15115_v41, %v15108_v16  ;;  %v24862_v53 = vld [vmem:[#allocation5 + $0x8] sm:$0xff] }
0x1749   :  { %v21195_v32 = vpop.eup %21194  ;;  %21200 = vrcp.f32 %v14934_v15  ;;  %v20320_v15 = vpack.c.bf16 %v24812_v19, %v24815_v58 }
0x174a   :  { %v14937_v61 = vadd.f32 1.0, %v21195_v32 }
0x174b   :  { %v21197_v37 = vpop.eup %21196 }
0x174c   :  { %21202 = vrcp.f32 %v14937_v61  ;;  %v14936_v28 = vadd.f32 1.0, %v21197_v37 }
0x174e   :  { %21204 = vrcp.f32 %v14936_v28 }
0x1750   :  { %v21199_v12 = vpop.eup %21198 }
0x1751   :  { %v14947_v25 = vmul.f32 %v21199_v12, %v14919_v26 }
0x1753   :  { %v21201_v48 = vpop.eup %21200  ;;  %v14974_v8 = vsel %vm145_vm0, %v14947_v25, 0 }
0x1754   :  { %v14946_v35 = vmul.f32 %v21201_v48, %v14918_v52  ;;  %v24820_v11 = vand.u32 4294901760, %v14974_v8 }
0x1756   :  { %v21203_v20 = vpop.eup %21202  ;;  %v14971_v21 = vsel %vm145_vm0, %v14946_v35, 0  ;;  %v15062_v3 = vsub.f32 %v14974_v8, %v24820_v11 }
0x1757   :  { %v14949_v22 = vmul.f32 %v21203_v20, %v14921_v7  ;;  %v24824_v17 = vand.u32 4294901760, %v14971_v21 }
0x1758   :  { %v21205_v45 = vpop.eup %21204  ;;  %v15063_v18 = vand.u32 4294901760, %v15062_v3 }
0x1759   :  { %v14980_v29 = vsel %vm145_vm0, %v14949_v22, 0  ;;  %v15052_v42 = vsub.f32 %v14971_v21, %v24824_v17  ;;  %v14948_v62 = vmul.f32 %v21205_v45, %v14920_v43 }
0x175a   :  { %v24832_v26 = vand.u32 4294901760, %v14980_v29  ;;  %v15064_v5 = vsub.f32 %v15062_v3, %v15063_v18 }
0x175b   :  { %v15053_v60 = vand.u32 4294901760, %v15052_v42  ;;  %v14977_v1 = vsel %vm145_vm0, %v14948_v62, 0 }
0x175c   :  { %v15082_v55 = vsub.f32 %v14980_v29, %v24832_v26  ;;  %v15071_v47 = vand.u32 4294901760, %v14977_v1  ;;  %v15065_v33 = vand.u32 4294901760, %v15064_v5 }
0x175d   :  { %v15054_v52 = vsub.f32 %v15052_v42, %v15053_v60 }
0x175e   :  { %v15083_v13 = vand.u32 4294901760, %v15082_v55  ;;  %v15072_v63 = vsub.f32 %v14977_v1, %v15071_v47  ;;  %v21246_v1 = vld [vmem:[#allocation7] sm:$0xff] }
0x175f   :  { %v15055_v7 = vand.u32 4294901760, %v15054_v52  ;;  %v21251_v52 = vld [vmem:[%s25179_s6 + $0x8] sm:$0xff] }
0x1760   :  { %v15073_v24 = vand.u32 4294901760, %v15072_v63  ;;  %v15084_v9 = vsub.f32 %v15082_v55, %v15083_v13 }
0x1761   :  { %19288 = vmatprep.mubr.f32.mxu0 %v15055_v7  ;;  %v21255_v7 = vld [vmem:[%s25179_s6 + $0x28] sm:$0xff] }
0x1762   :  { %19289 = vmatmul.mubr.f32.vlgmr.msra.gmra.mrb[30].mxu0 %v15065_v33  ;;  %v15074_v43 = vsub.f32 %v15072_v63, %v15073_v24  ;;  %v15085_v4 = vand.u32 4294901760, %v15084_v9  ;;  %v21253_v33 = vld [vmem:[%s25179_s6 + $0x18] sm:$0xff] }
0x1763   :  { %20311 = vmatpush3.bf16.msra.mxu0 %v24802_v56  ;;  %v14953_v56 = vrot.slane %v24862_v53, %v25446_v0 }
0x1764   :  { %20313 = vmatprep.subr.bf16.mxu0 %v20312_v38  ;;  %v15075_v49 = vand.u32 4294901760, %v15074_v43 }
0x1766   :  { %19291 = vmatprep.mubr.f32.mxu0 %v15075_v49 }
0x1767   :  { %20315 = vmatpush3.bf16.msra.mxu0 %v20312_v38  ;;  %v21256_v38 = vld [vmem:[%s25179_s6 + $0x38] sm:$0xff] }
0x1768   :  { %20317 = vmatprep.subr.bf16.mxu0 %v20316_v30  ;;  %19292 = vmatmul.mubr.f32.gmra.mrb[32].mxu0 %v15085_v4 }
0x1769   :  { %19302 = vmatprep.mubr.f32.mxu0 %v24824_v17 }
0x176c   :  { %19303 = vmatmul.mubr.f32.vlgmr.msra.gmra.mrb[30].mxu0 %v24820_v11 }
0x176d   :  { %20319 = vmatpush3.bf16.msra.mxu0 %v20316_v30  ;;  %19305 = vmatprep.mubr.f32.mxu0 %v15071_v47 }
0x176e   :  { %20321 = vmatprep.subr.bf16.mxu0 %v20320_v15 }
0x1770   :  { %19306 = vmatmul.mubr.f32.gmra.mrb[32].mxu0 %v24832_v26 }
0x1771   :  { %20323 = vmatpush3.bf16.msra.mxu0 %v20320_v15  ;;  %19316 = vmatprep.mubr.f32.mxu0 %v15052_v42 }
0x1772   :  { %20325 = vmatprep.subr.bf16.mxu0 %v24766_v27 }
0x1774   :  { %19317 = vmatmul.mubr.f32.vlgmr.msra.gmra.mrb[30].mxu0 %v15062_v3 }
0x1775   :  { %20327 = vmatpush3.bf16.msra.mxu0 %v24766_v27  ;;  %19319 = vmatprep.mubr.f32.mxu0 %v15072_v63  ;;  %v21254_v63 = vld [vmem:[%s25179_s6 + $0x30] sm:$0xff] }
0x1776   :  { %20329 = vmatprep.subr.bf16.mxu0 %v24790_v44 }
0x1778   :  { %19320 = vmatmul.mubr.f32.gmra.mrb[32].mxu0 %v15082_v55  ;;  %v21247_v55 = vld [vmem:[#allocation7 + $0x10] sm:$0xff] }
0x1779   :  { %20331 = vmatpush3.bf16.msra.mxu0 %v24790_v44  ;;  %19330 = vmatprep.mubr.f32.mxu0 %v15053_v60  ;;  %v21245_v60 = vld [vmem:[#allocation7 + $0x8] sm:$0xff] }
0x177a   :  { %20333 = vmatprep.subr.bf16.mxu0 %v24806_v6 }
0x177c   :  { %19331 = vmatmul.mubr.f32.vlgmr.msra.gmra.mrb[30].mxu0 %v15063_v18 }
0x177d   :  { %20335 = vmatpush3.bf16.msra.mxu0 %v24806_v6  ;;  %19333 = vmatprep.mubr.f32.mxu0 %v15073_v24 }
0x177e   :  { %20337 = vmatprep.subr.bf16.mxu0 %v20336_v40 }
0x1780   :  { %19334 = vmatmul.mubr.f32.gmra.mrb[32].mxu0 %v15083_v13  ;;  %v21252_v13 = vld [vmem:[%s25179_s6 + $0x20] sm:$0xff] }
0x1781   :  { %20339 = vmatpush3.bf16.msra.mxu0 %v20336_v40  ;;  %19344 = vmatprep.mubr.f32.mxu0 %v24824_v17 }
0x1782   :  { %20341 = vmatprep.subr.bf16.mxu0 %v24766_v27 }
0x1784   :  { %19345 = vmatmul.mubr.f32.vlgmr.msra.gmra.mrb[30].mxu0 %v24820_v11 }
0x1785   :  { %20343 = vmatpush3.bf16.msra.mxu0 %v24766_v27  ;;  %19347 = vmatprep.mubr.f32.mxu0 %v15071_v47 }
0x1786   :  { %20345 = vmatprep.subr.bf16.mxu0 %v24790_v44 }
0x1788   :  { %19348 = vmatmul.mubr.f32.gmra.mrb[32].mxu0 %v24832_v26 }
0x1789   :  { %20347 = vmatpush3.bf16.msra.mxu0 %v24790_v44  ;;  %19358 = vmatprep.mubr.f32.mxu0 %v24824_v17 }
0x178c   :  { %19359 = vmatmul.mubr.f32.vlgmr.msra.gmra.mrb[30].mxu0 %v24820_v11 }
0x178d   :  { %19361 = vmatprep.mubr.f32.mxu0 %v15071_v47  ;;  %v21250_v47 = vld [vmem:[%s25179_s6 + $0x10] sm:$0xff] }
0x1790   :  { %19362 = vmatmul.mubr.f32.gmra.mrb[32].mxu0 %v24832_v26 }
0x185f   :  { %v19360_v27 = vpop.f32.mrb[30].mxu0 }
0x1860   :  { %v20540_v6 = vadd.f32 %v19360_v27, %v14953_v56  ;;  %v15574_v32 = vpop.f32.mrb[31].mxu0 }
0x1861   :  { %v20541_v61 = vadd.f32 %v15574_v32, %v14953_v56 }
0x1862   :  { %v24867_v37 = vadd.f32 %v20540_v6, %v24485_v14 }
0x1863   :  { %v24870_v44 = vadd.f32 %v20541_v61, %v24488_v59  ;;  %v19363_v28 = vpop.f32.mrb[32].mxu0 }
0x1864   :  { %v15586_v12 = vpop.f32.mrb[33].mxu0  ;;  %v15603_v19 = vsel %vm145_vm0, %v24867_v37, 0.0  ;;  %v20542_v58 = vadd.f32 %v19363_v28, %v14953_v56 }
0x1865   :  { %v20543_v25 = vadd.f32 %v15586_v12, %v14953_v56  ;;  %15604 = vadd.xlane.f32.xlu1 %v15603_v19  ;;  %v15600_v0 = vsel %vm145_vm0, %v24870_v44, 0.0 }
0x1866   :  { %15601 = vadd.xlane.f32.xlu0 %v15600_v0  ;;  %v24880_v14 = vadd.f32 %v20542_v58, %v24498_v39  ;;  %v15655_v58 = vrot.slane %v24862_v53, %v25448_v34 }
0x1867   :  { %v24877_v48 = vadd.f32 %v20543_v25, %v24495_v31 }
0x1868   :  { %v15609_v8 = vsel %vm145_vm0, %v24880_v14, 0.0 }
0x1869   :  { %v15606_v59 = vsel %vm145_vm0, %v24877_v48, 0.0 }
0x186a   :  { %15607 = vadd.xlane.f32.xlu0 %v15606_v59 }
0x186e   :  { %15610 = vadd.xlane.f32.xlu0 %v15609_v8 }
0x18f2   :  { %v15605_v41 = vpop.xlane.xlu1 %15604 }
0x18f3   :  { %v15613_v16 = vmul.f32 0.03125, %v15605_v41  ;;  %v15602_v35 = vpop.xlane.xlu0 %15601  ;;  %v15663_v41 = vrot.slane %v24630_v57, %v25439_v36 }
0x18f4   :  { %v15612_v11 = vmul.f32 0.03125, %v15602_v35 }
0x18f5   :  { %v24887_v20 = vsub.f32 %v24867_v37, %v15613_v16 }
0x18f6   :  { %v24890_v31 = vsub.f32 %v24870_v44, %v15612_v11 }
0x18f7   :  { %v15608_v39 = vpop.xlane.xlu0 %15607  ;;  %v15621_v21 = vmul.f32 %v24887_v20, %v24887_v20 }
0x18f8   :  { %v15614_v3 = vmul.f32 0.03125, %v15608_v39  ;;  %v15620_v22 = vmul.f32 %v24890_v31, %v24890_v31 }
0x18f9   :  { %v15627_v17 = vsel %vm145_vm0, %v15621_v21, 0.0 }
0x18fa   :  { %v24898_v45 = vsub.f32 %v24877_v48, %v15614_v3  ;;  %15628 = vadd.xlane.f32.xlu1 %v15627_v17  ;;  %v15624_v46 = vsel %vm145_vm0, %v15620_v22, 0.0 }
0x18fb   :  { %15625 = vadd.xlane.f32.xlu0 %v15624_v46  ;;  %v15611_v51 = vpop.xlane.xlu0 %15610 }
0x18fc   :  { %v15615_v18 = vmul.f32 0.03125, %v15611_v51  ;;  %v15622_v29 = vmul.f32 %v24898_v45, %v24898_v45 }
0x18fe   :  { %v24904_v42 = vsub.f32 %v24880_v14, %v15615_v18  ;;  %v15630_v62 = vsel %vm145_vm0, %v15622_v29, 0.0 }
0x18ff   :  { %15631 = vadd.xlane.f32.xlu0 %v15630_v62 }
0x1900   :  { %v15623_v26 = vmul.f32 %v24904_v42, %v24904_v42 }
0x1902   :  { %v15633_v5 = vsel %vm145_vm0, %v15623_v26, 0.0 }
0x1903   :  { %15634 = vadd.xlane.f32.xlu1 %v15633_v5 }
0x1914   :  { %15678 = vrot.lane.b32.xlu1 %v21245_v60, %s21420_s2 }
0x1915   :  { %15676 = vrot.lane.b32.xlu0 %v21246_v1, %s21420_s2 }
0x1918   :  { %15680 = vrot.lane.b32.xlu1 %v21247_v55, %s21420_s2 }
0x1919   :  { %16354 = vrot.lane.b32.xlu0 %v21248_v2, %s21409_s17 }
0x191c   :  { %15682 = vrot.lane.b32.xlu1 %v21249_v23, %s21420_s2 }
0x191d   :  { %16358 = vrot.lane.b32.xlu0 %v21250_v47, %s21409_s17 }
0x1920   :  { %16356 = vrot.lane.b32.xlu1 %v21251_v52, %s21409_s17 }
0x1921   :  { %16362 = vrot.lane.b32.xlu0 %v21252_v13, %s21409_s17 }
0x1924   :  { %16360 = vrot.lane.b32.xlu1 %v21253_v33, %s21409_s17 }
0x1925   :  { %16366 = vrot.lane.b32.xlu0 %v21254_v63, %s21409_s17 }
0x1928   :  { %16364 = vrot.lane.b32.xlu1 %v21255_v7, %s21409_s17 }
0x192c   :  { %16368 = vrot.lane.b32.xlu1 %v21256_v38, %s21409_s17 }
0x1987   :  { %v15629_v24 = vpop.xlane.xlu1 %15628 }
0x1988   :  { %v15637_v9 = vmul.f32 0.03125, %v15629_v24  ;;  %v15626_v43 = vpop.xlane.xlu0 %15625 }
0x1989   :  { %v15636_v49 = vmul.f32 0.03125, %v15626_v43 }
0x198a   :  { %v15641_v4 = vadd.f32 1e-05, %v15637_v9 }
0x198b   :  { %v15640_v30 = vadd.f32 1e-05, %v15636_v49 }
0x198c   :  { %21206 = vrsqrt.f32 %v15641_v4  ;;  %v15632_v15 = vpop.xlane.xlu0 %15631 }
0x198d   :  { %21208 = vrsqrt.f32 %v15640_v30  ;;  %v15638_v40 = vmul.f32 0.03125, %v15632_v15 }
0x198f   :  { %v15642_v56 = vadd.f32 1e-05, %v15638_v40 }
0x1990   :  { %v15635_v27 = vpop.xlane.xlu1 %15634  ;;  %v15677_v6 = vpop.permute.xlu0 %15676 }
0x1991   :  { %21210 = vrsqrt.f32 %v15642_v56  ;;  %v15639_v32 = vmul.f32 0.03125, %v15635_v27  ;;  %v15701_v61 = vand.u32 4294901760, %v15677_v6 }
0x1993   :  { %v15643_v28 = vadd.f32 1e-05, %v15639_v32  ;;  %v24946_v12 = vsub.f32 %v15677_v6, %v15701_v61 }
0x1994   :  { %v15679_v19 = vpop.permute.xlu1 %15678 }
0x1995   :  { %21212 = vrsqrt.f32 %v15643_v28  ;;  %v15704_v25 = vand.u32 4294901760, %v15679_v19  ;;  %v15812_v0 = vand.u32 4294901760, %v24946_v12 }
0x1996   :  { %v21207_v59 = vpop.eup %21206 }
0x1997   :  { %v21209_v8 = vpop.eup %21208  ;;  %v15649_v16 = vmul.f32 %v21207_v59, %v24887_v20  ;;  %v24954_v35 = vsub.f32 %v15679_v19, %v15704_v25  ;;  %v24956_v11 = vpack.c.bf16 %v15704_v25, %v15701_v61  ;;  %v15813_v34 = vsub.f32 %v24946_v12, %v15812_v0 }
0x1998   :  { %v15648_v39 = vmul.f32 %v21209_v8, %v24890_v31  ;;  %v15681_v21 = vpop.permute.xlu1 %15680 }
0x1999   :  { %v15657_v53 = vmul.f32 %v15655_v58, %v15649_v16  ;;  %v15819_v3 = vand.u32 4294901760, %v24954_v35  ;;  %v15707_v22 = vand.u32 4294901760, %v15681_v21  ;;  %20349 = vmatprep.subr.bf16.mxu1 %v24956_v11  ;;  %v15814_v29 = vand.u32 4294901760, %v15813_v34 }
0x199a   :  { %20351 = vmatpush3.bf16.msra.mxu1 %v24956_v11  ;;  %v15656_v36 = vmul.f32 %v15655_v58, %v15648_v39 }
0x199b   :  { %v21211_v57 = vpop.eup %21210  ;;  %v15665_v20 = vadd.f32 %v15663_v41, %v15657_v53  ;;  %v15820_v31 = vsub.f32 %v24954_v35, %v15819_v3  ;;  %v24968_v17 = vsub.f32 %v15681_v21, %v15707_v22  ;;  %v20364_v53 = vpack.c.bf16 %v24954_v35, %v24946_v12 }
0x199c   :  { %v15650_v46 = vmul.f32 %v21211_v57, %v24898_v45  ;;  %v15683_v51 = vpop.permute.xlu1 %15682  ;;  %v15664_v18 = vadd.f32 %v15663_v41, %v15656_v36  ;;  %v20380_v57 = vpack.c.bf16 %v15819_v3, %v15812_v0  ;;  %v16355_v0 = vpop.permute.xlu0 %16354 }
0x199d   :  { %v15710_v62 = vand.u32 4294901760, %v15683_v51  ;;  %v15821_v26 = vand.u32 4294901760, %v15820_v31  ;;  %v15692_v5 = vsel %vm145_vm0, %v15665_v20, 0  ;;  %v15826_v60 = vand.u32 4294901760, %v24968_v17 }
0x199e   :  { %v15689_v1 = vsel %vm145_vm0, %v15664_v18, 0  ;;  %v24974_v55 = vand.u32 4294901760, %v15692_v5  ;;  %v15658_v2 = vmul.f32 %v15655_v58, %v15650_v46  ;;  %v16391_v3 = vand.u32 4294901760, %v16355_v0 }
0x199f   :  { %v21213_v23 = vpop.eup %21212  ;;  %v24976_v47 = vpack.c.bf16 %v15710_v62, %v15707_v22  ;;  %v24978_v52 = vsub.f32 %v15683_v51, %v15710_v62  ;;  %v24980_v45 = vand.u32 4294901760, %v15689_v1  ;;  %v20356_v33 = vpack.c.bf16 %v15821_v26, %v15814_v29 }
0x19a0   :  { %v15651_v13 = vmul.f32 %v21213_v23, %v24904_v42  ;;  %v15780_v63 = vsub.f32 %v15692_v5, %v24974_v55  ;;  %v15666_v7 = vadd.f32 %v15663_v41, %v15658_v2  ;;  %v15827_v9 = vsub.f32 %v24968_v17, %v15826_v60  ;;  %v16357_v12 = vpop.permute.xlu1 %16356  ;;  %v16359_v51 = vpop.permute.xlu0 %16358 }
0x19a1   :  { %v15833_v38 = vand.u32 4294901760, %v24978_v52  ;;  %20353 = vmatprep.subr.bf16.mxu1 %v24976_v47  ;;  %v15770_v24 = vsub.f32 %v15689_v1, %v24980_v45  ;;  %v20368_v36 = vpack.c.bf16 %v24978_v52, %v24968_v17  ;;  %v16394_v35 = vand.u32 4294901760, %v16357_v12 }
0x19a2   :  { %20355 = vmatpush3.bf16.msra.mxu1 %v24976_v47  ;;  %v15781_v43 = vand.u32 4294901760, %v15780_v63  ;;  %v15695_v49 = vsel %vm145_vm0, %v15666_v7, 0  ;;  %v15659_v42 = vmul.f32 %v15655_v58, %v15651_v13  ;;  %v15828_v32 = vand.u32 4294901760, %v15827_v9 }
0x19a3   :  { %v15834_v4 = vsub.f32 %v24978_v52, %v15833_v38  ;;  %v15771_v30 = vand.u32 4294901760, %v15770_v24  ;;  %20357 = vmatprep.subr.bf16.mxu1 %v20356_v33  ;;  %v24993_v15 = vand.u32 4294901760, %v15695_v49  ;;  %v20384_v20 = vpack.c.bf16 %v15833_v38, %v15826_v60 }
0x19a4   :  { %v15782_v40 = vsub.f32 %v15780_v63, %v15781_v43  ;;  %v15667_v56 = vadd.f32 %v15663_v41, %v15659_v42  ;;  %v25024_v31 = vpack.c.bf16 %v16394_v35, %v16391_v3  ;;  %v16505_v17 = vsub.f32 %v16355_v0, %v16391_v3  ;;  %v16361_v46 = vpop.permute.xlu1 %16360  ;;  %v16363_v2 = vpop.permute.xlu0 %16362 }
0x19a5   :  { %v15772_v27 = vsub.f32 %v15770_v24, %v15771_v30  ;;  %v15790_v6 = vsub.f32 %v15695_v49, %v24993_v15  ;;  %v15835_v61 = vand.u32 4294901760, %v15834_v4  ;;  %v16400_v18 = vand.u32 4294901760, %v16361_v46 }
0x19a6   :  { %v15698_v28 = vsel %vm145_vm0, %v15667_v56, 0  ;;  %v15783_v8 = vand.u32 4294901760, %v15782_v40  ;;  %v16397_v29 = vand.u32 4294901760, %v16359_v51  ;;  %20445 = vmatprep.subr.bf16.mxu0 %v25024_v31  ;;  %v16506_v62 = vand.u32 4294901760, %v16505_v17 }
0x19a7   :  { %v15773_v19 = vand.u32 4294901760, %v15772_v27  ;;  %v15791_v25 = vand.u32 4294901760, %v15790_v6  ;;  %v15799_v59 = vand.u32 4294901760, %v15698_v28  ;;  %v20360_v39 = vpack.c.bf16 %v15835_v61, %v15828_v32  ;;  %20447 = vmatpush3.bf16.msra.mxu0 %v25024_v31 }
0x19a8   :  { %v16526_v5 = vsub.f32 %v16361_v46, %v16400_v18  ;;  %v25030_v60 = vpack.c.bf16 %v16400_v18, %v16397_v29  ;;  %v16519_v1 = vsub.f32 %v16359_v51, %v16397_v29  ;;  %v16507_v23 = vsub.f32 %v16505_v17, %v16506_v62  ;;  %v16367_v42 = vpop.permute.xlu0 %16366  ;;  %v21257_v51 = vld [vmem:[%s25177_s4] sm:$0x7]  ;;  %s21458_s4 = smov [#allocation11]  }
0x19a9   :  { %19372 = vmatprep.mubr.f32.mxu1 %v15773_v19  ;;  %v15792_v58 = vsub.f32 %v15790_v6, %v15791_v25  ;;  %v15800_v16 = vsub.f32 %v15698_v28, %v15799_v59  ;;  %v16409_v40 = vand.u32 4294901760, %v16367_v42  ;;  %v15671_v18 = vrot.slane %v21257_v51, %v25444_v54  ;;  %s17141_s7 = sshll.u32 %s21458_s4, 4  ;;  %s17142_s7 = int_to_ptr.vmem [resolvable:$true] %s17141_s7 }
0x19aa   :  { %19373 = vmatmul.mubr.f32.vlgmr.msra.gmra.mrb[26].mxu1 %v15783_v8  ;;  %20449 = vmatprep.subr.bf16.mxu0 %v25030_v60  ;;  %v16520_v13 = vand.u32 4294901760, %v16519_v1  ;;  %v25066_v0 = vpack.c.bf16 %v16526_v5, %v16519_v1  ;;  %s21369_s16 = scalar_lea.vmem %s17142_s7, 512  ;;  %p21374_p13 = scmp.lt.s32.totalorder %s17142_s7, %s17142_s7 }
0x19ab   :  { %20359 = vmatpush3.bf16.msra.mxu1 %v20356_v33  ;;  %v15793_v21 = vand.u32 4294901760, %v15792_v58  ;;  %v15801_v34 = vand.u32 4294901760, %v15800_v16  ;;  %v16527_v33 = vand.u32 4294901760, %v16526_v5  ;;  %20451 = vmatpush3.bf16.msra.mxu0 %v25030_v60  ;;  %p21370_p12 = scmp.ne.s32.totalorder %s17142_s7, %s21369_s16  ;;  %p21375_p0 = scmp.lt.s32.totalorder %s21369_s16, %s21369_s16 }
0x19ac   :  { %20361 = vmatprep.subr.bf16.mxu1 %v20360_v39  ;;  %v16521_v4 = vsub.f32 %v16519_v1, %v16520_v13 }
0x19ad   :  { %19375 = vmatprep.mubr.f32.mxu1 %v15793_v21  ;;  %v15802_v41 = vsub.f32 %v15800_v16, %v15801_v34  ;;  %p21376_p1 = por %p21375_p0, %p21374_p13 }
0x19ae   :  { %v16522_v61 = vand.u32 4294901760, %v16521_v4 }
0x19af   :  { %20363 = vmatpush3.bf16.msra.mxu1 %v20360_v39  ;;  %v15803_v22 = vand.u32 4294901760, %v15802_v41  ;;  %p21377_p2 = pnand %p21376_p1, %p21370_p12 }
0x19b0   :  { %20365 = vmatprep.subr.bf16.mxu1 %v20364_v53 }
0x19b1   :  { %19376 = vmatmul.mubr.f32.gmra.mrb[28].mxu1 %v15803_v22 }
0x19b2   :  { %19386 = vmatprep.mubr.f32.mxu1 %v24980_v45 }
0x19b5   :  { %19387 = vmatmul.mubr.f32.vlgmr.msra.gmra.mrb[26].mxu1 %v24974_v55 }
0x19b6   :  { %20367 = vmatpush3.bf16.msra.mxu1 %v20364_v53  ;;  %19389 = vmatprep.mubr.f32.mxu1 %v24993_v15 }
0x19b7   :  { %20369 = vmatprep.subr.bf16.mxu1 %v20368_v36 }
0x19b9   :  { %19390 = vmatmul.mubr.f32.gmra.mrb[28].mxu1 %v15799_v59 }
0x19ba   :  { %20371 = vmatpush3.bf16.msra.mxu1 %v20368_v36  ;;  %19400 = vmatprep.mubr.f32.mxu1 %v15770_v24 }
0x19bb   :  { %20373 = vmatprep.subr.bf16.mxu1 %v24956_v11 }
0x19bd   :  { %19401 = vmatmul.mubr.f32.vlgmr.msra.gmra.mrb[26].mxu1 %v15780_v63  ;;  %v16508_v63 = vand.u32 4294901760, %v16507_v23 }
0x19be   :  { %20375 = vmatpush3.bf16.msra.mxu1 %v24956_v11  ;;  %19403 = vmatprep.mubr.f32.mxu1 %v15790_v6 }
0x19bf   :  { %20377 = vmatprep.subr.bf16.mxu1 %v24976_v47 }
0x19c1   :  { %19404 = vmatmul.mubr.f32.gmra.mrb[28].mxu1 %v15800_v16 }
0x19c2   :  { %20379 = vmatpush3.bf16.msra.mxu1 %v24976_v47  ;;  %19414 = vmatprep.mubr.f32.mxu1 %v15771_v30  ;;  %v16528_v30 = vsub.f32 %v16526_v5, %v16527_v33 }
0x19c3   :  { %20381 = vmatprep.subr.bf16.mxu1 %v20380_v57 }
0x19c4   :  { %v16529_v28 = vand.u32 4294901760, %v16528_v30 }
0x19c5   :  { %19415 = vmatmul.mubr.f32.vlgmr.msra.gmra.mrb[26].mxu1 %v15781_v43  ;;  %v25038_v43 = vpack.c.bf16 %v16527_v33, %v16520_v13 }
0x19c6   :  { %20383 = vmatpush3.bf16.msra.mxu1 %v20380_v57  ;;  %19417 = vmatprep.mubr.f32.mxu1 %v15791_v25  ;;  %v25052_v58 = vpack.c.bf16 %v16529_v28, %v16522_v61 }
0x19c7   :  { %20385 = vmatprep.subr.bf16.mxu1 %v20384_v20 }
0x19c9   :  { %19418 = vmatmul.mubr.f32.gmra.mrb[28].mxu1 %v15801_v34 }
0x19ca   :  { %20387 = vmatpush3.bf16.msra.mxu1 %v20384_v20  ;;  %19428 = vmatprep.mubr.f32.mxu1 %v24980_v45 }
0x19cb   :  { %20389 = vmatprep.subr.bf16.mxu1 %v24956_v11 }
0x19cd   :  { %19429 = vmatmul.mubr.f32.vlgmr.msra.gmra.mrb[26].mxu1 %v24974_v55 }
0x19ce   :  { %20391 = vmatpush3.bf16.msra.mxu1 %v24956_v11  ;;  %19431 = vmatprep.mubr.f32.mxu1 %v24993_v15  ;;  %v16512_v11 = vsub.f32 %v16357_v12, %v16394_v35 }
0x19cf   :  { %20393 = vmatprep.subr.bf16.mxu1 %v24976_v47 }
0x19d0   :  { %v16513_v26 = vand.u32 4294901760, %v16512_v11  ;;  %v25054_v21 = vpack.c.bf16 %v16512_v11, %v16505_v17 }
0x19d1   :  { %19432 = vmatmul.mubr.f32.gmra.mrb[28].mxu1 %v15799_v59 }
0x19d2   :  { %20395 = vmatpush3.bf16.msra.mxu1 %v24976_v47  ;;  %19442 = vmatprep.mubr.f32.mxu1 %v24980_v45  ;;  %v16514_v47 = vsub.f32 %v16512_v11, %v16513_v26  ;;  %v16403_v45 = vand.u32 4294901760, %v16363_v2  ;;  %v25044_v6 = vpack.c.bf16 %v16513_v26, %v16506_v62 }
0x19d3   :  { %20397 = vmatprep.subr.bf16.mxu1 %v25024_v31 }
0x19d4   :  { %v16515_v7 = vand.u32 4294901760, %v16514_v47  ;;  %v16533_v9 = vsub.f32 %v16363_v2, %v16403_v45 }
0x19d5   :  { %19443 = vmatmul.mubr.f32.vlgmr.msra.gmra.mrb[26].mxu1 %v24974_v55  ;;  %v16365_v55 = vpop.permute.xlu1 %16364 }
0x19d6   :  { %19445 = vmatprep.mubr.f32.mxu1 %v24993_v15  ;;  %20399 = vmatpush3.bf16.msra.mxu1 %v25024_v31  ;;  %v16406_v52 = vand.u32 4294901760, %v16365_v55  ;;  %v16534_v56 = vand.u32 4294901760, %v16533_v9  ;;  %v25046_v32 = vpack.c.bf16 %v16515_v7, %v16508_v63 }
0x19d7   :  { %20401 = vmatprep.subr.bf16.mxu1 %v25030_v60 }
0x19d8   :  { %v16540_v38 = vsub.f32 %v16365_v55, %v16406_v52  ;;  %v25036_v24 = vpack.c.bf16 %v16406_v52, %v16403_v45  ;;  %v16535_v16 = vsub.f32 %v16533_v9, %v16534_v56 }
0x19d9   :  { %19446 = vmatmul.mubr.f32.gmra.mrb[28].mxu1 %v15799_v59  ;;  %v16369_v49 = vpop.permute.xlu1 %16368  ;;  %v16547_v59 = vsub.f32 %v16367_v42, %v16409_v40 }
0x19da   :  { %20403 = vmatpush3.bf16.msra.mxu1 %v25030_v60  ;;  %v16412_v15 = vand.u32 4294901760, %v16369_v49  ;;  %20453 = vmatprep.subr.bf16.mxu0 %v25036_v24  ;;  %v16541_v27 = vand.u32 4294901760, %v16540_v38  ;;  %v16536_v53 = vand.u32 4294901760, %v16535_v16  ;;  %v25070_v17 = vpack.c.bf16 %v16540_v38, %v16533_v9 }
0x19db   :  { %20405 = vmatprep.subr.bf16.mxu1 %v25036_v24  ;;  %20455 = vmatpush3.bf16.msra.mxu0 %v25036_v24  ;;  %v16548_v34 = vand.u32 4294901760, %v16547_v59 }
0x19dc   :  { %v16554_v19 = vsub.f32 %v16369_v49, %v16412_v15  ;;  %v25048_v25 = vpack.c.bf16 %v16412_v15, %v16409_v40  ;;  %v25050_v8 = vpack.c.bf16 %v16541_v27, %v16534_v56  ;;  %v16542_v39 = vsub.f32 %v16540_v38, %v16541_v27 }
0x19dd   :  { %v16549_v57 = vsub.f32 %v16547_v59, %v16548_v34 }
0x19de   :  { %20407 = vmatpush3.bf16.msra.mxu1 %v25036_v24  ;;  %20457 = vmatprep.subr.bf16.mxu0 %v25048_v25  ;;  %v16555_v41 = vand.u32 4294901760, %v16554_v19  ;;  %v16543_v22 = vand.u32 4294901760, %v16542_v39  ;;  %v25072_v46 = vpack.c.bf16 %v16554_v19, %v16547_v59 }
0x19df   :  { %20409 = vmatprep.subr.bf16.mxu1 %v25048_v25  ;;  %20459 = vmatpush3.bf16.msra.mxu0 %v25048_v25  ;;  %v16550_v35 = vand.u32 4294901760, %v16549_v57 }
0x19e0   :  { %20461 = vmatprep.subr.bf16.mxu0 %v25044_v6  ;;  %v25062_v36 = vpack.c.bf16 %v16555_v41, %v16548_v34  ;;  %v16556_v20 = vsub.f32 %v16554_v19, %v16555_v41  ;;  %v25064_v12 = vpack.c.bf16 %v16543_v22, %v16536_v53 }
0x19e2   :  { %20411 = vmatpush3.bf16.msra.mxu1 %v25048_v25  ;;  %v16557_v3 = vand.u32 4294901760, %v16556_v20 }
0x19e3   :  { %20413 = vmatprep.subr.bf16.mxu1 %v25046_v32 }
0x19e4   :  { %v25068_v11 = vpack.c.bf16 %v16557_v3, %v16550_v35 }
0x1aa8   :  { %v19444_v29 = vpop.f32.mrb[26].mxu1 }
0x1aa9   :  { %v20544_v62 = vadd.f32 %v19444_v29, %v15671_v18  ;;  %v16292_v26 = vpop.f32.mrb[27].mxu1 }
0x1aaa   :  { %v20545_v55 = vadd.f32 %v16292_v26, %v15671_v18 }
0x1aab   :  { %v17189_v5 = vmul.f32 -1.442695, %v20544_v62 }
0x1aac   :  { %v17188_v1 = vmul.f32 -1.442695, %v20545_v55  ;;  %v19447_v2 = vpop.f32.mrb[28].mxu1 }
0x1aad   :  { %21214 = vpow2.f32 %v17189_v5  ;;  %v20546_v23 = vadd.f32 %v19447_v2, %v15671_v18  ;;  %v16304_v47 = vpop.f32.mrb[29].mxu1 }
0x1aae   :  { %21216 = vpow2.f32 %v17188_v1  ;;  %v20547_v52 = vadd.f32 %v16304_v47, %v15671_v18 }
0x1aaf   :  { %v17191_v45 = vmul.f32 -1.442695, %v20546_v23 }
0x1ab0   :  { %v17190_v13 = vmul.f32 -1.442695, %v20547_v52 }
0x1ab1   :  { %21218 = vpow2.f32 %v17191_v45 }
0x1ab2   :  { %21220 = vpow2.f32 %v17190_v13 }
0x1ab7   :  { %v21215_v33 = vpop.eup %21214 }
0x1ab8   :  { %v21217_v63 = vpop.eup %21216  ;;  %v16327_v7 = vadd.f32 1.0, %v21215_v33 }
0x1ab9   :  { %v16326_v38 = vadd.f32 1.0, %v21217_v63 }
0x1aba   :  { %21222 = vrcp.f32 %v16327_v7 }
0x1abb   :  { %v21219_v9 = vpop.eup %21218  ;;  %21224 = vrcp.f32 %v16326_v38 }
0x1abc   :  { %v21221_v49 = vpop.eup %21220  ;;  %v16329_v42 = vadd.f32 1.0, %v21219_v9 }
0x1abd   :  { %v16328_v4 = vadd.f32 1.0, %v21221_v49 }
0x1abe   :  { %21226 = vrcp.f32 %v16329_v42 }
0x1abf   :  { %21228 = vrcp.f32 %v16328_v4 }
0x1ac4   :  { %v21223_v30 = vpop.eup %21222 }
0x1ac5   :  { %v21225_v15 = vpop.eup %21224  ;;  %v16339_v40 = vmul.f32 %v21223_v30, %v20544_v62 }
0x1ac6   :  { %v16338_v56 = vmul.f32 %v21225_v15, %v20545_v55 }
0x1ac7   :  { %v16382_v27 = vsel %vm877_vm1, %v16339_v40, 0 }
0x1ac8   :  { %v21227_v61 = vpop.eup %21226  ;;  %v25079_v28 = vand.u32 4294901760, %v16382_v27  ;;  %v16379_v19 = vsel %vm877_vm1, %v16338_v56, 0 }
0x1ac9   :  { %v21229_v59 = vpop.eup %21228  ;;  %v16463_v16 = vand.u32 4294901760, %v16379_v19  ;;  %v16341_v39 = vmul.f32 %v21227_v61, %v20546_v23 }
0x1aca   :  { %v25083_v34 = vsub.f32 %v16382_v27, %v25079_v28  ;;  %v16340_v41 = vmul.f32 %v21229_v59, %v20547_v52 }
0x1acb   :  { %v16464_v53 = vsub.f32 %v16379_v19, %v16463_v16  ;;  %v16388_v22 = vsel %vm877_vm1, %v16341_v39, 0 }
0x1acc   :  { %v16475_v57 = vand.u32 4294901760, %v25083_v34  ;;  %v25087_v20 = vand.u32 4294901760, %v16388_v22  ;;  %v16385_v35 = vsel %vm877_vm1, %v16340_v41, 0 }
0x1acd   :  { %v16483_v3 = vand.u32 4294901760, %v16385_v35  ;;  %v16465_v51 = vand.u32 4294901760, %v16464_v53 }
0x1ace   :  { %v16476_v18 = vsub.f32 %v25083_v34, %v16475_v57  ;;  %v25092_v29 = vsub.f32 %v16388_v22, %v25087_v20 }
0x1acf   :  { %v16484_v62 = vsub.f32 %v16385_v35, %v16483_v3  ;;  %19530 = vmatprep.mubr.f32.mxu0 %v16465_v51  ;;  %v16466_v26 = vsub.f32 %v16464_v53, %v16465_v51 }
0x1ad0   :  { %19531 = vmatmul.mubr.f32.vlgmr.msra.gmra.mrb[34].mxu0 %v16475_v57  ;;  %v16495_v55 = vand.u32 4294901760, %v25092_v29  ;;  %v16477_v2 = vand.u32 4294901760, %v16476_v18 }
0x1ad1   :  { %20463 = vmatpush3.bf16.msra.mxu0 %v25044_v6  ;;  %v16467_v5 = vand.u32 4294901760, %v16466_v26  ;;  %v16485_v1 = vand.u32 4294901760, %v16484_v62 }
0x1ad2   :  { %20465 = vmatprep.subr.bf16.mxu0 %v25038_v43  ;;  %v16496_v23 = vsub.f32 %v25092_v29, %v16495_v55 }
0x1ad3   :  { %19464 = vmatprep.mubr.f32.mxu1 %v16467_v5  ;;  %19533 = vmatprep.mubr.f32.mxu0 %v16485_v1  ;;  %v16486_v47 = vsub.f32 %v16484_v62, %v16485_v1 }
0x1ad4   :  { %19465 = vmatmul.mubr.f32.vlgmr.msra.gmra.mrb[30].mxu1 %v16477_v2  ;;  %19534 = vmatmul.mubr.f32.gmra.mrb[36].mxu0 %v16495_v55  ;;  %v16497_v6 = vand.u32 4294901760, %v16496_v23 }
0x1ad5   :  { %20415 = vmatpush3.bf16.msra.mxu1 %v25046_v32  ;;  %20467 = vmatpush3.bf16.msra.mxu0 %v25038_v43  ;;  %v16487_v52 = vand.u32 4294901760, %v16486_v47 }
0x1ad6   :  { %20417 = vmatprep.subr.bf16.mxu1 %v25052_v58  ;;  %20469 = vmatprep.subr.bf16.mxu0 %v25050_v8 }
0x1ad7   :  { %19552 = vmatprep.mubr.f32.mxu0 %v16463_v16  ;;  %19467 = vmatprep.mubr.f32.mxu1 %v16487_v52 }
0x1ad8   :  { %19468 = vmatmul.mubr.f32.gmra.mrb[32].mxu1 %v16497_v6 }
0x1ad9   :  { %20419 = vmatpush3.bf16.msra.mxu1 %v25052_v58  ;;  %20471 = vmatpush3.bf16.msra.mxu0 %v25050_v8 }
0x1ada   :  { %20421 = vmatprep.subr.bf16.mxu1 %v25064_v12  ;;  %19486 = vmatprep.mubr.f32.mxu1 %v16463_v16 }
0x1adb   :  { %20473 = vmatprep.subr.bf16.mxu0 %v25062_v36 }
0x1add   :  { %20423 = vmatpush3.bf16.msra.mxu1 %v25064_v12  ;;  %20475 = vmatpush3.bf16.msra.mxu0 %v25062_v36 }
0x1ade   :  { %20425 = vmatprep.subr.bf16.mxu1 %v25068_v11  ;;  %20477 = vmatprep.subr.bf16.mxu0 %v25024_v31 }
0x1ae0   :  { %19553 = vmatmul.mubr.f32.vlgmr.msra.gmra.mrb[34].mxu0 %v25079_v28 }
0x1ae1   :  { %20427 = vmatpush3.bf16.msra.mxu1 %v25068_v11  ;;  %19555 = vmatprep.mubr.f32.mxu0 %v16483_v3 }
0x1ae2   :  { %20479 = vmatpush3.bf16.msra.mxu0 %v25024_v31  ;;  %20429 = vmatprep.subr.bf16.mxu1 %v25054_v21 }
0x1ae3   :  { %20481 = vmatprep.subr.bf16.mxu0 %v25030_v60 }
0x1ae4   :  { %19487 = vmatmul.mubr.f32.vlgmr.msra.gmra.mrb[30].mxu1 %v25079_v28  ;;  %19556 = vmatmul.mubr.f32.gmra.mrb[36].mxu0 %v25087_v20 }
0x1ae5   :  { %19489 = vmatprep.mubr.f32.mxu1 %v16483_v3  ;;  %20431 = vmatpush3.bf16.msra.mxu1 %v25054_v21 }
0x1ae6   :  { %20483 = vmatpush3.bf16.msra.mxu0 %v25030_v60  ;;  %19574 = vmatprep.mubr.f32.mxu0 %v16463_v16  ;;  %v25134_v60 = vld [vmem:[#allocation5 + $0x10] sm:$0xff] }
0x1ae7   :  { %20433 = vmatprep.subr.bf16.mxu1 %v25066_v0  ;;  %20485 = vmatprep.subr.bf16.mxu0 %v25036_v24 }
0x1ae8   :  { %19490 = vmatmul.mubr.f32.gmra.mrb[32].mxu1 %v25087_v20 }
0x1ae9   :  { %20435 = vmatpush3.bf16.msra.mxu1 %v25066_v0  ;;  %19508 = vmatprep.mubr.f32.mxu1 %v16464_v53 }
0x1aea   :  { %20487 = vmatpush3.bf16.msra.mxu0 %v25036_v24  ;;  %20437 = vmatprep.subr.bf16.mxu1 %v25070_v17  ;;  %v16345_v24 = vrot.slane %v25134_v60, %v25444_v54 }
0x1aeb   :  { %20489 = vmatprep.subr.bf16.mxu0 %v25048_v25 }
0x1aed   :  { %20439 = vmatpush3.bf16.msra.mxu1 %v25070_v17 }
0x1aee   :  { %20491 = vmatpush3.bf16.msra.mxu0 %v25048_v25  ;;  %20441 = vmatprep.subr.bf16.mxu1 %v25072_v46 }
0x1af1   :  { %19575 = vmatmul.mubr.f32.vlgmr.msra.gmra.mrb[34].mxu0 %v25079_v28  ;;  %20443 = vmatpush3.bf16.msra.mxu1 %v25072_v46 }
0x1af2   :  { %19577 = vmatprep.mubr.f32.mxu0 %v16483_v3 }
0x1af4   :  { %19509 = vmatmul.mubr.f32.vlgmr.msra.gmra.mrb[30].mxu1 %v25083_v34 }
0x1af5   :  { %19578 = vmatmul.mubr.f32.gmra.mrb[36].mxu0 %v25087_v20  ;;  %19511 = vmatprep.mubr.f32.mxu1 %v16484_v62 }
0x1af8   :  { %19512 = vmatmul.mubr.f32.gmra.mrb[32].mxu1 %v25092_v29 }
0x1bc4   :  { %v19576_v31 = vpop.f32.mrb[34].mxu0 }
0x1bc5   :  { %v17034_v43 = vpop.f32.mrb[35].mxu0 }
0x1bc7   :  { %v19510_v32 = vpop.f32.mrb[30].mxu1 }
0x1bc8   :  { %v20548_v25 = vadd.f32 %v19510_v32, %v16345_v24  ;;  %v19579_v8 = vpop.f32.mrb[36].mxu0  ;;  %v16716_v58 = vpop.f32.mrb[31].mxu1 }
0x1bc9   :  { %v20550_v21 = vadd.f32 %v16716_v58, %v16345_v24  ;;  %v17046_v36 = vpop.f32.mrb[37].mxu0 }
0x1bca   :  { %v20549_v12 = vadd.f32 %v20548_v25, %v19576_v31  ;;  %v17119_v31 = vrot.slane %v25134_v60, %v25445_v50  ;;  %v17127_v25 = vrot.slane %v25134_v60, %v25450_v10 }
0x1bcb   :  { %v20551_v0 = vadd.f32 %v20550_v21, %v17034_v43  ;;  %v19513_v11 = vpop.f32.mrb[32].mxu1 }
0x1bcc   :  { %v17057_v17 = vmul.f32 0.5, %v20549_v12  ;;  %v20552_v46 = vadd.f32 %v19513_v11, %v16345_v24  ;;  %v16730_v45 = vpop.f32.mrb[33].mxu1 }
0x1bcd   :  { %v17056_v13 = vmul.f32 0.5, %v20551_v0  ;;  %v20554_v33 = vadd.f32 %v16730_v45, %v16345_v24 }
0x1bce   :  { %v20553_v63 = vadd.f32 %v20552_v46, %v19579_v8  ;;  %v17061_v7 = vadd.f32 %v17057_v17, %v24867_v37 }
0x1bcf   :  { %v20555_v38 = vadd.f32 %v20554_v33, %v17046_v36  ;;  %v17060_v54 = vadd.f32 %v17056_v13, %v24870_v44 }
0x1bd0   :  { %v17067_v9 = vsel %vm145_vm0, %v17061_v7, 0.0  ;;  %v17059_v49 = vmul.f32 0.5, %v20553_v63 }
0x1bd1   :  { %v17058_v42 = vmul.f32 0.5, %v20555_v38  ;;  %17068 = vadd.xlane.f32.xlu1 %v17067_v9  ;;  %v17064_v4 = vsel %vm145_vm0, %v17060_v54, 0.0 }
0x1bd2   :  { %17065 = vadd.xlane.f32.xlu0 %v17064_v4  ;;  %v17063_v40 = vadd.f32 %v17059_v49, %v24880_v14 }
0x1bd3   :  { %v17062_v30 = vadd.f32 %v17058_v42, %v24877_v48 }
0x1bd4   :  { %v17073_v37 = vsel %vm145_vm0, %v17063_v40, 0.0 }
0x1bd5   :  { %v17070_v15 = vsel %vm145_vm0, %v17062_v30, 0.0 }
0x1bd6   :  { %17071 = vadd.xlane.f32.xlu0 %v17070_v15 }
0x1bda   :  { %17074 = vadd.xlane.f32.xlu0 %v17073_v37 }
0x1c5e   :  { %v17069_v56 = vpop.xlane.xlu1 %17068 }
0x1c5f   :  { %v17077_v44 = vmul.f32 0.03125, %v17069_v56  ;;  %v17066_v27 = vpop.xlane.xlu0 %17065 }
0x1c60   :  { %v17076_v61 = vmul.f32 0.03125, %v17066_v27 }
0x1c61   :  { %v17081_v28 = vsub.f32 %v17061_v7, %v17077_v44 }
0x1c62   :  { %v17080_v19 = vsub.f32 %v17060_v54, %v17076_v61 }
0x1c63   :  { %v17072_v59 = vpop.xlane.xlu0 %17071  ;;  %v17085_v16 = vmul.f32 %v17081_v28, %v17081_v28 }
0x1c64   :  { %v17078_v39 = vmul.f32 0.03125, %v17072_v59  ;;  %v17084_v34 = vmul.f32 %v17080_v19, %v17080_v19 }
0x1c65   :  { %v17091_v48 = vsel %vm145_vm0, %v17085_v16, 0.0 }
0x1c66   :  { %v17082_v41 = vsub.f32 %v17062_v30, %v17078_v39  ;;  %17092 = vadd.xlane.f32.xlu1 %v17091_v48  ;;  %v17088_v14 = vsel %vm145_vm0, %v17084_v34, 0.0 }
0x1c67   :  { %17089 = vadd.xlane.f32.xlu0 %v17088_v14  ;;  %v17075_v53 = vpop.xlane.xlu0 %17074 }
0x1c68   :  { %v17079_v22 = vmul.f32 0.03125, %v17075_v53  ;;  %v17086_v57 = vmul.f32 %v17082_v41, %v17082_v41 }
0x1c6a   :  { %v17083_v20 = vsub.f32 %v17063_v40, %v17079_v22  ;;  %v17094_v35 = vsel %vm145_vm0, %v17086_v57, 0.0 }
0x1c6b   :  { %17095 = vadd.xlane.f32.xlu0 %v17094_v35 }
0x1c6c   :  { %v17087_v3 = vmul.f32 %v17083_v20, %v17083_v20 }
0x1c6e   :  { %v17097_v51 = vsel %vm145_vm0, %v17087_v3, 0.0 }
0x1c6f   :  { %17098 = vadd.xlane.f32.xlu1 %v17097_v51 }
0x1cf3   :  { %v17093_v18 = vpop.xlane.xlu1 %17092 }
0x1cf4   :  { %v17101_v29 = vmul.f32 0.03125, %v17093_v18  ;;  %v17090_v62 = vpop.xlane.xlu0 %17089 }
0x1cf5   :  { %v17100_v26 = vmul.f32 0.03125, %v17090_v62 }
0x1cf6   :  { %v17105_v55 = vadd.f32 1e-05, %v17101_v29 }
0x1cf7   :  { %v17104_v5 = vadd.f32 1e-05, %v17100_v26 }
0x1cf8   :  { %21230 = vrsqrt.f32 %v17105_v55  ;;  %v17096_v1 = vpop.xlane.xlu0 %17095 }
0x1cf9   :  { %21232 = vrsqrt.f32 %v17104_v5  ;;  %v17102_v2 = vmul.f32 0.03125, %v17096_v1 }
0x1cfb   :  { %v17106_v23 = vadd.f32 1e-05, %v17102_v2 }
0x1cfc   :  { %v17099_v47 = vpop.xlane.xlu1 %17098 }
0x1cfd   :  { %21234 = vrsqrt.f32 %v17106_v23  ;;  %v17103_v52 = vmul.f32 0.03125, %v17099_v47 }
0x1cff   :  { %v17107_v6 = vadd.f32 1e-05, %v17103_v52 }
0x1d01   :  { %21236 = vrsqrt.f32 %v17107_v6 }
0x1d02   :  { %v21231_v24 = vpop.eup %21230 }
0x1d03   :  { %v21233_v43 = vpop.eup %21232  ;;  %v17113_v32 = vmul.f32 %v21231_v24, %v17081_v28 }
0x1d04   :  { %v17112_v8 = vmul.f32 %v21233_v43, %v17080_v19 }
0x1d05   :  { %v17121_v58 = vmul.f32 %v17119_v31, %v17113_v32 }
0x1d06   :  { %v17120_v21 = vmul.f32 %v17119_v31, %v17112_v8 }
0x1d07   :  { %v21235_v36 = vpop.eup %21234  ;;  %v17129_v12 = vadd.f32 %v17127_v25, %v17121_v58 }
0x1d08   :  { %v17114_v0 = vmul.f32 %v21235_v36, %v17082_v41  ;;  %v17128_v11 = vadd.f32 %v17127_v25, %v17120_v21 }
0x1d09   :  { %17133 = vst.msk [vmem:[#allocation11 + $0x8] sm:$0xff] %vm145_vm0, %v17129_v12 }
0x1d0a   :  { %v17122_v17 = vmul.f32 %v17119_v31, %v17114_v0  ;;  %17132 = vst.msk [vmem:[#allocation11] sm:$0xff] %vm145_vm0, %v17128_v11 }
0x1d0b   :  { %v21237_v50 = vpop.eup %21236 }
0x1d0c   :  { %v17115_v46 = vmul.f32 %v21237_v50, %v17083_v20  ;;  %v17130_v45 = vadd.f32 %v17127_v25, %v17122_v17 }
0x1d0e   :  { %v17123_v13 = vmul.f32 %v17119_v31, %v17115_v46  ;;  %17134 = vst.msk [vmem:[#allocation11 + $0x10] sm:$0xff] %vm145_vm0, %v17130_v45 }
0x1d10   :  { %v17131_v10 = vadd.f32 %v17127_v25, %v17123_v13 }
0x1d12   :  { %17135 = vst.msk [vmem:[#allocation11 + $0x18] sm:$0xff] %vm145_vm0, %v17131_v10 }
0x1d13   :  { %21380 = shalt.err (!%p21377_p2)
}
0x1d14   :  { %s21381_s8 = scalar_lea.hbm %s25183_s10, 512 }
0x1d15   :  { %p21382_p3 = scmp.ne.s32.totalorder %s25183_s10, %s21381_s8  ;;  %p21385_p4 = scmp.lt.u32.totalorder %s21381_s8, %s25183_s10 }
0x1d17   :  { %p21387_p5 = pnand %p21385_p4, %p21382_p3 }
0x1d19   :  { %21390 = shalt.err (!%p21387_p5)
}
0x1d1a   :  { %17147 = dma.vmem_to_hbm [thread:$0]  %s17142_s7, 512, %s25183_s10, [#allocation4], %s21401_s25, %s21401_s25, %s21402_s26  }
0x1d1b   :  { %21397 = dma.done.wait [#allocation4], 512  }
0x1d1c   :  { %21398 = vsyncadd [#allocation4], 4294966784 }
0x1d1d   :  { %17151 = vsyncpa [#allocation3], 1 }
0x1d1e   :  { %17152 = vsyncpa [#allocation6], 1 }
0x1d1f   :  { %17153 = vsyncpa [#allocation9], 1 }
0x1d20   :  { %17154 = vsyncpa [#allocation4], 1 }

</bundles_post_ra>
